<compile_context>
chip_gen: v7x
topology: tpu7x:2x2x1
jax: 0.10.0
libtpu: 0.0.40
codegen_flags: <defaults>
</compile_context>

<pallas_src>
import jax
import jax.numpy as jnp
from jax import lax
from jax.experimental import pallas as pl
from jax.experimental.pallas import tpu as pltpu

KERNEL = 5
STRIDE = 2
MXU_DTYPE = jnp.bfloat16


def _conv_out(size, k=KERNEL, s=STRIDE):
    return (size - (k - 1) - 1) // s + 1


# ------------------------------- Pallas kernel ------------------------------- #

def _conv_block(x2d, t_ref, w2_ref, be_ref):
    """One stride-2 VALID conv + bias + ReLU on a single image.

    x2d    : (H_in, W_in*C_in)            bf16 value (NHWC scanlines, (w,c) on lanes)
    t_ref  : (KH, H_out, H_in)            bf16 0/1 row-selection matrices
    w2_ref : (KH, W_in*C_in, W_out*C_out) bf16 width-Toeplitz expanded weights
    be_ref : (1, W_out*C_out)             f32 lane-tiled bias
    returns (H_out, W_out*C_out) f32, post-ReLU (same layout convention as x2d).
    """
    acc = None
    for i in range(t_ref.shape[0]):
        # Row downsample (gather via 0/1 matmul -> exact, no strided loads needed).
        sel = jnp.dot(t_ref[i], x2d,
                      preferred_element_type=jnp.float32).astype(MXU_DTYPE)
        # Column taps + channel mixing folded into the Toeplitz weight.
        part = jnp.dot(sel, w2_ref[i], preferred_element_type=jnp.float32)
        acc = part if acc is None else acc + part
    return jnp.maximum(acc + be_ref[...], 0.0)


def _pixel_reacher_kernel(x_ref, t1_ref, w1_ref, b1_ref,
                          t2_ref, w2_ref, b2_ref,
                          t3_ref, w3_ref, b3_ref,
                          hw_ref, hb_ref, o_ref):
    batch = x_ref.shape[0]
    kh3, h3, _ = t3_ref.shape
    for b in range(batch):                                # B is tiny -> static unroll
        x2d = x_ref[b]                                    # (H, W*C) bf16
        a1 = _conv_block(x2d, t1_ref, w1_ref, b1_ref).astype(MXU_DTYPE)
        a2 = _conv_block(a1, t2_ref, w2_ref, b2_ref).astype(MXU_DTYPE)

        # conv3 (only h3 = 2 output rows) computed per output row and fused with the
        # linear head, so the result never needs a sublane->lane flatten.
        out = hb_ref[...]                                 # (1, 2) f32
        for h in range(h3):
            acc = None
            for i in range(kh3):
                sel = jnp.dot(t3_ref[i, h:h + 1, :], a2,
                              preferred_element_type=jnp.float32).astype(MXU_DTYPE)
                part = jnp.dot(sel, w3_ref[i], preferred_element_type=jnp.float32)
                acc = part if acc is None else acc + part
            row = jnp.maximum(acc + b3_ref[...], 0.0).astype(MXU_DTYPE)   # (1, Wo3*32)
            out = out + jnp.dot(row, hw_ref[h], preferred_element_type=jnp.float32)
        o_ref[b:b + 1, :] = out.astype(o_ref.dtype)


# --------------------------------- wrapper ----------------------------------- #

def pixel_reacher_forward(x_nchw, kp):
    """x_nchw: (B, C, H, W) f32; kp: kernel-ready params from prepare_kernel_params."""
    B, C, H, W = x_nchw.shape
    # Only per-call layout op: NCHW -> NHWC scanlines (B, H, W*C), bf16 for the MXU.
    x = jnp.transpose(x_nchw, (0, 2, 3, 1)).reshape(B, H, W * C).astype(MXU_DTYPE)

    operands = (x, kp["t1"], kp["w1"], kp["b1"],
                kp["t2"], kp["w2"], kp["b2"],
                kp["t3"], kp["w3"], kp["b3"],
                kp["hw"], kp["hb"])

    flops = 0
    for t, w in ((kp["t1"], kp["w1"]), (kp["t2"], kp["w2"]), (kp["t3"], kp["w3"])):
        kh, ho, hi = t.shape
        _, kdim, ndim = w.shape
        flops += B * kh * 2 * (ho * hi * kdim + ho * kdim * ndim)
    flops += B * kp["hw"].shape[0] * 2 * kp["hw"].shape[1] * kp["hw"].shape[2]
    bytes_accessed = sum(int(a.size) * a.dtype.itemsize for a in operands) + B * 2 * 4

    return pl.pallas_call(
        _pixel_reacher_kernel,
        out_shape=jax.ShapeDtypeStruct((B, 2), jnp.float32),
        in_specs=[pl.BlockSpec(memory_space=pltpu.MemorySpace.VMEM)] * len(operands),
        out_specs=pl.BlockSpec(memory_space=pltpu.MemorySpace.VMEM),
        cost_estimate=pl.CostEstimate(flops=int(flops), transcendentals=0,
                                      bytes_accessed=int(bytes_accessed)),
        # Gridless on purpose: whole net is < 1 MB of VMEM and a few dozen tiny matmuls.
        # If B grows, add a ("parallel",) grid over batch to use v7x's second TensorCore.
    )(*operands)


# -------------------- one-time parameter relayout (host side) ---------------- #

def _row_selection(h_in, dtype):
    h_out = _conv_out(h_in)
    rows = STRIDE * jnp.arange(h_out)[None, :] + jnp.arange(KERNEL)[:, None]   # (KH, Ho)
    t = (jnp.arange(h_in)[None, None, :] == rows[:, :, None]).astype(dtype)    # (KH, Ho, H_in)
    return t


def _toeplitz_weight(w_oihw, w_in, dtype):
    """(Cout,Cin,KH,KW) torch conv weight -> (KH, W_in*Cin, W_out*Cout) width-Toeplitz."""
    cout, cin, kh, kw = w_oihw.shape
    w_out = _conv_out(w_in)
    w2 = jnp.zeros((kh, w_in * cin, w_out * cout), jnp.float32)
    for j in range(kw):
        blk = jnp.transpose(w_oihw[:, :, :, j], (2, 1, 0))      # (KH, Cin, Cout)
        for wo in range(w_out):
            wi = STRIDE * wo + j
            w2 = w2.at[:, wi * cin:(wi + 1) * cin,
                       wo * cout:(wo + 1) * cout].set(blk)
    return w2.astype(dtype)


def _tiled_bias(bias, w_out):
    return jnp.tile(bias.astype(jnp.float32), (w_out,)).reshape(1, -1)


def prepare_kernel_params(params, h, w):
    """One-time relayout of torch-style params into kernel-ready constants."""
    h_a, w_a = h, w                          # conv1 input
    h_b, w_b = _conv_out(h_a), _conv_out(w_a)  # conv1 out / conv2 in
    h_c, w_c = _conv_out(h_b), _conv_out(w_b)  # conv2 out / conv3 in
    h_d, w_d = _conv_out(h_c), _conv_out(w_c)  # conv3 out

    # Head weight (2, 32*h_d*w_d) with torch (C,H,W) flatten -> per-output-row (w,c)
    # matrices matching the kernel's NHWC scanline layout.
    hw = params["head_w"].reshape(2, 32, h_d, w_d)            # (a, c, h, w)
    hw = jnp.transpose(hw, (2, 3, 1, 0)).reshape(h_d, w_d * 32, 2)

    return {
        "t1": _row_selection(h_a, MXU_DTYPE),
        "w1": _toeplitz_weight(params["conv1_w"], w_a, MXU_DTYPE),
        "b1": _tiled_bias(params["conv1_b"], w_b),
        "t2": _row_selection(h_b, MXU_DTYPE),
        "w2": _toeplitz_weight(params["conv2_w"], w_b, MXU_DTYPE),
        "b2": _tiled_bias(params["conv2_b"], w_c),
        "t3": _row_selection(h_c, MXU_DTYPE),
        "w3": _toeplitz_weight(params["conv3_w"], w_c, MXU_DTYPE),
        "b3": _tiled_bias(params["conv3_b"], w_d),
        "hw": hw.astype(MXU_DTYPE),
        "hb": params["head_b"].astype(jnp.float32).reshape(1, 2),
    }


# ------------------------- deterministic parameters -------------------------- #

def init_params(key, h, w, n_frames):
    convw = _conv_out(_conv_out(_conv_out(w)))
    convh = _conv_out(_conv_out(_conv_out(h)))
    linear_input = convw * convh * 32

    ks = jax.random.split(key, 8)
    scale = 0.05
    return {
        "conv1_w": scale * jax.random.normal(ks[0], (16, n_frames, 5, 5), jnp.float32),
        "conv1_b": scale * jax.random.normal(ks[1], (16,), jnp.float32),
        "conv2_w": scale * jax.random.normal(ks[2], (32, 16, 5, 5), jnp.float32),
        "conv2_b": scale * jax.random.normal(ks[3], (32,), jnp.float32),
        "conv3_w": scale * jax.random.normal(ks[4], (32, 32, 5, 5), jnp.float32),
        "conv3_b": scale * jax.random.normal(ks[5], (32,), jnp.float32),
        "head_w": scale * jax.random.normal(ks[6], (2, linear_input), jnp.float32),
        "head_b": scale * jax.random.normal(ks[7], (2,), jnp.float32),
    }


# ----------------------------- pure-JAX reference ----------------------------- #

def reference_forward(x_nchw, params):
    def conv_relu(x, w, b):
        y = lax.conv_general_dilated(
            x, w, window_strides=(2, 2), padding="VALID",
            dimension_numbers=("NCHW", "OIHW", "NCHW"))
        return jnp.maximum(y + b[None, :, None, None], 0.0)

    x = conv_relu(x_nchw, params["conv1_w"], params["conv1_b"])
    x = conv_relu(x, params["conv2_w"], params["conv2_b"])
    x = conv_relu(x, params["conv3_w"], params["conv3_b"])
    flat = x.reshape(x.shape[0], -1)
    return flat @ params["head_w"].T + params["head_b"]


# ----------------------------------- main ------------------------------------ #

if __name__ == "__main__":
    # Small-but-valid shapes: 37x37 -> 17 -> 7 -> 2 spatially (k=5, stride=2).
    B, N_FRAMES, H, W = 2, 1, 37, 37

    key = jax.random.PRNGKey(0)
    kx, kparam = jax.random.split(key)
    x = jax.random.normal(kx, (B, N_FRAMES, H, W), jnp.float32)
    params = init_params(kparam, H, W, N_FRAMES)
    kernel_params = prepare_kernel_params(params, H, W)   # one-time weight relayout

    fwd = jax.jit(pixel_reacher_forward)
    out = jax.block_until_ready(fwd(x, kernel_params))
    assert out.shape == (B, 2), out.shape

    ref = jax.block_until_ready(reference_forward(x, params))
    max_err = float(jnp.max(jnp.abs(out - ref)))
    # bf16 MXU operands with f32 accumulation -> ~1e-2-level agreement expected.
    assert jnp.allclose(out, ref, atol=3e-2, rtol=3e-2), max_err

    print("KERNEL_OK")
</pallas_src>

<mosaic_0001>
module attributes {stable_mosaic.version = 11 : i64} {
  func.func @_pixel_reacher_kernel(%arg0: memref<2x37x37xbf16, #tpu.memory_space<vmem>>, %arg1: memref<5x17x37xbf16, #tpu.memory_space<vmem>>, %arg2: memref<5x37x272xbf16, #tpu.memory_space<vmem>>, %arg3: memref<1x272xf32, #tpu.memory_space<vmem>>, %arg4: memref<5x7x17xbf16, #tpu.memory_space<vmem>>, %arg5: memref<5x272x224xbf16, #tpu.memory_space<vmem>>, %arg6: memref<1x224xf32, #tpu.memory_space<vmem>>, %arg7: memref<5x2x7xbf16, #tpu.memory_space<vmem>>, %arg8: memref<5x224x64xbf16, #tpu.memory_space<vmem>>, %arg9: memref<1x64xf32, #tpu.memory_space<vmem>>, %arg10: memref<2x64x2xbf16, #tpu.memory_space<vmem>>, %arg11: memref<1x2xf32, #tpu.memory_space<vmem>>, %arg12: memref<2x2xf32, #tpu.memory_space<vmem>>) attributes {dimension_semantics = [], scalar_prefetch = 0 : i64, scratch_operands = 0 : i64, tpu.core_type = #tpu.core_type<tc>} {
    %c0 = arith.constant 0 : index
    %c0_0 = arith.constant 0 : index
    %c0_1 = arith.constant 0 : index
    %0 = vector.load %arg0[%c0, %c0_0, %c0_1] : memref<2x37x37xbf16, #tpu.memory_space<vmem>>, vector<1x37x37xbf16>
    %1 = vector.shape_cast %0 : vector<1x37x37xbf16> to vector<37x37xbf16>
    %c0_2 = arith.constant 0 : index
    %c0_3 = arith.constant 0 : index
    %c0_4 = arith.constant 0 : index
    %2 = vector.load %arg1[%c0_2, %c0_3, %c0_4] : memref<5x17x37xbf16, #tpu.memory_space<vmem>>, vector<1x17x37xbf16>
    %3 = vector.shape_cast %2 : vector<1x17x37xbf16> to vector<17x37xbf16>
    %cst = arith.constant dense<0.000000e+00> : vector<17x37xf32>
    %4 = tpu.matmul %3, %1, %cst {dimension_numbers = #tpu.dot_dimension_numbers<[1], [0], [0], [1], [0, 0, 1, 1], [], []>} : vector<17x37xbf16>, vector<37x37xbf16>, vector<17x37xf32> -> vector<17x37xf32>
    %5 = arith.truncf %4 : vector<17x37xf32> to vector<17x37xbf16>
    %c0_5 = arith.constant 0 : index
    %c0_6 = arith.constant 0 : index
    %c0_7 = arith.constant 0 : index
    %6 = vector.load %arg2[%c0_5, %c0_6, %c0_7] : memref<5x37x272xbf16, #tpu.memory_space<vmem>>, vector<1x37x272xbf16>
    %7 = vector.shape_cast %6 : vector<1x37x272xbf16> to vector<37x272xbf16>
    %cst_8 = arith.constant dense<0.000000e+00> : vector<17x272xf32>
    %8 = tpu.matmul %5, %7, %cst_8 {dimension_numbers = #tpu.dot_dimension_numbers<[1], [0], [0], [1], [0, 0, 1, 1], [], []>} : vector<17x37xbf16>, vector<37x272xbf16>, vector<17x272xf32> -> vector<17x272xf32>
    %c1 = arith.constant 1 : index
    %c0_9 = arith.constant 0 : index
    %c0_10 = arith.constant 0 : index
    %9 = vector.load %arg1[%c1, %c0_9, %c0_10] : memref<5x17x37xbf16, #tpu.memory_space<vmem>>, vector<1x17x37xbf16>
    %10 = vector.shape_cast %9 : vector<1x17x37xbf16> to vector<17x37xbf16>
    %cst_11 = arith.constant dense<0.000000e+00> : vector<17x37xf32>
    %11 = tpu.matmul %10, %1, %cst_11 {dimension_numbers = #tpu.dot_dimension_numbers<[1], [0], [0], [1], [0, 0, 1, 1], [], []>} : vector<17x37xbf16>, vector<37x37xbf16>, vector<17x37xf32> -> vector<17x37xf32>
    %12 = arith.truncf %11 : vector<17x37xf32> to vector<17x37xbf16>
    %c1_12 = arith.constant 1 : index
    %c0_13 = arith.constant 0 : index
    %c0_14 = arith.constant 0 : index
    %13 = vector.load %arg2[%c1_12, %c0_13, %c0_14] : memref<5x37x272xbf16, #tpu.memory_space<vmem>>, vector<1x37x272xbf16>
    %14 = vector.shape_cast %13 : vector<1x37x272xbf16> to vector<37x272xbf16>
    %cst_15 = arith.constant dense<0.000000e+00> : vector<17x272xf32>
    %15 = tpu.matmul %12, %14, %cst_15 {dimension_numbers = #tpu.dot_dimension_numbers<[1], [0], [0], [1], [0, 0, 1, 1], [], []>} : vector<17x37xbf16>, vector<37x272xbf16>, vector<17x272xf32> -> vector<17x272xf32>
    %16 = arith.addf %8, %15 : vector<17x272xf32>
    %c2 = arith.constant 2 : index
    %c0_16 = arith.constant 0 : index
    %c0_17 = arith.constant 0 : index
    %17 = vector.load %arg1[%c2, %c0_16, %c0_17] : memref<5x17x37xbf16, #tpu.memory_space<vmem>>, vector<1x17x37xbf16>
    %18 = vector.shape_cast %17 : vector<1x17x37xbf16> to vector<17x37xbf16>
    %cst_18 = arith.constant dense<0.000000e+00> : vector<17x37xf32>
    %19 = tpu.matmul %18, %1, %cst_18 {dimension_numbers = #tpu.dot_dimension_numbers<[1], [0], [0], [1], [0, 0, 1, 1], [], []>} : vector<17x37xbf16>, vector<37x37xbf16>, vector<17x37xf32> -> vector<17x37xf32>
    %20 = arith.truncf %19 : vector<17x37xf32> to vector<17x37xbf16>
    %c2_19 = arith.constant 2 : index
    %c0_20 = arith.constant 0 : index
    %c0_21 = arith.constant 0 : index
    %21 = vector.load %arg2[%c2_19, %c0_20, %c0_21] : memref<5x37x272xbf16, #tpu.memory_space<vmem>>, vector<1x37x272xbf16>
    %22 = vector.shape_cast %21 : vector<1x37x272xbf16> to vector<37x272xbf16>
    %cst_22 = arith.constant dense<0.000000e+00> : vector<17x272xf32>
    %23 = tpu.matmul %20, %22, %cst_22 {dimension_numbers = #tpu.dot_dimension_numbers<[1], [0], [0], [1], [0, 0, 1, 1], [], []>} : vector<17x37xbf16>, vector<37x272xbf16>, vector<17x272xf32> -> vector<17x272xf32>
    %24 = arith.addf %16, %23 : vector<17x272xf32>
    %c3 = arith.constant 3 : index
    %c0_23 = arith.constant 0 : index
    %c0_24 = arith.constant 0 : index
    %25 = vector.load %arg1[%c3, %c0_23, %c0_24] : memref<5x17x37xbf16, #tpu.memory_space<vmem>>, vector<1x17x37xbf16>
    %26 = vector.shape_cast %25 : vector<1x17x37xbf16> to vector<17x37xbf16>
    %cst_25 = arith.constant dense<0.000000e+00> : vector<17x37xf32>
    %27 = tpu.matmul %26, %1, %cst_25 {dimension_numbers = #tpu.dot_dimension_numbers<[1], [0], [0], [1], [0, 0, 1, 1], [], []>} : vector<17x37xbf16>, vector<37x37xbf16>, vector<17x37xf32> -> vector<17x37xf32>
    %28 = arith.truncf %27 : vector<17x37xf32> to vector<17x37xbf16>
    %c3_26 = arith.constant 3 : index
    %c0_27 = arith.constant 0 : index
    %c0_28 = arith.constant 0 : index
    %29 = vector.load %arg2[%c3_26, %c0_27, %c0_28] : memref<5x37x272xbf16, #tpu.memory_space<vmem>>, vector<1x37x272xbf16>
    %30 = vector.shape_cast %29 : vector<1x37x272xbf16> to vector<37x272xbf16>
    %cst_29 = arith.constant dense<0.000000e+00> : vector<17x272xf32>
    %31 = tpu.matmul %28, %30, %cst_29 {dimension_numbers = #tpu.dot_dimension_numbers<[1], [0], [0], [1], [0, 0, 1, 1], [], []>} : vector<17x37xbf16>, vector<37x272xbf16>, vector<17x272xf32> -> vector<17x272xf32>
    %32 = arith.addf %24, %31 : vector<17x272xf32>
    %c4 = arith.constant 4 : index
    %c0_30 = arith.constant 0 : index
    %c0_31 = arith.constant 0 : index
    %33 = vector.load %arg1[%c4, %c0_30, %c0_31] : memref<5x17x37xbf16, #tpu.memory_space<vmem>>, vector<1x17x37xbf16>
    %34 = vector.shape_cast %33 : vector<1x17x37xbf16> to vector<17x37xbf16>
    %cst_32 = arith.constant dense<0.000000e+00> : vector<17x37xf32>
    %35 = tpu.matmul %34, %1, %cst_32 {dimension_numbers = #tpu.dot_dimension_numbers<[1], [0], [0], [1], [0, 0, 1, 1], [], []>} : vector<17x37xbf16>, vector<37x37xbf16>, vector<17x37xf32> -> vector<17x37xf32>
    %36 = arith.truncf %35 : vector<17x37xf32> to vector<17x37xbf16>
    %c4_33 = arith.constant 4 : index
    %c0_34 = arith.constant 0 : index
    %c0_35 = arith.constant 0 : index
    %37 = vector.load %arg2[%c4_33, %c0_34, %c0_35] : memref<5x37x272xbf16, #tpu.memory_space<vmem>>, vector<1x37x272xbf16>
    %38 = vector.shape_cast %37 : vector<1x37x272xbf16> to vector<37x272xbf16>
    %cst_36 = arith.constant dense<0.000000e+00> : vector<17x272xf32>
    %39 = tpu.matmul %36, %38, %cst_36 {dimension_numbers = #tpu.dot_dimension_numbers<[1], [0], [0], [1], [0, 0, 1, 1], [], []>} : vector<17x37xbf16>, vector<37x272xbf16>, vector<17x272xf32> -> vector<17x272xf32>
    %40 = arith.addf %32, %39 : vector<17x272xf32>
    %c0_37 = arith.constant 0 : index
    %c0_38 = arith.constant 0 : index
    %41 = vector.load %arg3[%c0_37, %c0_38] : memref<1x272xf32, #tpu.memory_space<vmem>>, vector<1x272xf32>
    %42 = vector.broadcast %41 : vector<1x272xf32> to vector<17x272xf32>
    %43 = arith.addf %40, %42 : vector<17x272xf32>
    %cst_39 = arith.constant 0.000000e+00 : f32
    %44 = vector.broadcast %cst_39 : f32 to vector<17x272xf32>
    %45 = arith.maximumf %43, %44 : vector<17x272xf32>
    %46 = arith.truncf %45 : vector<17x272xf32> to vector<17x272xbf16>
    %c0_40 = arith.constant 0 : index
    %c0_41 = arith.constant 0 : index
    %c0_42 = arith.constant 0 : index
    %47 = vector.load %arg4[%c0_40, %c0_41, %c0_42] : memref<5x7x17xbf16, #tpu.memory_space<vmem>>, vector<1x7x17xbf16>
    %48 = vector.shape_cast %47 : vector<1x7x17xbf16> to vector<7x17xbf16>
    %cst_43 = arith.constant dense<0.000000e+00> : vector<7x272xf32>
    %49 = tpu.matmul %48, %46, %cst_43 {dimension_numbers = #tpu.dot_dimension_numbers<[1], [0], [0], [1], [0, 0, 1, 1], [], []>} : vector<7x17xbf16>, vector<17x272xbf16>, vector<7x272xf32> -> vector<7x272xf32>
    %50 = arith.truncf %49 : vector<7x272xf32> to vector<7x272xbf16>
    %c0_44 = arith.constant 0 : index
    %c0_45 = arith.constant 0 : index
    %c0_46 = arith.constant 0 : index
    %51 = vector.load %arg5[%c0_44, %c0_45, %c0_46] : memref<5x272x224xbf16, #tpu.memory_space<vmem>>, vector<1x272x224xbf16>
    %52 = vector.shape_cast %51 : vector<1x272x224xbf16> to vector<272x224xbf16>
    %cst_47 = arith.constant dense<0.000000e+00> : vector<7x224xf32>
    %53 = tpu.matmul %50, %52, %cst_47 {dimension_numbers = #tpu.dot_dimension_numbers<[1], [0], [0], [1], [0, 0, 1, 1], [], []>} : vector<7x272xbf16>, vector<272x224xbf16>, vector<7x224xf32> -> vector<7x224xf32>
    %c1_48 = arith.constant 1 : index
    %c0_49 = arith.constant 0 : index
    %c0_50 = arith.constant 0 : index
    %54 = vector.load %arg4[%c1_48, %c0_49, %c0_50] : memref<5x7x17xbf16, #tpu.memory_space<vmem>>, vector<1x7x17xbf16>
    %55 = vector.shape_cast %54 : vector<1x7x17xbf16> to vector<7x17xbf16>
    %cst_51 = arith.constant dense<0.000000e+00> : vector<7x272xf32>
    %56 = tpu.matmul %55, %46, %cst_51 {dimension_numbers = #tpu.dot_dimension_numbers<[1], [0], [0], [1], [0, 0, 1, 1], [], []>} : vector<7x17xbf16>, vector<17x272xbf16>, vector<7x272xf32> -> vector<7x272xf32>
    %57 = arith.truncf %56 : vector<7x272xf32> to vector<7x272xbf16>
    %c1_52 = arith.constant 1 : index
    %c0_53 = arith.constant 0 : index
    %c0_54 = arith.constant 0 : index
    %58 = vector.load %arg5[%c1_52, %c0_53, %c0_54] : memref<5x272x224xbf16, #tpu.memory_space<vmem>>, vector<1x272x224xbf16>
    %59 = vector.shape_cast %58 : vector<1x272x224xbf16> to vector<272x224xbf16>
    %cst_55 = arith.constant dense<0.000000e+00> : vector<7x224xf32>
    %60 = tpu.matmul %57, %59, %cst_55 {dimension_numbers = #tpu.dot_dimension_numbers<[1], [0], [0], [1], [0, 0, 1, 1], [], []>} : vector<7x272xbf16>, vector<272x224xbf16>, vector<7x224xf32> -> vector<7x224xf32>
    %61 = arith.addf %53, %60 : vector<7x224xf32>
    %c2_56 = arith.constant 2 : index
    %c0_57 = arith.constant 0 : index
    %c0_58 = arith.constant 0 : index
    %62 = vector.load %arg4[%c2_56, %c0_57, %c0_58] : memref<5x7x17xbf16, #tpu.memory_space<vmem>>, vector<1x7x17xbf16>
    %63 = vector.shape_cast %62 : vector<1x7x17xbf16> to vector<7x17xbf16>
    %cst_59 = arith.constant dense<0.000000e+00> : vector<7x272xf32>
    %64 = tpu.matmul %63, %46, %cst_59 {dimension_numbers = #tpu.dot_dimension_numbers<[1], [0], [0], [1], [0, 0, 1, 1], [], []>} : vector<7x17xbf16>, vector<17x272xbf16>, vector<7x272xf32> -> vector<7x272xf32>
    %65 = arith.truncf %64 : vector<7x272xf32> to vector<7x272xbf16>
    %c2_60 = arith.constant 2 : index
    %c0_61 = arith.constant 0 : index
    %c0_62 = arith.constant 0 : index
    %66 = vector.load %arg5[%c2_60, %c0_61, %c0_62] : memref<5x272x224xbf16, #tpu.memory_space<vmem>>, vector<1x272x224xbf16>
    %67 = vector.shape_cast %66 : vector<1x272x224xbf16> to vector<272x224xbf16>
    %cst_63 = arith.constant dense<0.000000e+00> : vector<7x224xf32>
    %68 = tpu.matmul %65, %67, %cst_63 {dimension_numbers = #tpu.dot_dimension_numbers<[1], [0], [0], [1], [0, 0, 1, 1], [], []>} : vector<7x272xbf16>, vector<272x224xbf16>, vector<7x224xf32> -> vector<7x224xf32>
    %69 = arith.addf %61, %68 : vector<7x224xf32>
    %c3_64 = arith.constant 3 : index
    %c0_65 = arith.constant 0 : index
    %c0_66 = arith.constant 0 : index
    %70 = vector.load %arg4[%c3_64, %c0_65, %c0_66] : memref<5x7x17xbf16, #tpu.memory_space<vmem>>, vector<1x7x17xbf16>
    %71 = vector.shape_cast %70 : vector<1x7x17xbf16> to vector<7x17xbf16>
    %cst_67 = arith.constant dense<0.000000e+00> : vector<7x272xf32>
    %72 = tpu.matmul %71, %46, %cst_67 {dimension_numbers = #tpu.dot_dimension_numbers<[1], [0], [0], [1], [0, 0, 1, 1], [], []>} : vector<7x17xbf16>, vector<17x272xbf16>, vector<7x272xf32> -> vector<7x272xf32>
    %73 = arith.truncf %72 : vector<7x272xf32> to vector<7x272xbf16>
    %c3_68 = arith.constant 3 : index
    %c0_69 = arith.constant 0 : index
    %c0_70 = arith.constant 0 : index
    %74 = vector.load %arg5[%c3_68, %c0_69, %c0_70] : memref<5x272x224xbf16, #tpu.memory_space<vmem>>, vector<1x272x224xbf16>
    %75 = vector.shape_cast %74 : vector<1x272x224xbf16> to vector<272x224xbf16>
    %cst_71 = arith.constant dense<0.000000e+00> : vector<7x224xf32>
    %76 = tpu.matmul %73, %75, %cst_71 {dimension_numbers = #tpu.dot_dimension_numbers<[1], [0], [0], [1], [0, 0, 1, 1], [], []>} : vector<7x272xbf16>, vector<272x224xbf16>, vector<7x224xf32> -> vector<7x224xf32>
    %77 = arith.addf %69, %76 : vector<7x224xf32>
    %c4_72 = arith.constant 4 : index
    %c0_73 = arith.constant 0 : index
    %c0_74 = arith.constant 0 : index
    %78 = vector.load %arg4[%c4_72, %c0_73, %c0_74] : memref<5x7x17xbf16, #tpu.memory_space<vmem>>, vector<1x7x17xbf16>
    %79 = vector.shape_cast %78 : vector<1x7x17xbf16> to vector<7x17xbf16>
    %cst_75 = arith.constant dense<0.000000e+00> : vector<7x272xf32>
    %80 = tpu.matmul %79, %46, %cst_75 {dimension_numbers = #tpu.dot_dimension_numbers<[1], [0], [0], [1], [0, 0, 1, 1], [], []>} : vector<7x17xbf16>, vector<17x272xbf16>, vector<7x272xf32> -> vector<7x272xf32>
    %81 = arith.truncf %80 : vector<7x272xf32> to vector<7x272xbf16>
    %c4_76 = arith.constant 4 : index
    %c0_77 = arith.constant 0 : index
    %c0_78 = arith.constant 0 : index
    %82 = vector.load %arg5[%c4_76, %c0_77, %c0_78] : memref<5x272x224xbf16, #tpu.memory_space<vmem>>, vector<1x272x224xbf16>
    %83 = vector.shape_cast %82 : vector<1x272x224xbf16> to vector<272x224xbf16>
    %cst_79 = arith.constant dense<0.000000e+00> : vector<7x224xf32>
    %84 = tpu.matmul %81, %83, %cst_79 {dimension_numbers = #tpu.dot_dimension_numbers<[1], [0], [0], [1], [0, 0, 1, 1], [], []>} : vector<7x272xbf16>, vector<272x224xbf16>, vector<7x224xf32> -> vector<7x224xf32>
    %85 = arith.addf %77, %84 : vector<7x224xf32>
    %c0_80 = arith.constant 0 : index
    %c0_81 = arith.constant 0 : index
    %86 = vector.load %arg6[%c0_80, %c0_81] : memref<1x224xf32, #tpu.memory_space<vmem>>, vector<1x224xf32>
    %87 = vector.broadcast %86 : vector<1x224xf32> to vector<7x224xf32>
    %88 = arith.addf %85, %87 : vector<7x224xf32>
    %cst_82 = arith.constant 0.000000e+00 : f32
    %89 = vector.broadcast %cst_82 : f32 to vector<7x224xf32>
    %90 = arith.maximumf %88, %89 : vector<7x224xf32>
    %91 = arith.truncf %90 : vector<7x224xf32> to vector<7x224xbf16>
    %c0_83 = arith.constant 0 : index
    %c0_84 = arith.constant 0 : index
    %92 = vector.load %arg11[%c0_83, %c0_84] : memref<1x2xf32, #tpu.memory_space<vmem>>, vector<1x2xf32>
    %c0_85 = arith.constant 0 : index
    %c0_86 = arith.constant 0 : index
    %c0_87 = arith.constant 0 : index
    %93 = vector.load %arg7[%c0_85, %c0_86, %c0_87] : memref<5x2x7xbf16, #tpu.memory_space<vmem>>, vector<1x1x7xbf16>
    %94 = vector.shape_cast %93 : vector<1x1x7xbf16> to vector<1x7xbf16>
    %cst_88 = arith.constant dense<0.000000e+00> : vector<1x224xf32>
    %95 = tpu.matmul %94, %91, %cst_88 {dimension_numbers = #tpu.dot_dimension_numbers<[1], [0], [0], [1], [0, 0, 1, 1], [], []>} : vector<1x7xbf16>, vector<7x224xbf16>, vector<1x224xf32> -> vector<1x224xf32>
    %96 = arith.truncf %95 : vector<1x224xf32> to vector<1x224xbf16>
    %c0_89 = arith.constant 0 : index
    %c0_90 = arith.constant 0 : index
    %c0_91 = arith.constant 0 : index
    %97 = vector.load %arg8[%c0_89, %c0_90, %c0_91] : memref<5x224x64xbf16, #tpu.memory_space<vmem>>, vector<1x224x64xbf16>
    %98 = vector.shape_cast %97 : vector<1x224x64xbf16> to vector<224x64xbf16>
    %cst_92 = arith.constant dense<0.000000e+00> : vector<1x64xf32>
    %99 = tpu.matmul %96, %98, %cst_92 {dimension_numbers = #tpu.dot_dimension_numbers<[1], [0], [0], [1], [0, 0, 1, 1], [], []>} : vector<1x224xbf16>, vector<224x64xbf16>, vector<1x64xf32> -> vector<1x64xf32>
    %c1_93 = arith.constant 1 : index
    %c0_94 = arith.constant 0 : index
    %c0_95 = arith.constant 0 : index
    %100 = vector.load %arg7[%c1_93, %c0_94, %c0_95] : memref<5x2x7xbf16, #tpu.memory_space<vmem>>, vector<1x1x7xbf16>
    %101 = vector.shape_cast %100 : vector<1x1x7xbf16> to vector<1x7xbf16>
    %cst_96 = arith.constant dense<0.000000e+00> : vector<1x224xf32>
    %102 = tpu.matmul %101, %91, %cst_96 {dimension_numbers = #tpu.dot_dimension_numbers<[1], [0], [0], [1], [0, 0, 1, 1], [], []>} : vector<1x7xbf16>, vector<7x224xbf16>, vector<1x224xf32> -> vector<1x224xf32>
    %103 = arith.truncf %102 : vector<1x224xf32> to vector<1x224xbf16>
    %c1_97 = arith.constant 1 : index
    %c0_98 = arith.constant 0 : index
    %c0_99 = arith.constant 0 : index
    %104 = vector.load %arg8[%c1_97, %c0_98, %c0_99] : memref<5x224x64xbf16, #tpu.memory_space<vmem>>, vector<1x224x64xbf16>
    %105 = vector.shape_cast %104 : vector<1x224x64xbf16> to vector<224x64xbf16>
    %cst_100 = arith.constant dense<0.000000e+00> : vector<1x64xf32>
    %106 = tpu.matmul %103, %105, %cst_100 {dimension_numbers = #tpu.dot_dimension_numbers<[1], [0], [0], [1], [0, 0, 1, 1], [], []>} : vector<1x224xbf16>, vector<224x64xbf16>, vector<1x64xf32> -> vector<1x64xf32>
    %107 = arith.addf %99, %106 : vector<1x64xf32>
    %c2_101 = arith.constant 2 : index
    %c0_102 = arith.constant 0 : index
    %c0_103 = arith.constant 0 : index
    %108 = vector.load %arg7[%c2_101, %c0_102, %c0_103] : memref<5x2x7xbf16, #tpu.memory_space<vmem>>, vector<1x1x7xbf16>
    %109 = vector.shape_cast %108 : vector<1x1x7xbf16> to vector<1x7xbf16>
    %cst_104 = arith.constant dense<0.000000e+00> : vector<1x224xf32>
    %110 = tpu.matmul %109, %91, %cst_104 {dimension_numbers = #tpu.dot_dimension_numbers<[1], [0], [0], [1], [0, 0, 1, 1], [], []>} : vector<1x7xbf16>, vector<7x224xbf16>, vector<1x224xf32> -> vector<1x224xf32>
    %111 = arith.truncf %110 : vector<1x224xf32> to vector<1x224xbf16>
    %c2_105 = arith.constant 2 : index
    %c0_106 = arith.constant 0 : index
    %c0_107 = arith.constant 0 : index
    %112 = vector.load %arg8[%c2_105, %c0_106, %c0_107] : memref<5x224x64xbf16, #tpu.memory_space<vmem>>, vector<1x224x64xbf16>
    %113 = vector.shape_cast %112 : vector<1x224x64xbf16> to vector<224x64xbf16>
    %cst_108 = arith.constant dense<0.000000e+00> : vector<1x64xf32>
    %114 = tpu.matmul %111, %113, %cst_108 {dimension_numbers = #tpu.dot_dimension_numbers<[1], [0], [0], [1], [0, 0, 1, 1], [], []>} : vector<1x224xbf16>, vector<224x64xbf16>, vector<1x64xf32> -> vector<1x64xf32>
    %115 = arith.addf %107, %114 : vector<1x64xf32>
    %c3_109 = arith.constant 3 : index
    %c0_110 = arith.constant 0 : index
    %c0_111 = arith.constant 0 : index
    %116 = vector.load %arg7[%c3_109, %c0_110, %c0_111] : memref<5x2x7xbf16, #tpu.memory_space<vmem>>, vector<1x1x7xbf16>
    %117 = vector.shape_cast %116 : vector<1x1x7xbf16> to vector<1x7xbf16>
    %cst_112 = arith.constant dense<0.000000e+00> : vector<1x224xf32>
    %118 = tpu.matmul %117, %91, %cst_112 {dimension_numbers = #tpu.dot_dimension_numbers<[1], [0], [0], [1], [0, 0, 1, 1], [], []>} : vector<1x7xbf16>, vector<7x224xbf16>, vector<1x224xf32> -> vector<1x224xf32>
    %119 = arith.truncf %118 : vector<1x224xf32> to vector<1x224xbf16>
    %c3_113 = arith.constant 3 : index
    %c0_114 = arith.constant 0 : index
    %c0_115 = arith.constant 0 : index
    %120 = vector.load %arg8[%c3_113, %c0_114, %c0_115] : memref<5x224x64xbf16, #tpu.memory_space<vmem>>, vector<1x224x64xbf16>
    %121 = vector.shape_cast %120 : vector<1x224x64xbf16> to vector<224x64xbf16>
    %cst_116 = arith.constant dense<0.000000e+00> : vector<1x64xf32>
    %122 = tpu.matmul %119, %121, %cst_116 {dimension_numbers = #tpu.dot_dimension_numbers<[1], [0], [0], [1], [0, 0, 1, 1], [], []>} : vector<1x224xbf16>, vector<224x64xbf16>, vector<1x64xf32> -> vector<1x64xf32>
    %123 = arith.addf %115, %122 : vector<1x64xf32>
    %c4_117 = arith.constant 4 : index
    %c0_118 = arith.constant 0 : index
    %c0_119 = arith.constant 0 : index
    %124 = vector.load %arg7[%c4_117, %c0_118, %c0_119] : memref<5x2x7xbf16, #tpu.memory_space<vmem>>, vector<1x1x7xbf16>
    %125 = vector.shape_cast %124 : vector<1x1x7xbf16> to vector<1x7xbf16>
    %cst_120 = arith.constant dense<0.000000e+00> : vector<1x224xf32>
    %126 = tpu.matmul %125, %91, %cst_120 {dimension_numbers = #tpu.dot_dimension_numbers<[1], [0], [0], [1], [0, 0, 1, 1], [], []>} : vector<1x7xbf16>, vector<7x224xbf16>, vector<1x224xf32> -> vector<1x224xf32>
    %127 = arith.truncf %126 : vector<1x224xf32> to vector<1x224xbf16>
    %c4_121 = arith.constant 4 : index
    %c0_122 = arith.constant 0 : index
    %c0_123 = arith.constant 0 : index
    %128 = vector.load %arg8[%c4_121, %c0_122, %c0_123] : memref<5x224x64xbf16, #tpu.memory_space<vmem>>, vector<1x224x64xbf16>
    %129 = vector.shape_cast %128 : vector<1x224x64xbf16> to vector<224x64xbf16>
    %cst_124 = arith.constant dense<0.000000e+00> : vector<1x64xf32>
    %130 = tpu.matmul %127, %129, %cst_124 {dimension_numbers = #tpu.dot_dimension_numbers<[1], [0], [0], [1], [0, 0, 1, 1], [], []>} : vector<1x224xbf16>, vector<224x64xbf16>, vector<1x64xf32> -> vector<1x64xf32>
    %131 = arith.addf %123, %130 : vector<1x64xf32>
    %c0_125 = arith.constant 0 : index
    %c0_126 = arith.constant 0 : index
    %132 = vector.load %arg9[%c0_125, %c0_126] : memref<1x64xf32, #tpu.memory_space<vmem>>, vector<1x64xf32>
    %133 = arith.addf %131, %132 : vector<1x64xf32>
    %cst_127 = arith.constant 0.000000e+00 : f32
    %134 = vector.broadcast %cst_127 : f32 to vector<1x64xf32>
    %135 = arith.maximumf %133, %134 : vector<1x64xf32>
    %136 = arith.truncf %135 : vector<1x64xf32> to vector<1x64xbf16>
    %c0_128 = arith.constant 0 : index
    %c0_129 = arith.constant 0 : index
    %c0_130 = arith.constant 0 : index
    %137 = vector.load %arg10[%c0_128, %c0_129, %c0_130] : memref<2x64x2xbf16, #tpu.memory_space<vmem>>, vector<1x64x2xbf16>
    %138 = vector.shape_cast %137 : vector<1x64x2xbf16> to vector<64x2xbf16>
    %cst_131 = arith.constant dense<0.000000e+00> : vector<1x2xf32>
    %139 = tpu.matmul %136, %138, %cst_131 {dimension_numbers = #tpu.dot_dimension_numbers<[1], [0], [0], [1], [0, 0, 1, 1], [], []>} : vector<1x64xbf16>, vector<64x2xbf16>, vector<1x2xf32> -> vector<1x2xf32>
    %140 = arith.addf %92, %139 : vector<1x2xf32>
    %c0_132 = arith.constant 0 : index
    %c1_133 = arith.constant 1 : index
    %c0_134 = arith.constant 0 : index
    %141 = vector.load %arg7[%c0_132, %c1_133, %c0_134] : memref<5x2x7xbf16, #tpu.memory_space<vmem>>, vector<1x1x7xbf16>
    %142 = vector.shape_cast %141 : vector<1x1x7xbf16> to vector<1x7xbf16>
    %cst_135 = arith.constant dense<0.000000e+00> : vector<1x224xf32>
    %143 = tpu.matmul %142, %91, %cst_135 {dimension_numbers = #tpu.dot_dimension_numbers<[1], [0], [0], [1], [0, 0, 1, 1], [], []>} : vector<1x7xbf16>, vector<7x224xbf16>, vector<1x224xf32> -> vector<1x224xf32>
    %144 = arith.truncf %143 : vector<1x224xf32> to vector<1x224xbf16>
    %c0_136 = arith.constant 0 : index
    %c0_137 = arith.constant 0 : index
    %c0_138 = arith.constant 0 : index
    %145 = vector.load %arg8[%c0_136, %c0_137, %c0_138] : memref<5x224x64xbf16, #tpu.memory_space<vmem>>, vector<1x224x64xbf16>
    %146 = vector.shape_cast %145 : vector<1x224x64xbf16> to vector<224x64xbf16>
    %cst_139 = arith.constant dense<0.000000e+00> : vector<1x64xf32>
    %147 = tpu.matmul %144, %146, %cst_139 {dimension_numbers = #tpu.dot_dimension_numbers<[1], [0], [0], [1], [0, 0, 1, 1], [], []>} : vector<1x224xbf16>, vector<224x64xbf16>, vector<1x64xf32> -> vector<1x64xf32>
    %c1_140 = arith.constant 1 : index
    %c1_141 = arith.constant 1 : index
    %c0_142 = arith.constant 0 : index
    %148 = vector.load %arg7[%c1_140, %c1_141, %c0_142] : memref<5x2x7xbf16, #tpu.memory_space<vmem>>, vector<1x1x7xbf16>
    %149 = vector.shape_cast %148 : vector<1x1x7xbf16> to vector<1x7xbf16>
    %cst_143 = arith.constant dense<0.000000e+00> : vector<1x224xf32>
    %150 = tpu.matmul %149, %91, %cst_143 {dimension_numbers = #tpu.dot_dimension_numbers<[1], [0], [0], [1], [0, 0, 1, 1], [], []>} : vector<1x7xbf16>, vector<7x224xbf16>, vector<1x224xf32> -> vector<1x224xf32>
    %151 = arith.truncf %150 : vector<1x224xf32> to vector<1x224xbf16>
    %c1_144 = arith.constant 1 : index
    %c0_145 = arith.constant 0 : index
    %c0_146 = arith.constant 0 : index
    %152 = vector.load %arg8[%c1_144, %c0_145, %c0_146] : memref<5x224x64xbf16, #tpu.memory_space<vmem>>, vector<1x224x64xbf16>
    %153 = vector.shape_cast %152 : vector<1x224x64xbf16> to vector<224x64xbf16>
    %cst_147 = arith.constant dense<0.000000e+00> : vector<1x64xf32>
    %154 = tpu.matmul %151, %153, %cst_147 {dimension_numbers = #tpu.dot_dimension_numbers<[1], [0], [0], [1], [0, 0, 1, 1], [], []>} : vector<1x224xbf16>, vector<224x64xbf16>, vector<1x64xf32> -> vector<1x64xf32>
    %155 = arith.addf %147, %154 : vector<1x64xf32>
    %c2_148 = arith.constant 2 : index
    %c1_149 = arith.constant 1 : index
    %c0_150 = arith.constant 0 : index
    %156 = vector.load %arg7[%c2_148, %c1_149, %c0_150] : memref<5x2x7xbf16, #tpu.memory_space<vmem>>, vector<1x1x7xbf16>
    %157 = vector.shape_cast %156 : vector<1x1x7xbf16> to vector<1x7xbf16>
    %cst_151 = arith.constant dense<0.000000e+00> : vector<1x224xf32>
    %158 = tpu.matmul %157, %91, %cst_151 {dimension_numbers = #tpu.dot_dimension_numbers<[1], [0], [0], [1], [0, 0, 1, 1], [], []>} : vector<1x7xbf16>, vector<7x224xbf16>, vector<1x224xf32> -> vector<1x224xf32>
    %159 = arith.truncf %158 : vector<1x224xf32> to vector<1x224xbf16>
    %c2_152 = arith.constant 2 : index
    %c0_153 = arith.constant 0 : index
    %c0_154 = arith.constant 0 : index
    %160 = vector.load %arg8[%c2_152, %c0_153, %c0_154] : memref<5x224x64xbf16, #tpu.memory_space<vmem>>, vector<1x224x64xbf16>
    %161 = vector.shape_cast %160 : vector<1x224x64xbf16> to vector<224x64xbf16>
    %cst_155 = arith.constant dense<0.000000e+00> : vector<1x64xf32>
    %162 = tpu.matmul %159, %161, %cst_155 {dimension_numbers = #tpu.dot_dimension_numbers<[1], [0], [0], [1], [0, 0, 1, 1], [], []>} : vector<1x224xbf16>, vector<224x64xbf16>, vector<1x64xf32> -> vector<1x64xf32>
    %163 = arith.addf %155, %162 : vector<1x64xf32>
    %c3_156 = arith.constant 3 : index
    %c1_157 = arith.constant 1 : index
    %c0_158 = arith.constant 0 : index
    %164 = vector.load %arg7[%c3_156, %c1_157, %c0_158] : memref<5x2x7xbf16, #tpu.memory_space<vmem>>, vector<1x1x7xbf16>
    %165 = vector.shape_cast %164 : vector<1x1x7xbf16> to vector<1x7xbf16>
    %cst_159 = arith.constant dense<0.000000e+00> : vector<1x224xf32>
    %166 = tpu.matmul %165, %91, %cst_159 {dimension_numbers = #tpu.dot_dimension_numbers<[1], [0], [0], [1], [0, 0, 1, 1], [], []>} : vector<1x7xbf16>, vector<7x224xbf16>, vector<1x224xf32> -> vector<1x224xf32>
    %167 = arith.truncf %166 : vector<1x224xf32> to vector<1x224xbf16>
    %c3_160 = arith.constant 3 : index
    %c0_161 = arith.constant 0 : index
    %c0_162 = arith.constant 0 : index
    %168 = vector.load %arg8[%c3_160, %c0_161, %c0_162] : memref<5x224x64xbf16, #tpu.memory_space<vmem>>, vector<1x224x64xbf16>
    %169 = vector.shape_cast %168 : vector<1x224x64xbf16> to vector<224x64xbf16>
    %cst_163 = arith.constant dense<0.000000e+00> : vector<1x64xf32>
    %170 = tpu.matmul %167, %169, %cst_163 {dimension_numbers = #tpu.dot_dimension_numbers<[1], [0], [0], [1], [0, 0, 1, 1], [], []>} : vector<1x224xbf16>, vector<224x64xbf16>, vector<1x64xf32> -> vector<1x64xf32>
    %171 = arith.addf %163, %170 : vector<1x64xf32>
    %c4_164 = arith.constant 4 : index
    %c1_165 = arith.constant 1 : index
    %c0_166 = arith.constant 0 : index
    %172 = vector.load %arg7[%c4_164, %c1_165, %c0_166] : memref<5x2x7xbf16, #tpu.memory_space<vmem>>, vector<1x1x7xbf16>
    %173 = vector.shape_cast %172 : vector<1x1x7xbf16> to vector<1x7xbf16>
    %cst_167 = arith.constant dense<0.000000e+00> : vector<1x224xf32>
    %174 = tpu.matmul %173, %91, %cst_167 {dimension_numbers = #tpu.dot_dimension_numbers<[1], [0], [0], [1], [0, 0, 1, 1], [], []>} : vector<1x7xbf16>, vector<7x224xbf16>, vector<1x224xf32> -> vector<1x224xf32>
    %175 = arith.truncf %174 : vector<1x224xf32> to vector<1x224xbf16>
    %c4_168 = arith.constant 4 : index
    %c0_169 = arith.constant 0 : index
    %c0_170 = arith.constant 0 : index
    %176 = vector.load %arg8[%c4_168, %c0_169, %c0_170] : memref<5x224x64xbf16, #tpu.memory_space<vmem>>, vector<1x224x64xbf16>
    %177 = vector.shape_cast %176 : vector<1x224x64xbf16> to vector<224x64xbf16>
    %cst_171 = arith.constant dense<0.000000e+00> : vector<1x64xf32>
    %178 = tpu.matmul %175, %177, %cst_171 {dimension_numbers = #tpu.dot_dimension_numbers<[1], [0], [0], [1], [0, 0, 1, 1], [], []>} : vector<1x224xbf16>, vector<224x64xbf16>, vector<1x64xf32> -> vector<1x64xf32>
    %179 = arith.addf %171, %178 : vector<1x64xf32>
    %c0_172 = arith.constant 0 : index
    %c0_173 = arith.constant 0 : index
    %180 = vector.load %arg9[%c0_172, %c0_173] : memref<1x64xf32, #tpu.memory_space<vmem>>, vector<1x64xf32>
    %181 = arith.addf %179, %180 : vector<1x64xf32>
    %cst_174 = arith.constant 0.000000e+00 : f32
    %182 = vector.broadcast %cst_174 : f32 to vector<1x64xf32>
    %183 = arith.maximumf %181, %182 : vector<1x64xf32>
    %184 = arith.truncf %183 : vector<1x64xf32> to vector<1x64xbf16>
    %c1_175 = arith.constant 1 : index
    %c0_176 = arith.constant 0 : index
    %c0_177 = arith.constant 0 : index
    %185 = vector.load %arg10[%c1_175, %c0_176, %c0_177] : memref<2x64x2xbf16, #tpu.memory_space<vmem>>, vector<1x64x2xbf16>
    %186 = vector.shape_cast %185 : vector<1x64x2xbf16> to vector<64x2xbf16>
    %cst_178 = arith.constant dense<0.000000e+00> : vector<1x2xf32>
    %187 = tpu.matmul %184, %186, %cst_178 {dimension_numbers = #tpu.dot_dimension_numbers<[1], [0], [0], [1], [0, 0, 1, 1], [], []>} : vector<1x64xbf16>, vector<64x2xbf16>, vector<1x2xf32> -> vector<1x2xf32>
    %188 = arith.addf %140, %187 : vector<1x2xf32>
    %c0_179 = arith.constant 0 : index
    %c0_180 = arith.constant 0 : index
    %189 = vector.load %arg12[%c0_179, %c0_180] : memref<2x2xf32, #tpu.memory_space<vmem>>, vector<1x2xf32>
    tpu.vector_store %arg12[%c0_179, %c0_180], %188 {strides = array<i32>} : memref<2x2xf32, #tpu.memory_space<vmem>>, vector<1x2xf32>,
    %c1_181 = arith.constant 1 : index
    %c0_182 = arith.constant 0 : index
    %c0_183 = arith.constant 0 : index
    %190 = vector.load %arg0[%c1_181, %c0_182, %c0_183] : memref<2x37x37xbf16, #tpu.memory_space<vmem>>, vector<1x37x37xbf16>
    %191 = vector.shape_cast %190 : vector<1x37x37xbf16> to vector<37x37xbf16>
    %c0_184 = arith.constant 0 : index
    %c0_185 = arith.constant 0 : index
    %c0_186 = arith.constant 0 : index
    %192 = vector.load %arg1[%c0_184, %c0_185, %c0_186] : memref<5x17x37xbf16, #tpu.memory_space<vmem>>, vector<1x17x37xbf16>
    %193 = vector.shape_cast %192 : vector<1x17x37xbf16> to vector<17x37xbf16>
    %cst_187 = arith.constant dense<0.000000e+00> : vector<17x37xf32>
    %194 = tpu.matmul %193, %191, %cst_187 {dimension_numbers = #tpu.dot_dimension_numbers<[1], [0], [0], [1], [0, 0, 1, 1], [], []>} : vector<17x37xbf16>, vector<37x37xbf16>, vector<17x37xf32> -> vector<17x37xf32>
    %195 = arith.truncf %194 : vector<17x37xf32> to vector<17x37xbf16>
    %c0_188 = arith.constant 0 : index
    %c0_189 = arith.constant 0 : index
    %c0_190 = arith.constant 0 : index
    %196 = vector.load %arg2[%c0_188, %c0_189, %c0_190] : memref<5x37x272xbf16, #tpu.memory_space<vmem>>, vector<1x37x272xbf16>
    %197 = vector.shape_cast %196 : vector<1x37x272xbf16> to vector<37x272xbf16>
    %cst_191 = arith.constant dense<0.000000e+00> : vector<17x272xf32>
    %198 = tpu.matmul %195, %197, %cst_191 {dimension_numbers = #tpu.dot_dimension_numbers<[1], [0], [0], [1], [0, 0, 1, 1], [], []>} : vector<17x37xbf16>, vector<37x272xbf16>, vector<17x272xf32> -> vector<17x272xf32>
    %c1_192 = arith.constant 1 : index
    %c0_193 = arith.constant 0 : index
    %c0_194 = arith.constant 0 : index
    %199 = vector.load %arg1[%c1_192, %c0_193, %c0_194] : memref<5x17x37xbf16, #tpu.memory_space<vmem>>, vector<1x17x37xbf16>
    %200 = vector.shape_cast %199 : vector<1x17x37xbf16> to vector<17x37xbf16>
    %cst_195 = arith.constant dense<0.000000e+00> : vector<17x37xf32>
    %201 = tpu.matmul %200, %191, %cst_195 {dimension_numbers = #tpu.dot_dimension_numbers<[1], [0], [0], [1], [0, 0, 1, 1], [], []>} : vector<17x37xbf16>, vector<37x37xbf16>, vector<17x37xf32> -> vector<17x37xf32>
    %202 = arith.truncf %201 : vector<17x37xf32> to vector<17x37xbf16>
    %c1_196 = arith.constant 1 : index
    %c0_197 = arith.constant 0 : index
    %c0_198 = arith.constant 0 : index
    %203 = vector.load %arg2[%c1_196, %c0_197, %c0_198] : memref<5x37x272xbf16, #tpu.memory_space<vmem>>, vector<1x37x272xbf16>
    %204 = vector.shape_cast %203 : vector<1x37x272xbf16> to vector<37x272xbf16>
    %cst_199 = arith.constant dense<0.000000e+00> : vector<17x272xf32>
    %205 = tpu.matmul %202, %204, %cst_199 {dimension_numbers = #tpu.dot_dimension_numbers<[1], [0], [0], [1], [0, 0, 1, 1], [], []>} : vector<17x37xbf16>, vector<37x272xbf16>, vector<17x272xf32> -> vector<17x272xf32>
    %206 = arith.addf %198, %205 : vector<17x272xf32>
    %c2_200 = arith.constant 2 : index
    %c0_201 = arith.constant 0 : index
    %c0_202 = arith.constant 0 : index
    %207 = vector.load %arg1[%c2_200, %c0_201, %c0_202] : memref<5x17x37xbf16, #tpu.memory_space<vmem>>, vector<1x17x37xbf16>
    %208 = vector.shape_cast %207 : vector<1x17x37xbf16> to vector<17x37xbf16>
    %cst_203 = arith.constant dense<0.000000e+00> : vector<17x37xf32>
    %209 = tpu.matmul %208, %191, %cst_203 {dimension_numbers = #tpu.dot_dimension_numbers<[1], [0], [0], [1], [0, 0, 1, 1], [], []>} : vector<17x37xbf16>, vector<37x37xbf16>, vector<17x37xf32> -> vector<17x37xf32>
    %210 = arith.truncf %209 : vector<17x37xf32> to vector<17x37xbf16>
    %c2_204 = arith.constant 2 : index
    %c0_205 = arith.constant 0 : index
    %c0_206 = arith.constant 0 : index
    %211 = vector.load %arg2[%c2_204, %c0_205, %c0_206] : memref<5x37x272xbf16, #tpu.memory_space<vmem>>, vector<1x37x272xbf16>
    %212 = vector.shape_cast %211 : vector<1x37x272xbf16> to vector<37x272xbf16>
    %cst_207 = arith.constant dense<0.000000e+00> : vector<17x272xf32>
    %213 = tpu.matmul %210, %212, %cst_207 {dimension_numbers = #tpu.dot_dimension_numbers<[1], [0], [0], [1], [0, 0, 1, 1], [], []>} : vector<17x37xbf16>, vector<37x272xbf16>, vector<17x272xf32> -> vector<17x272xf32>
    %214 = arith.addf %206, %213 : vector<17x272xf32>
    %c3_208 = arith.constant 3 : index
    %c0_209 = arith.constant 0 : index
    %c0_210 = arith.constant 0 : index
    %215 = vector.load %arg1[%c3_208, %c0_209, %c0_210] : memref<5x17x37xbf16, #tpu.memory_space<vmem>>, vector<1x17x37xbf16>
    %216 = vector.shape_cast %215 : vector<1x17x37xbf16> to vector<17x37xbf16>
    %cst_211 = arith.constant dense<0.000000e+00> : vector<17x37xf32>
    %217 = tpu.matmul %216, %191, %cst_211 {dimension_numbers = #tpu.dot_dimension_numbers<[1], [0], [0], [1], [0, 0, 1, 1], [], []>} : vector<17x37xbf16>, vector<37x37xbf16>, vector<17x37xf32> -> vector<17x37xf32>
    %218 = arith.truncf %217 : vector<17x37xf32> to vector<17x37xbf16>
    %c3_212 = arith.constant 3 : index
    %c0_213 = arith.constant 0 : index
    %c0_214 = arith.constant 0 : index
    %219 = vector.load %arg2[%c3_212, %c0_213, %c0_214] : memref<5x37x272xbf16, #tpu.memory_space<vmem>>, vector<1x37x272xbf16>
    %220 = vector.shape_cast %219 : vector<1x37x272xbf16> to vector<37x272xbf16>
    %cst_215 = arith.constant dense<0.000000e+00> : vector<17x272xf32>
    %221 = tpu.matmul %218, %220, %cst_215 {dimension_numbers = #tpu.dot_dimension_numbers<[1], [0], [0], [1], [0, 0, 1, 1], [], []>} : vector<17x37xbf16>, vector<37x272xbf16>, vector<17x272xf32> -> vector<17x272xf32>
    %222 = arith.addf %214, %221 : vector<17x272xf32>
    %c4_216 = arith.constant 4 : index
    %c0_217 = arith.constant 0 : index
    %c0_218 = arith.constant 0 : index
    %223 = vector.load %arg1[%c4_216, %c0_217, %c0_218] : memref<5x17x37xbf16, #tpu.memory_space<vmem>>, vector<1x17x37xbf16>
    %224 = vector.shape_cast %223 : vector<1x17x37xbf16> to vector<17x37xbf16>
    %cst_219 = arith.constant dense<0.000000e+00> : vector<17x37xf32>
    %225 = tpu.matmul %224, %191, %cst_219 {dimension_numbers = #tpu.dot_dimension_numbers<[1], [0], [0], [1], [0, 0, 1, 1], [], []>} : vector<17x37xbf16>, vector<37x37xbf16>, vector<17x37xf32> -> vector<17x37xf32>
    %226 = arith.truncf %225 : vector<17x37xf32> to vector<17x37xbf16>
    %c4_220 = arith.constant 4 : index
    %c0_221 = arith.constant 0 : index
    %c0_222 = arith.constant 0 : index
    %227 = vector.load %arg2[%c4_220, %c0_221, %c0_222] : memref<5x37x272xbf16, #tpu.memory_space<vmem>>, vector<1x37x272xbf16>
    %228 = vector.shape_cast %227 : vector<1x37x272xbf16> to vector<37x272xbf16>
    %cst_223 = arith.constant dense<0.000000e+00> : vector<17x272xf32>
    %229 = tpu.matmul %226, %228, %cst_223 {dimension_numbers = #tpu.dot_dimension_numbers<[1], [0], [0], [1], [0, 0, 1, 1], [], []>} : vector<17x37xbf16>, vector<37x272xbf16>, vector<17x272xf32> -> vector<17x272xf32>
    %230 = arith.addf %222, %229 : vector<17x272xf32>
    %c0_224 = arith.constant 0 : index
    %c0_225 = arith.constant 0 : index
    %231 = vector.load %arg3[%c0_224, %c0_225] : memref<1x272xf32, #tpu.memory_space<vmem>>, vector<1x272xf32>
    %232 = vector.broadcast %231 : vector<1x272xf32> to vector<17x272xf32>
    %233 = arith.addf %230, %232 : vector<17x272xf32>
    %cst_226 = arith.constant 0.000000e+00 : f32
    %234 = vector.broadcast %cst_226 : f32 to vector<17x272xf32>
    %235 = arith.maximumf %233, %234 : vector<17x272xf32>
    %236 = arith.truncf %235 : vector<17x272xf32> to vector<17x272xbf16>
    %c0_227 = arith.constant 0 : index
    %c0_228 = arith.constant 0 : index
    %c0_229 = arith.constant 0 : index
    %237 = vector.load %arg4[%c0_227, %c0_228, %c0_229] : memref<5x7x17xbf16, #tpu.memory_space<vmem>>, vector<1x7x17xbf16>
    %238 = vector.shape_cast %237 : vector<1x7x17xbf16> to vector<7x17xbf16>
    %cst_230 = arith.constant dense<0.000000e+00> : vector<7x272xf32>
    %239 = tpu.matmul %238, %236, %cst_230 {dimension_numbers = #tpu.dot_dimension_numbers<[1], [0], [0], [1], [0, 0, 1, 1], [], []>} : vector<7x17xbf16>, vector<17x272xbf16>, vector<7x272xf32> -> vector<7x272xf32>
    %240 = arith.truncf %239 : vector<7x272xf32> to vector<7x272xbf16>
    %c0_231 = arith.constant 0 : index
    %c0_232 = arith.constant 0 : index
    %c0_233 = arith.constant 0 : index
    %241 = vector.load %arg5[%c0_231, %c0_232, %c0_233] : memref<5x272x224xbf16, #tpu.memory_space<vmem>>, vector<1x272x224xbf16>
    %242 = vector.shape_cast %241 : vector<1x272x224xbf16> to vector<272x224xbf16>
    %cst_234 = arith.constant dense<0.000000e+00> : vector<7x224xf32>
    %243 = tpu.matmul %240, %242, %cst_234 {dimension_numbers = #tpu.dot_dimension_numbers<[1], [0], [0], [1], [0, 0, 1, 1], [], []>} : vector<7x272xbf16>, vector<272x224xbf16>, vector<7x224xf32> -> vector<7x224xf32>
    %c1_235 = arith.constant 1 : index
    %c0_236 = arith.constant 0 : index
    %c0_237 = arith.constant 0 : index
    %244 = vector.load %arg4[%c1_235, %c0_236, %c0_237] : memref<5x7x17xbf16, #tpu.memory_space<vmem>>, vector<1x7x17xbf16>
    %245 = vector.shape_cast %244 : vector<1x7x17xbf16> to vector<7x17xbf16>
    %cst_238 = arith.constant dense<0.000000e+00> : vector<7x272xf32>
    %246 = tpu.matmul %245, %236, %cst_238 {dimension_numbers = #tpu.dot_dimension_numbers<[1], [0], [0], [1], [0, 0, 1, 1], [], []>} : vector<7x17xbf16>, vector<17x272xbf16>, vector<7x272xf32> -> vector<7x272xf32>
    %247 = arith.truncf %246 : vector<7x272xf32> to vector<7x272xbf16>
    %c1_239 = arith.constant 1 : index
    %c0_240 = arith.constant 0 : index
    %c0_241 = arith.constant 0 : index
    %248 = vector.load %arg5[%c1_239, %c0_240, %c0_241] : memref<5x272x224xbf16, #tpu.memory_space<vmem>>, vector<1x272x224xbf16>
    %249 = vector.shape_cast %248 : vector<1x272x224xbf16> to vector<272x224xbf16>
    %cst_242 = arith.constant dense<0.000000e+00> : vector<7x224xf32>
    %250 = tpu.matmul %247, %249, %cst_242 {dimension_numbers = #tpu.dot_dimension_numbers<[1], [0], [0], [1], [0, 0, 1, 1], [], []>} : vector<7x272xbf16>, vector<272x224xbf16>, vector<7x224xf32> -> vector<7x224xf32>
    %251 = arith.addf %243, %250 : vector<7x224xf32>
    %c2_243 = arith.constant 2 : index
    %c0_244 = arith.constant 0 : index
    %c0_245 = arith.constant 0 : index
    %252 = vector.load %arg4[%c2_243, %c0_244, %c0_245] : memref<5x7x17xbf16, #tpu.memory_space<vmem>>, vector<1x7x17xbf16>
    %253 = vector.shape_cast %252 : vector<1x7x17xbf16> to vector<7x17xbf16>
    %cst_246 = arith.constant dense<0.000000e+00> : vector<7x272xf32>
    %254 = tpu.matmul %253, %236, %cst_246 {dimension_numbers = #tpu.dot_dimension_numbers<[1], [0], [0], [1], [0, 0, 1, 1], [], []>} : vector<7x17xbf16>, vector<17x272xbf16>, vector<7x272xf32> -> vector<7x272xf32>
    %255 = arith.truncf %254 : vector<7x272xf32> to vector<7x272xbf16>
    %c2_247 = arith.constant 2 : index
    %c0_248 = arith.constant 0 : index
    %c0_249 = arith.constant 0 : index
    %256 = vector.load %arg5[%c2_247, %c0_248, %c0_249] : memref<5x272x224xbf16, #tpu.memory_space<vmem>>, vector<1x272x224xbf16>
    %257 = vector.shape_cast %256 : vector<1x272x224xbf16> to vector<272x224xbf16>
    %cst_250 = arith.constant dense<0.000000e+00> : vector<7x224xf32>
    %258 = tpu.matmul %255, %257, %cst_250 {dimension_numbers = #tpu.dot_dimension_numbers<[1], [0], [0], [1], [0, 0, 1, 1], [], []>} : vector<7x272xbf16>, vector<272x224xbf16>, vector<7x224xf32> -> vector<7x224xf32>
    %259 = arith.addf %251, %258 : vector<7x224xf32>
    %c3_251 = arith.constant 3 : index
    %c0_252 = arith.constant 0 : index
    %c0_253 = arith.constant 0 : index
    %260 = vector.load %arg4[%c3_251, %c0_252, %c0_253] : memref<5x7x17xbf16, #tpu.memory_space<vmem>>, vector<1x7x17xbf16>
    %261 = vector.shape_cast %260 : vector<1x7x17xbf16> to vector<7x17xbf16>
    %cst_254 = arith.constant dense<0.000000e+00> : vector<7x272xf32>
    %262 = tpu.matmul %261, %236, %cst_254 {dimension_numbers = #tpu.dot_dimension_numbers<[1], [0], [0], [1], [0, 0, 1, 1], [], []>} : vector<7x17xbf16>, vector<17x272xbf16>, vector<7x272xf32> -> vector<7x272xf32>
    %263 = arith.truncf %262 : vector<7x272xf32> to vector<7x272xbf16>
    %c3_255 = arith.constant 3 : index
    %c0_256 = arith.constant 0 : index
    %c0_257 = arith.constant 0 : index
    %264 = vector.load %arg5[%c3_255, %c0_256, %c0_257] : memref<5x272x224xbf16, #tpu.memory_space<vmem>>, vector<1x272x224xbf16>
    %265 = vector.shape_cast %264 : vector<1x272x224xbf16> to vector<272x224xbf16>
    %cst_258 = arith.constant dense<0.000000e+00> : vector<7x224xf32>
    %266 = tpu.matmul %263, %265, %cst_258 {dimension_numbers = #tpu.dot_dimension_numbers<[1], [0], [0], [1], [0, 0, 1, 1], [], []>} : vector<7x272xbf16>, vector<272x224xbf16>, vector<7x224xf32> -> vector<7x224xf32>
    %267 = arith.addf %259, %266 : vector<7x224xf32>
    %c4_259 = arith.constant 4 : index
    %c0_260 = arith.constant 0 : index
    %c0_261 = arith.constant 0 : index
    %268 = vector.load %arg4[%c4_259, %c0_260, %c0_261] : memref<5x7x17xbf16, #tpu.memory_space<vmem>>, vector<1x7x17xbf16>
    %269 = vector.shape_cast %268 : vector<1x7x17xbf16> to vector<7x17xbf16>
    %cst_262 = arith.constant dense<0.000000e+00> : vector<7x272xf32>
    %270 = tpu.matmul %269, %236, %cst_262 {dimension_numbers = #tpu.dot_dimension_numbers<[1], [0], [0], [1], [0, 0, 1, 1], [], []>} : vector<7x17xbf16>, vector<17x272xbf16>, vector<7x272xf32> -> vector<7x272xf32>
    %271 = arith.truncf %270 : vector<7x272xf32> to vector<7x272xbf16>
    %c4_263 = arith.constant 4 : index
    %c0_264 = arith.constant 0 : index
    %c0_265 = arith.constant 0 : index
    %272 = vector.load %arg5[%c4_263, %c0_264, %c0_265] : memref<5x272x224xbf16, #tpu.memory_space<vmem>>, vector<1x272x224xbf16>
    %273 = vector.shape_cast %272 : vector<1x272x224xbf16> to vector<272x224xbf16>
    %cst_266 = arith.constant dense<0.000000e+00> : vector<7x224xf32>
    %274 = tpu.matmul %271, %273, %cst_266 {dimension_numbers = #tpu.dot_dimension_numbers<[1], [0], [0], [1], [0, 0, 1, 1], [], []>} : vector<7x272xbf16>, vector<272x224xbf16>, vector<7x224xf32> -> vector<7x224xf32>
    %275 = arith.addf %267, %274 : vector<7x224xf32>
    %c0_267 = arith.constant 0 : index
    %c0_268 = arith.constant 0 : index
    %276 = vector.load %arg6[%c0_267, %c0_268] : memref<1x224xf32, #tpu.memory_space<vmem>>, vector<1x224xf32>
    %277 = vector.broadcast %276 : vector<1x224xf32> to vector<7x224xf32>
    %278 = arith.addf %275, %277 : vector<7x224xf32>
    %cst_269 = arith.constant 0.000000e+00 : f32
    %279 = vector.broadcast %cst_269 : f32 to vector<7x224xf32>
    %280 = arith.maximumf %278, %279 : vector<7x224xf32>
    %281 = arith.truncf %280 : vector<7x224xf32> to vector<7x224xbf16>
    %c0_270 = arith.constant 0 : index
    %c0_271 = arith.constant 0 : index
    %282 = vector.load %arg11[%c0_270, %c0_271] : memref<1x2xf32, #tpu.memory_space<vmem>>, vector<1x2xf32>
    %c0_272 = arith.constant 0 : index
    %c0_273 = arith.constant 0 : index
    %c0_274 = arith.constant 0 : index
    %283 = vector.load %arg7[%c0_272, %c0_273, %c0_274] : memref<5x2x7xbf16, #tpu.memory_space<vmem>>, vector<1x1x7xbf16>
    %284 = vector.shape_cast %283 : vector<1x1x7xbf16> to vector<1x7xbf16>
    %cst_275 = arith.constant dense<0.000000e+00> : vector<1x224xf32>
    %285 = tpu.matmul %284, %281, %cst_275 {dimension_numbers = #tpu.dot_dimension_numbers<[1], [0], [0], [1], [0, 0, 1, 1], [], []>} : vector<1x7xbf16>, vector<7x224xbf16>, vector<1x224xf32> -> vector<1x224xf32>
    %286 = arith.truncf %285 : vector<1x224xf32> to vector<1x224xbf16>
    %c0_276 = arith.constant 0 : index
    %c0_277 = arith.constant 0 : index
    %c0_278 = arith.constant 0 : index
    %287 = vector.load %arg8[%c0_276, %c0_277, %c0_278] : memref<5x224x64xbf16, #tpu.memory_space<vmem>>, vector<1x224x64xbf16>
    %288 = vector.shape_cast %287 : vector<1x224x64xbf16> to vector<224x64xbf16>
    %cst_279 = arith.constant dense<0.000000e+00> : vector<1x64xf32>
    %289 = tpu.matmul %286, %288, %cst_279 {dimension_numbers = #tpu.dot_dimension_numbers<[1], [0], [0], [1], [0, 0, 1, 1], [], []>} : vector<1x224xbf16>, vector<224x64xbf16>, vector<1x64xf32> -> vector<1x64xf32>
    %c1_280 = arith.constant 1 : index
    %c0_281 = arith.constant 0 : index
    %c0_282 = arith.constant 0 : index
    %290 = vector.load %arg7[%c1_280, %c0_281, %c0_282] : memref<5x2x7xbf16, #tpu.memory_space<vmem>>, vector<1x1x7xbf16>
    %291 = vector.shape_cast %290 : vector<1x1x7xbf16> to vector<1x7xbf16>
    %cst_283 = arith.constant dense<0.000000e+00> : vector<1x224xf32>
    %292 = tpu.matmul %291, %281, %cst_283 {dimension_numbers = #tpu.dot_dimension_numbers<[1], [0], [0], [1], [0, 0, 1, 1], [], []>} : vector<1x7xbf16>, vector<7x224xbf16>, vector<1x224xf32> -> vector<1x224xf32>
    %293 = arith.truncf %292 : vector<1x224xf32> to vector<1x224xbf16>
    %c1_284 = arith.constant 1 : index
    %c0_285 = arith.constant 0 : index
    %c0_286 = arith.constant 0 : index
    %294 = vector.load %arg8[%c1_284, %c0_285, %c0_286] : memref<5x224x64xbf16, #tpu.memory_space<vmem>>, vector<1x224x64xbf16>
    %295 = vector.shape_cast %294 : vector<1x224x64xbf16> to vector<224x64xbf16>
    %cst_287 = arith.constant dense<0.000000e+00> : vector<1x64xf32>
    %296 = tpu.matmul %293, %295, %cst_287 {dimension_numbers = #tpu.dot_dimension_numbers<[1], [0], [0], [1], [0, 0, 1, 1], [], []>} : vector<1x224xbf16>, vector<224x64xbf16>, vector<1x64xf32> -> vector<1x64xf32>
    %297 = arith.addf %289, %296 : vector<1x64xf32>
    %c2_288 = arith.constant 2 : index
    %c0_289 = arith.constant 0 : index
    %c0_290 = arith.constant 0 : index
    %298 = vector.load %arg7[%c2_288, %c0_289, %c0_290] : memref<5x2x7xbf16, #tpu.memory_space<vmem>>, vector<1x1x7xbf16>
    %299 = vector.shape_cast %298 : vector<1x1x7xbf16> to vector<1x7xbf16>
    %cst_291 = arith.constant dense<0.000000e+00> : vector<1x224xf32>
    %300 = tpu.matmul %299, %281, %cst_291 {dimension_numbers = #tpu.dot_dimension_numbers<[1], [0], [0], [1], [0, 0, 1, 1], [], []>} : vector<1x7xbf16>, vector<7x224xbf16>, vector<1x224xf32> -> vector<1x224xf32>
    %301 = arith.truncf %300 : vector<1x224xf32> to vector<1x224xbf16>
    %c2_292 = arith.constant 2 : index
    %c0_293 = arith.constant 0 : index
    %c0_294 = arith.constant 0 : index
    %302 = vector.load %arg8[%c2_292, %c0_293, %c0_294] : memref<5x224x64xbf16, #tpu.memory_space<vmem>>, vector<1x224x64xbf16>
    %303 = vector.shape_cast %302 : vector<1x224x64xbf16> to vector<224x64xbf16>
    %cst_295 = arith.constant dense<0.000000e+00> : vector<1x64xf32>
    %304 = tpu.matmul %301, %303, %cst_295 {dimension_numbers = #tpu.dot_dimension_numbers<[1], [0], [0], [1], [0, 0, 1, 1], [], []>} : vector<1x224xbf16>, vector<224x64xbf16>, vector<1x64xf32> -> vector<1x64xf32>
    %305 = arith.addf %297, %304 : vector<1x64xf32>
    %c3_296 = arith.constant 3 : index
    %c0_297 = arith.constant 0 : index
    %c0_298 = arith.constant 0 : index
    %306 = vector.load %arg7[%c3_296, %c0_297, %c0_298] : memref<5x2x7xbf16, #tpu.memory_space<vmem>>, vector<1x1x7xbf16>
    %307 = vector.shape_cast %306 : vector<1x1x7xbf16> to vector<1x7xbf16>
    %cst_299 = arith.constant dense<0.000000e+00> : vector<1x224xf32>
    %308 = tpu.matmul %307, %281, %cst_299 {dimension_numbers = #tpu.dot_dimension_numbers<[1], [0], [0], [1], [0, 0, 1, 1], [], []>} : vector<1x7xbf16>, vector<7x224xbf16>, vector<1x224xf32> -> vector<1x224xf32>
    %309 = arith.truncf %308 : vector<1x224xf32> to vector<1x224xbf16>
    %c3_300 = arith.constant 3 : index
    %c0_301 = arith.constant 0 : index
    %c0_302 = arith.constant 0 : index
    %310 = vector.load %arg8[%c3_300, %c0_301, %c0_302] : memref<5x224x64xbf16, #tpu.memory_space<vmem>>, vector<1x224x64xbf16>
    %311 = vector.shape_cast %310 : vector<1x224x64xbf16> to vector<224x64xbf16>
    %cst_303 = arith.constant dense<0.000000e+00> : vector<1x64xf32>
    %312 = tpu.matmul %309, %311, %cst_303 {dimension_numbers = #tpu.dot_dimension_numbers<[1], [0], [0], [1], [0, 0, 1, 1], [], []>} : vector<1x224xbf16>, vector<224x64xbf16>, vector<1x64xf32> -> vector<1x64xf32>
    %313 = arith.addf %305, %312 : vector<1x64xf32>
    %c4_304 = arith.constant 4 : index
    %c0_305 = arith.constant 0 : index
    %c0_306 = arith.constant 0 : index
    %314 = vector.load %arg7[%c4_304, %c0_305, %c0_306] : memref<5x2x7xbf16, #tpu.memory_space<vmem>>, vector<1x1x7xbf16>
    %315 = vector.shape_cast %314 : vector<1x1x7xbf16> to vector<1x7xbf16>
    %cst_307 = arith.constant dense<0.000000e+00> : vector<1x224xf32>
    %316 = tpu.matmul %315, %281, %cst_307 {dimension_numbers = #tpu.dot_dimension_numbers<[1], [0], [0], [1], [0, 0, 1, 1], [], []>} : vector<1x7xbf16>, vector<7x224xbf16>, vector<1x224xf32> -> vector<1x224xf32>
    %317 = arith.truncf %316 : vector<1x224xf32> to vector<1x224xbf16>
    %c4_308 = arith.constant 4 : index
    %c0_309 = arith.constant 0 : index
    %c0_310 = arith.constant 0 : index
    %318 = vector.load %arg8[%c4_308, %c0_309, %c0_310] : memref<5x224x64xbf16, #tpu.memory_space<vmem>>, vector<1x224x64xbf16>
    %319 = vector.shape_cast %318 : vector<1x224x64xbf16> to vector<224x64xbf16>
    %cst_311 = arith.constant dense<0.000000e+00> : vector<1x64xf32>
    %320 = tpu.matmul %317, %319, %cst_311 {dimension_numbers = #tpu.dot_dimension_numbers<[1], [0], [0], [1], [0, 0, 1, 1], [], []>} : vector<1x224xbf16>, vector<224x64xbf16>, vector<1x64xf32> -> vector<1x64xf32>
    %321 = arith.addf %313, %320 : vector<1x64xf32>
    %c0_312 = arith.constant 0 : index
    %c0_313 = arith.constant 0 : index
    %322 = vector.load %arg9[%c0_312, %c0_313] : memref<1x64xf32, #tpu.memory_space<vmem>>, vector<1x64xf32>
    %323 = arith.addf %321, %322 : vector<1x64xf32>
    %cst_314 = arith.constant 0.000000e+00 : f32
    %324 = vector.broadcast %cst_314 : f32 to vector<1x64xf32>
    %325 = arith.maximumf %323, %324 : vector<1x64xf32>
    %326 = arith.truncf %325 : vector<1x64xf32> to vector<1x64xbf16>
    %c0_315 = arith.constant 0 : index
    %c0_316 = arith.constant 0 : index
    %c0_317 = arith.constant 0 : index
    %327 = vector.load %arg10[%c0_315, %c0_316, %c0_317] : memref<2x64x2xbf16, #tpu.memory_space<vmem>>, vector<1x64x2xbf16>
    %328 = vector.shape_cast %327 : vector<1x64x2xbf16> to vector<64x2xbf16>
    %cst_318 = arith.constant dense<0.000000e+00> : vector<1x2xf32>
    %329 = tpu.matmul %326, %328, %cst_318 {dimension_numbers = #tpu.dot_dimension_numbers<[1], [0], [0], [1], [0, 0, 1, 1], [], []>} : vector<1x64xbf16>, vector<64x2xbf16>, vector<1x2xf32> -> vector<1x2xf32>
    %330 = arith.addf %282, %329 : vector<1x2xf32>
    %c0_319 = arith.constant 0 : index
    %c1_320 = arith.constant 1 : index
    %c0_321 = arith.constant 0 : index
    %331 = vector.load %arg7[%c0_319, %c1_320, %c0_321] : memref<5x2x7xbf16, #tpu.memory_space<vmem>>, vector<1x1x7xbf16>
    %332 = vector.shape_cast %331 : vector<1x1x7xbf16> to vector<1x7xbf16>
    %cst_322 = arith.constant dense<0.000000e+00> : vector<1x224xf32>
    %333 = tpu.matmul %332, %281, %cst_322 {dimension_numbers = #tpu.dot_dimension_numbers<[1], [0], [0], [1], [0, 0, 1, 1], [], []>} : vector<1x7xbf16>, vector<7x224xbf16>, vector<1x224xf32> -> vector<1x224xf32>
    %334 = arith.truncf %333 : vector<1x224xf32> to vector<1x224xbf16>
    %c0_323 = arith.constant 0 : index
    %c0_324 = arith.constant 0 : index
    %c0_325 = arith.constant 0 : index
    %335 = vector.load %arg8[%c0_323, %c0_324, %c0_325] : memref<5x224x64xbf16, #tpu.memory_space<vmem>>, vector<1x224x64xbf16>
    %336 = vector.shape_cast %335 : vector<1x224x64xbf16> to vector<224x64xbf16>
    %cst_326 = arith.constant dense<0.000000e+00> : vector<1x64xf32>
    %337 = tpu.matmul %334, %336, %cst_326 {dimension_numbers = #tpu.dot_dimension_numbers<[1], [0], [0], [1], [0, 0, 1, 1], [], []>} : vector<1x224xbf16>, vector<224x64xbf16>, vector<1x64xf32> -> vector<1x64xf32>
    %c1_327 = arith.constant 1 : index
    %c1_328 = arith.constant 1 : index
    %c0_329 = arith.constant 0 : index
    %338 = vector.load %arg7[%c1_327, %c1_328, %c0_329] : memref<5x2x7xbf16, #tpu.memory_space<vmem>>, vector<1x1x7xbf16>
    %339 = vector.shape_cast %338 : vector<1x1x7xbf16> to vector<1x7xbf16>
    %cst_330 = arith.constant dense<0.000000e+00> : vector<1x224xf32>
    %340 = tpu.matmul %339, %281, %cst_330 {dimension_numbers = #tpu.dot_dimension_numbers<[1], [0], [0], [1], [0, 0, 1, 1], [], []>} : vector<1x7xbf16>, vector<7x224xbf16>, vector<1x224xf32> -> vector<1x224xf32>
    %341 = arith.truncf %340 : vector<1x224xf32> to vector<1x224xbf16>
    %c1_331 = arith.constant 1 : index
    %c0_332 = arith.constant 0 : index
    %c0_333 = arith.constant 0 : index
    %342 = vector.load %arg8[%c1_331, %c0_332, %c0_333] : memref<5x224x64xbf16, #tpu.memory_space<vmem>>, vector<1x224x64xbf16>
    %343 = vector.shape_cast %342 : vector<1x224x64xbf16> to vector<224x64xbf16>
    %cst_334 = arith.constant dense<0.000000e+00> : vector<1x64xf32>
    %344 = tpu.matmul %341, %343, %cst_334 {dimension_numbers = #tpu.dot_dimension_numbers<[1], [0], [0], [1], [0, 0, 1, 1], [], []>} : vector<1x224xbf16>, vector<224x64xbf16>, vector<1x64xf32> -> vector<1x64xf32>
    %345 = arith.addf %337, %344 : vector<1x64xf32>
    %c2_335 = arith.constant 2 : index
    %c1_336 = arith.constant 1 : index
    %c0_337 = arith.constant 0 : index
    %346 = vector.load %arg7[%c2_335, %c1_336, %c0_337] : memref<5x2x7xbf16, #tpu.memory_space<vmem>>, vector<1x1x7xbf16>
    %347 = vector.shape_cast %346 : vector<1x1x7xbf16> to vector<1x7xbf16>
    %cst_338 = arith.constant dense<0.000000e+00> : vector<1x224xf32>
    %348 = tpu.matmul %347, %281, %cst_338 {dimension_numbers = #tpu.dot_dimension_numbers<[1], [0], [0], [1], [0, 0, 1, 1], [], []>} : vector<1x7xbf16>, vector<7x224xbf16>, vector<1x224xf32> -> vector<1x224xf32>
    %349 = arith.truncf %348 : vector<1x224xf32> to vector<1x224xbf16>
    %c2_339 = arith.constant 2 : index
    %c0_340 = arith.constant 0 : index
    %c0_341 = arith.constant 0 : index
    %350 = vector.load %arg8[%c2_339, %c0_340, %c0_341] : memref<5x224x64xbf16, #tpu.memory_space<vmem>>, vector<1x224x64xbf16>
    %351 = vector.shape_cast %350 : vector<1x224x64xbf16> to vector<224x64xbf16>
    %cst_342 = arith.constant dense<0.000000e+00> : vector<1x64xf32>
    %352 = tpu.matmul %349, %351, %cst_342 {dimension_numbers = #tpu.dot_dimension_numbers<[1], [0], [0], [1], [0, 0, 1, 1], [], []>} : vector<1x224xbf16>, vector<224x64xbf16>, vector<1x64xf32> -> vector<1x64xf32>
    %353 = arith.addf %345, %352 : vector<1x64xf32>
    %c3_343 = arith.constant 3 : index
    %c1_344 = arith.constant 1 : index
    %c0_345 = arith.constant 0 : index
    %354 = vector.load %arg7[%c3_343, %c1_344, %c0_345] : memref<5x2x7xbf16, #tpu.memory_space<vmem>>, vector<1x1x7xbf16>
    %355 = vector.shape_cast %354 : vector<1x1x7xbf16> to vector<1x7xbf16>
    %cst_346 = arith.constant dense<0.000000e+00> : vector<1x224xf32>
    %356 = tpu.matmul %355, %281, %cst_346 {dimension_numbers = #tpu.dot_dimension_numbers<[1], [0], [0], [1], [0, 0, 1, 1], [], []>} : vector<1x7xbf16>, vector<7x224xbf16>, vector<1x224xf32> -> vector<1x224xf32>
    %357 = arith.truncf %356 : vector<1x224xf32> to vector<1x224xbf16>
    %c3_347 = arith.constant 3 : index
    %c0_348 = arith.constant 0 : index
    %c0_349 = arith.constant 0 : index
    %358 = vector.load %arg8[%c3_347, %c0_348, %c0_349] : memref<5x224x64xbf16, #tpu.memory_space<vmem>>, vector<1x224x64xbf16>
    %359 = vector.shape_cast %358 : vector<1x224x64xbf16> to vector<224x64xbf16>
    %cst_350 = arith.constant dense<0.000000e+00> : vector<1x64xf32>
    %360 = tpu.matmul %357, %359, %cst_350 {dimension_numbers = #tpu.dot_dimension_numbers<[1], [0], [0], [1], [0, 0, 1, 1], [], []>} : vector<1x224xbf16>, vector<224x64xbf16>, vector<1x64xf32> -> vector<1x64xf32>
    %361 = arith.addf %353, %360 : vector<1x64xf32>
    %c4_351 = arith.constant 4 : index
    %c1_352 = arith.constant 1 : index
    %c0_353 = arith.constant 0 : index
    %362 = vector.load %arg7[%c4_351, %c1_352, %c0_353] : memref<5x2x7xbf16, #tpu.memory_space<vmem>>, vector<1x1x7xbf16>
    %363 = vector.shape_cast %362 : vector<1x1x7xbf16> to vector<1x7xbf16>
    %cst_354 = arith.constant dense<0.000000e+00> : vector<1x224xf32>
    %364 = tpu.matmul %363, %281, %cst_354 {dimension_numbers = #tpu.dot_dimension_numbers<[1], [0], [0], [1], [0, 0, 1, 1], [], []>} : vector<1x7xbf16>, vector<7x224xbf16>, vector<1x224xf32> -> vector<1x224xf32>
    %365 = arith.truncf %364 : vector<1x224xf32> to vector<1x224xbf16>
    %c4_355 = arith.constant 4 : index
    %c0_356 = arith.constant 0 : index
    %c0_357 = arith.constant 0 : index
    %366 = vector.load %arg8[%c4_355, %c0_356, %c0_357] : memref<5x224x64xbf16, #tpu.memory_space<vmem>>, vector<1x224x64xbf16>
    %367 = vector.shape_cast %366 : vector<1x224x64xbf16> to vector<224x64xbf16>
    %cst_358 = arith.constant dense<0.000000e+00> : vector<1x64xf32>
    %368 = tpu.matmul %365, %367, %cst_358 {dimension_numbers = #tpu.dot_dimension_numbers<[1], [0], [0], [1], [0, 0, 1, 1], [], []>} : vector<1x224xbf16>, vector<224x64xbf16>, vector<1x64xf32> -> vector<1x64xf32>
    %369 = arith.addf %361, %368 : vector<1x64xf32>
    %c0_359 = arith.constant 0 : index
    %c0_360 = arith.constant 0 : index
    %370 = vector.load %arg9[%c0_359, %c0_360] : memref<1x64xf32, #tpu.memory_space<vmem>>, vector<1x64xf32>
    %371 = arith.addf %369, %370 : vector<1x64xf32>
    %cst_361 = arith.constant 0.000000e+00 : f32
    %372 = vector.broadcast %cst_361 : f32 to vector<1x64xf32>
    %373 = arith.maximumf %371, %372 : vector<1x64xf32>
    %374 = arith.truncf %373 : vector<1x64xf32> to vector<1x64xbf16>
    %c1_362 = arith.constant 1 : index
    %c0_363 = arith.constant 0 : index
    %c0_364 = arith.constant 0 : index
    %375 = vector.load %arg10[%c1_362, %c0_363, %c0_364] : memref<2x64x2xbf16, #tpu.memory_space<vmem>>, vector<1x64x2xbf16>
    %376 = vector.shape_cast %375 : vector<1x64x2xbf16> to vector<64x2xbf16>
    %cst_365 = arith.constant dense<0.000000e+00> : vector<1x2xf32>
    %377 = tpu.matmul %374, %376, %cst_365 {dimension_numbers = #tpu.dot_dimension_numbers<[1], [0], [0], [1], [0, 0, 1, 1], [], []>} : vector<1x64xbf16>, vector<64x2xbf16>, vector<1x2xf32> -> vector<1x2xf32>
    %378 = arith.addf %330, %377 : vector<1x2xf32>
    %c1_366 = arith.constant 1 : index
    %c0_367 = arith.constant 0 : index
    %379 = vector.load %arg12[%c1_366, %c0_367] : memref<2x2xf32, #tpu.memory_space<vmem>>, vector<1x2xf32>
    tpu.vector_store %arg12[%c1_366, %c0_367], %378 {strides = array<i32>} : memref<2x2xf32, #tpu.memory_space<vmem>>, vector<1x2xf32>,
    return
  }
}

</mosaic_0001>

<bundles_post_ra>
// kernel: pixel_reacher_forward.1
= control target key start
LH: loop header
LB: loop body
LE: loop exit
PB: predicated region body
PF: predicated region fallthrough
CT: control target
= control target key end

     0   :  { %17 = vsyncpa [#allocation3], 0  ;;  %s14891_s0 = inlined_call_operand.vmem [shape: bf16[2,37,37], index: 0, kind: input, shape index: {}]   ;;  %s14892_s1 = inlined_call_operand.vmem [shape: bf16[5,17,37], index: 1, kind: input, shape index: {}]   ;;  %s14893_s2 = inlined_call_operand.vmem [shape: bf16[5,37,272], index: 2, kind: input, shape index: {}]   ;;  %s14894_s3 = inlined_call_operand.vmem [shape: f32[1,272], index: 3, kind: input, shape index: {}]   ;;  %s14895_s4 = inlined_call_operand.vmem [shape: bf16[5,7,17], index: 4, kind: input, shape index: {}]   ;;  %s14896_s5 = inlined_call_operand.hbm [shape: bf16[5,272,224], index: 5, kind: input, shape index: {}]   ;;  %s14897_s6 = inlined_call_operand.vmem [shape: f32[1,224], index: 6, kind: input, shape index: {}]   ;;  %s14898_s7 = inlined_call_operand.vmem [shape: bf16[5,2,7], index: 7, kind: input, shape index: {}]   ;;  %s14899_s8 = inlined_call_operand.vmem [shape: bf16[5,224,64], index: 8, kind: input, shape index: {}]   ;;  %s14900_s9 = inlined_call_operand.vmem [shape: f32[1,64], index: 9, kind: input, shape index: {}]   ;;  %s14901_s10 = inlined_call_operand.vmem [shape: bf16[2,64,2], index: 10, kind: input, shape index: {}]   ;;  %s14902_s11 = inlined_call_operand.vmem [shape: f32[1,2], index: 11, kind: input, shape index: {}]   ;;  %s14903_s12 = inlined_call_operand.hbm [shape: f32[2,2], index: 12, kind: output, shape index: {}]  }
   0x1   :  { %18 = vsyncpa [#allocation4], 0  ;;  %s12395_s21 = smov [#allocation2]   ;;  %s12347_s25 = scalar_lea.hbm %s14896_s5, 21760 }
   0x2   :  { %s34_s22 = sshll.u32 %s12395_s21, 4  ;;  %p12348_p0 = scmp.ne.s32.totalorder %s14896_s5, %s12347_s25  ;;  %s35_s22 = int_to_ptr.vmem [resolvable:$true] %s34_s22 }
   0x3   :  { %p12351_p1 = scmp.lt.u32.totalorder %s12347_s25, %s14896_s5 }
   0x5   :  { %p12353_p2 = pnand %p12351_p1, %p12348_p0 }
   0x7   :  { %12356 = shalt.err (!%p12353_p2)
}
   0x8   :  { %s12357_s30 = scalar_lea.vmem %s35_s22, 21760  ;;  %p12362_p4 = scmp.lt.s32.totalorder %s35_s22, %s35_s22 }
   0x9   :  { %p12358_p3 = scmp.ne.s32.totalorder %s35_s22, %s12357_s30  ;;  %p12363_p5 = scmp.lt.s32.totalorder %s12357_s30, %s12357_s30 }
   0xb   :  { %p12364_p6 = por %p12363_p5, %p12362_p4 }
   0xd   :  { %p12365_p7 = pnand %p12364_p6, %p12358_p3 }
   0xf   :  { %12368 = shalt.err (!%p12365_p7)
}
  0x10   :  { %s12396_s13 = smov 128   ;;  %s12397_s14 = smov 8  }
  0x11   :  { %40 = dma.hbm_to_vmem [thread:$0]  %s14896_s5, 21760, %s35_s22, [#allocation3], %s12396_s13, %s12396_s13, %s12397_s14  }
  0x12   :  { %12391 = dma.done.wait [#allocation3], 21760  }
  0x13   :  { %12392 = vsyncadd [#allocation3], 4294945536  ;;  %vm95_vm0 = vcmask 1041408   ;;  %vm96_vm1 = vcmask 1042432   ;;  %v12398_v0 = vmov 65535   ;;  %v11543_v2 = vld [vmem:[%s14891_s0] sm:$0xff]  }
  0x14   :  { %v97_v1 = vsel %vm95_vm0, 4294967295, %v12398_v0  ;;  %vm88_vm2 = vcmask 302080   ;;  %v11544_v3 = vld [vmem:[%s14891_s0 + $0x8] sm:$0xff]   ;;  %11174 = vmatprep.subr.bf16.mxu1 %v11543_v2  ;;  %v11545_v5 = vld [vmem:[%s14891_s0 + $0x10] ss:$0 sps:$4 sm:$0x77]   ;;  %11164 = vmatprep.subr.bf16.mxu0 %v11543_v2 }
  0x15   :  { %v12489_v4 = vsel %vm96_vm1, %v97_v1, 0  ;;  %v11546_v6 = vld [vmem:[%s14892_s1 + $0xc] sm:$0xff]   ;;  %11175 = vmatpush3.bf16.msra.mxu1 %v11543_v2  ;;  %11165 = vmatpush3.bf16.msra.mxu0 %v11543_v2  ;;  %v11548_v8 = vld [vmem:[%s14892_s1] sm:$0xff]   ;;  %v11547_v9 = vld [vmem:[%s14892_s1 + $0x14] ss:$0 sps:$4 sm:$0x11]  }
  0x16   :  { %14977 = vst [vmem:[#allocation8_spill] sm:$0xff] %v12489_v4  ;;  %11176 = vmatprep.subr.bf16.mxu1 %v11544_v3  ;;  %v12498_v7 = vand.u32 %v11545_v5, %v12489_v4  ;;  %11180 = vmatprep.mubr.msk.bf16.mxu1 %vm88_vm2, %v11546_v6  ;;  %v11549_v10 = vld [vmem:[%s14892_s1 + $0x8] ss:$0 sps:$4 sm:$0x11]   ;;  %v11552_v11 = vld [vmem:[%s14893_s2 + $0x40] ss:$12 sps:$4 sm:$0xff]  }
  0x17   :  { %11166 = vmatprep.subr.bf16.mxu0 %v11544_v3  ;;  %11170 = vmatprep.mubr.msk.bf16.mxu0 %vm88_vm2, %v11548_v8  ;;  %v11550_v12 = vld [vmem:[%s14893_s2 + $0x3c] ss:$12 sps:$4 sm:$0xff]   ;;  %v11555_v13 = vld [vmem:[%s14893_s2 + $0x58] ss:$12 sps:$4 sm:$0xff]   ;;  %v11553_v14 = vld [vmem:[%s14893_s2 + $0x54] ss:$12 sps:$4 sm:$0xff]  }
  0x18   :  { %v9909_v15 = vld [vmem:[%s14893_s2 + $0x6c] sm:$0x77]  ;;  %v14924_v20 = vmov 0   ;;  %v11559_v27 = vld [vmem:[%s14893_s2 + $0x5c] ss:$12 sps:$4 sm:$0xff]   ;;  %v12586_v50 = vld [vmem:[%s14891_s0] sm:$0xff]  }
  0x19   :  { %11177 = vmatpush3.bf16.msra.mxu1 %v11544_v3  ;;  %11167 = vmatpush3.bf16.msra.mxu0 %v11544_v3  ;;  %v9918_v16 = vcombine.high %v9909_v15, %v9909_v15  ;;  %v9917_v17 = vcombine.low %v9909_v15, %v9909_v15  ;;  %v11558_v21 = vld [vmem:[%s14893_s2 + $0x44] ss:$12 sps:$4 sm:$0xff]   ;;  %v11560_v28 = vld [vmem:[%s14893_s2 + $0x74] ss:$0 sps:$4 sm:$0x77]   ;;  %v11572_v51 = vld [vmem:[%s14892_s1 + $0x18] sm:$0xff]  }
  0x1a   :  { %11178 = vmatprep.subr.bf16.mxu1 %v12498_v7  ;;  %11168 = vmatprep.subr.bf16.mxu0 %v12498_v7  ;;  %v294_v34 = vand.u32 %v11560_v28, %v12489_v4  ;;  %v11563_v35 = vld [vmem:[%s14893_s2 + $0x4] ss:$12 sps:$4 sm:$0xff]   ;;  %v11561_v38 = vld [vmem:[%s14893_s2] ss:$12 sps:$4 sm:$0xff]   ;;  %v11566_v39 = vld [vmem:[%s14893_s2 + $0x1c] ss:$12 sps:$4 sm:$0xff]  }
  0x1b   :  { %v291_v18 = vand.u32 %v9918_v16, %v12489_v4  ;;  %v288_v19 = vand.u32 %v9917_v17, %v12489_v4  ;;  %v160_v37 = vld [vmem:[%s14893_s2 + $0x30] sm:$0x77]  ;;  %v11564_v41 = vld [vmem:[%s14893_s2 + $0x18] ss:$12 sps:$4 sm:$0xff]   ;;  %v11570_v46 = vld [vmem:[%s14893_s2 + $0x20] ss:$12 sps:$4 sm:$0xff]  }
  0x1c   :  { %v9931_v40 = vcombine.high %v160_v37, %v160_v37  ;;  %v9930_v42 = vcombine.low %v160_v37, %v160_v37  ;;  %v11569_v44 = vld [vmem:[%s14893_s2 + $0x8] ss:$12 sps:$4 sm:$0xff]   ;;  %v11571_v47 = vld [vmem:[%s14893_s2 + $0x38] ss:$0 sps:$4 sm:$0x77]   ;;  %vm1321_vm3 = vcmask 1040384  }
  0x1d   :  { %11179 = vmatpush3.bf16.msra.mxu1 %v12498_v7  ;;  %11169 = vmatpush3.bf16.msra.mxu0 %v12498_v7  ;;  %v448_v48 = vand.u32 %v11571_v47, %v12489_v4  ;;  %v12598_v52 = vld [vmem:[%s14891_s0 + $0x8] sm:$0xff]   ;;  %v11573_v53 = vld [vmem:[%s14892_s1 + $0x20] ss:$0 sps:$4 sm:$0x11]   ;;  %v11574_v54 = vld [vmem:[%s14893_s2 + $0x78] ss:$12 sps:$4 sm:$0xff]  }
  0x1e   :  { %296 = vmatprep.subr.bf16.mxu1 %v11552_v11  ;;  %v445_v43 = vand.u32 %v9931_v40, %v12489_v4  ;;  %v442_v45 = vand.u32 %v9930_v42, %v12489_v4  ;;  %v11576_v55 = vld [vmem:[%s14893_s2 + $0x7c] ss:$12 sps:$4 sm:$0xff]   ;;  %v11577_v56 = vld [vmem:[%s14893_s2 + $0x80] ss:$12 sps:$4 sm:$0xff]   ;;  %v11581_v58 = vld [vmem:[%s14893_s2 + $0x98] ss:$12 sps:$4 sm:$0xff]  }
  0x1f   :  { %v11580_v57 = vld [vmem:[%s14893_s2 + $0x94] ss:$12 sps:$4 sm:$0xff]   ;;  %683 = vmatprep.subr.bf16.mxu0 %v11576_v55  ;;  %v11578_v59 = vld [vmem:[%s14893_s2 + $0x90] ss:$12 sps:$4 sm:$0xff]   ;;  %v9952_v60 = vld [vmem:[%s14893_s2 + $0xa8] sm:$0x77] }
  0x20   :  { %11181 = vmatmul.mubr.msk.bf16.vlgmr.msra.gmra.mrb[0].mxu1 %vm88_vm2, %v11547_v9  ;;  %11171 = vmatmul.mubr.msk.bf16.vlgmr.msra.gmra.mrb[0].mxu0 %vm88_vm2, %v11549_v10  ;;  %v9961_v61 = vcombine.high %v9952_v60, %v9952_v60  ;;  %v9960_v62 = vcombine.low %v9952_v60, %v9952_v60  ;;  %v11584_v63 = vld [vmem:[%s14893_s2 + $0xb0] ss:$0 sps:$4 sm:$0x77]   ;;  %v11589_v40 = vld [vmem:[%s14893_s2 + $0xb8] ss:$12 sps:$4 sm:$0xff]   ;;  %vm1317_vm4 = vcmask 138240  }
  0x21   :  { %297 = vmatpush1.bf16.msra.mxu1 %v11550_v12  ;;  %328 = vmatprep.mubr.bf16.mxu1 %v14924_v20  ;;  %v681_v3 = vand.u32 %v11584_v63, %v12489_v4  ;;  %v11587_v42 = vld [vmem:[%s14893_s2 + $0xb4] ss:$12 sps:$4 sm:$0xff]   ;;  %vm12401_vm5 = vmmov 0   ;;  %vm1745_vm6 = vcmask 130048   ;;  %vm3253_vm7 = vcmask 1043456   ;;  %s12403_s29 = smov [#allocation5]  }
  0x22   :  { %298 = vmatprep.subr.bf16.mxu1 %v11555_v13  ;;  %715 = vmatprep.mubr.bf16.mxu0 %v14924_v20  ;;  %v678_v1 = vand.u32 %v9961_v61, %v12489_v4  ;;  %v675_v2 = vand.u32 %v9960_v62, %v12489_v4  ;;  %vm3249_vm8 = vcmask 56320   ;;  %vm3494_vm9 = vcmask 785408   ;;  %s9878_s30 = sshll.u32 %s12403_s29, 4  ;;  %s9879_s30 = int_to_ptr.vmem [resolvable:$true] %s9878_s30 }
  0x23   :  { %684 = vmatpush1.bf16.msra.mxu0 %v11574_v54  ;;  %vm4316_vm10 = vcmask 523264   ;;  %vm4983_vm11 = vcmask 8192   ;;  %p12374_p9 = scmp.lt.s32.totalorder %s9879_s30, %s9879_s30 }
  0x24   :  { %685 = vmatprep.subr.bf16.mxu0 %v11580_v57 }
  0x25   :  { %299 = vmatpush1.bf16.msra.mxu1 %v11553_v14 }
  0x26   :  { %300 = vmatprep.subr.bf16.mxu1 %v291_v18 }
  0x27   :  { %686 = vmatpush1.bf16.msra.mxu0 %v11578_v59 }
  0x28   :  { %687 = vmatprep.subr.bf16.mxu0 %v678_v1 }
  0x29   :  { %301 = vmatpush1.bf16.msra.mxu1 %v288_v19 }
  0x2a   :  { %11184 = vmatprep.subr.bf16.mxu1 %v11558_v21 }
  0x2b   :  { %688 = vmatpush1.bf16.msra.mxu0 %v675_v2 }
  0x2c   :  { %11224 = vmatprep.subr.bf16.mxu0 %v12586_v50 }
  0xf3   :  { %v11182_v22 = vpop.f32.mrb[0].mxu1  ;;  %v11172_v23 = vpop.f32.mrb[0].mxu0 }
  0xf4   :  { %v214_v24 = vpop.f32.mrb[1].mxu1  ;;  %v136_v25 = vpop.f32.mrb[1].mxu0  ;;  %v229_v36 = vpack.c.bf16 %v11182_v22, %v11182_v22  ;;  %v151_v49 = vpack.c.bf16 %v11172_v23, %v11172_v23 }
  0xf5   :  { %v11183_v26 = vpop.f32.mrb[2].mxu1  ;;  %v11173_v29 = vpop.f32.mrb[2].mxu0 }
  0xf6   :  { %v217_v30 = vpop.f32.mrb[3].mxu1  ;;  %v139_v31 = vpop.f32.mrb[3].mxu0 }
  0xf7   :  { %v228_v32 = vpack.c.bf16 %v217_v30, %v214_v24  ;;  %v150_v33 = vpack.c.bf16 %v139_v31, %v136_v25 }
  0xf9   :  { %9920 = vmatmul.mubr.msk.bf16.vlgmr.msra.gmra.mrb[4].mxu1 %vm88_vm2, %v228_v32 }
  0xfa   :  { %11185 = vmatpush3.bf16.msra.mxu1 %v11558_v21  ;;  %338 = vmatprep.mubr.bf16.mxu1 %v14924_v20 }
  0xfb   :  { %11186 = vmatprep.subr.bf16.mxu1 %v11559_v27 }
  0xfe   :  { %11187 = vmatpush3.bf16.msra.mxu1 %v11559_v27 }
  0xff   :  { %11188 = vmatprep.subr.bf16.mxu1 %v294_v34 }
 0x101   :  { %9921 = vmatmul.mubr.msk.bf16.gmra.mrb[8].mxu1 %vm88_vm2, %v229_v36 }
 0x102   :  { %11190 = vmatprep.mubr.msk.bf16.mxu1 %vm88_vm2, %v228_v32  ;;  %11189 = vmatpush3.bf16.msra.mxu1 %v294_v34 }
 0x103   :  { %450 = vmatprep.subr.bf16.mxu1 %v11563_v35 }
 0x109   :  { %11191 = vmatmul.mubr.msk.bf16.vlgmr.msra.gmra.mrb[12].mxu1 %vm88_vm2, %v229_v36 }
 0x10a   :  { %451 = vmatpush1.bf16.msra.mxu1 %v11561_v38  ;;  %482 = vmatprep.mubr.bf16.mxu1 %v14924_v20  ;;  %v11585_v38 = vld [vmem:[%s14892_s1 + $0x24] sm:$0xff]  }
 0x10b   :  { %452 = vmatprep.subr.bf16.mxu1 %v11566_v39  ;;  %v11586_v39 = vld [vmem:[%s14892_s1 + $0x2c] ss:$0 sps:$4 sm:$0x11]  }
 0x10e   :  { %453 = vmatpush1.bf16.msra.mxu1 %v11564_v41  ;;  %v11590_v41 = vld [vmem:[%s14893_s2 + $0xbc] ss:$12 sps:$4 sm:$0xff]  }
 0x10f   :  { %454 = vmatprep.subr.bf16.mxu1 %v445_v43  ;;  %v11591_v43 = vld [vmem:[%s14893_s2 + $0xcc] ss:$12 sps:$4 sm:$0xff]  }
 0x112   :  { %455 = vmatpush1.bf16.msra.mxu1 %v442_v45  ;;  %v11594_v45 = vld [vmem:[%s14893_s2 + $0xd4] ss:$12 sps:$4 sm:$0xff]  }
 0x113   :  { %11194 = vmatprep.subr.bf16.mxu1 %v11569_v44 }
 0x115   :  { %9933 = vmatmul.mubr.msk.bf16.vlgmr.msra.gmra.mrb[4].mxu1 %vm88_vm2, %v150_v33 }
 0x116   :  { %11195 = vmatpush3.bf16.msra.mxu1 %v11569_v44  ;;  %492 = vmatprep.mubr.bf16.mxu1 %v14924_v20  ;;  %v11593_v44 = vld [vmem:[%s14893_s2 + $0xd0] ss:$12 sps:$4 sm:$0xff]  }
 0x117   :  { %11196 = vmatprep.subr.bf16.mxu1 %v11570_v46 }
 0x11a   :  { %11197 = vmatpush3.bf16.msra.mxu1 %v11570_v46  ;;  %v9982_v46 = vld [vmem:[%s14893_s2 + $0xe4] sm:$0x77] }
 0x11b   :  { %11198 = vmatprep.subr.bf16.mxu1 %v448_v48  ;;  %v9991_v47 = vcombine.high %v9982_v46, %v9982_v46 }
 0x11d   :  { %9934 = vmatmul.mubr.msk.bf16.gmra.mrb[16].mxu1 %vm88_vm2, %v151_v49 }
 0x11e   :  { %11200 = vmatprep.mubr.msk.bf16.mxu1 %vm88_vm2, %v150_v33  ;;  %11199 = vmatpush3.bf16.msra.mxu1 %v448_v48  ;;  %v11597_v48 = vld [vmem:[%s14893_s2 + $0xec] ss:$0 sps:$4 sm:$0x77]  }
 0x11f   :  { %11204 = vmatprep.subr.bf16.mxu1 %v12586_v50 }
 0x125   :  { %11201 = vmatmul.mubr.msk.bf16.vlgmr.msra.gmra.mrb[20].mxu1 %vm88_vm2, %v151_v49  ;;  %v9990_v49 = vcombine.low %v9982_v46, %v9982_v46 }
 0x126   :  { %11205 = vmatpush3.bf16.msra.mxu1 %v12586_v50  ;;  %11210 = vmatprep.mubr.msk.bf16.mxu1 %vm88_vm2, %v11572_v51  ;;  %v920_v51 = vand.u32 %v9991_v47, %v12489_v4 }
 0x127   :  { %11206 = vmatprep.subr.bf16.mxu1 %v12598_v52  ;;  %v917_v54 = vand.u32 %v9990_v49, %v12489_v4  ;;  %v1277_v49 = vlaneseq }
 0x12a   :  { %11207 = vmatpush3.bf16.msra.mxu1 %v12598_v52 }
 0x12b   :  { %11208 = vmatprep.subr.bf16.mxu1 %v12498_v7 }
 0x12e   :  { %11209 = vmatpush3.bf16.msra.mxu1 %v12498_v7 }
 0x12f   :  { %11214 = vmatprep.subr.bf16.mxu1 %v11577_v56 }
 0x131   :  { %11211 = vmatmul.mubr.msk.bf16.vlgmr.msra.gmra.mrb[24].mxu1 %vm88_vm2, %v11573_v53  ;;  %v923_v53 = vand.u32 %v11597_v48, %v12489_v4 }
 0x132   :  { %11215 = vmatpush3.bf16.msra.mxu1 %v11577_v56 }
 0x133   :  { %11216 = vmatprep.subr.bf16.mxu1 %v11581_v58 }
 0x136   :  { %11217 = vmatpush3.bf16.msra.mxu1 %v11581_v58 }
 0x137   :  { %11218 = vmatprep.subr.bf16.mxu1 %v681_v3 }
 0x13a   :  { %11219 = vmatpush3.bf16.msra.mxu1 %v681_v3 }
 0x13b   :  { %11234 = vmatprep.subr.bf16.mxu1 %v11590_v41 }
 0x1d4   :  { %v340_v5 = vpop.f32.mrb[8].mxu1 }
 0x1d5   :  { %v342_v6 = vpop.f32.mrb[9].mxu1 }
 0x1d6   :  { %v344_v8 = vpop.f32.mrb[10].mxu1 }
 0x1d7   :  { %v345_v9 = vpop.f32.mrb[11].mxu1 }
 0x1dc   :  { %v11192_v10 = vpop.f32.mrb[12].mxu1 }
 0x1dd   :  { %v381_v11 = vpop.f32.mrb[13].mxu1 }
 0x1de   :  { %v11193_v12 = vpop.f32.mrb[14].mxu1 }
 0x1df   :  { %v384_v13 = vpop.f32.mrb[15].mxu1  ;;  %v11598_v12 = vld [vmem:[%s14892_s1 + $0x30] sm:$0xff]  }
 0x1e8   :  { %v12636_v14 = vpop.f32.mrb[4].mxu1 }
 0x1e9   :  { %v12638_v15 = vpop.f32.mrb[5].mxu1 }
 0x1ea   :  { %v12640_v16 = vpop.f32.mrb[6].mxu1 }
 0x1eb   :  { %v12642_v17 = vpop.f32.mrb[7].mxu1 }
 0x1f0   :  { %v494_v18 = vpop.f32.mrb[16].mxu1 }
 0x1f1   :  { %v12644_v19 = vadd.f32 %v494_v18, %v340_v5  ;;  %v496_v21 = vpop.f32.mrb[17].mxu1  ;;  %v11599_v18 = vld [vmem:[%s14892_s1 + $0x38] ss:$0 sps:$4 sm:$0x11]  }
 0x1f2   :  { %v12646_v22 = vadd.f32 %v496_v21, %v342_v6  ;;  %v498_v23 = vpop.f32.mrb[18].mxu1  ;;  %v11604_v21 = vld [vmem:[%s14893_s2 + $0x108] ss:$12 sps:$4 sm:$0xff]  }
 0x1f3   :  { %v499_v24 = vpop.f32.mrb[19].mxu1  ;;  %v10012_v23 = vld [vmem:[%s14893_s2 + $0x120] sm:$0x77] }
 0x1f4   :  { %v10021_v24 = vcombine.high %v10012_v23, %v10012_v23 }
 0x1f8   :  { %v11202_v25 = vpop.f32.mrb[20].mxu1 }
 0x1f9   :  { %v544_v26 = vadd.f32 %v11202_v25, %v11192_v10  ;;  %v535_v27 = vpop.f32.mrb[21].mxu1  ;;  %v10020_v25 = vcombine.low %v10012_v23, %v10012_v23 }
 0x1fa   :  { %v536_v28 = vadd.f32 %v535_v27, %v381_v11  ;;  %v11203_v29 = vpop.f32.mrb[22].mxu1  ;;  %v1162_v27 = vand.u32 %v10021_v24, %v12489_v4 }
 0x1fb   :  { %v538_v30 = vpop.f32.mrb[23].mxu1 }
 0x1fc   :  { %v539_v31 = vadd.f32 %v538_v30, %v384_v13 }
 0x204   :  { %v11212_v32 = vpop.f32.mrb[24].mxu1 }
 0x205   :  { %v601_v33 = vpop.f32.mrb[25].mxu1  ;;  %v616_v37 = vpack.c.bf16 %v11212_v32, %v11212_v32 }
 0x206   :  { %v11213_v34 = vpop.f32.mrb[26].mxu1 }
 0x207   :  { %v604_v35 = vpop.f32.mrb[27].mxu1 }
 0x208   :  { %v615_v36 = vpack.c.bf16 %v604_v35, %v601_v33 }
 0x20a   :  { %9963 = vmatmul.mubr.msk.bf16.vlgmr.msra.gmra.mrb[4].mxu0 %vm88_vm2, %v615_v36  ;;  %11220 = vmatprep.mubr.msk.bf16.mxu1 %vm88_vm2, %v615_v36 }
 0x20b   :  { %11221 = vmatmul.mubr.msk.bf16.vlgmr.msra.gmra.mrb[28].mxu1 %vm88_vm2, %v616_v37  ;;  %11225 = vmatpush3.bf16.msra.mxu0 %v12586_v50 }
 0x20c   :  { %725 = vmatprep.mubr.bf16.mxu0 %v14924_v20  ;;  %11226 = vmatprep.subr.bf16.mxu0 %v12598_v52 }
 0x20d   :  { %11235 = vmatpush3.bf16.msra.mxu1 %v11590_v41 }
 0x20e   :  { %11236 = vmatprep.subr.bf16.mxu1 %v11594_v45 }
 0x20f   :  { %11227 = vmatpush3.bf16.msra.mxu0 %v12598_v52 }
 0x210   :  { %11228 = vmatprep.subr.bf16.mxu0 %v12498_v7 }
 0x211   :  { %11237 = vmatpush3.bf16.msra.mxu1 %v11594_v45 }
 0x212   :  { %9964 = vmatmul.mubr.msk.bf16.gmra.mrb[8].mxu0 %vm88_vm2, %v616_v37  ;;  %11238 = vmatprep.subr.bf16.mxu1 %v923_v53 }
 0x213   :  { %11229 = vmatpush3.bf16.msra.mxu0 %v12498_v7  ;;  %11230 = vmatprep.mubr.msk.bf16.mxu0 %vm88_vm2, %v11585_v38 }
 0x214   :  { %925 = vmatprep.subr.bf16.mxu0 %v11589_v40 }
 0x215   :  { %11239 = vmatpush3.bf16.msra.mxu1 %v923_v53 }
 0x216   :  { %11244 = vmatprep.subr.bf16.mxu1 %v12586_v50 }
 0x21a   :  { %11231 = vmatmul.mubr.msk.bf16.vlgmr.msra.gmra.mrb[12].mxu0 %vm88_vm2, %v11586_v39 }
 0x21b   :  { %957 = vmatprep.mubr.bf16.mxu0 %v14924_v20  ;;  %926 = vmatpush1.bf16.msra.mxu0 %v11587_v42 }
 0x21c   :  { %927 = vmatprep.subr.bf16.mxu0 %v11593_v44 }
 0x21f   :  { %928 = vmatpush1.bf16.msra.mxu0 %v11591_v43 }
 0x220   :  { %929 = vmatprep.subr.bf16.mxu0 %v920_v51  ;;  %v12750_v51 = vshrl.u32 %v1277_v49, 7 }
 0x222   :  { %v12753_v53 = vsub.s32 0, %v12750_v51 }
 0x223   :  { %930 = vmatpush1.bf16.msra.mxu0 %v917_v54  ;;  %v1275_v54 = vld [vmem:[%s14894_s3] sm:$0x7] }
 0x224   :  { %14978 = vst [vmem:[#allocation9_spill] sm:$0xff] %v12753_v53 }
 0x2de   :  { %v11222_v55 = vpop.f32.mrb[28].mxu1 }
 0x2df   :  { %v790_v56 = vadd.f32 %v11222_v55, %v544_v26  ;;  %v768_v57 = vpop.f32.mrb[29].mxu1  ;;  %v11610_v26 = vld [vmem:[%s14893_s2 + $0x128] ss:$0 sps:$4 sm:$0x77]   ;;  %v12759_v55 = vsub.s32 1, %v12750_v51 }
 0x2e0   :  { %v784_v58 = vadd.f32 %v768_v57, %v536_v28  ;;  %v11223_v59 = vpop.f32.mrb[30].mxu1  ;;  %v1159_v28 = vand.u32 %v10020_v25, %v12489_v4  ;;  %v1165_v29 = vand.u32 %v11610_v26, %v12489_v4  ;;  %v1280_v57 = vrot.slane %v1275_v54, %v12753_v53 }
 0x2e1   :  { %v771_v60 = vpop.f32.mrb[31].mxu1  ;;  %14979 = vst [vmem:[#allocation10_spill] sm:$0xff] %v12759_v55  ;;  %v1284_v59 = vrot.slane %v1275_v54, %v12759_v55 }
 0x2e2   :  { %v787_v61 = vadd.f32 %v771_v60, %v539_v31 }
 0x2e5   :  { %v727_v62 = vpop.f32.mrb[8].mxu0 }
 0x2e6   :  { %v788_v63 = vadd.f32 %v727_v62, %v12644_v19  ;;  %v729_v1 = vpop.f32.mrb[9].mxu0  ;;  %v11603_v19 = vld [vmem:[%s14893_s2 + $0xf8] ss:$12 sps:$4 sm:$0xff]  }
 0x2e7   :  { %v789_v2 = vadd.f32 %v729_v1, %v12646_v22  ;;  %v731_v3 = vpop.f32.mrb[10].mxu0  ;;  %v11607_v22 = vld [vmem:[%s14893_s2 + $0x110] ss:$12 sps:$4 sm:$0xff]  }
 0x2e8   :  { %v732_v5 = vpop.f32.mrb[11].mxu0 }
 0x2ed   :  { %v11232_v6 = vpop.f32.mrb[12].mxu0 }
 0x2ee   :  { %v843_v8 = vpop.f32.mrb[13].mxu0  ;;  %v858_v13 = vpack.c.bf16 %v11232_v6, %v11232_v6 }
 0x2ef   :  { %v11233_v9 = vpop.f32.mrb[14].mxu0 }
 0x2f0   :  { %v846_v10 = vpop.f32.mrb[15].mxu0 }
 0x2f1   :  { %v857_v11 = vpack.c.bf16 %v846_v10, %v843_v8 }
 0x2f3   :  { %9993 = vmatmul.mubr.msk.bf16.vlgmr.msra.gmra.mrb[4].mxu0 %vm88_vm2, %v857_v11  ;;  %11240 = vmatprep.mubr.msk.bf16.mxu1 %vm88_vm2, %v857_v11 }
 0x2f4   :  { %11241 = vmatmul.mubr.msk.bf16.vlgmr.msra.gmra.mrb[32].mxu1 %vm88_vm2, %v858_v13  ;;  %967 = vmatprep.mubr.bf16.mxu0 %v14924_v20 }
 0x2f5   :  { %11245 = vmatpush3.bf16.msra.mxu1 %v12586_v50  ;;  %11250 = vmatprep.mubr.msk.bf16.mxu1 %vm88_vm2, %v11598_v12  ;;  %v11600_v50 = vld [vmem:[%s14893_s2 + $0xf0] ss:$12 sps:$4 sm:$0xff]  }
 0x2f6   :  { %11246 = vmatprep.subr.bf16.mxu1 %v12598_v52 }
 0x2f9   :  { %11247 = vmatpush3.bf16.msra.mxu1 %v12598_v52  ;;  %v11602_v52 = vld [vmem:[%s14893_s2 + $0xf4] ss:$12 sps:$4 sm:$0xff]  }
 0x2fa   :  { %11248 = vmatprep.subr.bf16.mxu1 %v12498_v7  ;;  %1167 = vmatprep.subr.bf16.mxu0 %v11602_v52 }
 0x2fb   :  { %9994 = vmatmul.mubr.msk.bf16.gmra.mrb[16].mxu0 %vm88_vm2, %v858_v13 }
 0x2fc   :  { %1199 = vmatprep.mubr.bf16.mxu0 %v14924_v20  ;;  %1168 = vmatpush1.bf16.msra.mxu0 %v11600_v50 }
 0x2fd   :  { %11249 = vmatpush3.bf16.msra.mxu1 %v12498_v7  ;;  %v11606_v7 = vld [vmem:[%s14893_s2 + $0x10c] ss:$12 sps:$4 sm:$0xff]  }
 0x2fe   :  { %11254 = vmatprep.subr.bf16.mxu1 %v11603_v19  ;;  %1169 = vmatprep.subr.bf16.mxu0 %v11606_v7 }
 0x300   :  { %11251 = vmatmul.mubr.msk.bf16.vlgmr.msra.gmra.mrb[36].mxu1 %vm88_vm2, %v11599_v18  ;;  %1170 = vmatpush1.bf16.msra.mxu0 %v11604_v21 }
 0x301   :  { %11255 = vmatpush3.bf16.msra.mxu1 %v11603_v19  ;;  %1171 = vmatprep.subr.bf16.mxu0 %v1162_v27 }
 0x302   :  { %11256 = vmatprep.subr.bf16.mxu1 %v11607_v22 }
 0x304   :  { %1172 = vmatpush1.bf16.msra.mxu0 %v1159_v28 }
 0x305   :  { %11257 = vmatpush3.bf16.msra.mxu1 %v11607_v22 }
 0x306   :  { %11258 = vmatprep.subr.bf16.mxu1 %v1165_v29 }
 0x309   :  { %11259 = vmatpush3.bf16.msra.mxu1 %v1165_v29 }
 0x3c7   :  { %v11242_v30 = vpop.f32.mrb[32].mxu1 }
 0x3c8   :  { %v1032_v31 = vadd.f32 %v11242_v30, %v790_v56  ;;  %v1010_v32 = vpop.f32.mrb[33].mxu1  ;;  %v14904_v56 = vsub.s32 2, %v12750_v51 }
 0x3c9   :  { %v1026_v33 = vadd.f32 %v1010_v32, %v784_v58  ;;  %v11243_v34 = vpop.f32.mrb[34].mxu1 }
 0x3ca   :  { %v1013_v35 = vpop.f32.mrb[35].mxu1 }
 0x3cb   :  { %v1029_v36 = vadd.f32 %v1013_v35, %v787_v61 }
 0x3ce   :  { %v969_v37 = vpop.f32.mrb[16].mxu0 }
 0x3cf   :  { %v1030_v38 = vadd.f32 %v969_v37, %v788_v63  ;;  %v971_v39 = vpop.f32.mrb[17].mxu0  ;;  %v1288_v63 = vrot.slane %v1275_v54, %v14904_v56  ;;  %v11616_v54 = vld [vmem:[#allocation2 + $0x124] ss:$8 sps:$4 sm:$0xff]  }
 0x3d0   :  { %v1031_v40 = vadd.f32 %v971_v39, %v789_v2  ;;  %v973_v41 = vpop.f32.mrb[18].mxu0  ;;  %v13318_v56 = vld [vmem:[%s14899_s8 + $0x148] sm:$0xff]  }
 0x3d1   :  { %v974_v42 = vpop.f32.mrb[19].mxu0  ;;  %14993 = vst [vmem:[#allocation24_spill] sm:$0xff] %v13318_v56 }
 0x3d2   :  { %v11613_v42 = vld [vmem:[#allocation2 + $0x114] ss:$8 sps:$4 sm:$0xff]  }
 0x3d3   :  { %v11252_v43 = vpop.f32.mrb[36].mxu1 }
 0x3d4   :  { %v1085_v44 = vpop.f32.mrb[37].mxu1  ;;  %v1100_v48 = vpack.c.bf16 %v11252_v43, %v11252_v43 }
 0x3d5   :  { %v11253_v45 = vpop.f32.mrb[38].mxu1 }
 0x3d6   :  { %v1088_v46 = vpop.f32.mrb[39].mxu1  ;;  %v1316_v45 = vld [vmem:[%s14895_s4] sm:$0xf] }
 0x3d7   :  { %v1099_v47 = vpack.c.bf16 %v1088_v46, %v1085_v44  ;;  %v10029_v46 = vld [vmem:[%s14895_s4 + $0x4] sm:$0xf] }
 0x3d9   :  { %10023 = vmatmul.mubr.msk.bf16.vlgmr.msra.gmra.mrb[4].mxu0 %vm88_vm2, %v1099_v47  ;;  %11260 = vmatprep.mubr.msk.bf16.mxu1 %vm88_vm2, %v1099_v47  ;;  %v14905_v47 = vmov 0.0  }
 0x3da   :  { %11261 = vmatmul.mubr.msk.bf16.vlgmr.msra.gmra.mrb[40].mxu1 %vm88_vm2, %v1100_v48  ;;  %1209 = vmatprep.mubr.bf16.mxu0 %v14924_v20 }
 0x3db   :  { %1365 = vmatprep.mubr.bf16.mxu1 %v14924_v20 }
 0x3e1   :  { %10024 = vmatmul.mubr.msk.bf16.gmra.mrb[20].mxu0 %vm88_vm2, %v1100_v48  ;;  %v11611_v48 = vld [vmem:[#allocation2 + $0x110] ss:$8 sps:$4 sm:$0xff]  }
 0x3e2   :  { %1488 = vmatprep.mubr.bf16.mxu0 %v14924_v20 }
 0x4ac   :  { %v1201_v58 = vpop.f32.mrb[4].mxu0 }
 0x4ad   :  { %v11492_v60 = vadd.f32 %v1201_v58, %v12636_v14  ;;  %v1203_v61 = vpop.f32.mrb[5].mxu0  ;;  %v11262_v62 = vpop.f32.mrb[40].mxu1 }
 0x4ae   :  { %v11493_v1 = vadd.f32 %v1203_v61, %v12638_v15  ;;  %v1274_v2 = vadd.f32 %v11262_v62, %v1032_v31  ;;  %v1205_v3 = vpop.f32.mrb[6].mxu0  ;;  %v1252_v5 = vpop.f32.mrb[41].mxu1  ;;  %v11622_v61 = vld [vmem:[#allocation2 + $0x144] ss:$8 sps:$4 sm:$0xff]   ;;  %v11620_v62 = vld [vmem:[#allocation2 + $0x140] ss:$8 sps:$4 sm:$0xff]  }
 0x4af   :  { %v1292_v6 = vadd.f32 %v11492_v60, %v1280_v57  ;;  %v11494_v8 = vadd.f32 %v1205_v3, %v12640_v16  ;;  %v1268_v9 = vadd.f32 %v1252_v5, %v1026_v33  ;;  %v1207_v10 = vpop.f32.mrb[7].mxu0  ;;  %v11263_v11 = vpop.f32.mrb[42].mxu1  ;;  %v11617_v60 = vld [vmem:[#allocation2 + $0x130] ss:$8 sps:$4 sm:$0xff]   ;;  %v11626_v3 = vld [vmem:[#allocation2 + $0x160] ss:$8 sps:$4 sm:$0xff]  }
 0x4b0   :  { %v1293_v12 = vadd.f32 %v11493_v1, %v1284_v59  ;;  %v11495_v13 = vadd.f32 %v1207_v10, %v12642_v17  ;;  %v1255_v14 = vpop.f32.mrb[43].mxu1  ;;  %v1300_v37 = vadd.f32 %v1288_v63, %v1274_v2  ;;  %v11623_v1 = vld [vmem:[#allocation2 + $0x150] ss:$8 sps:$4 sm:$0xff]   ;;  %v11628_v2 = vld [vmem:[#allocation2 + $0x164] ss:$8 sps:$4 sm:$0xff]  }
 0x4b1   :  { %v1295_v18 = vadd.f32 %v11494_v8, %v1280_v57  ;;  %v1294_v50 = vadd.f32 %v1288_v63, %v1268_v9  ;;  %v1271_v52 = vadd.f32 %v1255_v14, %v1029_v36  ;;  %v1301_v7 = vmax.f32 %v1292_v6, 0.0  ;;  %v11631_v5 = vld [vmem:[#allocation2 + $0x174] ss:$8 sps:$4 sm:$0xff]   ;;  %v11629_v6 = vld [vmem:[#allocation2 + $0x170] ss:$8 sps:$4 sm:$0xff]  }
 0x4b2   :  { %v1296_v19 = vadd.f32 %v11495_v13, %v1284_v59  ;;  %v1302_v22 = vmax.f32 %v1293_v12, 0.0  ;;  %v1309_v43 = vmax.f32 %v1300_v37, 0.0  ;;  %v11634_v8 = vld [vmem:[#allocation2 + $0x184] ss:$8 sps:$4 sm:$0xff]   ;;  %v11632_v9 = vld [vmem:[#allocation2 + $0x180] ss:$8 sps:$4 sm:$0xff]  }
 0x4b3   :  { %v1304_v21 = vmax.f32 %v1295_v18, 0.0  ;;  %v1297_v15 = vadd.f32 %v1288_v63, %v1271_v52  ;;  %v1303_v16 = vmax.f32 %v1294_v50, 0.0  ;;  %v11625_v63 = vld [vmem:[#allocation2 + $0x154] ss:$8 sps:$4 sm:$0xff]   ;;  %v11635_v11 = vld [vmem:[#allocation2 + $0x190] ss:$8 sps:$4 sm:$0xff]  }
 0x4b4   :  { %v1305_v23 = vmax.f32 %v1296_v19, 0.0  ;;  %v1211_v24 = vpop.f32.mrb[20].mxu0  ;;  %v1315_v49 = vpack.c.bf16 %v1309_v43, %v1309_v43  ;;  %v11637_v10 = vld [vmem:[#allocation2 + $0x194] ss:$8 sps:$4 sm:$0xff]   ;;  %v11640_v12 = vld [vmem:[#allocation2 + $0x1a4] ss:$8 sps:$4 sm:$0xff]  }
 0x4b5   :  { %v12770_v25 = vpack.c.bf16 %v1304_v21, %v1301_v7  ;;  %v1306_v26 = vmax.f32 %v1297_v15, 0.0  ;;  %v1272_v27 = vadd.f32 %v1211_v24, %v1030_v38  ;;  %v1213_v28 = vpop.f32.mrb[21].mxu0  ;;  %v11638_v13 = vld [vmem:[#allocation2 + $0x1a0] ss:$8 sps:$4 sm:$0xff]   ;;  %v11643_v14 = vld [vmem:[#allocation2 + $0x1b4] ss:$8 sps:$4 sm:$0xff]  }
 0x4b6   :  { %v12772_v29 = vpack.c.bf16 %v1305_v23, %v1302_v22  ;;  %v1273_v17 = vadd.f32 %v1213_v28, %v1031_v40  ;;  %v1215_v30 = vpop.f32.mrb[22].mxu0  ;;  %v12781_v40 = vsel %vm1321_vm3, 65535, %v14924_v20  ;;  %v11641_v18 = vld [vmem:[#allocation2 + $0x1b0] ss:$8 sps:$4 sm:$0xff]   ;;  %v11646_v50 = vld [vmem:[#allocation2 + $0x1c4] ss:$8 sps:$4 sm:$0xff]  }
 0x4b7   :  { %v12774_v31 = vpack.c.bf16 %v1306_v26, %v1303_v16  ;;  %v1298_v32 = vadd.f32 %v1280_v57, %v1272_v27  ;;  %v1216_v33 = vpop.f32.mrb[23].mxu0  ;;  %14980 = vst [vmem:[#allocation11_spill] sm:$0xff] %v12781_v40  ;;  %v11614_v57 = vld [vmem:[#allocation2 + $0x120] ss:$8 sps:$4 sm:$0xff]   ;;  %v12807_v58 = vand.u32 %v12781_v40, %v1315_v49  ;;  %v11649_v19 = vld [vmem:[#allocation2 + $0x1d4] ss:$8 sps:$4 sm:$0xff]  }
 0x4b8   :  { %v1299_v34 = vadd.f32 %v1284_v59, %v1273_v17  ;;  %1333 = vmatprep.subr.bf16.mxu1 %v12772_v29  ;;  %1456 = vmatprep.subr.bf16.mxu0 %v12772_v29  ;;  %v11619_v59 = vld [vmem:[#allocation2 + $0x134] ss:$8 sps:$4 sm:$0xff]   ;;  %v11644_v52 = vld [vmem:[#allocation2 + $0x1c0] ss:$8 sps:$4 sm:$0xff]   ;;  %v11647_v7 = vld [vmem:[#allocation2 + $0x1d0] ss:$8 sps:$4 sm:$0xff]  }
 0x4b9   :  { %v1307_v35 = vmax.f32 %v1298_v32, 0.0  ;;  %1334 = vmatpush1.bf16.msra.mxu1 %v12770_v25  ;;  %1457 = vmatpush1.bf16.msra.mxu0 %v12770_v25  ;;  %v11652_v21 = vld [vmem:[#allocation2 + $0x1e4] ss:$8 sps:$4 sm:$0xff]   ;;  %v11650_v15 = vld [vmem:[#allocation2 + $0x1e0] ss:$8 sps:$4 sm:$0xff]  }
 0x4ba   :  { %v1308_v36 = vmax.f32 %v1299_v34, 0.0  ;;  %v11655_v22 = vld [vmem:[#allocation2 + $0x1f4] ss:$8 sps:$4 sm:$0xff]   ;;  %v11653_v23 = vld [vmem:[#allocation2 + $0x1f0] ss:$8 sps:$4 sm:$0xff]  }
 0x4bb   :  { %v1313_v38 = vpack.c.bf16 %v1307_v35, %v1307_v35  ;;  %v11658_v24 = vld [vmem:[#allocation2 + $0x204] ss:$8 sps:$4 sm:$0xff]   ;;  %v11656_v16 = vld [vmem:[#allocation2 + $0x200] ss:$8 sps:$4 sm:$0xff]   ;;  %v11664_v27 = vld [vmem:[#allocation2 + $0x214] ss:$8 sps:$4 sm:$0xff]  }
 0x4bc   :  { %v1314_v39 = vpack.c.bf16 %v1308_v36, %v1308_v36  ;;  %v11661_v26 = vld [vmem:[#allocation2 + $0x104] ss:$8 sps:$4 sm:$0xff]   ;;  %v11662_v28 = vld [vmem:[#allocation2 + $0x210] ss:$8 sps:$4 sm:$0xff]  }
 0x4bd   :  { %v12787_v44 = vand.u32 %v12781_v40, %v1313_v38  ;;  %v11667_v17 = vld [vmem:[#allocation2 + $0x4] ss:$8 sps:$4 sm:$0xff]   ;;  %v11659_v38 = vld [vmem:[#allocation2 + $0x100] ss:$8 sps:$4 sm:$0xff]  }
 0x4be   :  { %v12784_v41 = vand.u32 %v12781_v40, %v1314_v39  ;;  %v13340_v40 = vld [vmem:[%s14899_s8 + $0x1b8] sm:$0xff]  }
 0x4bf   :  { %14996 = vst [vmem:[#allocation27_spill] sm:$0xff] %v13340_v40 }
 0x4c0   :  { %1335 = vmatprep.subr.bf16.mxu1 %v12784_v41  ;;  %1458 = vmatprep.subr.bf16.mxu0 %v12784_v41 }
 0x4c1   :  { %1336 = vmatpush1.bf16.msra.mxu1 %v12787_v44  ;;  %1459 = vmatpush1.bf16.msra.mxu0 %v12787_v44 }
 0x4c2   :  { %11264 = vmatprep.subr.bf16.mxu1 %v14905_v47  ;;  %1749 = vmatprep.subr.bf16.mxu0 %v11613_v42 }
 0x4c4   :  { %10027 = vmatmul.mubr.msk.bf16.vlgmr.msra.gmra.mrb[44].mxu1 %vm1317_vm4, %v1316_v45  ;;  %10030 = vmatmul.mubr.msk.bf16.vlgmr.msra.gmra.mrb[24].mxu0 %vm1317_vm4, %v10029_v46 }
 0x4c5   :  { %11265 = vmatpush3.bf16.msra.mxu1 %v12774_v31  ;;  %11268 = vmatprep.mubr.msk.bf16.mxu1 %vm12401_vm5, %v14905_v47 }
 0x4c6   :  { %11266 = vmatprep.subr.bf16.mxu1 %v14905_v47  ;;  %1750 = vmatpush1.bf16.msra.mxu0 %v11611_v48 }
 0x4c7   :  { %1751 = vmatprep.subr.bf16.mxu0 %v11616_v54 }
 0x4c9   :  { %11267 = vmatpush3.bf16.msra.mxu1 %v12807_v58 }
 0x4ca   :  { %11272 = vmatprep.subr.bf16.mxu1 %v14905_v47  ;;  %1752 = vmatpush1.bf16.msra.mxu0 %v11614_v57  ;;  %v11718_v57 = vld [vmem:[#allocation2 + $0x224] ss:$8 sps:$4 sm:$0xff]  }
 0x4cb   :  { %1753 = vmatprep.subr.bf16.mxu0 %v11619_v59 }
 0x4cc   :  { %11269 = vmatmul.mubr.msk.bf16.vlgmr.msra.gmra.mrb[48].mxu1 %vm1317_vm4, %v1316_v45 }
 0x4cd   :  { %11273 = vmatpush3.bf16.msra.mxu1 %v12774_v31  ;;  %11276 = vmatprep.mubr.msk.bf16.mxu1 %vm12401_vm5, %v14905_v47 }
 0x4ce   :  { %11274 = vmatprep.subr.bf16.mxu1 %v14905_v47  ;;  %1754 = vmatpush1.bf16.msra.mxu0 %v11617_v60  ;;  %v11665_v60 = vld [vmem:[#allocation2] ss:$8 sps:$4 sm:$0xff]  }
 0x4cf   :  { %1755 = vmatprep.subr.bf16.mxu0 %v11622_v61 }
 0x4d1   :  { %11275 = vmatpush3.bf16.msra.mxu1 %v12807_v58 }
 0x4d2   :  { %1756 = vmatpush1.bf16.msra.mxu0 %v11620_v62  ;;  %1790 = vmatprep.subr.bf16.mxu1 %v11664_v27  ;;  %v11731_v27 = vld [vmem:[#allocation2 + $0x270] ss:$8 sps:$4 sm:$0xff]  }
 0x4d3   :  { %1757 = vmatprep.subr.bf16.mxu0 %v11625_v63  ;;  %v11670_v63 = vld [vmem:[#allocation2 + $0x14] ss:$8 sps:$4 sm:$0xff]  }
 0x4d4   :  { %11277 = vmatmul.mubr.msk.bf16.vlgmr.msra.gmra.mrb[52].mxu1 %vm1317_vm4, %v10029_v46 }
 0x4d5   :  { %1822 = vmatprep.mubr.bf16.mxu1 %v14924_v20  ;;  %1791 = vmatpush1.bf16.msra.mxu1 %v11662_v28  ;;  %v11736_v28 = vld [vmem:[#allocation2 + $0x284] ss:$8 sps:$4 sm:$0xff]  }
 0x4d6   :  { %1758 = vmatpush1.bf16.msra.mxu0 %v11623_v1  ;;  %2004 = vmatprep.subr.bf16.mxu1 %v11667_v17  ;;  %v11683_v17 = vld [vmem:[#allocation2 + $0x60] ss:$8 sps:$4 sm:$0xff]  }
 0x4d7   :  { %1759 = vmatprep.subr.bf16.mxu0 %v11628_v2 }
 0x4da   :  { %1760 = vmatpush1.bf16.msra.mxu0 %v11626_v3  ;;  %v12831_v3 = vld [vmem:[%s14895_s4 + $0x8] sm:$0xf] }
 0x4db   :  { %1761 = vmatprep.subr.bf16.mxu0 %v11631_v5  ;;  %v11716_v5 = vld [vmem:[#allocation2 + $0x220] ss:$8 sps:$4 sm:$0xff]  }
 0x4de   :  { %1762 = vmatpush1.bf16.msra.mxu0 %v11629_v6 }
 0x4df   :  { %1763 = vmatprep.subr.bf16.mxu0 %v11634_v8  ;;  %v11721_v8 = vld [vmem:[#allocation2 + $0x234] ss:$8 sps:$4 sm:$0xff]  }
 0x4e2   :  { %1764 = vmatpush1.bf16.msra.mxu0 %v11632_v9  ;;  %v11668_v9 = vld [vmem:[#allocation2 + $0x10] ss:$8 sps:$4 sm:$0xff]  }
 0x4e3   :  { %1765 = vmatprep.subr.bf16.mxu0 %v11637_v10  ;;  %v11673_v10 = vld [vmem:[#allocation2 + $0x24] ss:$8 sps:$4 sm:$0xff]  }
 0x4e6   :  { %1766 = vmatpush1.bf16.msra.mxu0 %v11635_v11  ;;  %v11719_v11 = vld [vmem:[#allocation2 + $0x230] ss:$8 sps:$4 sm:$0xff]  }
 0x4e7   :  { %1767 = vmatprep.subr.bf16.mxu0 %v11640_v12  ;;  %v11724_v12 = vld [vmem:[#allocation2 + $0x244] ss:$8 sps:$4 sm:$0xff]  }
 0x4ea   :  { %1768 = vmatpush1.bf16.msra.mxu0 %v11638_v13  ;;  %v11671_v13 = vld [vmem:[#allocation2 + $0x20] ss:$8 sps:$4 sm:$0xff]  }
 0x4eb   :  { %1769 = vmatprep.subr.bf16.mxu0 %v11643_v14  ;;  %v11676_v14 = vld [vmem:[#allocation2 + $0x34] ss:$8 sps:$4 sm:$0xff]  }
 0x4ee   :  { %1770 = vmatpush1.bf16.msra.mxu0 %v11641_v18  ;;  %v11722_v18 = vld [vmem:[#allocation2 + $0x240] ss:$8 sps:$4 sm:$0xff]  }
 0x4ef   :  { %1771 = vmatprep.subr.bf16.mxu0 %v11646_v50  ;;  %v11727_v50 = vld [vmem:[#allocation2 + $0x254] ss:$8 sps:$4 sm:$0xff]  }
 0x4f2   :  { %1772 = vmatpush1.bf16.msra.mxu0 %v11644_v52  ;;  %v11674_v52 = vld [vmem:[#allocation2 + $0x30] ss:$8 sps:$4 sm:$0xff]  }
 0x4f3   :  { %1773 = vmatprep.subr.bf16.mxu0 %v11649_v19  ;;  %v11679_v19 = vld [vmem:[#allocation2 + $0x44] ss:$8 sps:$4 sm:$0xff]  }
 0x4f6   :  { %1774 = vmatpush1.bf16.msra.mxu0 %v11647_v7  ;;  %v11725_v7 = vld [vmem:[#allocation2 + $0x250] ss:$8 sps:$4 sm:$0xff]  }
 0x4f7   :  { %1775 = vmatprep.subr.bf16.mxu0 %v11652_v21  ;;  %v11730_v21 = vld [vmem:[#allocation2 + $0x264] ss:$8 sps:$4 sm:$0xff]  }
 0x4fa   :  { %1776 = vmatpush1.bf16.msra.mxu0 %v11650_v15  ;;  %v11677_v15 = vld [vmem:[#allocation2 + $0x40] ss:$8 sps:$4 sm:$0xff]  }
 0x4fb   :  { %1777 = vmatprep.subr.bf16.mxu0 %v11655_v22  ;;  %v11682_v22 = vld [vmem:[#allocation2 + $0x54] ss:$8 sps:$4 sm:$0xff]  }
 0x4fe   :  { %1778 = vmatpush1.bf16.msra.mxu0 %v11653_v23  ;;  %v11728_v23 = vld [vmem:[#allocation2 + $0x260] ss:$8 sps:$4 sm:$0xff]  }
 0x4ff   :  { %1779 = vmatprep.subr.bf16.mxu0 %v11658_v24  ;;  %v11733_v24 = vld [vmem:[#allocation2 + $0x274] ss:$8 sps:$4 sm:$0xff]  }
 0x502   :  { %1780 = vmatpush1.bf16.msra.mxu0 %v11656_v16  ;;  %v11680_v16 = vld [vmem:[#allocation2 + $0x50] ss:$8 sps:$4 sm:$0xff]  }
 0x503   :  { %2045 = vmatprep.subr.bf16.mxu0 %v11661_v26  ;;  %v11685_v26 = vld [vmem:[#allocation2 + $0x64] ss:$8 sps:$4 sm:$0xff]  }
 0x597   :  { %v12819_v30 = vpop.f32.mrb[44].mxu1  ;;  %v1490_v32 = vpop.f32.mrb[24].mxu0 }
 0x598   :  { %v1537_v33 = vpack.c.bf16 %v1490_v32, %v1490_v32  ;;  %v1369_v34 = vpop.f32.mrb[45].mxu1  ;;  %v1492_v35 = vpop.f32.mrb[25].mxu0  ;;  %v11688_v32 = vld [vmem:[#allocation2 + $0x74] ss:$8 sps:$4 sm:$0xff]  }
 0x599   :  { %v1538_v36 = vpack.c.bf16 %v1492_v35, %v1492_v35  ;;  %v1371_v37 = vpop.f32.mrb[46].mxu1  ;;  %v1494_v39 = vpop.f32.mrb[26].mxu0  ;;  %v1415_v1 = vpack.c.bf16 %v1369_v34, %v1369_v34  ;;  %v11739_v34 = vld [vmem:[#allocation2 + $0x294] ss:$8 sps:$4 sm:$0xff]   ;;  %v11686_v35 = vld [vmem:[#allocation2 + $0x70] ss:$8 sps:$4 sm:$0xff]  }
 0x59a   :  { %v1372_v42 = vpop.f32.mrb[47].mxu1  ;;  %v1495_v43 = vpop.f32.mrb[27].mxu0  ;;  %v11737_v37 = vld [vmem:[#allocation2 + $0x290] ss:$8 sps:$4 sm:$0xff]   ;;  %v11689_v39 = vld [vmem:[#allocation2 + $0x80] ss:$8 sps:$4 sm:$0xff]  }
 0x59b   :  { %1781 = vmatprep.mubr.bf16.mxu0 %v1538_v36  ;;  %v11691_v36 = vld [vmem:[#allocation2 + $0x84] ss:$8 sps:$4 sm:$0xff]   ;;  %v11694_v42 = vld [vmem:[#allocation2 + $0x94] ss:$8 sps:$4 sm:$0xff]   ;;  %v11740_v43 = vld [vmem:[#allocation2 + $0x2a0] ss:$8 sps:$4 sm:$0xff]  }
 0x59c   :  { %1782 = vmatmul.mubr.bf16.vlgmr.msra.gmra.mrb[28].mxu0 %v1537_v33  ;;  %v11734_v33 = vld [vmem:[#allocation2 + $0x280] ss:$8 sps:$4 sm:$0xff]  }
 0x59d   :  { %2046 = vmatpush1.bf16.msra.mxu0 %v11659_v38  ;;  %2077 = vmatprep.mubr.bf16.mxu0 %v14924_v20  ;;  %v11742_v38 = vld [vmem:[#allocation2 + $0x2a4] ss:$8 sps:$4 sm:$0xff]  }
 0x59e   :  { %2091 = vmatprep.subr.bf16.mxu0 %v12772_v29 }
 0x59f   :  { %v1408_v45 = vpop.f32.mrb[48].mxu1 }
 0x5a0   :  { %v11270_v46 = vpop.f32.mrb[49].mxu1  ;;  %v1416_v49 = vpack.c.bf16 %v1408_v45, %v1408_v45  ;;  %v11745_v45 = vld [vmem:[#allocation2 + $0x2b4] ss:$8 sps:$4 sm:$0xff]  }
 0x5a1   :  { %v1411_v48 = vpop.f32.mrb[50].mxu1  ;;  %v11692_v46 = vld [vmem:[#allocation2 + $0x90] ss:$8 sps:$4 sm:$0xff]  }
 0x5a2   :  { %v11271_v54 = vpop.f32.mrb[51].mxu1  ;;  %v11697_v48 = vld [vmem:[#allocation2 + $0xa4] ss:$8 sps:$4 sm:$0xff]  }
 0x5a3   :  { %v11748_v54 = vld [vmem:[#allocation2 + $0x2c4] ss:$8 sps:$4 sm:$0xff]  }
 0x5a4   :  { %10101 = vmatmul.mubr.msk.bf16.vlgmr.msra.gmra.mrb[32].mxu0 %vm1745_vm6, %v1416_v49  ;;  %v11743_v49 = vld [vmem:[#allocation2 + $0x2b0] ss:$8 sps:$4 sm:$0xff]  }
 0x5a5   :  { %2092 = vmatpush1.bf16.msra.mxu0 %v12770_v25  ;;  %2123 = vmatprep.mubr.bf16.mxu0 %v14924_v20 }
 0x5a6   :  { %2093 = vmatprep.subr.bf16.mxu0 %v12784_v41 }
 0x5a7   :  { %v1531_v59 = vpop.f32.mrb[52].mxu1 }
 0x5a8   :  { %v1539_v61 = vpack.c.bf16 %v1531_v59, %v1531_v59  ;;  %v11278_v62 = vpop.f32.mrb[53].mxu1  ;;  %v11700_v59 = vld [vmem:[#allocation2 + $0xb4] ss:$8 sps:$4 sm:$0xff]  }
 0x5a9   :  { %2094 = vmatpush1.bf16.msra.mxu0 %v12787_v44  ;;  %v1534_v2 = vpop.f32.mrb[54].mxu1  ;;  %v11698_v62 = vld [vmem:[#allocation2 + $0xb0] ss:$8 sps:$4 sm:$0xff]  }
 0x5aa   :  { %v11279_v6 = vpop.f32.mrb[55].mxu1  ;;  %10066 = vmatmul.mubr.msk.bf16.vlgmr.msra.gmra.mrb[56].mxu1 %vm1745_vm6, %v1539_v61  ;;  %2383 = vmatprep.subr.bf16.mxu0 %v11718_v57  ;;  %v11695_v57 = vld [vmem:[#allocation2 + $0xa0] ss:$8 sps:$4 sm:$0xff]   ;;  %v11751_v61 = vld [vmem:[#allocation2 + $0x2d4] ss:$8 sps:$4 sm:$0xff]  }
 0x5ab   :  { %2005 = vmatpush1.bf16.msra.mxu1 %v11665_v60  ;;  %2036 = vmatprep.mubr.bf16.mxu1 %v1415_v1  ;;  %v11746_v60 = vld [vmem:[#allocation2 + $0x2c0] ss:$8 sps:$4 sm:$0xff]   ;;  %v11749_v1 = vld [vmem:[#allocation2 + $0x2d0] ss:$8 sps:$4 sm:$0xff]  }
 0x5ac   :  { %10103 = vmatmul.mubr.msk.bf16.vlgmr.msra.gmra.mrb[36].mxu0 %vm1317_vm4, %v12831_v3  ;;  %2006 = vmatprep.subr.bf16.mxu1 %v11670_v63  ;;  %v11703_v63 = vld [vmem:[#allocation2 + $0xc4] ss:$8 sps:$4 sm:$0xff]   ;;  %v11701_v2 = vld [vmem:[#allocation2 + $0xc0] ss:$8 sps:$4 sm:$0xff]   ;;  %v11704_v6 = vld [vmem:[#allocation2 + $0xd0] ss:$8 sps:$4 sm:$0xff]  }
 0x5ad   :  { %2384 = vmatpush1.bf16.msra.mxu0 %v11716_v5  ;;  %v11706_v5 = vld [vmem:[#allocation2 + $0xd4] ss:$8 sps:$4 sm:$0xff]  }
 0x5ae   :  { %2385 = vmatprep.subr.bf16.mxu0 %v11721_v8  ;;  %v11709_v8 = vld [vmem:[#allocation2 + $0xe4] ss:$8 sps:$4 sm:$0xff]  }
 0x5af   :  { %2007 = vmatpush1.bf16.msra.mxu1 %v11668_v9  ;;  %v11707_v9 = vld [vmem:[#allocation2 + $0xe0] ss:$8 sps:$4 sm:$0xff]  }
 0x5b0   :  { %2008 = vmatprep.subr.bf16.mxu1 %v11673_v10  ;;  %v11712_v10 = vld [vmem:[#allocation2 + $0xf4] ss:$8 sps:$4 sm:$0xff]  }
 0x5b1   :  { %2386 = vmatpush1.bf16.msra.mxu0 %v11719_v11  ;;  %v11710_v11 = vld [vmem:[#allocation2 + $0xf0] ss:$8 sps:$4 sm:$0xff]  }
 0x5b2   :  { %2387 = vmatprep.subr.bf16.mxu0 %v11724_v12  ;;  %v1414_v12 = vpack.c.bf16 %v12819_v30, %v12819_v30  ;;  %v11757_v30 = vld [vmem:[#allocation2 + $0x2f4] ss:$8 sps:$4 sm:$0xff]  }
 0x5b3   :  { %2009 = vmatpush1.bf16.msra.mxu1 %v11671_v13  ;;  %v11715_v13 = vld [vmem:[#allocation2 + $0x324] ss:$8 sps:$4 sm:$0xff]  }
 0x5b4   :  { %2010 = vmatprep.subr.bf16.mxu1 %v11676_v14  ;;  %v11713_v14 = vld [vmem:[#allocation2 + $0x320] ss:$8 sps:$4 sm:$0xff]  }
 0x5b5   :  { %2388 = vmatpush1.bf16.msra.mxu0 %v11722_v18  ;;  %v11752_v18 = vld [vmem:[#allocation2 + $0x2e0] ss:$8 sps:$4 sm:$0xff]  }
 0x5b6   :  { %2389 = vmatprep.subr.bf16.mxu0 %v11727_v50  ;;  %v11754_v50 = vld [vmem:[#allocation2 + $0x2e4] ss:$8 sps:$4 sm:$0xff]  }
 0x5b7   :  { %2011 = vmatpush1.bf16.msra.mxu1 %v11674_v52  ;;  %v11755_v52 = vld [vmem:[#allocation2 + $0x2f0] ss:$8 sps:$4 sm:$0xff]  }
 0x5b8   :  { %2012 = vmatprep.subr.bf16.mxu1 %v11679_v19  ;;  %v11758_v19 = vld [vmem:[#allocation2 + $0x300] ss:$8 sps:$4 sm:$0xff]  }
 0x5b9   :  { %2390 = vmatpush1.bf16.msra.mxu0 %v11725_v7  ;;  %v11760_v7 = vld [vmem:[#allocation2 + $0x304] ss:$8 sps:$4 sm:$0xff]  }
 0x5ba   :  { %2391 = vmatprep.subr.bf16.mxu0 %v11730_v21  ;;  %v11763_v21 = vld [vmem:[#allocation2 + $0x314] ss:$8 sps:$4 sm:$0xff]  }
 0x5bb   :  { %2013 = vmatpush1.bf16.msra.mxu1 %v11677_v15  ;;  %v11761_v15 = vld [vmem:[#allocation2 + $0x310] ss:$8 sps:$4 sm:$0xff]  }
 0x5bc   :  { %2014 = vmatprep.subr.bf16.mxu1 %v11682_v22  ;;  %v11766_v22 = vld [vmem:[#allocation2 + $0x434] ss:$8 sps:$4 sm:$0xff]  }
 0x5bd   :  { %2392 = vmatpush1.bf16.msra.mxu0 %v11728_v23 }
 0x5be   :  { %2393 = vmatprep.subr.bf16.mxu0 %v11733_v24 }
 0x5bf   :  { %2015 = vmatpush1.bf16.msra.mxu1 %v11680_v16 }
 0x5c0   :  { %2016 = vmatprep.subr.bf16.mxu1 %v11685_v26 }
 0x5c1   :  { %2394 = vmatpush1.bf16.msra.mxu0 %v11731_v27 }
 0x5c2   :  { %2395 = vmatprep.subr.bf16.mxu0 %v11736_v28 }
 0x5c3   :  { %2017 = vmatpush1.bf16.msra.mxu1 %v11683_v17 }
 0x5c4   :  { %2018 = vmatprep.subr.bf16.mxu1 %v11688_v32 }
 0x5c5   :  { %2396 = vmatpush1.bf16.msra.mxu0 %v11734_v33 }
 0x5c6   :  { %2397 = vmatprep.subr.bf16.mxu0 %v11739_v34 }
 0x5c7   :  { %2019 = vmatpush1.bf16.msra.mxu1 %v11686_v35 }
 0x5c8   :  { %2020 = vmatprep.subr.bf16.mxu1 %v11691_v36 }
 0x5c9   :  { %2398 = vmatpush1.bf16.msra.mxu0 %v11737_v37 }
 0x5ca   :  { %2399 = vmatprep.subr.bf16.mxu0 %v11742_v38 }
 0x5cb   :  { %2021 = vmatpush1.bf16.msra.mxu1 %v11689_v39 }
 0x5cc   :  { %2022 = vmatprep.subr.bf16.mxu1 %v11694_v42 }
 0x5cd   :  { %2400 = vmatpush1.bf16.msra.mxu0 %v11740_v43 }
 0x5ce   :  { %2401 = vmatprep.subr.bf16.mxu0 %v11745_v45  ;;  %v11764_v45 = vld [vmem:[#allocation2 + $0x430] ss:$8 sps:$4 sm:$0xff]  }
 0x5cf   :  { %2023 = vmatpush1.bf16.msra.mxu1 %v11692_v46 }
 0x5d0   :  { %2024 = vmatprep.subr.bf16.mxu1 %v11697_v48 }
 0x5d1   :  { %2402 = vmatpush1.bf16.msra.mxu0 %v11743_v49 }
 0x5d2   :  { %2403 = vmatprep.subr.bf16.mxu0 %v11748_v54 }
 0x5d3   :  { %2025 = vmatpush1.bf16.msra.mxu1 %v11695_v57 }
 0x5d4   :  { %2026 = vmatprep.subr.bf16.mxu1 %v11700_v59 }
 0x5d5   :  { %2404 = vmatpush1.bf16.msra.mxu0 %v11746_v60 }
 0x5d6   :  { %2405 = vmatprep.subr.bf16.mxu0 %v11751_v61 }
 0x5d7   :  { %2027 = vmatpush1.bf16.msra.mxu1 %v11698_v62 }
 0x5d8   :  { %2028 = vmatprep.subr.bf16.mxu1 %v11703_v63 }
 0x5d9   :  { %2406 = vmatpush1.bf16.msra.mxu0 %v11749_v1 }
 0x5da   :  { %2407 = vmatprep.subr.bf16.mxu0 %v11754_v50  ;;  %v11776_v50 = vld [vmem:[#allocation2 + $0x360] ss:$8 sps:$4 sm:$0xff]  }
 0x5db   :  { %2029 = vmatpush1.bf16.msra.mxu1 %v11701_v2 }
 0x5dc   :  { %2030 = vmatprep.subr.bf16.mxu1 %v11706_v5 }
 0x5dd   :  { %2408 = vmatpush1.bf16.msra.mxu0 %v11752_v18  ;;  %v11778_v18 = vld [vmem:[#allocation2 + $0x364] ss:$8 sps:$4 sm:$0xff]  }
 0x5de   :  { %2409 = vmatprep.subr.bf16.mxu0 %v11757_v30  ;;  %v11781_v30 = vld [vmem:[#allocation2 + $0x374] ss:$8 sps:$4 sm:$0xff]  }
 0x5df   :  { %2031 = vmatpush1.bf16.msra.mxu1 %v11704_v6 }
 0x5e0   :  { %2032 = vmatprep.subr.bf16.mxu1 %v11709_v8 }
 0x5e1   :  { %2410 = vmatpush1.bf16.msra.mxu0 %v11755_v52  ;;  %v11779_v52 = vld [vmem:[#allocation2 + $0x370] ss:$8 sps:$4 sm:$0xff]  }
 0x5e2   :  { %2411 = vmatprep.subr.bf16.mxu0 %v11760_v7  ;;  %v11782_v7 = vld [vmem:[#allocation2 + $0x380] ss:$8 sps:$4 sm:$0xff]  }
 0x5e3   :  { %2033 = vmatpush1.bf16.msra.mxu1 %v11707_v9  ;;  %v11769_v9 = vld [vmem:[#allocation2 + $0x334] ss:$8 sps:$4 sm:$0xff]  }
 0x5e4   :  { %2034 = vmatprep.subr.bf16.mxu1 %v11712_v10  ;;  %v11767_v10 = vld [vmem:[#allocation2 + $0x330] ss:$8 sps:$4 sm:$0xff]  }
 0x5e5   :  { %2412 = vmatpush1.bf16.msra.mxu0 %v11758_v19  ;;  %v11784_v19 = vld [vmem:[#allocation2 + $0x384] ss:$8 sps:$4 sm:$0xff]  }
 0x5e6   :  { %2413 = vmatprep.subr.bf16.mxu0 %v11763_v21  ;;  %v11787_v21 = vld [vmem:[#allocation2 + $0x394] ss:$8 sps:$4 sm:$0xff]  }
 0x5e7   :  { %2035 = vmatpush1.bf16.msra.mxu1 %v11710_v11  ;;  %v11772_v11 = vld [vmem:[#allocation2 + $0x344] ss:$8 sps:$4 sm:$0xff]  }
 0x5e8   :  { %11280 = vmatprep.subr.bf16.mxu1 %v14905_v47 }
 0x5e9   :  { %2414 = vmatpush1.bf16.msra.mxu0 %v11761_v15  ;;  %v11785_v15 = vld [vmem:[#allocation2 + $0x390] ss:$8 sps:$4 sm:$0xff]  }
 0x5ea   :  { %2037 = vmatmul.mubr.bf16.vlgmr.msra.gmra.mrb[60].mxu1 %v1414_v12  ;;  %2805 = vmatprep.subr.bf16.mxu0 %v11766_v22  ;;  %v11770_v12 = vld [vmem:[#allocation2 + $0x340] ss:$8 sps:$4 sm:$0xff]   ;;  %v11790_v22 = vld [vmem:[#allocation2 + $0x3a4] ss:$8 sps:$4 sm:$0xff]  }
 0x5eb   :  { %11281 = vmatpush3.bf16.msra.mxu1 %v12774_v31  ;;  %11284 = vmatprep.mubr.msk.bf16.mxu1 %vm12401_vm5, %v14905_v47 }
 0x5ec   :  { %11282 = vmatprep.subr.bf16.mxu1 %v14905_v47 }
 0x5ef   :  { %11283 = vmatpush3.bf16.msra.mxu1 %v12807_v58 }
 0x5f0   :  { %2424 = vmatprep.subr.bf16.mxu1 %v11715_v13  ;;  %v11775_v13 = vld [vmem:[#allocation2 + $0x354] ss:$8 sps:$4 sm:$0xff]  }
 0x5f2   :  { %11285 = vmatmul.mubr.msk.bf16.vlgmr.msra.gmra.mrb[64].mxu1 %vm1317_vm4, %v12831_v3 }
 0x5f3   :  { %2425 = vmatpush1.bf16.msra.mxu1 %v11713_v14  ;;  %2456 = vmatprep.mubr.bf16.mxu1 %v14924_v20  ;;  %v11773_v14 = vld [vmem:[#allocation2 + $0x350] ss:$8 sps:$4 sm:$0xff]  }
 0x5f4   :  { %2472 = vmatprep.subr.bf16.mxu1 %v12772_v29 }
 0x66f   :  { %v1783_v3 = vpop.f32.mrb[28].mxu0 }
 0x670   :  { %v1785_v23 = vpop.f32.mrb[29].mxu0 }
 0x671   :  { %v1787_v24 = vpop.f32.mrb[30].mxu0 }
 0x672   :  { %v1788_v16 = vpop.f32.mrb[31].mxu0  ;;  %v11791_v24 = vld [vmem:[#allocation2 + $0x3b0] ss:$8 sps:$4 sm:$0xff]  }
 0x673   :  { %v11796_v16 = vld [vmem:[#allocation2 + $0x3c4] ss:$8 sps:$4 sm:$0xff]  }
 0x677   :  { %v2079_v26 = vpop.f32.mrb[32].mxu0 }
 0x678   :  { %v2081_v27 = vpop.f32.mrb[33].mxu0 }
 0x679   :  { %v2083_v28 = vpop.f32.mrb[34].mxu0 }
 0x67a   :  { %v2084_v17 = vpop.f32.mrb[35].mxu0  ;;  %v11797_v28 = vld [vmem:[#allocation2 + $0x3d0] ss:$8 sps:$4 sm:$0xff]  }
 0x67b   :  { %v11802_v17 = vld [vmem:[#allocation2 + $0x3e4] ss:$8 sps:$4 sm:$0xff]  }
 0x67d   :  { %v1824_v32 = vpop.f32.mrb[56].mxu1 }
 0x67e   :  { %v1825_v33 = vadd.f32 %v1824_v32, %v1783_v3  ;;  %v1826_v34 = vpop.f32.mrb[57].mxu1  ;;  %v11788_v3 = vld [vmem:[#allocation2 + $0x3a0] ss:$8 sps:$4 sm:$0xff]  }
 0x67f   :  { %v1827_v35 = vadd.f32 %v1826_v34, %v1785_v23  ;;  %v1828_v36 = vpop.f32.mrb[58].mxu1  ;;  %v2125_v37 = vpop.f32.mrb[36].mxu0  ;;  %v11793_v23 = vld [vmem:[#allocation2 + $0x3b4] ss:$8 sps:$4 sm:$0xff]   ;;  %v11800_v32 = vld [vmem:[#allocation2 + $0x3e0] ss:$8 sps:$4 sm:$0xff]  }
 0x680   :  { %v2172_v38 = vpack.c.bf16 %v2125_v37, %v2125_v37  ;;  %v1829_v39 = vpop.f32.mrb[59].mxu1  ;;  %v2127_v42 = vpop.f32.mrb[37].mxu0  ;;  %v11803_v34 = vld [vmem:[#allocation2 + $0x3f0] ss:$8 sps:$4 sm:$0xff]   ;;  %v11806_v36 = vld [vmem:[#allocation2 + $0x400] ss:$8 sps:$4 sm:$0xff]  }
 0x681   :  { %v2173_v43 = vpack.c.bf16 %v2127_v42, %v2127_v42  ;;  %v2129_v46 = vpop.f32.mrb[38].mxu0  ;;  %v11809_v37 = vld [vmem:[#allocation2 + $0x410] ss:$8 sps:$4 sm:$0xff]   ;;  %v11814_v39 = vld [vmem:[#allocation2 + $0x424] ss:$8 sps:$4 sm:$0xff]  }
 0x682   :  { %v2130_v48 = vpop.f32.mrb[39].mxu0  ;;  %v11812_v42 = vld [vmem:[#allocation2 + $0x420] ss:$8 sps:$4 sm:$0xff]  }
 0x683   :  { %2415 = vmatprep.mubr.bf16.mxu0 %v2173_v43 }
 0x684   :  { %2416 = vmatmul.mubr.bf16.vlgmr.msra.gmra.mrb[40].mxu0 %v2172_v38  ;;  %v11811_v38 = vld [vmem:[#allocation2 + $0x414] ss:$8 sps:$4 sm:$0xff]  }
 0x685   :  { %2806 = vmatpush1.bf16.msra.mxu0 %v11764_v45  ;;  %2837 = vmatprep.mubr.bf16.mxu0 %v14924_v20 }
 0x686   :  { %2853 = vmatprep.subr.bf16.mxu0 %v12772_v29  ;;  %v10140_v29 = vld [vmem:[%s14895_s4 + $0xc] sm:$0xf] }
 0x6bd   :  { %v2038_v49 = vpop.f32.mrb[60].mxu1 }
 0x6be   :  { %v2039_v54 = vadd.f32 %v2038_v49, %v1825_v33  ;;  %v2040_v57 = vpop.f32.mrb[61].mxu1  ;;  %v11805_v33 = vld [vmem:[#allocation2 + $0x3f4] ss:$8 sps:$4 sm:$0xff]  }
 0x6bf   :  { %v2041_v59 = vadd.f32 %v2040_v57, %v1827_v35  ;;  %v2042_v60 = vpop.f32.mrb[62].mxu1  ;;  %v11808_v35 = vld [vmem:[#allocation2 + $0x404] ss:$8 sps:$4 sm:$0xff]  }
 0x6c0   :  { %v12850_v61 = vadd.f32 %v2079_v26, %v2039_v54  ;;  %v2043_v62 = vpop.f32.mrb[63].mxu1  ;;  %v11794_v26 = vld [vmem:[#allocation2 + $0x3c0] ss:$8 sps:$4 sm:$0xff]  }
 0x6c1   :  { %v12852_v63 = vadd.f32 %v2081_v27, %v2041_v59  ;;  %v11799_v27 = vld [vmem:[#allocation2 + $0x3d4] ss:$8 sps:$4 sm:$0xff]  }
 0x6c5   :  { %v2166_v1 = vpop.f32.mrb[64].mxu1 }
 0x6c6   :  { %v2174_v2 = vpack.c.bf16 %v2166_v1, %v2166_v1  ;;  %v11286_v5 = vpop.f32.mrb[65].mxu1 }
 0x6c7   :  { %v2169_v6 = vpop.f32.mrb[66].mxu1 }
 0x6c8   :  { %v11287_v8 = vpop.f32.mrb[67].mxu1  ;;  %10139 = vmatmul.mubr.msk.bf16.vlgmr.msra.gmra.mrb[68].mxu1 %vm1745_vm6, %v2174_v2 }
 0x6c9   :  { %2473 = vmatpush1.bf16.msra.mxu1 %v12770_v25  ;;  %2504 = vmatprep.mubr.bf16.mxu1 %v14924_v20 }
 0x6ca   :  { %2474 = vmatprep.subr.bf16.mxu1 %v12784_v41 }
 0x6cd   :  { %2475 = vmatpush1.bf16.msra.mxu1 %v12787_v44 }
 0x6ce   :  { %11288 = vmatprep.subr.bf16.mxu1 %v14905_v47 }
 0x6d0   :  { %10141 = vmatmul.mubr.msk.bf16.vlgmr.msra.gmra.mrb[72].mxu1 %vm1317_vm4, %v10140_v29 }
 0x6d1   :  { %11289 = vmatpush3.bf16.msra.mxu1 %v12774_v31  ;;  %11292 = vmatprep.mubr.msk.bf16.mxu1 %vm12401_vm5, %v14905_v47 }
 0x6d2   :  { %11290 = vmatprep.subr.bf16.mxu1 %v14905_v47 }
 0x6d5   :  { %11291 = vmatpush3.bf16.msra.mxu1 %v12807_v58 }
 0x6d6   :  { %2764 = vmatprep.subr.bf16.mxu1 %v11769_v9 }
 0x6d8   :  { %11293 = vmatmul.mubr.msk.bf16.vlgmr.msra.gmra.mrb[76].mxu1 %vm1317_vm4, %v10140_v29 }
 0x6d9   :  { %2765 = vmatpush1.bf16.msra.mxu1 %v11767_v10 }
 0x6da   :  { %2766 = vmatprep.subr.bf16.mxu1 %v11772_v11 }
 0x6dd   :  { %2767 = vmatpush1.bf16.msra.mxu1 %v11770_v12 }
 0x6de   :  { %2768 = vmatprep.subr.bf16.mxu1 %v11775_v13 }
 0x6e1   :  { %2769 = vmatpush1.bf16.msra.mxu1 %v11773_v14 }
 0x6e2   :  { %2770 = vmatprep.subr.bf16.mxu1 %v11778_v18  ;;  %v11818_v18 = vld [vmem:[#allocation2 + $0x450] ss:$8 sps:$4 sm:$0xff]  }
 0x6e5   :  { %2771 = vmatpush1.bf16.msra.mxu1 %v11776_v50  ;;  %v11823_v50 = vld [vmem:[#allocation2 + $0x464] ss:$8 sps:$4 sm:$0xff]  }
 0x6e6   :  { %2772 = vmatprep.subr.bf16.mxu1 %v11781_v30  ;;  %v11821_v30 = vld [vmem:[#allocation2 + $0x460] ss:$8 sps:$4 sm:$0xff]  }
 0x6e9   :  { %2773 = vmatpush1.bf16.msra.mxu1 %v11779_v52  ;;  %v11824_v52 = vld [vmem:[#allocation2 + $0x470] ss:$8 sps:$4 sm:$0xff]  }
 0x6ea   :  { %2774 = vmatprep.subr.bf16.mxu1 %v11784_v19  ;;  %v11829_v19 = vld [vmem:[#allocation2 + $0x484] ss:$8 sps:$4 sm:$0xff]  }
 0x6ed   :  { %2775 = vmatpush1.bf16.msra.mxu1 %v11782_v7  ;;  %v11827_v7 = vld [vmem:[#allocation2 + $0x480] ss:$8 sps:$4 sm:$0xff]  }
 0x6ee   :  { %2776 = vmatprep.subr.bf16.mxu1 %v11787_v21  ;;  %v11830_v21 = vld [vmem:[#allocation2 + $0x490] ss:$8 sps:$4 sm:$0xff]  }
 0x6f1   :  { %2777 = vmatpush1.bf16.msra.mxu1 %v11785_v15  ;;  %v11835_v15 = vld [vmem:[#allocation2 + $0x4a4] ss:$8 sps:$4 sm:$0xff]  }
 0x6f2   :  { %2778 = vmatprep.subr.bf16.mxu1 %v11790_v22  ;;  %v11833_v22 = vld [vmem:[#allocation2 + $0x4a0] ss:$8 sps:$4 sm:$0xff]  }
 0x6f5   :  { %2779 = vmatpush1.bf16.msra.mxu1 %v11788_v3  ;;  %v11838_v3 = vld [vmem:[#allocation2 + $0x4b4] ss:$8 sps:$4 sm:$0xff]  }
 0x6f6   :  { %2780 = vmatprep.subr.bf16.mxu1 %v11793_v23  ;;  %v11836_v23 = vld [vmem:[#allocation2 + $0x4b0] ss:$8 sps:$4 sm:$0xff]  }
 0x6f9   :  { %2781 = vmatpush1.bf16.msra.mxu1 %v11791_v24  ;;  %v11841_v24 = vld [vmem:[#allocation2 + $0x4c4] ss:$8 sps:$4 sm:$0xff]  }
 0x6fa   :  { %2782 = vmatprep.subr.bf16.mxu1 %v11796_v16  ;;  %v11839_v16 = vld [vmem:[#allocation2 + $0x4c0] ss:$8 sps:$4 sm:$0xff]  }
 0x6fd   :  { %2783 = vmatpush1.bf16.msra.mxu1 %v11794_v26  ;;  %v11844_v26 = vld [vmem:[#allocation2 + $0x4d4] ss:$8 sps:$4 sm:$0xff]  }
 0x6fe   :  { %2784 = vmatprep.subr.bf16.mxu1 %v11799_v27  ;;  %v11842_v27 = vld [vmem:[#allocation2 + $0x4d0] ss:$8 sps:$4 sm:$0xff]  }
 0x701   :  { %2785 = vmatpush1.bf16.msra.mxu1 %v11797_v28  ;;  %v11847_v28 = vld [vmem:[#allocation2 + $0x4e4] ss:$8 sps:$4 sm:$0xff]  }
 0x702   :  { %2786 = vmatprep.subr.bf16.mxu1 %v11802_v17  ;;  %v11845_v17 = vld [vmem:[#allocation2 + $0x4e0] ss:$8 sps:$4 sm:$0xff]  }
 0x705   :  { %2787 = vmatpush1.bf16.msra.mxu1 %v11800_v32  ;;  %v11850_v32 = vld [vmem:[#allocation2 + $0x4f4] ss:$8 sps:$4 sm:$0xff]  }
 0x706   :  { %2788 = vmatprep.subr.bf16.mxu1 %v11805_v33  ;;  %v11848_v33 = vld [vmem:[#allocation2 + $0x4f0] ss:$8 sps:$4 sm:$0xff]  }
 0x709   :  { %2789 = vmatpush1.bf16.msra.mxu1 %v11803_v34  ;;  %v11853_v34 = vld [vmem:[#allocation2 + $0x504] ss:$8 sps:$4 sm:$0xff]  }
 0x70a   :  { %2790 = vmatprep.subr.bf16.mxu1 %v11808_v35  ;;  %v11851_v35 = vld [vmem:[#allocation2 + $0x500] ss:$8 sps:$4 sm:$0xff]  }
 0x70d   :  { %2791 = vmatpush1.bf16.msra.mxu1 %v11806_v36  ;;  %v11856_v36 = vld [vmem:[#allocation2 + $0x514] ss:$8 sps:$4 sm:$0xff]  }
 0x70e   :  { %2792 = vmatprep.subr.bf16.mxu1 %v11811_v38  ;;  %v11857_v38 = vld [vmem:[#allocation2 + $0x520] ss:$8 sps:$4 sm:$0xff]  }
 0x711   :  { %2793 = vmatpush1.bf16.msra.mxu1 %v11809_v37  ;;  %v11854_v37 = vld [vmem:[#allocation2 + $0x510] ss:$8 sps:$4 sm:$0xff]  }
 0x712   :  { %2794 = vmatprep.subr.bf16.mxu1 %v11814_v39  ;;  %v11859_v39 = vld [vmem:[#allocation2 + $0x524] ss:$8 sps:$4 sm:$0xff]  }
 0x715   :  { %2795 = vmatpush1.bf16.msra.mxu1 %v11812_v42  ;;  %v11862_v42 = vld [vmem:[#allocation2 + $0x534] ss:$8 sps:$4 sm:$0xff]  }
 0x757   :  { %v2417_v43 = vpop.f32.mrb[40].mxu0 }
 0x758   :  { %v2419_v45 = vpop.f32.mrb[41].mxu0 }
 0x759   :  { %v2421_v46 = vpop.f32.mrb[42].mxu0 }
 0x75a   :  { %v2422_v48 = vpop.f32.mrb[43].mxu0  ;;  %v11865_v46 = vld [vmem:[#allocation2 + $0x544] ss:$8 sps:$4 sm:$0xff]  }
 0x75b   :  { %3186 = vmatprep.subr.bf16.mxu1 %v11865_v46 }
 0x79b   :  { %v2458_v49 = vpop.f32.mrb[68].mxu1 }
 0x79c   :  { %v2459_v54 = vadd.f32 %v2458_v49, %v2417_v43  ;;  %v2460_v57 = vpop.f32.mrb[69].mxu1  ;;  %v11860_v43 = vld [vmem:[#allocation2 + $0x530] ss:$8 sps:$4 sm:$0xff]  }
 0x79d   :  { %v2461_v59 = vadd.f32 %v2460_v57, %v2419_v45  ;;  %v2462_v60 = vpop.f32.mrb[70].mxu1  ;;  %v11863_v45 = vld [vmem:[#allocation2 + $0x540] ss:$8 sps:$4 sm:$0xff]  }
 0x79e   :  { %v12871_v62 = vadd.f32 %v2459_v54, %v12850_v61  ;;  %v2463_v1 = vpop.f32.mrb[71].mxu1 }
 0x79f   :  { %v12874_v2 = vadd.f32 %v2461_v59, %v12852_v63  ;;  %v10178_v63 = vld [vmem:[%s14895_s4 + $0x10] sm:$0xf] }
 0x7a3   :  { %v2506_v5 = vpop.f32.mrb[72].mxu1 }
 0x7a4   :  { %v2508_v6 = vpop.f32.mrb[73].mxu1  ;;  %v2553_v9 = vpack.c.bf16 %v2506_v5, %v2506_v5 }
 0x7a5   :  { %v2554_v8 = vpack.c.bf16 %v2508_v6, %v2508_v6  ;;  %v2510_v29 = vpop.f32.mrb[74].mxu1 }
 0x7a6   :  { %v2511_v10 = vpop.f32.mrb[75].mxu1 }
 0x7a7   :  { %2796 = vmatprep.mubr.bf16.mxu1 %v2554_v8 }
 0x7a8   :  { %2797 = vmatmul.mubr.bf16.vlgmr.msra.gmra.mrb[80].mxu1 %v2553_v9 }
 0x7a9   :  { %3218 = vmatprep.mubr.bf16.mxu1 %v14924_v20  ;;  %3187 = vmatpush1.bf16.msra.mxu1 %v11863_v45  ;;  %v3254_v45 = vsel %vm96_vm1, 4294967295, %v12398_v0  ;;  %v13022_v0 = vld [vmem:[%s14898_s7] sm:$0x1] }
 0x7ab   :  { %v2547_v11 = vpop.f32.mrb[76].mxu1 }
 0x7ac   :  { %v2555_v12 = vpack.c.bf16 %v2547_v11, %v2547_v11  ;;  %v11294_v13 = vpop.f32.mrb[77].mxu1 }
 0x7ad   :  { %v2550_v14 = vpop.f32.mrb[78].mxu1 }
 0x7ae   :  { %v11295_v61 = vpop.f32.mrb[79].mxu1  ;;  %10177 = vmatmul.mubr.msk.bf16.vlgmr.msra.gmra.mrb[44].mxu0 %vm1745_vm6, %v2555_v12  ;;  %v12903_v14 = vld [vmem:[%s14899_s8] sm:$0xff]  }
 0x7af   :  { %2854 = vmatpush1.bf16.msra.mxu0 %v12770_v25  ;;  %2885 = vmatprep.mubr.bf16.mxu0 %v14924_v20  ;;  %v11817_v25 = vld [vmem:[#allocation2 + $0x444] ss:$8 sps:$4 sm:$0xff]  }
 0x7b0   :  { %2855 = vmatprep.subr.bf16.mxu0 %v12784_v41  ;;  %v11815_v41 = vld [vmem:[#allocation2 + $0x440] ss:$8 sps:$4 sm:$0xff]  }
 0x7b3   :  { %2856 = vmatpush1.bf16.msra.mxu0 %v12787_v44  ;;  %v11820_v44 = vld [vmem:[#allocation2 + $0x454] ss:$8 sps:$4 sm:$0xff]  }
 0x7b4   :  { %11296 = vmatprep.subr.bf16.mxu0 %v14905_v47 }
 0x7b6   :  { %10179 = vmatmul.mubr.msk.bf16.vlgmr.msra.gmra.mrb[48].mxu0 %vm1317_vm4, %v10178_v63 }
 0x7b7   :  { %11297 = vmatpush3.bf16.msra.mxu0 %v12774_v31  ;;  %11300 = vmatprep.mubr.msk.bf16.mxu0 %vm12401_vm5, %v14905_v47  ;;  %v11826_v31 = vld [vmem:[#allocation2 + $0x474] ss:$8 sps:$4 sm:$0xff]  }
 0x7b8   :  { %11298 = vmatprep.subr.bf16.mxu0 %v14905_v47  ;;  %v13326_v47 = vld [vmem:[%s14899_s8 + $0x1a8] sm:$0xff]  }
 0x7b9   :  { %14994 = vst [vmem:[#allocation25_spill] sm:$0xff] %v13326_v47 }
 0x7bb   :  { %11299 = vmatpush3.bf16.msra.mxu0 %v12807_v58  ;;  %v11832_v58 = vld [vmem:[#allocation2 + $0x494] ss:$8 sps:$4 sm:$0xff]  }
 0x7bc   :  { %3145 = vmatprep.subr.bf16.mxu0 %v11817_v25 }
 0x7be   :  { %11301 = vmatmul.mubr.msk.bf16.vlgmr.msra.gmra.mrb[52].mxu0 %vm1317_vm4, %v10178_v63 }
 0x7bf   :  { %3146 = vmatpush1.bf16.msra.mxu0 %v11815_v41 }
 0x7c0   :  { %3147 = vmatprep.subr.bf16.mxu0 %v11820_v44 }
 0x7c3   :  { %3148 = vmatpush1.bf16.msra.mxu0 %v11818_v18  ;;  %v12916_v18 = vld [vmem:[%s14899_s8 + $0x10] sm:$0xff]  }
 0x7c4   :  { %3149 = vmatprep.subr.bf16.mxu0 %v11823_v50 }
 0x7c7   :  { %3150 = vmatpush1.bf16.msra.mxu0 %v11821_v30  ;;  %v12925_v30 = vld [vmem:[%s14899_s8 + $0x18] sm:$0xff]  }
 0x7c8   :  { %3151 = vmatprep.subr.bf16.mxu0 %v11826_v31  ;;  %v12932_v31 = vld [vmem:[%s14899_s8 + $0x20] sm:$0xff]  }
 0x7cb   :  { %3152 = vmatpush1.bf16.msra.mxu0 %v11824_v52  ;;  %v12939_v52 = vld [vmem:[%s14899_s8 + $0x28] sm:$0xff]  }
 0x7cc   :  { %3153 = vmatprep.subr.bf16.mxu0 %v11829_v19  ;;  %v12946_v19 = vld [vmem:[%s14899_s8 + $0x30] sm:$0xff]  }
 0x7cf   :  { %3154 = vmatpush1.bf16.msra.mxu0 %v11827_v7  ;;  %v12953_v7 = vld [vmem:[%s14899_s8 + $0x38] sm:$0xff]  }
 0x7d0   :  { %3155 = vmatprep.subr.bf16.mxu0 %v11832_v58  ;;  %v12960_v58 = vld [vmem:[%s14899_s8 + $0x40] sm:$0xff]  }
 0x7d3   :  { %3156 = vmatpush1.bf16.msra.mxu0 %v11830_v21  ;;  %v12968_v21 = vld [vmem:[%s14899_s8 + $0x48] sm:$0xff]  }
 0x7d4   :  { %3157 = vmatprep.subr.bf16.mxu0 %v11835_v15  ;;  %v12975_v15 = vld [vmem:[%s14899_s8 + $0x50] sm:$0xff]  }
 0x7d7   :  { %3158 = vmatpush1.bf16.msra.mxu0 %v11833_v22  ;;  %v12982_v22 = vld [vmem:[%s14899_s8 + $0x58] sm:$0xff]  }
 0x7d8   :  { %3159 = vmatprep.subr.bf16.mxu0 %v11838_v3  ;;  %v12989_v3 = vld [vmem:[%s14899_s8 + $0x60] sm:$0xff]  }
 0x7db   :  { %3160 = vmatpush1.bf16.msra.mxu0 %v11836_v23  ;;  %v12996_v23 = vld [vmem:[%s14899_s8 + $0x68] sm:$0xff]  }
 0x7dc   :  { %3161 = vmatprep.subr.bf16.mxu0 %v11841_v24 }
 0x7df   :  { %3162 = vmatpush1.bf16.msra.mxu0 %v11839_v16 }
 0x7e0   :  { %3163 = vmatprep.subr.bf16.mxu0 %v11844_v26 }
 0x7e3   :  { %3164 = vmatpush1.bf16.msra.mxu0 %v11842_v27 }
 0x7e4   :  { %3165 = vmatprep.subr.bf16.mxu0 %v11847_v28  ;;  %v3229_v28 = vld [vmem:[%s14897_s6] sm:$0x3] }
 0x7e7   :  { %3166 = vmatpush1.bf16.msra.mxu0 %v11845_v17 }
 0x7e8   :  { %3167 = vmatprep.subr.bf16.mxu0 %v11850_v32 }
 0x7eb   :  { %3168 = vmatpush1.bf16.msra.mxu0 %v11848_v33  ;;  %v3234_v33 = vrot.slane %v3229_v28, %v12753_v53 }
 0x7ec   :  { %3169 = vmatprep.subr.bf16.mxu0 %v11853_v34 }
 0x7ef   :  { %3170 = vmatpush1.bf16.msra.mxu0 %v11851_v35 }
 0x7f0   :  { %3171 = vmatprep.subr.bf16.mxu0 %v11856_v36  ;;  %v3238_v36 = vrot.slane %v3229_v28, %v12759_v55  ;;  %v14997_v55 = vmov 0.0  }
 0x7f3   :  { %3172 = vmatpush1.bf16.msra.mxu0 %v11854_v37 }
 0x7f4   :  { %3173 = vmatprep.subr.bf16.mxu0 %v11859_v39 }
 0x7f7   :  { %3174 = vmatpush1.bf16.msra.mxu0 %v11857_v38 }
 0x7f8   :  { %3175 = vmatprep.subr.bf16.mxu0 %v11862_v42 }
 0x7fb   :  { %3176 = vmatpush1.bf16.msra.mxu0 %v11860_v43 }
 0x7fc   :  { %3625 = vmatprep.subr.bf16.mxu0 %v14924_v20 }
 0x87b   :  { %v2798_v48 = vpop.f32.mrb[80].mxu1 }
 0x87c   :  { %v2800_v49 = vpop.f32.mrb[81].mxu1 }
 0x87d   :  { %v2802_v54 = vpop.f32.mrb[82].mxu1 }
 0x87e   :  { %v2803_v57 = vpop.f32.mrb[83].mxu1 }
 0x87f   :  { %v13008_v57 = vsel %vm3253_vm7, %v3254_v45, 0  ;;  %v13168_v45 = vld [vmem:[%s14899_s8 + $0x160] sm:$0xff]  }
 0x880   :  { %14981 = vst [vmem:[#allocation12_spill] sm:$0xff] %v13008_v57 }
 0x881   :  { %v2839_v59 = vpop.f32.mrb[44].mxu0 }
 0x882   :  { %v2840_v60 = vadd.f32 %v2839_v59, %v2798_v48  ;;  %v2841_v1 = vpop.f32.mrb[45].mxu0 }
 0x883   :  { %v2842_v5 = vadd.f32 %v2841_v1, %v2800_v49  ;;  %v2843_v6 = vpop.f32.mrb[46].mxu0 }
 0x884   :  { %v12895_v8 = vadd.f32 %v2840_v60, %v12871_v62  ;;  %v2844_v29 = vpop.f32.mrb[47].mxu0  ;;  %v12909_v62 = vld [vmem:[%s14899_s8 + $0x8] sm:$0xff]   ;;  %v13036_v6 = vld [vmem:[%s14899_s8 + $0x70] sm:$0xff]  }
 0x885   :  { %v12898_v9 = vadd.f32 %v2842_v5, %v12874_v2  ;;  %v10217_v5 = vld [vmem:[%s14898_s7 + $0x1] sm:$0x1] }
 0x886   :  { %v13050_v29 = vld [vmem:[%s14899_s8 + $0x80] sm:$0xff]  }
 0x889   :  { %v2887_v10 = vpop.f32.mrb[48].mxu0 }
 0x88a   :  { %v2889_v11 = vpop.f32.mrb[49].mxu0  ;;  %v2934_v61 = vpack.c.bf16 %v2887_v10, %v2887_v10  ;;  %v13064_v10 = vld [vmem:[%s14899_s8 + $0x90] sm:$0xff]  }
 0x88b   :  { %v2935_v12 = vpack.c.bf16 %v2889_v11, %v2889_v11  ;;  %v2891_v13 = vpop.f32.mrb[50].mxu0  ;;  %v13071_v11 = vld [vmem:[%s14899_s8 + $0x98] sm:$0xff]  }
 0x88c   :  { %v2892_v63 = vpop.f32.mrb[51].mxu0  ;;  %v13085_v13 = vld [vmem:[%s14899_s8 + $0xa8] sm:$0xff]  }
 0x88d   :  { %3177 = vmatprep.mubr.bf16.mxu0 %v2935_v12  ;;  %v13078_v12 = vld [vmem:[%s14899_s8 + $0xa0] sm:$0xff]   ;;  %v13099_v63 = vld [vmem:[%s14899_s8 + $0xb8] sm:$0xff]  }
 0x88e   :  { %3178 = vmatmul.mubr.bf16.vlgmr.msra.gmra.mrb[56].mxu0 %v2934_v61  ;;  %v13092_v61 = vld [vmem:[%s14899_s8 + $0xb0] sm:$0xff]  }
 0x88f   :  { %3626 = vmatpush1.bf16.msra.mxu0 %v12903_v14 }
 0x890   :  { %3627 = vmatprep.subr.bf16.mxu0 %v14924_v20 }
 0x891   :  { %v2928_v2 = vpop.f32.mrb[52].mxu0 }
 0x892   :  { %v2936_v25 = vpack.c.bf16 %v2928_v2, %v2928_v2  ;;  %v11302_v41 = vpop.f32.mrb[53].mxu0  ;;  %v13106_v2 = vld [vmem:[%s14899_s8 + $0xc0] sm:$0xff]  }
 0x893   :  { %v2931_v44 = vpop.f32.mrb[54].mxu0  ;;  %3628 = vmatpush1.bf16.msra.mxu0 %v12909_v62  ;;  %v13120_v41 = vld [vmem:[%s14899_s8 + $0xd0] sm:$0xff]  }
 0x894   :  { %v11303_v50 = vpop.f32.mrb[55].mxu0  ;;  %10215 = vmatmul.mubr.msk.bf16.vlgmr.msra.gmra.mrb[84].mxu1 %vm1745_vm6, %v2936_v25  ;;  %3629 = vmatprep.subr.bf16.mxu0 %v14924_v20  ;;  %v13113_v25 = vld [vmem:[%s14899_s8 + $0xc8] sm:$0xff]   ;;  %v13127_v44 = vld [vmem:[%s14899_s8 + $0xd8] sm:$0xff]  }
 0x895   :  { %3294 = vmatprep.mubr.bf16.mxu1 %v14924_v20 }
 0x897   :  { %3630 = vmatpush1.bf16.msra.mxu0 %v12916_v18 }
 0x898   :  { %3631 = vmatprep.subr.bf16.mxu0 %v14924_v20 }
 0x89b   :  { %3632 = vmatpush1.bf16.msra.mxu0 %v12925_v30 }
 0x89c   :  { %3633 = vmatprep.subr.bf16.mxu0 %v14924_v20 }
 0x89f   :  { %3634 = vmatpush1.bf16.msra.mxu0 %v12932_v31 }
 0x8a0   :  { %3635 = vmatprep.subr.bf16.mxu0 %v14924_v20 }
 0x8a3   :  { %3636 = vmatpush1.bf16.msra.mxu0 %v12939_v52 }
 0x8a4   :  { %3637 = vmatprep.subr.bf16.mxu0 %v14924_v20 }
 0x8a7   :  { %3638 = vmatpush1.bf16.msra.mxu0 %v12946_v19 }
 0x8a8   :  { %3639 = vmatprep.subr.bf16.mxu0 %v14924_v20 }
 0x8ab   :  { %3640 = vmatpush1.bf16.msra.mxu0 %v12953_v7 }
 0x8ac   :  { %3641 = vmatprep.subr.bf16.mxu0 %v14924_v20 }
 0x8af   :  { %3642 = vmatpush1.bf16.msra.mxu0 %v12960_v58 }
 0x8b0   :  { %3643 = vmatprep.subr.bf16.mxu0 %v14924_v20 }
 0x8b3   :  { %3644 = vmatpush1.bf16.msra.mxu0 %v12968_v21 }
 0x8b4   :  { %3645 = vmatprep.subr.bf16.mxu0 %v14924_v20 }
 0x8b7   :  { %3646 = vmatpush1.bf16.msra.mxu0 %v12975_v15 }
 0x8b8   :  { %3647 = vmatprep.subr.bf16.mxu0 %v14924_v20 }
 0x8bb   :  { %3648 = vmatpush1.bf16.msra.mxu0 %v12982_v22 }
 0x8bc   :  { %3649 = vmatprep.subr.bf16.mxu0 %v14924_v20 }
 0x8bf   :  { %3650 = vmatpush1.bf16.msra.mxu0 %v12989_v3 }
 0x8c0   :  { %3651 = vmatprep.subr.bf16.mxu0 %v14924_v20 }
 0x8c3   :  { %3652 = vmatpush1.bf16.msra.mxu0 %v12996_v23 }
 0x961   :  { %v3179_v24 = vpop.f32.mrb[56].mxu0 }
 0x962   :  { %v3181_v16 = vpop.f32.mrb[57].mxu0 }
 0x963   :  { %v3183_v26 = vpop.f32.mrb[58].mxu0 }
 0x964   :  { %v3184_v27 = vpop.f32.mrb[59].mxu0 }
 0x967   :  { %v3220_v17 = vpop.f32.mrb[84].mxu1 }
 0x968   :  { %v3221_v32 = vadd.f32 %v3220_v17, %v3179_v24  ;;  %v3222_v34 = vpop.f32.mrb[85].mxu1 }
 0x969   :  { %v3223_v35 = vadd.f32 %v3222_v34, %v3181_v16  ;;  %v3224_v37 = vpop.f32.mrb[86].mxu1 }
 0x96a   :  { %v3227_v38 = vadd.f32 %v3221_v32, %v12895_v8  ;;  %v3225_v39 = vpop.f32.mrb[87].mxu1  ;;  %v13043_v8 = vld [vmem:[%s14899_s8 + $0x78] sm:$0xff]  }
 0x96b   :  { %v3228_v42 = vadd.f32 %v3223_v35, %v12898_v9  ;;  %v13057_v9 = vld [vmem:[%s14899_s8 + $0x88] sm:$0xff]   ;;  %v10322_v35 = vld [vmem:[%s14898_s7 + $0x3] sm:$0x1]  ;;  %v13153_v39 = vld [vmem:[%s14899_s8 + $0x158] sm:$0xff]  }
 0x96c   :  { %v3241_v43 = vadd.f32 %v3234_v33, %v3227_v38  ;;  %v13142_v38 = vld [vmem:[%s14899_s8 + $0x150] sm:$0xff]  }
 0x96d   :  { %v3242_v46 = vadd.f32 %v3238_v36, %v3228_v42  ;;  %v10277_v42 = vld [vmem:[%s14898_s7 + $0x2] sm:$0x1] }
 0x96e   :  { %v3243_v48 = vmax.f32 %v3241_v43, 0.0  ;;  %v13162_v43 = vld [vmem:[%s14899_s8 + $0xe0] sm:$0xff]  }
 0x96f   :  { %v3244_v49 = vmax.f32 %v3242_v46, 0.0  ;;  %v13176_v46 = vld [vmem:[%s14899_s8 + $0xe8] sm:$0xff]  }
 0x970   :  { %v3245_v54 = vpack.c.bf16 %v3243_v48, %v3243_v48  ;;  %v13183_v48 = vld [vmem:[%s14899_s8 + $0x168] sm:$0xff]  }
 0x971   :  { %v3246_v59 = vpack.c.bf16 %v3244_v49, %v3244_v49  ;;  %14982 = vst [vmem:[#allocation13_spill] sm:$0xff] %v13183_v48  ;;  %v13190_v49 = vld [vmem:[%s14899_s8 + $0xf0] sm:$0xff]  }
 0x972   :  { %v13014_v1 = vand.u32 %v13008_v57, %v3245_v54  ;;  %v13197_v54 = vld [vmem:[%s14899_s8 + $0x170] sm:$0xff]  }
 0x973   :  { %v13011_v60 = vand.u32 %v13008_v57, %v3246_v59  ;;  %14983 = vst [vmem:[#allocation14_spill] sm:$0xff] %v13197_v54  ;;  %v13204_v59 = vld [vmem:[%s14899_s8 + $0xf8] sm:$0xff]   ;;  %v13333_v57 = vld [vmem:[%s14899_s8 + $0x1b0] sm:$0xff]  }
 0x974   :  { %14995 = vst [vmem:[#allocation26_spill] sm:$0xff] %v13333_v57 }
 0x975   :  { %3262 = vmatprep.subr.bf16.mxu1 %v13011_v60  ;;  %3875 = vmatprep.subr.bf16.mxu0 %v13011_v60 }
 0x976   :  { %3263 = vmatpush1.bf16.msra.mxu1 %v13014_v1 }
 0x977   :  { %3338 = vmatprep.subr.bf16.mxu1 %v13011_v60 }
 0x979   :  { %10216 = vmatmul.mubr.msk.bf16.vlgmr.msra.gmra.mrb[88].mxu1 %vm3249_vm8, %v13022_v0 }
 0x97a   :  { %3339 = vmatpush1.bf16.msra.mxu1 %v13014_v1  ;;  %3370 = vmatprep.mubr.bf16.mxu1 %v14924_v20 }
 0x97b   :  { %3498 = vmatprep.subr.bf16.mxu1 %v14924_v20 }
 0x981   :  { %10218 = vmatmul.mubr.msk.bf16.vlgmr.msra.gmra.mrb[92].mxu1 %vm3249_vm8, %v10217_v5  ;;  %v13211_v5 = vld [vmem:[%s14899_s8 + $0x178] sm:$0xff]  }
 0x982   :  { %3499 = vmatpush1.bf16.msra.mxu1 %v13036_v6  ;;  %14984 = vst [vmem:[#allocation15_spill] sm:$0xff] %v13211_v5 }
 0x983   :  { %3500 = vmatprep.subr.bf16.mxu1 %v14924_v20 }
 0x986   :  { %3501 = vmatpush1.bf16.msra.mxu1 %v13043_v8 }
 0x987   :  { %3502 = vmatprep.subr.bf16.mxu1 %v14924_v20 }
 0x98a   :  { %3503 = vmatpush1.bf16.msra.mxu1 %v13050_v29 }
 0x98b   :  { %3504 = vmatprep.subr.bf16.mxu1 %v14924_v20 }
 0x98e   :  { %3505 = vmatpush1.bf16.msra.mxu1 %v13057_v9 }
 0x98f   :  { %3506 = vmatprep.subr.bf16.mxu1 %v14924_v20 }
 0x992   :  { %3507 = vmatpush1.bf16.msra.mxu1 %v13064_v10 }
 0x993   :  { %3508 = vmatprep.subr.bf16.mxu1 %v14924_v20 }
 0x996   :  { %3509 = vmatpush1.bf16.msra.mxu1 %v13071_v11 }
 0x997   :  { %3510 = vmatprep.subr.bf16.mxu1 %v14924_v20 }
 0x99a   :  { %3511 = vmatpush1.bf16.msra.mxu1 %v13078_v12 }
 0x99b   :  { %3512 = vmatprep.subr.bf16.mxu1 %v14924_v20 }
 0x99e   :  { %3513 = vmatpush1.bf16.msra.mxu1 %v13085_v13 }
 0x99f   :  { %3514 = vmatprep.subr.bf16.mxu1 %v14924_v20 }
 0x9a2   :  { %3515 = vmatpush1.bf16.msra.mxu1 %v13092_v61 }
 0x9a3   :  { %3516 = vmatprep.subr.bf16.mxu1 %v14924_v20 }
 0x9a6   :  { %3517 = vmatpush1.bf16.msra.mxu1 %v13099_v63 }
 0x9a7   :  { %3518 = vmatprep.subr.bf16.mxu1 %v14924_v20 }
 0x9aa   :  { %3519 = vmatpush1.bf16.msra.mxu1 %v13106_v2 }
 0x9ab   :  { %3520 = vmatprep.subr.bf16.mxu1 %v14924_v20 }
 0x9ae   :  { %3521 = vmatpush1.bf16.msra.mxu1 %v13113_v25 }
 0x9af   :  { %3522 = vmatprep.subr.bf16.mxu1 %v14924_v20 }
 0x9b2   :  { %3523 = vmatpush1.bf16.msra.mxu1 %v13120_v41 }
 0x9b3   :  { %3524 = vmatprep.subr.bf16.mxu1 %v14924_v20 }
 0x9b6   :  { %3525 = vmatpush1.bf16.msra.mxu1 %v13127_v44 }
 0x9b7   :  { %3670 = vmatprep.subr.bf16.mxu1 %v13011_v60 }
 0xa4c   :  { %v3296_v50 = vpop.f32.mrb[88].mxu1 }
 0xa4d   :  { %v3298_v24 = vpop.f32.mrb[89].mxu1  ;;  %v3303_v27 = vpack.c.bf16 %v3296_v50, %v3296_v50  ;;  %v13218_v50 = vld [vmem:[%s14899_s8 + $0x100] sm:$0xff]  }
 0xa4e   :  { %v3304_v16 = vpack.c.bf16 %v3298_v24, %v3298_v24  ;;  %v3300_v26 = vpop.f32.mrb[90].mxu1  ;;  %v13225_v24 = vld [vmem:[%s14899_s8 + $0x180] sm:$0xff]  }
 0xa4f   :  { %v3301_v28 = vpop.f32.mrb[91].mxu1  ;;  %14985 = vst [vmem:[#allocation16_spill] sm:$0xff] %v13225_v24  ;;  %v13239_v26 = vld [vmem:[%s14899_s8 + $0x188] sm:$0xff]  }
 0xa50   :  { %10276 = vmatprep.mubr.msk.bf16.mxu0 %vm3494_vm9, %v3304_v16  ;;  %v13232_v16 = vld [vmem:[%s14899_s8 + $0x108] sm:$0xff]   ;;  %14986 = vst [vmem:[#allocation17_spill] sm:$0xff] %v13239_v26  ;;  %v13253_v28 = vld [vmem:[%s14899_s8 + $0x190] sm:$0xff]  }
 0xa51   :  { %3658 = vmatmul.mubr.bf16.vlgmr.msra.gmra.mrb[60].mxu0 %v3303_v27  ;;  %v13246_v27 = vld [vmem:[%s14899_s8 + $0x110] sm:$0xff]   ;;  %14987 = vst [vmem:[#allocation18_spill] sm:$0xff] %v13253_v28 }
 0xa52   :  { %3876 = vmatpush1.bf16.msra.mxu0 %v13014_v1  ;;  %3907 = vmatprep.mubr.bf16.mxu0 %v14924_v20 }
 0xa53   :  { %4034 = vmatprep.subr.bf16.mxu0 %v14924_v20 }
 0xa54   :  { %v3372_v17 = vpop.f32.mrb[92].mxu1 }
 0xa55   :  { %v3374_v32 = vpop.f32.mrb[93].mxu1  ;;  %v3379_v36 = vpack.c.bf16 %v3372_v17, %v3372_v17  ;;  %v13260_v17 = vld [vmem:[%s14899_s8 + $0x118] sm:$0xff]  }
 0xa56   :  { %v3380_v33 = vpack.c.bf16 %v3374_v32, %v3374_v32  ;;  %v3376_v34 = vpop.f32.mrb[94].mxu1  ;;  %v13267_v32 = vld [vmem:[%s14899_s8 + $0x198] sm:$0xff]  }
 0xa57   :  { %v3377_v37 = vpop.f32.mrb[95].mxu1  ;;  %14988 = vst [vmem:[#allocation19_spill] sm:$0xff] %v13267_v32  ;;  %v13281_v34 = vld [vmem:[%s14899_s8 + $0x1a0] sm:$0xff]  }
 0xa58   :  { %10261 = vmatprep.mubr.msk.bf16.mxu1 %vm3494_vm9, %v3380_v33  ;;  %v13274_v33 = vld [vmem:[%s14899_s8 + $0x120] sm:$0xff]   ;;  %14989 = vst [vmem:[#allocation20_spill] sm:$0xff] %v13281_v34  ;;  %v13304_v37 = vld [vmem:[%s14899_s8 + $0x138] sm:$0xff]  }
 0xa59   :  { %3531 = vmatmul.mubr.bf16.vlgmr.msra.gmra.mrb[96].mxu1 %v3379_v36  ;;  %10323 = vmatmul.mubr.msk.bf16.vlgmr.msra.gmra.mrb[64].mxu0 %vm3249_vm8, %v10322_v35  ;;  %v13288_v35 = vld [vmem:[%s14899_s8 + $0x128] sm:$0xff]   ;;  %v13297_v36 = vld [vmem:[%s14899_s8 + $0x130] sm:$0xff]   ;;  %14991 = vst [vmem:[#allocation22_spill] sm:$0xff] %v13304_v37 }
 0xa5a   :  { %3671 = vmatpush1.bf16.msra.mxu1 %v13014_v1  ;;  %3702 = vmatprep.mubr.bf16.mxu1 %v14924_v20  ;;  %14990 = vst [vmem:[#allocation21_spill] sm:$0xff] %v13297_v36 }
 0xa5b   :  { %3829 = vmatprep.subr.bf16.mxu1 %v14924_v20  ;;  %4035 = vmatpush1.bf16.msra.mxu0 %v13142_v38 }
 0xa5c   :  { %4036 = vmatprep.subr.bf16.mxu0 %v14924_v20 }
 0xa5f   :  { %4037 = vmatpush1.bf16.msra.mxu0 %v13153_v39 }
 0xa60   :  { %4038 = vmatprep.subr.bf16.mxu0 %v14924_v20 }
 0xa61   :  { %10278 = vmatmul.mubr.msk.bf16.vlgmr.msra.gmra.mrb[100].mxu1 %vm3249_vm8, %v10277_v42  ;;  %v13311_v42 = vld [vmem:[%s14899_s8 + $0x140] sm:$0xff]  }
 0xa62   :  { %3830 = vmatpush1.bf16.msra.mxu1 %v13162_v43  ;;  %14992 = vst [vmem:[#allocation23_spill] sm:$0xff] %v13311_v42 }
 0xa63   :  { %3831 = vmatprep.subr.bf16.mxu1 %v14924_v20  ;;  %4039 = vmatpush1.bf16.msra.mxu0 %v13168_v45 }
 0xa64   :  { %4040 = vmatprep.subr.bf16.mxu0 %v14924_v20 }
 0xa66   :  { %3832 = vmatpush1.bf16.msra.mxu1 %v13176_v46 }
 0xa67   :  { %3833 = vmatprep.subr.bf16.mxu1 %v14924_v20  ;;  %4041 = vmatpush1.bf16.msra.mxu0 %v13183_v48 }
 0xa68   :  { %4042 = vmatprep.subr.bf16.mxu0 %v14924_v20 }
 0xa6a   :  { %3834 = vmatpush1.bf16.msra.mxu1 %v13190_v49 }
 0xa6b   :  { %3835 = vmatprep.subr.bf16.mxu1 %v14924_v20  ;;  %4043 = vmatpush1.bf16.msra.mxu0 %v13197_v54 }
 0xa6c   :  { %4044 = vmatprep.subr.bf16.mxu0 %v14924_v20 }
 0xa6e   :  { %3836 = vmatpush1.bf16.msra.mxu1 %v13204_v59 }
 0xa6f   :  { %3837 = vmatprep.subr.bf16.mxu1 %v14924_v20  ;;  %4045 = vmatpush1.bf16.msra.mxu0 %v13211_v5  ;;  %v11922_v5 = vld [vmem:[%s14901_s10] sm:$0xff]  }
 0xa70   :  { %4046 = vmatprep.subr.bf16.mxu0 %v14924_v20 }
 0xa72   :  { %3838 = vmatpush1.bf16.msra.mxu1 %v13218_v50 }
 0xa73   :  { %3839 = vmatprep.subr.bf16.mxu1 %v14924_v20  ;;  %4047 = vmatpush1.bf16.msra.mxu0 %v13225_v24 }
 0xa74   :  { %4048 = vmatprep.subr.bf16.mxu0 %v14924_v20 }
 0xa76   :  { %3840 = vmatpush1.bf16.msra.mxu1 %v13232_v16 }
 0xa77   :  { %3841 = vmatprep.subr.bf16.mxu1 %v14924_v20  ;;  %4049 = vmatpush1.bf16.msra.mxu0 %v13239_v26 }
 0xa78   :  { %4050 = vmatprep.subr.bf16.mxu0 %v14924_v20 }
 0xa7a   :  { %3842 = vmatpush1.bf16.msra.mxu1 %v13246_v27 }
 0xa7b   :  { %3843 = vmatprep.subr.bf16.mxu1 %v14924_v20  ;;  %4051 = vmatpush1.bf16.msra.mxu0 %v13253_v28 }
 0xa7c   :  { %4052 = vmatprep.subr.bf16.mxu0 %v14924_v20 }
 0xa7e   :  { %3844 = vmatpush1.bf16.msra.mxu1 %v13260_v17 }
 0xa7f   :  { %3845 = vmatprep.subr.bf16.mxu1 %v14924_v20  ;;  %4053 = vmatpush1.bf16.msra.mxu0 %v13267_v32 }
 0xa80   :  { %4054 = vmatprep.subr.bf16.mxu0 %v14924_v20 }
 0xa82   :  { %3846 = vmatpush1.bf16.msra.mxu1 %v13274_v33 }
 0xa83   :  { %3847 = vmatprep.subr.bf16.mxu1 %v14924_v20  ;;  %4055 = vmatpush1.bf16.msra.mxu0 %v13281_v34 }
 0xa84   :  { %4056 = vmatprep.subr.bf16.mxu0 %v14924_v20 }
 0xa86   :  { %3848 = vmatpush1.bf16.msra.mxu1 %v13288_v35 }
 0xa87   :  { %3849 = vmatprep.subr.bf16.mxu1 %v14924_v20  ;;  %4057 = vmatpush1.bf16.msra.mxu0 %v13326_v47 }
 0xa88   :  { %4058 = vmatprep.subr.bf16.mxu0 %v14924_v20 }
 0xa8a   :  { %3850 = vmatpush1.bf16.msra.mxu1 %v13297_v36 }
 0xa8b   :  { %3851 = vmatprep.subr.bf16.mxu1 %v14924_v20  ;;  %4059 = vmatpush1.bf16.msra.mxu0 %v13333_v57 }
 0xa8c   :  { %4060 = vmatprep.subr.bf16.mxu0 %v14924_v20 }
 0xa8e   :  { %3852 = vmatpush1.bf16.msra.mxu1 %v13304_v37 }
 0xa8f   :  { %3853 = vmatprep.subr.bf16.mxu1 %v14924_v20  ;;  %4061 = vmatpush1.bf16.msra.mxu0 %v13340_v40 }
 0xa90   :  { %11304 = vmatprep.subr.bf16.mxu0 %v14997_v55 }
 0xa92   :  { %3854 = vmatpush1.bf16.msra.mxu1 %v13311_v42 }
 0xa93   :  { %3855 = vmatprep.subr.bf16.mxu1 %v14924_v20 }
 0xa96   :  { %3856 = vmatpush1.bf16.msra.mxu1 %v13318_v56 }
 0xa97   :  { %4080 = vmatprep.subr.bf16.mxu1 %v13011_v60 }
 0xb24   :  { %v3659_v53 = vpop.f32.mrb[60].mxu0 }
 0xb25   :  { %v3661_v4 = vpop.f32.mrb[61].mxu0 }
 0xb26   :  { %v3662_v47 = vpop.f32.mrb[62].mxu0  ;;  %v11923_v4 = vld [vmem:[%s14901_s10 + $0x8] sm:$0xff]  }
 0xb27   :  { %v3663_v34 = vpop.f32.mrb[63].mxu0  ;;  %v11924_v47 = vld [vmem:[%s14901_s10 + $0x10] sm:$0xff]  }
 0xb28   :  { %v13382_v34 = vld [vmem:[%s14899_s8 + $0x1c8] sm:$0xff]  }
 0xb29   :  { %15000 = vst [vmem:[#allocation29_spill] sm:$0xff] %v13382_v34 }
 0xb2c   :  { %v3532_v32 = vpop.f32.mrb[96].mxu1  ;;  %v3909_v28 = vpop.f32.mrb[64].mxu0 }
 0xb2d   :  { %v13344_v26 = vadd.f32 %v3659_v53, %v3532_v32  ;;  %v3916_v57 = vpack.c.bf16 %v3909_v28, %v3909_v28  ;;  %v3534_v56 = vpop.f32.mrb[97].mxu1  ;;  %v3911_v20 = vpop.f32.mrb[65].mxu0  ;;  %v10367_v28 = vld [vmem:[%s14898_s7 + $0x4] sm:$0x1] }
 0xb2e   :  { %v3917_v24 = vpack.c.bf16 %v3911_v20, %v3911_v20  ;;  %v3535_v42 = vpop.f32.mrb[98].mxu1  ;;  %v3913_v40 = vpop.f32.mrb[66].mxu0  ;;  %v13374_v32 = vld [vmem:[%s14899_s8 + $0x1c0] sm:$0xff]  }
 0xb2f   :  { %v3536_v37 = vpop.f32.mrb[99].mxu1  ;;  %v3914_v54 = vpop.f32.mrb[67].mxu0  ;;  %14999 = vst [vmem:[#allocation28_spill] sm:$0xff] %v13374_v32  ;;  %v13396_v42 = vld [vmem:[%s14899_s8 + $0x1d8] sm:$0xff]  }
 0xb30   :  { %10366 = vmatprep.mubr.msk.bf16.mxu0 %vm3494_vm9, %v3917_v24  ;;  %v14998_v24 = vmov 0   ;;  %v13389_v37 = vld [vmem:[%s14899_s8 + $0x1d0] sm:$0xff]   ;;  %15002 = vst [vmem:[#allocation31_spill] sm:$0xff] %v13396_v42 }
 0xb31   :  { %4067 = vmatmul.mubr.bf16.vlgmr.msra.gmra.mrb[68].mxu0 %v3916_v57  ;;  %15001 = vst [vmem:[#allocation30_spill] sm:$0xff] %v13389_v37 }
 0xb32   :  { %11305 = vmatpush3.bf16.msra.mxu0 %v11922_v5  ;;  %11312 = vmatprep.mubr.msk.bf16.mxu0 %vm12401_vm5, %v14997_v55  ;;  %v11925_v5 = vld [vmem:[%s14901_s10 + $0x18] sm:$0xff]  }
 0xb33   :  { %11306 = vmatprep.subr.bf16.mxu0 %v14997_v55 }
 0xb34   :  { %v3704_v20 = vpop.f32.mrb[100].mxu1 }
 0xb35   :  { %v3706_v53 = vpop.f32.mrb[101].mxu1  ;;  %v3711_v57 = vpack.c.bf16 %v3704_v20, %v3704_v20  ;;  %v13410_v20 = vld [vmem:[%s14899_s8 + $0x1e8] sm:$0xff]  }
 0xb36   :  { %v3712_v56 = vpack.c.bf16 %v3706_v53, %v3706_v53  ;;  %11307 = vmatpush3.bf16.msra.mxu0 %v11923_v4  ;;  %v3708_v40 = vpop.f32.mrb[102].mxu1  ;;  %v13403_v4 = vld [vmem:[%s14899_s8 + $0x1e0] sm:$0xff]   ;;  %15004 = vst [vmem:[#allocation33_spill] sm:$0xff] %v13410_v20  ;;  %v13417_v53 = vld [vmem:[%s14899_s8 + $0x1f0] sm:$0xff]  }
 0xb37   :  { %v3709_v54 = vpop.f32.mrb[103].mxu1  ;;  %11308 = vmatprep.subr.bf16.mxu0 %v14997_v55  ;;  %15003 = vst [vmem:[#allocation32_spill] sm:$0xff] %v13403_v4  ;;  %15005 = vst [vmem:[#allocation34_spill] sm:$0xff] %v13417_v53  ;;  %v13431_v40 = vld [vmem:[%s14899_s8 + $0x200] sm:$0xff]  }
 0xb38   :  { %10321 = vmatprep.mubr.msk.bf16.mxu1 %vm3494_vm9, %v3712_v56  ;;  %v13424_v56 = vld [vmem:[%s14899_s8 + $0x1f8] sm:$0xff]   ;;  %15007 = vst [vmem:[#allocation36_spill] sm:$0xff] %v13431_v40 }
 0xb39   :  { %3862 = vmatmul.mubr.bf16.vlgmr.msra.gmra.mrb[104].mxu1 %v3711_v57  ;;  %15006 = vst [vmem:[#allocation35_spill] sm:$0xff] %v13424_v56  ;;  %v13445_v57 = vld [vmem:[%s14899_s8 + $0x210] sm:$0xff]   ;;  %v13453_v54 = vld [vmem:[%s14899_s8 + $0x218] sm:$0xff]  }
 0xb3a   :  { %4081 = vmatpush1.bf16.msra.mxu1 %v13014_v1  ;;  %11309 = vmatpush3.bf16.msra.mxu0 %v11924_v47  ;;  %v13438_v47 = vld [vmem:[%s14899_s8 + $0x208] sm:$0xff]   ;;  %15009 = vst [vmem:[#allocation38_spill] sm:$0xff] %v13445_v57  ;;  %15010 = vst [vmem:[#allocation39_spill] sm:$0xff] %v13453_v54 }
 0xb3b   :  { %11310 = vmatprep.subr.bf16.mxu0 %v14997_v55  ;;  %4112 = vmatprep.mubr.bf16.mxu1 %v14998_v24  ;;  %15008 = vst [vmem:[#allocation37_spill] sm:$0xff] %v13438_v47 }
 0xb3c   :  { %4239 = vmatprep.subr.bf16.mxu1 %v14998_v24 }
 0xb3e   :  { %11311 = vmatpush3.bf16.msra.mxu0 %v11925_v5  ;;  %v13460_v5 = vld [vmem:[%s14899_s8 + $0x220] sm:$0xff]  }
 0xb3f   :  { %4382 = vmatprep.subr.bf16.mxu0 %v13011_v60  ;;  %15011 = vst [vmem:[#allocation40_spill] sm:$0xff] %v13460_v5 }
 0xb41   :  { %10368 = vmatmul.mubr.msk.bf16.vlgmr.msra.gmra.mrb[108].mxu1 %vm3249_vm8, %v10367_v28  ;;  %v13467_v28 = vld [vmem:[%s14899_s8 + $0x228] sm:$0xff]  }
 0xb42   :  { %4240 = vmatpush1.bf16.msra.mxu1 %v13374_v32 }
 0xb43   :  { %4241 = vmatprep.subr.bf16.mxu1 %v14998_v24 }
 0xb46   :  { %4242 = vmatpush1.bf16.msra.mxu1 %v13382_v34 }
 0xb47   :  { %4243 = vmatprep.subr.bf16.mxu1 %v14998_v24 }
 0xb4a   :  { %4244 = vmatpush1.bf16.msra.mxu1 %v13389_v37 }
 0xb4b   :  { %4245 = vmatprep.subr.bf16.mxu1 %v14998_v24 }
 0xb4e   :  { %4246 = vmatpush1.bf16.msra.mxu1 %v13396_v42 }
 0xb4f   :  { %4247 = vmatprep.subr.bf16.mxu1 %v14998_v24 }
 0xb52   :  { %4248 = vmatpush1.bf16.msra.mxu1 %v13403_v4 }
 0xb53   :  { %4249 = vmatprep.subr.bf16.mxu1 %v14998_v24 }
 0xb56   :  { %4250 = vmatpush1.bf16.msra.mxu1 %v13410_v20 }
 0xb57   :  { %4251 = vmatprep.subr.bf16.mxu1 %v14998_v24 }
 0xb5a   :  { %4252 = vmatpush1.bf16.msra.mxu1 %v13417_v53 }
 0xb5b   :  { %4253 = vmatprep.subr.bf16.mxu1 %v14998_v24 }
 0xb5e   :  { %4254 = vmatpush1.bf16.msra.mxu1 %v13424_v56 }
 0xb5f   :  { %4255 = vmatprep.subr.bf16.mxu1 %v14998_v24 }
 0xb62   :  { %4256 = vmatpush1.bf16.msra.mxu1 %v13431_v40 }
 0xb63   :  { %4257 = vmatprep.subr.bf16.mxu1 %v14998_v24 }
 0xb66   :  { %4258 = vmatpush1.bf16.msra.mxu1 %v13438_v47 }
 0xb67   :  { %4259 = vmatprep.subr.bf16.mxu1 %v14998_v24 }
 0xb6a   :  { %4260 = vmatpush1.bf16.msra.mxu1 %v13445_v57 }
 0xb6b   :  { %4261 = vmatprep.subr.bf16.mxu1 %v14998_v24 }
 0xb6e   :  { %4262 = vmatpush1.bf16.msra.mxu1 %v13453_v54 }
 0xb6f   :  { %4263 = vmatprep.subr.bf16.mxu1 %v14998_v24 }
 0xb72   :  { %4264 = vmatpush1.bf16.msra.mxu1 %v13460_v5 }
 0xb73   :  { %4265 = vmatprep.subr.bf16.mxu1 %v14998_v24 }
 0xb76   :  { %4266 = vmatpush1.bf16.msra.mxu1 %v13467_v28 }
 0xb77   :  { %4493 = vmatprep.subr.bf16.mxu1 %v14998_v24 }
 0xc04   :  { %v4068_v55 = vpop.f32.mrb[68].mxu0 }
 0xc05   :  { %v4070_v54 = vpop.f32.mrb[69].mxu0 }
 0xc06   :  { %v4071_v57 = vpop.f32.mrb[70].mxu0 }
 0xc07   :  { %v4072_v47 = vpop.f32.mrb[71].mxu0 }
 0xc0c   :  { %v3863_v40 = vpop.f32.mrb[104].mxu1 }
 0xc0d   :  { %v3869_v56 = vadd.f32 %v3863_v40, %v13344_v26  ;;  %v3865_v53 = vpop.f32.mrb[105].mxu1  ;;  %v10419_v26 = vld.sshfl [vmem:[%s14898_s7 + $0x1] sm:$0x1 pattern:$0x75316420] }
 0xc0e   :  { %v3866_v5 = vpop.f32.mrb[106].mxu1 }
 0xc0f   :  { %v4074_v20 = vadd.f32 %v4068_v55, %v3869_v56  ;;  %v3867_v4 = vpop.f32.mrb[107].mxu1  ;;  %v12402_v55 = vmov 1966171168  }
 0xc10   :  { %v15025_v4 = vld [vmem:[#allocation26_spill] sm:$0xff] }
 0xc14   :  { %v4114_v42 = vpop.f32.mrb[108].mxu1 }
 0xc15   :  { %v4116_v37 = vpop.f32.mrb[109].mxu1  ;;  %v4121_v36 = vpack.c.bf16 %v4114_v42, %v4114_v42  ;;  %v15024_v42 = vld [vmem:[#allocation25_spill] sm:$0xff] }
 0xc16   :  { %v4122_v34 = vpack.c.bf16 %v4116_v37, %v4116_v37  ;;  %v4118_v32 = vpop.f32.mrb[110].mxu1  ;;  %v15023_v37 = vld [vmem:[#allocation20_spill] sm:$0xff] }
 0xc17   :  { %v4119_v48 = vpop.f32.mrb[111].mxu1 }
 0xc18   :  { %10411 = vmatprep.mubr.msk.bf16.mxu1 %vm3494_vm9, %v4122_v34  ;;  %v15022_v34 = vld [vmem:[#allocation19_spill] sm:$0xff] }
 0xc19   :  { %4272 = vmatmul.mubr.bf16.vlgmr.msra.gmra.mrb[112].mxu1 %v4121_v36 }
 0xc1a   :  { %4494 = vmatpush1.bf16.msra.mxu1 %v13036_v6  ;;  %v4363_v6 = vunpack.c.l.s4 %v12402_v55 }
 0xc1b   :  { %4495 = vmatprep.subr.bf16.mxu1 %v14998_v24 }
 0xc1e   :  { %4496 = vmatpush1.bf16.msra.mxu1 %v13043_v8  ;;  %v4364_v8 = vunpack.c.0.s8 %v4363_v6 }
 0xc1f   :  { %4497 = vmatprep.subr.bf16.mxu1 %v14998_v24 }
 0xc22   :  { %4498 = vmatpush1.bf16.msra.mxu1 %v13050_v29 }
 0xc23   :  { %4499 = vmatprep.subr.bf16.mxu1 %v14998_v24 }
 0xc26   :  { %4500 = vmatpush1.bf16.msra.mxu1 %v13057_v9  ;;  %v13504_v9 = vld [vmem:[%s14900_s9] sm:$0x1] }
 0xc27   :  { %4501 = vmatprep.subr.bf16.mxu1 %v14998_v24 }
 0xc2a   :  { %4502 = vmatpush1.bf16.msra.mxu1 %v13064_v10  ;;  %v13507_v10 = vsub.s32 %v4364_v8, %v12750_v51 }
 0xc2b   :  { %4503 = vmatprep.subr.bf16.mxu1 %v14998_v24 }
 0xc2e   :  { %4504 = vmatpush1.bf16.msra.mxu1 %v13071_v11 }
 0xc2f   :  { %4505 = vmatprep.subr.bf16.mxu1 %v14998_v24 }
 0xc32   :  { %4506 = vmatpush1.bf16.msra.mxu1 %v13078_v12 }
 0xc33   :  { %4507 = vmatprep.subr.bf16.mxu1 %v14998_v24 }
 0xc36   :  { %4508 = vmatpush1.bf16.msra.mxu1 %v13085_v13 }
 0xc37   :  { %4509 = vmatprep.subr.bf16.mxu1 %v14998_v24 }
 0xc3a   :  { %4510 = vmatpush1.bf16.msra.mxu1 %v13092_v61 }
 0xc3b   :  { %4511 = vmatprep.subr.bf16.mxu1 %v14998_v24 }
 0xc3e   :  { %4512 = vmatpush1.bf16.msra.mxu1 %v13099_v63 }
 0xc3f   :  { %4513 = vmatprep.subr.bf16.mxu1 %v14998_v24 }
 0xc42   :  { %4514 = vmatpush1.bf16.msra.mxu1 %v13106_v2  ;;  %v4368_v2 = vrot.slane %v13022_v0, %v13507_v10  ;;  %v4440_v0 = vrot.slane %v10419_v26, %v13507_v10 }
 0xc43   :  { %4515 = vmatprep.subr.bf16.mxu1 %v14998_v24 }
 0xc44   :  { %v4442_v36 = vshrl.u32 %v4440_v0, 16  ;;  %v11943_v0 = vld [vmem:[%s14892_s1] sm:$0xff]  }
 0xc46   :  { %4516 = vmatpush1.bf16.msra.mxu1 %v13113_v25 }
 0xc47   :  { %4517 = vmatprep.subr.bf16.mxu1 %v14998_v24 }
 0xc4a   :  { %4518 = vmatpush1.bf16.msra.mxu1 %v13120_v41 }
 0xc4b   :  { %4519 = vmatprep.subr.bf16.mxu1 %v14998_v24 }
 0xc4e   :  { %4520 = vmatpush1.bf16.msra.mxu1 %v13127_v44  ;;  %v4375_v44 = vrot.slane %v4368_v2, %v13507_v10 }
 0xc4f   :  { %4598 = vmatprep.subr.bf16.mxu1 %v13011_v60 }
 0xc50   :  { %v4377_v48 = vshrl.u32 %v4375_v44, 16 }
 0xcec   :  { %v4273_v29 = vpop.f32.mrb[112].mxu1 }
 0xced   :  { %v4279_v11 = vadd.f32 %v4273_v29, %v4074_v20  ;;  %v4275_v12 = vpop.f32.mrb[113].mxu1  ;;  %v13630_v20 = vld [vmem:[%s14891_s0 + $0x14] sm:$0xff]  }
 0xcee   :  { %v4276_v13 = vpop.f32.mrb[114].mxu1 }
 0xcef   :  { %v4281_v61 = vadd.f32 %v13504_v9, %v4279_v11  ;;  %v4277_v63 = vpop.f32.mrb[115].mxu1  ;;  %v10432_v13 = vld.sshfl [vmem:[%s14898_s7 + $0x4] sm:$0x1 pattern:$0x75316420] }
 0xcf0   :  { %v4809_v2 = vrot.slane %v10432_v13, %v13507_v10 }
 0xcf1   :  { %v4282_v25 = vmax.f32 %v4281_v61, 0.0 }
 0xcf2   :  { %v4811_v44 = vshrl.u32 %v4809_v2, 16 }
 0xcf3   :  { %v4283_v41 = vpack.c.bf16 %v4282_v25, %v4282_v25 }
 0xcf5   :  { %11313 = vmatmul.mubr.msk.bf16.vlgmr.msra.gmra.mrb[72].mxu0 %vm4316_vm10, %v4283_v41 }
 0xcf6   :  { %4383 = vmatpush1.bf16.msra.mxu0 %v13014_v1  ;;  %4414 = vmatprep.mubr.bf16.mxu0 %v14998_v24 }
 0xcf7   :  { %4447 = vmatprep.subr.bf16.mxu0 %v13011_v60 }
 0xcfd   :  { %10417 = vmatmul.mubr.msk.bf16.vlgmr.msra.gmra.mrb[76].mxu0 %vm3249_vm8, %v4377_v48 }
 0xcfe   :  { %4448 = vmatpush1.bf16.msra.mxu0 %v13014_v1  ;;  %4479 = vmatprep.mubr.bf16.mxu0 %v14998_v24 }
 0xcff   :  { %4536 = vmatprep.subr.bf16.mxu0 %v14998_v24 }
 0xd05   :  { %10420 = vmatmul.mubr.msk.bf16.vlgmr.msra.gmra.mrb[80].mxu0 %vm3249_vm8, %v4442_v36 }
 0xd06   :  { %4537 = vmatpush1.bf16.msra.mxu0 %v12903_v14 }
 0xd07   :  { %4538 = vmatprep.subr.bf16.mxu0 %v14998_v24 }
 0xd0a   :  { %4539 = vmatpush1.bf16.msra.mxu0 %v12909_v62 }
 0xd0b   :  { %4540 = vmatprep.subr.bf16.mxu0 %v14998_v24 }
 0xd0e   :  { %4541 = vmatpush1.bf16.msra.mxu0 %v12916_v18 }
 0xd0f   :  { %4542 = vmatprep.subr.bf16.mxu0 %v14998_v24 }
 0xd12   :  { %4543 = vmatpush1.bf16.msra.mxu0 %v12925_v30 }
 0xd13   :  { %4544 = vmatprep.subr.bf16.mxu0 %v14998_v24 }
 0xd16   :  { %4545 = vmatpush1.bf16.msra.mxu0 %v12932_v31 }
 0xd17   :  { %4546 = vmatprep.subr.bf16.mxu0 %v14998_v24 }
 0xd1a   :  { %4547 = vmatpush1.bf16.msra.mxu0 %v12939_v52 }
 0xd1b   :  { %4548 = vmatprep.subr.bf16.mxu0 %v14998_v24 }
 0xd1e   :  { %4549 = vmatpush1.bf16.msra.mxu0 %v12946_v19 }
 0xd1f   :  { %4550 = vmatprep.subr.bf16.mxu0 %v14998_v24 }
 0xd22   :  { %4551 = vmatpush1.bf16.msra.mxu0 %v12953_v7 }
 0xd23   :  { %4552 = vmatprep.subr.bf16.mxu0 %v14998_v24 }
 0xd26   :  { %4553 = vmatpush1.bf16.msra.mxu0 %v12960_v58 }
 0xd27   :  { %4554 = vmatprep.subr.bf16.mxu0 %v14998_v24 }
 0xd2a   :  { %4555 = vmatpush1.bf16.msra.mxu0 %v12968_v21 }
 0xd2b   :  { %4556 = vmatprep.subr.bf16.mxu0 %v14998_v24 }
 0xd2e   :  { %4557 = vmatpush1.bf16.msra.mxu0 %v12975_v15  ;;  %v10424_v15 = vld.sshfl [vmem:[%s14898_s7 + $0x2] sm:$0x1 pattern:$0x75316420] }
 0xd2f   :  { %4558 = vmatprep.subr.bf16.mxu0 %v14998_v24 }
 0xd32   :  { %4559 = vmatpush1.bf16.msra.mxu0 %v12982_v22 }
 0xd33   :  { %4560 = vmatprep.subr.bf16.mxu0 %v14998_v24 }
 0xd36   :  { %4561 = vmatpush1.bf16.msra.mxu0 %v12989_v3 }
 0xd37   :  { %4562 = vmatprep.subr.bf16.mxu0 %v14998_v24 }
 0xd3a   :  { %4563 = vmatpush1.bf16.msra.mxu0 %v12996_v23  ;;  %v4591_v23 = vrot.slane %v10424_v15, %v13507_v10  ;;  %v15032_v15 = vld [vmem:[#allocation32_spill] sm:$0xff] }
 0xd3b   :  { %4644 = vmatprep.subr.bf16.mxu0 %v14998_v24 }
 0xdd0   :  { %v4416_v14 = vpop.f32.mrb[76].mxu0 }
 0xdd1   :  { %v4418_v62 = vpop.f32.mrb[77].mxu0  ;;  %v4423_v31 = vpack.c.bf16 %v4416_v14, %v4416_v14 }
 0xdd2   :  { %v4424_v18 = vpack.c.bf16 %v4418_v62, %v4418_v62  ;;  %v4420_v30 = vpop.f32.mrb[78].mxu0  ;;  %v13649_v62 = vld [vmem:[%s14891_s0 + $0x1c] sm:$0xff]  }
 0xdd3   :  { %v4421_v52 = vpop.f32.mrb[79].mxu0 }
 0xdd4   :  { %10422 = vmatprep.mubr.msk.bf16.mxu0 %vm3494_vm9, %v4424_v18  ;;  %v15027_v18 = vld [vmem:[#allocation8_spill] sm:$0xff]  ;;  %v15029_v52 = vld [vmem:[#allocation29_spill] sm:$0xff] }
 0xdd5   :  { %4569 = vmatmul.mubr.bf16.vlgmr.msra.gmra.mrb[84].mxu0 %v4423_v31  ;;  %v15028_v31 = vld [vmem:[#allocation28_spill] sm:$0xff] }
 0xdd6   :  { %4645 = vmatpush1.bf16.msra.mxu0 %v13162_v43  ;;  %v4593_v43 = vshrl.u32 %v4591_v23, 16  ;;  %v15034_v23 = vld [vmem:[#allocation34_spill] sm:$0xff] }
 0xdd7   :  { %4646 = vmatprep.subr.bf16.mxu0 %v14998_v24 }
 0xdd8   :  { %v4481_v19 = vpop.f32.mrb[80].mxu0 }
 0xdd9   :  { %v4483_v7 = vpop.f32.mrb[81].mxu0  ;;  %v4488_v22 = vpack.c.bf16 %v4481_v19, %v4481_v19  ;;  %v11944_v19 = vld [vmem:[%s14892_s1 + $0x8] ss:$0 sps:$4 sm:$0x11]  }
 0xdda   :  { %v4489_v58 = vpack.c.bf16 %v4483_v7, %v4483_v7  ;;  %4647 = vmatpush1.bf16.msra.mxu0 %v13176_v46  ;;  %v4485_v21 = vpop.f32.mrb[82].mxu0  ;;  %v10428_v46 = vld.sshfl [vmem:[%s14898_s7 + $0x3] sm:$0x1 pattern:$0x75316420]  ;;  %v11945_v7 = vld [vmem:[%s14892_s1 + $0xc] sm:$0xff]  }
 0xddb   :  { %v4486_v3 = vpop.f32.mrb[83].mxu0  ;;  %4648 = vmatprep.subr.bf16.mxu0 %v14998_v24  ;;  %v4700_v32 = vrot.slane %v10428_v46, %v13507_v10  ;;  %v15031_v21 = vld [vmem:[#allocation31_spill] sm:$0xff]  ;;  %v15036_v46 = vld [vmem:[#allocation36_spill] sm:$0xff] }
 0xddc   :  { %10421 = vmatprep.mubr.msk.bf16.mxu1 %vm3494_vm9, %v4489_v58  ;;  %v15030_v58 = vld [vmem:[#allocation30_spill] sm:$0xff]  ;;  %v15033_v3 = vld [vmem:[#allocation33_spill] sm:$0xff] }
 0xddd   :  { %4526 = vmatmul.mubr.bf16.vlgmr.msra.gmra.mrb[116].mxu1 %v4488_v22  ;;  %v11946_v22 = vld [vmem:[%s14892_s1 + $0x14] ss:$0 sps:$4 sm:$0x11]  }
 0xdde   :  { %4599 = vmatpush1.bf16.msra.mxu1 %v13014_v1  ;;  %4649 = vmatpush1.bf16.msra.mxu0 %v13190_v49  ;;  %v4702_v49 = vshrl.u32 %v4700_v32, 16  ;;  %v15037_v32 = vld [vmem:[#allocation37_spill] sm:$0xff] }
 0xddf   :  { %4707 = vmatprep.subr.bf16.mxu1 %v13011_v60  ;;  %4650 = vmatprep.subr.bf16.mxu0 %v14998_v24 }
 0xde0   :  { %4630 = vmatprep.mubr.bf16.mxu1 %v14998_v24 }
 0xde2   :  { %4651 = vmatpush1.bf16.msra.mxu0 %v13204_v59  ;;  %v15014_v59 = vld [vmem:[#allocation14_spill] sm:$0xff] }
 0xde3   :  { %4652 = vmatprep.subr.bf16.mxu0 %v14998_v24 }
 0xde5   :  { %10425 = vmatmul.mubr.msk.bf16.vlgmr.msra.gmra.mrb[120].mxu1 %vm3249_vm8, %v4593_v43  ;;  %v15035_v43 = vld [vmem:[#allocation35_spill] sm:$0xff] }
 0xde6   :  { %4653 = vmatpush1.bf16.msra.mxu0 %v13218_v50  ;;  %4708 = vmatpush1.bf16.msra.mxu1 %v13014_v1  ;;  %v15016_v50 = vld [vmem:[#allocation15_spill] sm:$0xff] }
 0xde7   :  { %4654 = vmatprep.subr.bf16.mxu0 %v14998_v24  ;;  %4739 = vmatprep.mubr.bf16.mxu1 %v14998_v24 }
 0xde8   :  { %4753 = vmatprep.subr.bf16.mxu1 %v14998_v24 }
 0xdea   :  { %4655 = vmatpush1.bf16.msra.mxu0 %v13232_v16  ;;  %v15017_v16 = vld [vmem:[#allocation23_spill] sm:$0xff] }
 0xdeb   :  { %4656 = vmatprep.subr.bf16.mxu0 %v14998_v24 }
 0xded   :  { %10429 = vmatmul.mubr.msk.bf16.vlgmr.msra.gmra.mrb[124].mxu1 %vm3249_vm8, %v4702_v49  ;;  %v15038_v49 = vld [vmem:[#allocation38_spill] sm:$0xff] }
 0xdee   :  { %4657 = vmatpush1.bf16.msra.mxu0 %v13246_v27  ;;  %4754 = vmatpush1.bf16.msra.mxu1 %v13142_v38  ;;  %v15012_v38 = vld [vmem:[#allocation13_spill] sm:$0xff]  ;;  %v15018_v27 = vld [vmem:[#allocation16_spill] sm:$0xff] }
 0xdef   :  { %4658 = vmatprep.subr.bf16.mxu0 %v14998_v24  ;;  %4755 = vmatprep.subr.bf16.mxu1 %v14998_v24 }
 0xdf2   :  { %4659 = vmatpush1.bf16.msra.mxu0 %v13260_v17  ;;  %4756 = vmatpush1.bf16.msra.mxu1 %v13153_v39  ;;  %v15013_v39 = vld [vmem:[#allocation21_spill] sm:$0xff]  ;;  %v15019_v17 = vld [vmem:[#allocation24_spill] sm:$0xff] }
 0xdf3   :  { %4660 = vmatprep.subr.bf16.mxu0 %v14998_v24  ;;  %4757 = vmatprep.subr.bf16.mxu1 %v14998_v24 }
 0xdf6   :  { %4661 = vmatpush1.bf16.msra.mxu0 %v13274_v33  ;;  %4758 = vmatpush1.bf16.msra.mxu1 %v13168_v45  ;;  %v15015_v45 = vld [vmem:[#allocation22_spill] sm:$0xff]  ;;  %v15020_v33 = vld [vmem:[#allocation17_spill] sm:$0xff] }
 0xdf7   :  { %4662 = vmatprep.subr.bf16.mxu0 %v14998_v24  ;;  %4759 = vmatprep.subr.bf16.mxu1 %v14998_v24 }
 0xdfa   :  { %4663 = vmatpush1.bf16.msra.mxu0 %v13288_v35  ;;  %4760 = vmatpush1.bf16.msra.mxu1 %v15012_v38  ;;  %v15021_v35 = vld [vmem:[#allocation18_spill] sm:$0xff]  ;;  %v15039_v38 = vld [vmem:[#allocation39_spill] sm:$0xff] }
 0xdfb   :  { %4664 = vmatprep.subr.bf16.mxu0 %v14998_v24  ;;  %4761 = vmatprep.subr.bf16.mxu1 %v14998_v24 }
 0xdfe   :  { %4665 = vmatpush1.bf16.msra.mxu0 %v15013_v39  ;;  %4762 = vmatpush1.bf16.msra.mxu1 %v15014_v59  ;;  %v15040_v39 = vld [vmem:[#allocation40_spill] sm:$0xff]  ;;  %v15041_v59 = vmov 0.0  }
 0xdff   :  { %4666 = vmatprep.subr.bf16.mxu0 %v14998_v24  ;;  %4763 = vmatprep.subr.bf16.mxu1 %v14998_v24 }
 0xe02   :  { %4667 = vmatpush1.bf16.msra.mxu0 %v15015_v45  ;;  %4764 = vmatpush1.bf16.msra.mxu1 %v15016_v50  ;;  %v11947_v45 = vld [vmem:[%s14893_s2 + $0x3c] ss:$12 sps:$4 sm:$0xff]   ;;  %v11949_v50 = vld [vmem:[%s14893_s2 + $0x40] ss:$12 sps:$4 sm:$0xff]  }
 0xe03   :  { %4668 = vmatprep.subr.bf16.mxu0 %v14998_v24  ;;  %4765 = vmatprep.subr.bf16.mxu1 %v14998_v24 }
 0xe06   :  { %4669 = vmatpush1.bf16.msra.mxu0 %v15017_v16  ;;  %4766 = vmatpush1.bf16.msra.mxu1 %v15018_v27  ;;  %v11952_v16 = vld [vmem:[%s14893_s2 + $0x58] ss:$12 sps:$4 sm:$0xff]   ;;  %v10475_v27 = vld [vmem:[%s14893_s2 + $0x6c] sm:$0x77] }
 0xe07   :  { %4670 = vmatprep.subr.bf16.mxu0 %v14998_v24  ;;  %4767 = vmatprep.subr.bf16.mxu1 %v14998_v24 }
 0xe0a   :  { %4671 = vmatpush1.bf16.msra.mxu0 %v15019_v17  ;;  %4768 = vmatpush1.bf16.msra.mxu1 %v15020_v33  ;;  %v10484_v17 = vcombine.high %v10475_v27, %v10475_v27  ;;  %v10483_v33 = vcombine.low %v10475_v27, %v10475_v27  ;;  %v11979_v27 = vld [vmem:[%s14893_s2 + $0x90] ss:$12 sps:$4 sm:$0xff]  }
 0xe0b   :  { %4816 = vmatprep.subr.bf16.mxu0 %v13011_v60  ;;  %4769 = vmatprep.subr.bf16.mxu1 %v14998_v24  ;;  %v15026_v60 = vld [vmem:[#allocation27_spill] sm:$0xff] }
 0xe0e   :  { %4770 = vmatpush1.bf16.msra.mxu1 %v15021_v35  ;;  %v5213_v35 = vand.u32 %v10484_v17, %v15027_v18  ;;  %v11981_v17 = vld [vmem:[%s14893_s2 + $0x94] ss:$12 sps:$4 sm:$0xff]  }
 0xe0f   :  { %4771 = vmatprep.subr.bf16.mxu1 %v14998_v24 }
 0xe12   :  { %4772 = vmatpush1.bf16.msra.mxu1 %v15022_v34  ;;  %v5210_v34 = vand.u32 %v10483_v33, %v15027_v18  ;;  %v10518_v33 = vld [vmem:[%s14893_s2 + $0xa8] sm:$0x77] }
 0xe13   :  { %4773 = vmatprep.subr.bf16.mxu1 %v14998_v24 }
 0xe16   :  { %4774 = vmatpush1.bf16.msra.mxu1 %v15023_v37  ;;  %v11955_v37 = vld [vmem:[%s14893_s2 + $0x44] ss:$12 sps:$4 sm:$0xff]  }
 0xe17   :  { %4775 = vmatprep.subr.bf16.mxu1 %v14998_v24 }
 0xe1a   :  { %4776 = vmatpush1.bf16.msra.mxu1 %v15024_v42 }
 0xe1b   :  { %4777 = vmatprep.subr.bf16.mxu1 %v14998_v24 }
 0xe1e   :  { %4778 = vmatpush1.bf16.msra.mxu1 %v15025_v4 }
 0xe1f   :  { %4779 = vmatprep.subr.bf16.mxu1 %v14998_v24 }
 0xe22   :  { %4780 = vmatpush1.bf16.msra.mxu1 %v15026_v60 }
 0xe23   :  { %11328 = vmatprep.subr.bf16.mxu1 %v13630_v20 }
 0xea8   :  { %v4570_v53 = vpop.f32.mrb[84].mxu0 }
 0xea9   :  { %v4572_v56 = vpop.f32.mrb[85].mxu0 }
 0xeaa   :  { %v4573_v40 = vpop.f32.mrb[86].mxu0 }
 0xeab   :  { %v4574_v47 = vpop.f32.mrb[87].mxu0 }
 0xeb0   :  { %v4527_v57 = vpop.f32.mrb[116].mxu1 }
 0xeb1   :  { %v13633_v54 = vadd.f32 %v4570_v53, %v4527_v57  ;;  %v4529_v5 = vpop.f32.mrb[117].mxu1 }
 0xeb2   :  { %v4530_v55 = vpop.f32.mrb[118].mxu1 }
 0xeb3   :  { %v4531_v6 = vpop.f32.mrb[119].mxu1 }
 0xeb8   :  { %v4632_v8 = vpop.f32.mrb[120].mxu1 }
 0xeb9   :  { %v4634_v29 = vpop.f32.mrb[121].mxu1  ;;  %v4639_v61 = vpack.c.bf16 %v4632_v8, %v4632_v8 }
 0xeba   :  { %v4640_v11 = vpack.c.bf16 %v4634_v29, %v4634_v29  ;;  %v4636_v12 = vpop.f32.mrb[122].mxu1 }
 0xebb   :  { %v4637_v63 = vpop.f32.mrb[123].mxu1  ;;  %v11968_v12 = vld [vmem:[%s14901_s10 + $0x20] sm:$0xff]  }
 0xebc   :  { %10426 = vmatprep.mubr.msk.bf16.mxu0 %vm3494_vm9, %v4640_v11 }
 0xebd   :  { %4677 = vmatmul.mubr.bf16.vlgmr.msra.gmra.mrb[88].mxu0 %v4639_v61 }
 0xebe   :  { %4817 = vmatpush1.bf16.msra.mxu0 %v13014_v1  ;;  %4848 = vmatprep.mubr.bf16.mxu0 %v14998_v24  ;;  %v11942_v1 = vld [vmem:[%s14891_s0 + $0x24] ss:$0 sps:$4 sm:$0x77]  }
 0xebf   :  { %4862 = vmatprep.subr.bf16.mxu0 %v14998_v24  ;;  %v13660_v30 = vand.u32 %v11942_v1, %v15027_v18  ;;  %v11956_v1 = vld [vmem:[%s14893_s2 + $0x5c] ss:$12 sps:$4 sm:$0xff]  }
 0xec0   :  { %v4741_v25 = vpop.f32.mrb[124].mxu1 }
 0xec1   :  { %v4743_v41 = vpop.f32.mrb[125].mxu1  ;;  %v4748_v36 = vpack.c.bf16 %v4741_v25, %v4741_v25 }
 0xec2   :  { %v4749_v48 = vpack.c.bf16 %v4743_v41, %v4743_v41  ;;  %v4745_v26 = vpop.f32.mrb[126].mxu1 }
 0xec3   :  { %v4746_v14 = vpop.f32.mrb[127].mxu1 }
 0xec4   :  { %10430 = vmatprep.mubr.msk.bf16.mxu1 %vm3494_vm9, %v4749_v48 }
 0xec5   :  { %4786 = vmatmul.mubr.bf16.vlgmr.msra.gmra.mrb[128].mxu1 %v4748_v36  ;;  %10433 = vmatmul.mubr.msk.bf16.vlgmr.msra.gmra.mrb[92].mxu0 %vm3249_vm8, %v4811_v44 }
 0xec6   :  { %11329 = vmatpush3.bf16.msra.mxu1 %v13630_v20  ;;  %11334 = vmatprep.mubr.msk.bf16.mxu1 %vm88_vm2, %v11943_v0 }
 0xec7   :  { %11330 = vmatprep.subr.bf16.mxu1 %v13649_v62  ;;  %4863 = vmatpush1.bf16.msra.mxu0 %v15028_v31  ;;  %v11957_v31 = vld [vmem:[%s14893_s2 + $0x74] ss:$0 sps:$4 sm:$0x77]  }
 0xec8   :  { %4864 = vmatprep.subr.bf16.mxu0 %v14998_v24 }
 0xeca   :  { %11331 = vmatpush3.bf16.msra.mxu1 %v13649_v62 }
 0xecb   :  { %11332 = vmatprep.subr.bf16.mxu1 %v13660_v30  ;;  %4865 = vmatpush1.bf16.msra.mxu0 %v15029_v52  ;;  %v5216_v52 = vand.u32 %v11957_v31, %v15027_v18 }
 0xecc   :  { %4866 = vmatprep.subr.bf16.mxu0 %v14998_v24 }
 0xece   :  { %11333 = vmatpush3.bf16.msra.mxu1 %v13660_v30 }
 0xecf   :  { %11338 = vmatprep.subr.bf16.mxu1 %v13630_v20  ;;  %4867 = vmatpush1.bf16.msra.mxu0 %v15030_v58  ;;  %v5084_v58 = vld [vmem:[%s14893_s2 + $0x30] sm:$0x77] }
 0xed0   :  { %4868 = vmatprep.subr.bf16.mxu0 %v14998_v24 }
 0xed1   :  { %11335 = vmatmul.mubr.msk.bf16.vlgmr.msra.gmra.mrb[132].mxu1 %vm88_vm2, %v11944_v19 }
 0xed2   :  { %11339 = vmatpush3.bf16.msra.mxu1 %v13630_v20  ;;  %11344 = vmatprep.mubr.msk.bf16.mxu1 %vm88_vm2, %v11945_v7  ;;  %v11960_v7 = vld [vmem:[%s14893_s2 + $0x4] ss:$12 sps:$4 sm:$0xff]  }
 0xed3   :  { %11340 = vmatprep.subr.bf16.mxu1 %v13649_v62  ;;  %4869 = vmatpush1.bf16.msra.mxu0 %v15031_v21  ;;  %v11958_v21 = vld [vmem:[%s14893_s2] ss:$12 sps:$4 sm:$0xff]  }
 0xed4   :  { %4870 = vmatprep.subr.bf16.mxu0 %v14998_v24 }
 0xed6   :  { %11341 = vmatpush3.bf16.msra.mxu1 %v13649_v62 }
 0xed7   :  { %11342 = vmatprep.subr.bf16.mxu1 %v13660_v30  ;;  %4871 = vmatpush1.bf16.msra.mxu0 %v15032_v15  ;;  %v11963_v15 = vld [vmem:[%s14893_s2 + $0x1c] ss:$12 sps:$4 sm:$0xff]  }
 0xed8   :  { %4872 = vmatprep.subr.bf16.mxu0 %v14998_v24 }
 0xeda   :  { %11343 = vmatpush3.bf16.msra.mxu1 %v13660_v30 }
 0xedb   :  { %4873 = vmatpush1.bf16.msra.mxu0 %v15033_v3  ;;  %5218 = vmatprep.subr.bf16.mxu1 %v11949_v50  ;;  %v11961_v3 = vld [vmem:[%s14893_s2 + $0x18] ss:$12 sps:$4 sm:$0xff]   ;;  %v11972_v50 = vld [vmem:[%s14893_s2 + $0x8] ss:$12 sps:$4 sm:$0xff]  }
 0xedc   :  { %4874 = vmatprep.subr.bf16.mxu0 %v14998_v24 }
 0xedd   :  { %11345 = vmatmul.mubr.msk.bf16.vlgmr.msra.gmra.mrb[136].mxu1 %vm88_vm2, %v11946_v22  ;;  %v10497_v22 = vcombine.high %v5084_v58, %v5084_v58 }
 0xede   :  { %5250 = vmatprep.mubr.bf16.mxu1 %v14998_v24  ;;  %5219 = vmatpush1.bf16.msra.mxu1 %v11947_v45  ;;  %v11971_v45 = vld [vmem:[%s14901_s10 + $0x38] sm:$0xff]  }
 0xedf   :  { %4875 = vmatpush1.bf16.msra.mxu0 %v15034_v23  ;;  %5220 = vmatprep.subr.bf16.mxu1 %v11952_v16  ;;  %v10496_v23 = vcombine.low %v5084_v58, %v5084_v58  ;;  %v11977_v16 = vld [vmem:[%s14893_s2 + $0x7c] ss:$12 sps:$4 sm:$0xff]  }
 0xee0   :  { %4876 = vmatprep.subr.bf16.mxu0 %v14998_v24 }
 0xee3   :  { %4877 = vmatpush1.bf16.msra.mxu0 %v15035_v43  ;;  %v5367_v43 = vand.u32 %v10497_v22, %v15027_v18  ;;  %v11987_v22 = vld [vmem:[%s14892_s1 + $0x2c] ss:$0 sps:$4 sm:$0x11]  }
 0xee4   :  { %4878 = vmatprep.subr.bf16.mxu0 %v14998_v24 }
 0xee7   :  { %4879 = vmatpush1.bf16.msra.mxu0 %v15036_v46  ;;  %v5364_v46 = vand.u32 %v10496_v23, %v15027_v18  ;;  %v11990_v23 = vld [vmem:[%s14893_s2 + $0xb8] ss:$12 sps:$4 sm:$0xff]  }
 0xee8   :  { %4880 = vmatprep.subr.bf16.mxu0 %v14998_v24 }
 0xeeb   :  { %4881 = vmatpush1.bf16.msra.mxu0 %v15037_v32  ;;  %v11966_v32 = vld [vmem:[%s14892_s1 + $0x18] sm:$0xff]  }
 0xeec   :  { %4882 = vmatprep.subr.bf16.mxu0 %v14998_v24 }
 0xeef   :  { %4883 = vmatpush1.bf16.msra.mxu0 %v15038_v49 }
 0xef0   :  { %4884 = vmatprep.subr.bf16.mxu0 %v14998_v24 }
 0xef3   :  { %4885 = vmatpush1.bf16.msra.mxu0 %v15039_v38  ;;  %v11967_v38 = vld [vmem:[%s14892_s1 + $0x20] ss:$0 sps:$4 sm:$0x11]  }
 0xef4   :  { %4886 = vmatprep.subr.bf16.mxu0 %v14998_v24 }
 0xef7   :  { %4887 = vmatpush1.bf16.msra.mxu0 %v15040_v39  ;;  %v11970_v39 = vld [vmem:[%s14901_s10 + $0x30] sm:$0xff]  }
 0xef8   :  { %4888 = vmatprep.subr.bf16.mxu0 %v14998_v24 }
 0xefb   :  { %4889 = vmatpush1.bf16.msra.mxu0 %v13467_v28  ;;  %v11950_v28 = vld [vmem:[%s14893_s2 + $0x54] ss:$12 sps:$4 sm:$0xff]  }
 0xefc   :  { %11316 = vmatprep.subr.bf16.mxu0 %v15041_v59  ;;  %5221 = vmatpush1.bf16.msra.mxu1 %v11950_v28  ;;  %v11975_v28 = vld [vmem:[%s14893_s2 + $0x78] ss:$12 sps:$4 sm:$0xff]  }
 0xefd   :  { %5222 = vmatprep.subr.bf16.mxu1 %v5213_v35  ;;  %v10527_v35 = vcombine.high %v10518_v33, %v10518_v33 }
 0xf00   :  { %5223 = vmatpush1.bf16.msra.mxu1 %v5210_v34  ;;  %v10526_v34 = vcombine.low %v10518_v33, %v10518_v33 }
 0xf01   :  { %11348 = vmatprep.subr.bf16.mxu1 %v11955_v37 }
 0xf90   :  { %v4678_v42 = vpop.f32.mrb[88].mxu0 }
 0xf91   :  { %v4684_v4 = vadd.f32 %v4678_v42, %v13633_v54  ;;  %v4680_v60 = vpop.f32.mrb[89].mxu0  ;;  %v11969_v54 = vld [vmem:[%s14901_s10 + $0x28] sm:$0xff]   ;;  %v5595_v42 = vand.u32 %v10526_v34, %v15027_v18 }
 0xf92   :  { %v4681_v53 = vpop.f32.mrb[90].mxu0 }
 0xf93   :  { %v4682_v56 = vpop.f32.mrb[91].mxu0 }
 0xf98   :  { %v4787_v40 = vpop.f32.mrb[128].mxu1  ;;  %v4850_v47 = vpop.f32.mrb[92].mxu0 }
 0xf99   :  { %v13733_v57 = vadd.f32 %v4787_v40, %v4684_v4  ;;  %v4857_v5 = vpack.c.bf16 %v4850_v47, %v4850_v47  ;;  %v4789_v55 = vpop.f32.mrb[129].mxu1  ;;  %v4852_v6 = vpop.f32.mrb[93].mxu0 }
 0xf9a   :  { %v4858_v8 = vpack.c.bf16 %v4852_v6, %v4852_v6  ;;  %v4790_v29 = vpop.f32.mrb[130].mxu1  ;;  %v4854_v11 = vpop.f32.mrb[94].mxu0  ;;  %v11973_v6 = vld [vmem:[%s14893_s2 + $0x20] ss:$12 sps:$4 sm:$0xff]  }
 0xf9b   :  { %v4791_v13 = vpop.f32.mrb[131].mxu1  ;;  %v4855_v61 = vpop.f32.mrb[95].mxu0  ;;  %v11982_v29 = vld [vmem:[%s14893_s2 + $0x98] ss:$12 sps:$4 sm:$0xff]  }
 0xf9c   :  { %10434 = vmatprep.mubr.msk.bf16.mxu0 %vm3494_vm9, %v4858_v8  ;;  %v11974_v8 = vld [vmem:[%s14893_s2 + $0x38] ss:$0 sps:$4 sm:$0x77]   ;;  %v11985_v11 = vld [vmem:[%s14893_s2 + $0xb0] ss:$0 sps:$4 sm:$0x77]  }
 0xf9d   :  { %4895 = vmatmul.mubr.bf16.vlgmr.msra.gmra.mrb[96].mxu0 %v4857_v5 }
 0xf9e   :  { %11317 = vmatpush3.bf16.msra.mxu0 %v11968_v12  ;;  %11324 = vmatprep.mubr.msk.bf16.mxu0 %vm12401_vm5, %v15041_v59  ;;  %v5601_v12 = vand.u32 %v11985_v11, %v15027_v18 }
 0xf9f   :  { %11318 = vmatprep.subr.bf16.mxu0 %v15041_v59 }
 0xfa2   :  { %11319 = vmatpush3.bf16.msra.mxu0 %v11969_v54 }
 0xfa3   :  { %11320 = vmatprep.subr.bf16.mxu0 %v15041_v59 }
 0xfa4   :  { %v11336_v63 = vpop.f32.mrb[132].mxu1 }
 0xfa5   :  { %v5060_v2 = vpop.f32.mrb[133].mxu1  ;;  %v5075_v49 = vpack.c.bf16 %v11336_v63, %v11336_v63 }
 0xfa6   :  { %v11337_v25 = vpop.f32.mrb[134].mxu1  ;;  %11321 = vmatpush3.bf16.msra.mxu0 %v11970_v39 }
 0xfa7   :  { %v5063_v41 = vpop.f32.mrb[135].mxu1  ;;  %11322 = vmatprep.subr.bf16.mxu0 %v15041_v59 }
 0xfa8   :  { %v13746_v44 = vpack.c.bf16 %v5063_v41, %v5060_v2 }
 0xfaa   :  { %11323 = vmatpush3.bf16.msra.mxu0 %v11971_v45 }
 0xfab   :  { %11358 = vmatprep.subr.bf16.mxu0 %v11972_v50 }
 0xfb0   :  { %v11346_v48 = vpop.f32.mrb[136].mxu1 }
 0xfb1   :  { %v5137_v26 = vpop.f32.mrb[137].mxu1  ;;  %v5152_v19 = vpack.c.bf16 %v11346_v48, %v11346_v48 }
 0xfb2   :  { %v11347_v0 = vpop.f32.mrb[138].mxu1 }
 0xfb3   :  { %v5140_v36 = vpop.f32.mrb[139].mxu1 }
 0xfb4   :  { %v5151_v14 = vpack.c.bf16 %v5140_v36, %v5137_v26 }
 0xfb6   :  { %10486 = vmatmul.mubr.msk.bf16.vlgmr.msra.gmra.mrb[140].mxu1 %vm88_vm2, %v5151_v14 }
 0xfb7   :  { %11349 = vmatpush3.bf16.msra.mxu1 %v11955_v37  ;;  %5260 = vmatprep.mubr.bf16.mxu1 %v14998_v24  ;;  %v5598_v37 = vand.u32 %v10527_v35, %v15027_v18 }
 0xfb8   :  { %11350 = vmatprep.subr.bf16.mxu1 %v11956_v1 }
 0xfbb   :  { %11351 = vmatpush3.bf16.msra.mxu1 %v11956_v1 }
 0xfbc   :  { %11352 = vmatprep.subr.bf16.mxu1 %v5216_v52 }
 0xfbe   :  { %10487 = vmatmul.mubr.msk.bf16.gmra.mrb[144].mxu1 %vm88_vm2, %v5152_v19 }
 0xfbf   :  { %11354 = vmatprep.mubr.msk.bf16.mxu1 %vm88_vm2, %v5151_v14  ;;  %11353 = vmatpush3.bf16.msra.mxu1 %v5216_v52 }
 0xfc0   :  { %5372 = vmatprep.subr.bf16.mxu1 %v11960_v7 }
 0xfc6   :  { %11355 = vmatmul.mubr.msk.bf16.vlgmr.msra.gmra.mrb[148].mxu1 %vm88_vm2, %v5152_v19 }
 0xfc7   :  { %5373 = vmatpush1.bf16.msra.mxu1 %v11958_v21  ;;  %5404 = vmatprep.mubr.bf16.mxu1 %v14998_v24  ;;  %v11986_v21 = vld [vmem:[%s14892_s1 + $0x24] sm:$0xff]  }
 0xfc8   :  { %5374 = vmatprep.subr.bf16.mxu1 %v11963_v15 }
 0xfcb   :  { %5375 = vmatpush1.bf16.msra.mxu1 %v11961_v3  ;;  %v11988_v3 = vld [vmem:[%s14893_s2 + $0xb4] ss:$12 sps:$4 sm:$0xff]  }
 0xfcc   :  { %5376 = vmatprep.subr.bf16.mxu1 %v5367_v43  ;;  %v11991_v43 = vld [vmem:[%s14893_s2 + $0xbc] ss:$12 sps:$4 sm:$0xff]  }
 0xfcf   :  { %5377 = vmatpush1.bf16.msra.mxu1 %v5364_v46  ;;  %v11994_v46 = vld [vmem:[%s14893_s2 + $0xd0] ss:$12 sps:$4 sm:$0xff]  }
 0xfd0   :  { %11368 = vmatprep.subr.bf16.mxu1 %v13630_v20 }
 0xfd2   :  { %10499 = vmatmul.mubr.msk.bf16.vlgmr.msra.gmra.mrb[140].mxu1 %vm88_vm2, %v13746_v44 }
 0xfd3   :  { %11369 = vmatpush3.bf16.msra.mxu1 %v13630_v20  ;;  %5414 = vmatprep.mubr.bf16.mxu1 %v14998_v24 }
 0xfd4   :  { %11370 = vmatprep.subr.bf16.mxu1 %v13649_v62 }
 0xfd7   :  { %11371 = vmatpush3.bf16.msra.mxu1 %v13649_v62 }
 0xfd8   :  { %11372 = vmatprep.subr.bf16.mxu1 %v13660_v30 }
 0xfda   :  { %10500 = vmatmul.mubr.msk.bf16.gmra.mrb[152].mxu1 %vm88_vm2, %v5075_v49 }
 0xfdb   :  { %11373 = vmatpush3.bf16.msra.mxu1 %v13660_v30  ;;  %11374 = vmatprep.mubr.msk.bf16.mxu1 %vm88_vm2, %v11966_v32  ;;  %v11992_v32 = vld [vmem:[%s14893_s2 + $0xcc] ss:$12 sps:$4 sm:$0xff]  }
 0xfdc   :  { %5603 = vmatprep.subr.bf16.mxu1 %v11977_v16 }
 0xfe2   :  { %11375 = vmatmul.mubr.msk.bf16.vlgmr.msra.gmra.mrb[156].mxu1 %vm88_vm2, %v11967_v38  ;;  %v10548_v38 = vld [vmem:[%s14893_s2 + $0xe4] sm:$0x77] }
 0xfe3   :  { %5635 = vmatprep.mubr.bf16.mxu1 %v14998_v24  ;;  %5604 = vmatpush1.bf16.msra.mxu1 %v11975_v28  ;;  %v10557_v39 = vcombine.high %v10548_v38, %v10548_v38  ;;  %v10556_v45 = vcombine.low %v10548_v38, %v10548_v38 }
 0xfe4   :  { %5605 = vmatprep.subr.bf16.mxu1 %v11981_v17  ;;  %v3247_v17 = vld [vmem:[%s14902_s11] sm:$0x1] }
 0xfe5   :  { %v5838_v16 = vand.u32 %v10557_v39, %v15027_v18  ;;  %v5835_v28 = vand.u32 %v10556_v45, %v15027_v18 }
 0xfe7   :  { %5606 = vmatpush1.bf16.msra.mxu1 %v11979_v27 }
 0xfe8   :  { %5607 = vmatprep.subr.bf16.mxu1 %v5598_v37 }
 0xfeb   :  { %5608 = vmatpush1.bf16.msra.mxu1 %v5595_v42 }
 0xfec   :  { %5843 = vmatprep.subr.bf16.mxu1 %v11990_v23 }
0x1070   :  { %v4896_v4 = vpop.f32.mrb[96].mxu0 }
0x1071   :  { %v4902_v60 = vadd.f32 %v4896_v4, %v13733_v57  ;;  %v4898_v53 = vpop.f32.mrb[97].mxu0  ;;  %v11978_v57 = vld [vmem:[%s14893_s2 + $0x80] ss:$12 sps:$4 sm:$0xff]  }
0x1072   :  { %v4899_v56 = vpop.f32.mrb[98].mxu0 }
0x1073   :  { %v4903_v40 = vadd.f32 %v4902_v60, %v13504_v9  ;;  %v4900_v47 = vpop.f32.mrb[99].mxu0  ;;  %v5370_v9 = vand.u32 %v11974_v8, %v15027_v18 }
0x1075   :  { %v4904_v5 = vmax.f32 %v4903_v40, 0.0 }
0x1077   :  { %v4905_v55 = vpack.c.bf16 %v4904_v5, %v4904_v5 }
0x1079   :  { %11325 = vmatmul.mubr.msk.bf16.vlgmr.msra.gmra.mrb[72].mxu0 %vm4316_vm10, %v4905_v55 }
0x107a   :  { %11359 = vmatpush3.bf16.msra.mxu0 %v11972_v50  ;;  %11364 = vmatprep.mubr.msk.bf16.mxu0 %vm88_vm2, %v13746_v44  ;;  %v11998_v50 = vld [vmem:[%s14893_s2 + $0xec] ss:$0 sps:$4 sm:$0x77]  }
0x107b   :  { %11360 = vmatprep.subr.bf16.mxu0 %v11973_v6  ;;  %v5841_v27 = vand.u32 %v11998_v50, %v15027_v18 }
0x107e   :  { %11361 = vmatpush3.bf16.msra.mxu0 %v11973_v6 }
0x107f   :  { %11362 = vmatprep.subr.bf16.mxu0 %v5370_v9 }
0x1082   :  { %11363 = vmatpush3.bf16.msra.mxu0 %v5370_v9 }
0x1083   :  { %11378 = vmatprep.subr.bf16.mxu0 %v11978_v57 }
0x1085   :  { %11365 = vmatmul.mubr.msk.bf16.vlgmr.msra.gmra.mrb[100].mxu0 %vm88_vm2, %v5075_v49  ;;  %v11995_v49 = vld [vmem:[%s14893_s2 + $0xd4] ss:$12 sps:$4 sm:$0xff]  }
0x1086   :  { %11379 = vmatpush3.bf16.msra.mxu0 %v11978_v57 }
0x1087   :  { %11380 = vmatprep.subr.bf16.mxu0 %v11982_v29 }
0x108a   :  { %11381 = vmatpush3.bf16.msra.mxu0 %v11982_v29 }
0x108b   :  { %11382 = vmatprep.subr.bf16.mxu0 %v5601_v12 }
0x108e   :  { %11383 = vmatpush3.bf16.msra.mxu0 %v5601_v12 }
0x108f   :  { %11388 = vmatprep.subr.bf16.mxu0 %v13630_v20 }
0x1091   :  { %v5262_v13 = vpop.f32.mrb[144].mxu1 }
0x1092   :  { %v5264_v61 = vpop.f32.mrb[145].mxu1 }
0x1093   :  { %v5266_v54 = vpop.f32.mrb[146].mxu1 }
0x1094   :  { %v5267_v63 = vpop.f32.mrb[147].mxu1 }
0x1099   :  { %v13848_v2 = vpop.f32.mrb[148].mxu1 }
0x109a   :  { %v13850_v25 = vpop.f32.mrb[149].mxu1 }
0x109b   :  { %v11357_v41 = vpop.f32.mrb[150].mxu1 }
0x109c   :  { %v13852_v44 = vpop.f32.mrb[151].mxu1 }
0x10ad   :  { %v5416_v48 = vpop.f32.mrb[152].mxu1 }
0x10ae   :  { %v13854_v26 = vadd.f32 %v5416_v48, %v5262_v13  ;;  %v5418_v0 = vpop.f32.mrb[153].mxu1 }
0x10af   :  { %v13856_v36 = vadd.f32 %v5418_v0, %v5264_v61  ;;  %v5420_v14 = vpop.f32.mrb[154].mxu1 }
0x10b0   :  { %v5421_v1 = vpop.f32.mrb[155].mxu1 }
0x10b1   :  { %v12005_v1 = vld [vmem:[%s14893_s2 + $0x108] ss:$12 sps:$4 sm:$0xff]  }
0x10b5   :  { %v11376_v31 = vpop.f32.mrb[156].mxu1 }
0x10b6   :  { %v5522_v52 = vpop.f32.mrb[157].mxu1  ;;  %v5537_v15 = vpack.c.bf16 %v11376_v31, %v11376_v31  ;;  %v12007_v31 = vld [vmem:[%s14893_s2 + $0x10c] ss:$12 sps:$4 sm:$0xff]  }
0x10b7   :  { %v11377_v19 = vpop.f32.mrb[158].mxu1 }
0x10b8   :  { %v5525_v7 = vpop.f32.mrb[159].mxu1  ;;  %v10578_v19 = vld [vmem:[%s14893_s2 + $0x120] sm:$0x77] }
0x10b9   :  { %v5536_v58 = vpack.c.bf16 %v5525_v7, %v5522_v52  ;;  %v12008_v52 = vld [vmem:[%s14893_s2 + $0x110] ss:$12 sps:$4 sm:$0xff]   ;;  %v10587_v7 = vcombine.high %v10578_v19, %v10578_v19 }
0x10bb   :  { %10529 = vmatmul.mubr.msk.bf16.vlgmr.msra.gmra.mrb[140].mxu1 %vm88_vm2, %v5536_v58  ;;  %11384 = vmatprep.mubr.msk.bf16.mxu0 %vm88_vm2, %v5536_v58  ;;  %v10586_v58 = vcombine.low %v10578_v19, %v10578_v19 }
0x10bc   :  { %11385 = vmatmul.mubr.msk.bf16.vlgmr.msra.gmra.mrb[104].mxu0 %vm88_vm2, %v5537_v15  ;;  %5645 = vmatprep.mubr.bf16.mxu1 %v14998_v24 }
0x10bd   :  { %11389 = vmatpush3.bf16.msra.mxu0 %v13630_v20  ;;  %11394 = vmatprep.mubr.msk.bf16.mxu0 %vm88_vm2, %v11986_v21  ;;  %v12011_v21 = vld [vmem:[%s14893_s2 + $0x128] ss:$0 sps:$4 sm:$0x77]  }
0x10be   :  { %11390 = vmatprep.subr.bf16.mxu0 %v13649_v62  ;;  %5844 = vmatpush1.bf16.msra.mxu1 %v11988_v3  ;;  %v6081_v3 = vand.u32 %v12011_v21, %v15027_v18 }
0x10bf   :  { %5845 = vmatprep.subr.bf16.mxu1 %v11994_v46 }
0x10c1   :  { %11391 = vmatpush3.bf16.msra.mxu0 %v13649_v62 }
0x10c2   :  { %11392 = vmatprep.subr.bf16.mxu0 %v13660_v30  ;;  %5846 = vmatpush1.bf16.msra.mxu1 %v11992_v32 }
0x10c3   :  { %10530 = vmatmul.mubr.msk.bf16.gmra.mrb[160].mxu1 %vm88_vm2, %v5537_v15  ;;  %5847 = vmatprep.subr.bf16.mxu1 %v5838_v16  ;;  %v6078_v15 = vand.u32 %v10587_v7, %v15027_v18 }
0x10c4   :  { %5875 = vmatprep.mubr.bf16.mxu1 %v14998_v24 }
0x10c5   :  { %11393 = vmatpush3.bf16.msra.mxu0 %v13660_v30 }
0x10c6   :  { %11398 = vmatprep.subr.bf16.mxu0 %v11991_v43  ;;  %5848 = vmatpush1.bf16.msra.mxu1 %v5835_v28 }
0x10c7   :  { %11408 = vmatprep.subr.bf16.mxu1 %v13630_v20 }
0x10c8   :  { %11395 = vmatmul.mubr.msk.bf16.vlgmr.msra.gmra.mrb[108].mxu0 %vm88_vm2, %v11987_v22  ;;  %v6075_v22 = vand.u32 %v10586_v58, %v15027_v18 }
0x10c9   :  { %11399 = vmatpush3.bf16.msra.mxu0 %v11991_v43 }
0x10ca   :  { %11400 = vmatprep.subr.bf16.mxu0 %v11995_v49 }
0x10cd   :  { %11401 = vmatpush3.bf16.msra.mxu0 %v11995_v49 }
0x10ce   :  { %11402 = vmatprep.subr.bf16.mxu0 %v5841_v27 }
0x10d1   :  { %11403 = vmatpush3.bf16.msra.mxu0 %v5841_v27 }
0x114c   :  { %v4976_v33 = vpop.f32.mrb[72].mxu0 }
0x114d   :  { %v11496_v35 = vadd.f32 %v4976_v33, %v3247_v17  ;;  %v11326_v34 = vpop.f32.mrb[73].mxu0 }
0x114e   :  { %v4979_v37 = vpop.f32.mrb[74].mxu0 }
0x114f   :  { %v11327_v42 = vpop.f32.mrb[75].mxu0  ;;  %4984 = vst.msk [vmem:[#allocation5] sm:$0x1] %vm4983_vm11, %v11496_v35 }
0x1158   :  { %v11366_v4 = vpop.f32.mrb[100].mxu0 }
0x1159   :  { %v5466_v60 = vadd.f32 %v11366_v4, %v13848_v2  ;;  %v5457_v53 = vpop.f32.mrb[101].mxu0  ;;  %v6191_v4 = vld [vmem:[%s14894_s3] sm:$0x7] }
0x115a   :  { %v5458_v56 = vadd.f32 %v5457_v53, %v13850_v25  ;;  %v11367_v40 = vpop.f32.mrb[102].mxu0 }
0x115b   :  { %v5460_v47 = vpop.f32.mrb[103].mxu0 }
0x115c   :  { %v5461_v5 = vadd.f32 %v5460_v47, %v13852_v44 }
0x118f   :  { %v11386_v55 = vpop.f32.mrb[104].mxu0 }
0x1190   :  { %v5710_v6 = vadd.f32 %v11386_v55, %v5466_v60  ;;  %v5688_v8 = vpop.f32.mrb[105].mxu0  ;;  %v15042_v60 = vld [vmem:[#allocation9_spill] sm:$0xff] }
0x1191   :  { %v5704_v9 = vadd.f32 %v5688_v8, %v5458_v56  ;;  %v11387_v57 = vpop.f32.mrb[106].mxu0  ;;  %v6196_v53 = vrot.slane %v6191_v4, %v15042_v60  ;;  %v15043_v56 = vld [vmem:[#allocation10_spill] sm:$0xff] }
0x1192   :  { %v5691_v29 = vpop.f32.mrb[107].mxu0  ;;  %v6200_v40 = vrot.slane %v6191_v4, %v15043_v56 }
0x1193   :  { %v5707_v11 = vadd.f32 %v5691_v29, %v5461_v5  ;;  %v15044_v5 = vsub.s32 2, %v12750_v51 }
0x1195   :  { %v6204_v55 = vrot.slane %v6191_v4, %v15044_v5  ;;  %v12018_v4 = vld [vmem:[#allocation2 + $0x130] ss:$8 sps:$4 sm:$0xff]  }
0x1196   :  { %v5647_v12 = vpop.f32.mrb[160].mxu1  ;;  %v12024_v5 = vld [vmem:[#allocation2 + $0x150] ss:$8 sps:$4 sm:$0xff]  }
0x1197   :  { %v5708_v13 = vadd.f32 %v5647_v12, %v13854_v26  ;;  %v5649_v61 = vpop.f32.mrb[161].mxu1  ;;  %v11999_v26 = vld [vmem:[%s14892_s1 + $0x30] sm:$0xff]  }
0x1198   :  { %v5709_v54 = vadd.f32 %v5649_v61, %v13856_v36  ;;  %v5651_v63 = vpop.f32.mrb[162].mxu1  ;;  %v12001_v36 = vld [vmem:[%s14893_s2 + $0xf0] ss:$12 sps:$4 sm:$0xff]  }
0x1199   :  { %v5652_v2 = vpop.f32.mrb[163].mxu1 }
0x119b   :  { %v11396_v25 = vpop.f32.mrb[108].mxu0 }
0x119c   :  { %v5762_v41 = vpop.f32.mrb[109].mxu0  ;;  %v5777_v14 = vpack.c.bf16 %v11396_v25, %v11396_v25 }
0x119d   :  { %v11397_v48 = vpop.f32.mrb[110].mxu0 }
0x119e   :  { %v5765_v0 = vpop.f32.mrb[111].mxu0 }
0x119f   :  { %v5776_v44 = vpack.c.bf16 %v5765_v0, %v5762_v41 }
0x11a1   :  { %10559 = vmatmul.mubr.msk.bf16.vlgmr.msra.gmra.mrb[140].mxu1 %vm88_vm2, %v5776_v44  ;;  %11404 = vmatprep.mubr.msk.bf16.mxu0 %vm88_vm2, %v5776_v44 }
0x11a2   :  { %11405 = vmatmul.mubr.msk.bf16.vlgmr.msra.gmra.mrb[112].mxu0 %vm88_vm2, %v5777_v14  ;;  %11409 = vmatpush3.bf16.msra.mxu1 %v13630_v20  ;;  %v12000_v20 = vld [vmem:[%s14892_s1 + $0x38] ss:$0 sps:$4 sm:$0x11]  }
0x11a3   :  { %5885 = vmatprep.mubr.bf16.mxu1 %v14998_v24  ;;  %11410 = vmatprep.subr.bf16.mxu1 %v13649_v62 }
0x11a6   :  { %11411 = vmatpush3.bf16.msra.mxu1 %v13649_v62  ;;  %v12003_v62 = vld [vmem:[%s14893_s2 + $0xf4] ss:$12 sps:$4 sm:$0xff]  }
0x11a7   :  { %11412 = vmatprep.subr.bf16.mxu1 %v13660_v30 }
0x11a9   :  { %10560 = vmatmul.mubr.msk.bf16.gmra.mrb[164].mxu1 %vm88_vm2, %v5777_v14 }
0x11aa   :  { %11413 = vmatpush3.bf16.msra.mxu1 %v13660_v30  ;;  %11414 = vmatprep.mubr.msk.bf16.mxu1 %vm88_vm2, %v11999_v26  ;;  %v12004_v30 = vld [vmem:[%s14893_s2 + $0xf8] ss:$12 sps:$4 sm:$0xff]  }
0x11ab   :  { %6083 = vmatprep.subr.bf16.mxu1 %v12003_v62  ;;  %11418 = vmatprep.subr.bf16.mxu0 %v12004_v30 }
0x11ac   :  { %11419 = vmatpush3.bf16.msra.mxu0 %v12004_v30 }
0x11ad   :  { %11420 = vmatprep.subr.bf16.mxu0 %v12008_v52 }
0x11b0   :  { %11421 = vmatpush3.bf16.msra.mxu0 %v12008_v52 }
0x11b1   :  { %11415 = vmatmul.mubr.msk.bf16.vlgmr.msra.gmra.mrb[168].mxu1 %vm88_vm2, %v12000_v20  ;;  %11422 = vmatprep.subr.bf16.mxu0 %v6081_v3 }
0x11b2   :  { %6115 = vmatprep.mubr.bf16.mxu1 %v14998_v24  ;;  %6084 = vmatpush1.bf16.msra.mxu1 %v12001_v36 }
0x11b3   :  { %6085 = vmatprep.subr.bf16.mxu1 %v12007_v31 }
0x11b4   :  { %11423 = vmatpush3.bf16.msra.mxu0 %v6081_v3 }
0x11b6   :  { %6086 = vmatpush1.bf16.msra.mxu1 %v12005_v1 }
0x11b7   :  { %6087 = vmatprep.subr.bf16.mxu1 %v6078_v15 }
0x11ba   :  { %6088 = vmatpush1.bf16.msra.mxu1 %v6075_v22 }
0x11bb   :  { %11436 = vmatprep.subr.bf16.mxu1 %v15041_v59 }
0x1275   :  { %v11406_v23 = vpop.f32.mrb[112].mxu0 }
0x1276   :  { %v5950_v43 = vadd.f32 %v11406_v23, %v5710_v6  ;;  %v5928_v46 = vpop.f32.mrb[113].mxu0 }
0x1277   :  { %v5944_v32 = vadd.f32 %v5928_v46, %v5704_v9  ;;  %v11407_v49 = vpop.f32.mrb[114].mxu0 }
0x1278   :  { %v5931_v38 = vpop.f32.mrb[115].mxu0  ;;  %v12044_v49 = vld [vmem:[#allocation2 + $0x214] ss:$8 sps:$4 sm:$0xff]  }
0x1279   :  { %v5947_v39 = vadd.f32 %v5931_v38, %v5707_v11  ;;  %v15045_v38 = vld [vmem:[#allocation11_spill] sm:$0xff] }
0x127c   :  { %v5887_v45 = vpop.f32.mrb[164].mxu1 }
0x127d   :  { %v5948_v50 = vadd.f32 %v5887_v45, %v5708_v13  ;;  %v5889_v16 = vpop.f32.mrb[165].mxu1 }
0x127e   :  { %v5949_v28 = vadd.f32 %v5889_v16, %v5709_v54  ;;  %v5891_v27 = vpop.f32.mrb[166].mxu1  ;;  %v10595_v16 = vld [vmem:[%s14895_s4 + $0x4] sm:$0xf] }
0x127f   :  { %v5892_v17 = vpop.f32.mrb[167].mxu1 }
0x1284   :  { %v11416_v18 = vpop.f32.mrb[168].mxu1 }
0x1285   :  { %v6002_v33 = vpop.f32.mrb[169].mxu1  ;;  %v6017_v42 = vpack.c.bf16 %v11416_v18, %v11416_v18  ;;  %v6232_v18 = vld [vmem:[%s14895_s4] sm:$0xf] }
0x1286   :  { %v11417_v35 = vpop.f32.mrb[170].mxu1 }
0x1287   :  { %v6005_v34 = vpop.f32.mrb[171].mxu1  ;;  %v12012_v35 = vld [vmem:[#allocation2 + $0x110] ss:$8 sps:$4 sm:$0xff]  }
0x1288   :  { %v6016_v37 = vpack.c.bf16 %v6005_v34, %v6002_v33  ;;  %v12014_v33 = vld [vmem:[#allocation2 + $0x114] ss:$8 sps:$4 sm:$0xff]   ;;  %v12017_v34 = vld [vmem:[#allocation2 + $0x124] ss:$8 sps:$4 sm:$0xff]  }
0x128a   :  { %10589 = vmatmul.mubr.msk.bf16.vlgmr.msra.gmra.mrb[140].mxu1 %vm88_vm2, %v6016_v37  ;;  %11424 = vmatprep.mubr.msk.bf16.mxu0 %vm88_vm2, %v6016_v37  ;;  %v12015_v37 = vld [vmem:[#allocation2 + $0x120] ss:$8 sps:$4 sm:$0xff]  }
0x128b   :  { %11425 = vmatmul.mubr.msk.bf16.vlgmr.msra.gmra.mrb[116].mxu0 %vm88_vm2, %v6017_v42  ;;  %6125 = vmatprep.mubr.bf16.mxu1 %v14998_v24 }
0x128c   :  { %6277 = vmatprep.mubr.bf16.mxu0 %v14998_v24 }
0x1292   :  { %10590 = vmatmul.mubr.msk.bf16.gmra.mrb[172].mxu1 %vm88_vm2, %v6017_v42  ;;  %v12020_v42 = vld [vmem:[#allocation2 + $0x134] ss:$8 sps:$4 sm:$0xff]  }
0x1293   :  { %11440 = vmatprep.mubr.msk.bf16.mxu1 %vm12401_vm5, %v15041_v59 }
0x135d   :  { %v6117_v47 = vpop.f32.mrb[140].mxu1 }
0x135e   :  { %v6208_v6 = vadd.f32 %v6196_v53, %v6117_v47  ;;  %v6119_v8 = vpop.f32.mrb[141].mxu1  ;;  %v11426_v9 = vpop.f32.mrb[116].mxu0  ;;  %v12026_v47 = vld [vmem:[#allocation2 + $0x154] ss:$8 sps:$4 sm:$0xff]  }
0x135f   :  { %v6209_v57 = vadd.f32 %v6200_v40, %v6119_v8  ;;  %v6190_v29 = vadd.f32 %v11426_v9, %v5950_v43  ;;  %v6121_v11 = vpop.f32.mrb[142].mxu1  ;;  %v6168_v12 = vpop.f32.mrb[117].mxu0  ;;  %v12032_v8 = vld [vmem:[#allocation2 + $0x174] ss:$8 sps:$4 sm:$0xff]   ;;  %v12030_v9 = vld [vmem:[#allocation2 + $0x170] ss:$8 sps:$4 sm:$0xff]  }
0x1360   :  { %v6211_v13 = vadd.f32 %v6196_v53, %v6121_v11  ;;  %v6184_v61 = vadd.f32 %v6168_v12, %v5944_v32  ;;  %v6123_v54 = vpop.f32.mrb[143].mxu1  ;;  %v11427_v63 = vpop.f32.mrb[118].mxu0  ;;  %v6217_v48 = vmax.f32 %v6208_v6, 0.0  ;;  %v12027_v6 = vld [vmem:[#allocation2 + $0x160] ss:$8 sps:$4 sm:$0xff]  }
0x1361   :  { %v6216_v2 = vadd.f32 %v6204_v55, %v6190_v29  ;;  %v6212_v25 = vadd.f32 %v6200_v40, %v6123_v54  ;;  %v6171_v41 = vpop.f32.mrb[119].mxu0  ;;  %v6218_v51 = vmax.f32 %v6209_v57, 0.0  ;;  %v12035_v57 = vld [vmem:[#allocation2 + $0x184] ss:$8 sps:$4 sm:$0xff]   ;;  %v12033_v29 = vld [vmem:[#allocation2 + $0x180] ss:$8 sps:$4 sm:$0xff]  }
0x1362   :  { %v6220_v0 = vmax.f32 %v6211_v13, 0.0  ;;  %v6210_v44 = vadd.f32 %v6204_v55, %v6184_v61  ;;  %v6187_v14 = vadd.f32 %v6171_v41, %v5947_v39  ;;  %v12038_v11 = vld [vmem:[#allocation2 + $0x194] ss:$8 sps:$4 sm:$0xff]   ;;  %v12036_v12 = vld [vmem:[#allocation2 + $0x190] ss:$8 sps:$4 sm:$0xff]  }
0x1363   :  { %v6221_v26 = vmax.f32 %v6212_v25, 0.0  ;;  %v6225_v20 = vmax.f32 %v6216_v2, 0.0  ;;  %v12041_v13 = vld [vmem:[#allocation2 + $0x1a4] ss:$8 sps:$4 sm:$0xff]   ;;  %v12039_v61 = vld [vmem:[#allocation2 + $0x1a0] ss:$8 sps:$4 sm:$0xff]  }
0x1364   :  { %v13976_v62 = vpack.c.bf16 %v6220_v0, %v6217_v48  ;;  %v6213_v36 = vadd.f32 %v6204_v55, %v6187_v14  ;;  %v6219_v31 = vmax.f32 %v6210_v44, 0.0  ;;  %v12029_v55 = vld [vmem:[#allocation2 + $0x164] ss:$8 sps:$4 sm:$0xff]   ;;  %v12047_v54 = vld [vmem:[#allocation2 + $0x1b4] ss:$8 sps:$4 sm:$0xff]  }
0x1365   :  { %v13978_v30 = vpack.c.bf16 %v6221_v26, %v6218_v51  ;;  %v6127_v1 = vpop.f32.mrb[172].mxu1  ;;  %v6231_v15 = vpack.c.bf16 %v6225_v20, %v6225_v20  ;;  %v12045_v63 = vld [vmem:[#allocation2 + $0x1b0] ss:$8 sps:$4 sm:$0xff]   ;;  %v12050_v2 = vld [vmem:[#allocation2 + $0x4] ss:$8 sps:$4 sm:$0xff]  }
0x1366   :  { %v6222_v52 = vmax.f32 %v6213_v36, 0.0  ;;  %v6188_v19 = vadd.f32 %v6127_v1, %v5948_v50  ;;  %v6129_v7 = vpop.f32.mrb[173].mxu1  ;;  %v12053_v25 = vld [vmem:[#allocation2 + $0x1c4] ss:$8 sps:$4 sm:$0xff]   ;;  %v12051_v41 = vld [vmem:[#allocation2 + $0x1c0] ss:$8 sps:$4 sm:$0xff]  }
0x1367   :  { %v6189_v58 = vadd.f32 %v6129_v7, %v5949_v28  ;;  %v6131_v21 = vpop.f32.mrb[174].mxu1  ;;  %6245 = vmatprep.subr.bf16.mxu0 %v13978_v30  ;;  %v13987_v39 = vand.u32 %v6231_v15, %v15045_v38  ;;  %v12042_v28 = vld [vmem:[#allocation2 + $0x210] ss:$8 sps:$4 sm:$0xff]   ;;  %v12059_v48 = vld [vmem:[#allocation2 + $0x1d4] ss:$8 sps:$4 sm:$0xff]  }
0x1368   :  { %v13981_v22 = vpack.c.bf16 %v6222_v52, %v6219_v31  ;;  %v6214_v3 = vadd.f32 %v6196_v53, %v6188_v19  ;;  %v6132_v23 = vpop.f32.mrb[175].mxu1  ;;  %6246 = vmatpush1.bf16.msra.mxu0 %v13976_v62  ;;  %v12023_v53 = vld [vmem:[#allocation2 + $0x144] ss:$8 sps:$4 sm:$0xff]   ;;  %v12057_v0 = vld [vmem:[#allocation2 + $0x1d0] ss:$8 sps:$4 sm:$0xff]  }
0x1369   :  { %v6215_v43 = vadd.f32 %v6200_v40, %v6189_v58  ;;  %v12021_v40 = vld [vmem:[#allocation2 + $0x140] ss:$8 sps:$4 sm:$0xff]   ;;  %v12065_v44 = vld [vmem:[#allocation2 + $0x1e4] ss:$8 sps:$4 sm:$0xff]   ;;  %v12071_v51 = vld [vmem:[#allocation2 + $0x1f4] ss:$8 sps:$4 sm:$0xff]  }
0x136a   :  { %v6223_v46 = vmax.f32 %v6214_v3, 0.0  ;;  %11437 = vmatpush3.bf16.msra.mxu1 %v13981_v22  ;;  %v12063_v14 = vld [vmem:[#allocation2 + $0x1e0] ss:$8 sps:$4 sm:$0xff]   ;;  %v12069_v26 = vld [vmem:[#allocation2 + $0x1f0] ss:$8 sps:$4 sm:$0xff]  }
0x136b   :  { %v6224_v32 = vmax.f32 %v6215_v43, 0.0  ;;  %11438 = vmatprep.subr.bf16.mxu1 %v15041_v59  ;;  %v12077_v20 = vld [vmem:[#allocation2 + $0x204] ss:$8 sps:$4 sm:$0xff]   ;;  %v12075_v36 = vld [vmem:[#allocation2 + $0x200] ss:$8 sps:$4 sm:$0xff]  }
0x136c   :  { %v6229_v45 = vpack.c.bf16 %v6223_v46, %v6223_v46  ;;  %v12083_v1 = vld [vmem:[#allocation2 + $0x104] ss:$8 sps:$4 sm:$0xff]   ;;  %v12048_v52 = vld [vmem:[#allocation2] ss:$8 sps:$4 sm:$0xff]   ;;  %v12056_v58 = vld [vmem:[#allocation2 + $0x14] ss:$8 sps:$4 sm:$0xff]  }
0x136d   :  { %v6230_v50 = vpack.c.bf16 %v6224_v32, %v6224_v32  ;;  %v12054_v3 = vld [vmem:[#allocation2 + $0x10] ss:$8 sps:$4 sm:$0xff]   ;;  %v12062_v43 = vld [vmem:[#allocation2 + $0x24] ss:$8 sps:$4 sm:$0xff]  }
0x136e   :  { %11439 = vmatpush3.bf16.msra.mxu1 %v13987_v39  ;;  %v13997_v17 = vand.u32 %v6229_v45, %v15045_v38  ;;  %v12060_v45 = vld [vmem:[#allocation2 + $0x20] ss:$8 sps:$4 sm:$0xff]  }
0x136f   :  { %v13994_v27 = vand.u32 %v6230_v50, %v15045_v38  ;;  %6699 = vmatprep.subr.bf16.mxu1 %v12044_v49  ;;  %v12068_v50 = vld [vmem:[#allocation2 + $0x34] ss:$8 sps:$4 sm:$0xff]  }
0x1371   :  { %6247 = vmatprep.subr.bf16.mxu0 %v13994_v27  ;;  %11441 = vmatmul.mubr.msk.bf16.vlgmr.msra.gmra.mrb[176].mxu1 %vm1317_vm4, %v10595_v16 }
0x1372   :  { %6248 = vmatpush1.bf16.msra.mxu0 %v13997_v17  ;;  %6700 = vmatpush1.bf16.msra.mxu1 %v12042_v28 }
0x1373   :  { %11428 = vmatprep.subr.bf16.mxu0 %v15041_v59  ;;  %6731 = vmatprep.mubr.bf16.mxu1 %v14998_v24 }
0x1374   :  { %6913 = vmatprep.subr.bf16.mxu1 %v12050_v2  ;;  %v12093_v2 = vld [vmem:[#allocation2 + $0x90] ss:$8 sps:$4 sm:$0xff]  }
0x1375   :  { %10593 = vmatmul.mubr.msk.bf16.vlgmr.msra.gmra.mrb[120].mxu0 %vm1317_vm4, %v6232_v18 }
0x1376   :  { %11429 = vmatpush3.bf16.msra.mxu0 %v13981_v22  ;;  %11432 = vmatprep.mubr.msk.bf16.mxu0 %vm12401_vm5, %v15041_v59 }
0x1377   :  { %11430 = vmatprep.subr.bf16.mxu0 %v15041_v59 }
0x137a   :  { %11431 = vmatpush3.bf16.msra.mxu0 %v13987_v39 }
0x137b   :  { %6367 = vmatprep.subr.bf16.mxu0 %v13978_v30 }
0x137d   :  { %11433 = vmatmul.mubr.msk.bf16.vlgmr.msra.gmra.mrb[124].mxu0 %vm1317_vm4, %v6232_v18 }
0x137e   :  { %6368 = vmatpush1.bf16.msra.mxu0 %v13976_v62  ;;  %6399 = vmatprep.mubr.bf16.mxu0 %v14998_v24 }
0x137f   :  { %6369 = vmatprep.subr.bf16.mxu0 %v13994_v27 }
0x1382   :  { %6370 = vmatpush1.bf16.msra.mxu0 %v13997_v17 }
0x1383   :  { %6658 = vmatprep.subr.bf16.mxu0 %v12014_v33  ;;  %v12074_v33 = vld [vmem:[#allocation2 + $0x44] ss:$8 sps:$4 sm:$0xff]  }
0x1385   :  { %10596 = vmatmul.mubr.msk.bf16.vlgmr.msra.gmra.mrb[128].mxu0 %vm1317_vm4, %v10595_v16  ;;  %v12066_v16 = vld [vmem:[#allocation2 + $0x30] ss:$8 sps:$4 sm:$0xff]  }
0x1386   :  { %6659 = vmatpush1.bf16.msra.mxu0 %v12012_v35 }
0x1387   :  { %6660 = vmatprep.subr.bf16.mxu0 %v12017_v34 }
0x138a   :  { %6661 = vmatpush1.bf16.msra.mxu0 %v12015_v37  ;;  %v12072_v37 = vld [vmem:[#allocation2 + $0x40] ss:$8 sps:$4 sm:$0xff]  }
0x138b   :  { %6662 = vmatprep.subr.bf16.mxu0 %v12020_v42  ;;  %v12080_v42 = vld [vmem:[#allocation2 + $0x54] ss:$8 sps:$4 sm:$0xff]  }
0x138e   :  { %6663 = vmatpush1.bf16.msra.mxu0 %v12018_v4 }
0x138f   :  { %6664 = vmatprep.subr.bf16.mxu0 %v12023_v53  ;;  %v12078_v53 = vld [vmem:[#allocation2 + $0x50] ss:$8 sps:$4 sm:$0xff]  }
0x1392   :  { %6665 = vmatpush1.bf16.msra.mxu0 %v12021_v40 }
0x1393   :  { %6666 = vmatprep.subr.bf16.mxu0 %v12026_v47 }
0x1396   :  { %6667 = vmatpush1.bf16.msra.mxu0 %v12024_v5  ;;  %v12086_v5 = vld [vmem:[#allocation2 + $0x64] ss:$8 sps:$4 sm:$0xff]  }
0x1397   :  { %6668 = vmatprep.subr.bf16.mxu0 %v12029_v55 }
0x139a   :  { %6669 = vmatpush1.bf16.msra.mxu0 %v12027_v6  ;;  %v12081_v6 = vld [vmem:[#allocation2 + $0x100] ss:$8 sps:$4 sm:$0xff]  }
0x139b   :  { %6670 = vmatprep.subr.bf16.mxu0 %v12032_v8 }
0x139e   :  { %6671 = vmatpush1.bf16.msra.mxu0 %v12030_v9 }
0x139f   :  { %6672 = vmatprep.subr.bf16.mxu0 %v12035_v57  ;;  %v12084_v57 = vld [vmem:[#allocation2 + $0x60] ss:$8 sps:$4 sm:$0xff]  }
0x13a2   :  { %6673 = vmatpush1.bf16.msra.mxu0 %v12033_v29  ;;  %v12089_v29 = vld [vmem:[#allocation2 + $0x74] ss:$8 sps:$4 sm:$0xff]  }
0x13a3   :  { %6674 = vmatprep.subr.bf16.mxu0 %v12038_v11  ;;  %v12087_v11 = vld [vmem:[#allocation2 + $0x70] ss:$8 sps:$4 sm:$0xff]  }
0x13a6   :  { %6675 = vmatpush1.bf16.msra.mxu0 %v12036_v12 }
0x13a7   :  { %6676 = vmatprep.subr.bf16.mxu0 %v12041_v13  ;;  %v12092_v13 = vld [vmem:[#allocation2 + $0x84] ss:$8 sps:$4 sm:$0xff]  }
0x13aa   :  { %6677 = vmatpush1.bf16.msra.mxu0 %v12039_v61  ;;  %v12090_v61 = vld [vmem:[#allocation2 + $0x80] ss:$8 sps:$4 sm:$0xff]  }
0x13ab   :  { %6678 = vmatprep.subr.bf16.mxu0 %v12047_v54  ;;  %v12095_v54 = vld [vmem:[#allocation2 + $0x94] ss:$8 sps:$4 sm:$0xff]  }
0x13ae   :  { %6679 = vmatpush1.bf16.msra.mxu0 %v12045_v63  ;;  %v12119_v63 = vld [vmem:[#allocation2 + $0x224] ss:$8 sps:$4 sm:$0xff]  }
0x13af   :  { %6680 = vmatprep.subr.bf16.mxu0 %v12053_v25  ;;  %v12098_v25 = vld [vmem:[#allocation2 + $0xa4] ss:$8 sps:$4 sm:$0xff]  }
0x13b2   :  { %6681 = vmatpush1.bf16.msra.mxu0 %v12051_v41  ;;  %v10668_v41 = vld [vmem:[%s14895_s4 + $0x8] sm:$0xf] }
0x13b3   :  { %6682 = vmatprep.subr.bf16.mxu0 %v12059_v48  ;;  %v12117_v48 = vld [vmem:[#allocation2 + $0x220] ss:$8 sps:$4 sm:$0xff]  }
0x13b6   :  { %6683 = vmatpush1.bf16.msra.mxu0 %v12057_v0  ;;  %v12122_v0 = vld [vmem:[#allocation2 + $0x234] ss:$8 sps:$4 sm:$0xff]  }
0x13b7   :  { %6684 = vmatprep.subr.bf16.mxu0 %v12065_v44  ;;  %v12096_v44 = vld [vmem:[#allocation2 + $0xa0] ss:$8 sps:$4 sm:$0xff]  }
0x13ba   :  { %6685 = vmatpush1.bf16.msra.mxu0 %v12063_v14  ;;  %v12101_v14 = vld [vmem:[#allocation2 + $0xb4] ss:$8 sps:$4 sm:$0xff]  }
0x13bb   :  { %6686 = vmatprep.subr.bf16.mxu0 %v12071_v51  ;;  %v12120_v51 = vld [vmem:[#allocation2 + $0x230] ss:$8 sps:$4 sm:$0xff]  }
0x13be   :  { %6687 = vmatpush1.bf16.msra.mxu0 %v12069_v26  ;;  %v12125_v26 = vld [vmem:[#allocation2 + $0x244] ss:$8 sps:$4 sm:$0xff]  }
0x13bf   :  { %6688 = vmatprep.subr.bf16.mxu0 %v12077_v20  ;;  %v12099_v20 = vld [vmem:[#allocation2 + $0xb0] ss:$8 sps:$4 sm:$0xff]  }
0x13c2   :  { %6689 = vmatpush1.bf16.msra.mxu0 %v12075_v36  ;;  %v12104_v36 = vld [vmem:[#allocation2 + $0xc4] ss:$8 sps:$4 sm:$0xff]  }
0x13c3   :  { %6954 = vmatprep.subr.bf16.mxu0 %v12083_v1  ;;  %v12123_v1 = vld [vmem:[#allocation2 + $0x240] ss:$8 sps:$4 sm:$0xff]  }
0x1444   :  { %v6442_v31 = vpop.f32.mrb[176].mxu1 }
0x1445   :  { %v6450_v19 = vpack.c.bf16 %v6442_v31, %v6442_v31  ;;  %v11442_v7 = vpop.f32.mrb[177].mxu1  ;;  %v12128_v31 = vld [vmem:[#allocation2 + $0x254] ss:$8 sps:$4 sm:$0xff]  }
0x1446   :  { %v6445_v21 = vpop.f32.mrb[178].mxu1  ;;  %v12126_v7 = vld [vmem:[#allocation2 + $0x250] ss:$8 sps:$4 sm:$0xff]  }
0x1447   :  { %10632 = vmatmul.mubr.msk.bf16.vlgmr.msra.gmra.mrb[180].mxu1 %vm1745_vm6, %v6450_v19  ;;  %v11443_v15 = vpop.f32.mrb[179].mxu1  ;;  %v12107_v19 = vld [vmem:[#allocation2 + $0xd4] ss:$8 sps:$4 sm:$0xff]   ;;  %v12105_v21 = vld [vmem:[#allocation2 + $0xd0] ss:$8 sps:$4 sm:$0xff]  }
0x1448   :  { %6914 = vmatpush1.bf16.msra.mxu1 %v12048_v52  ;;  %v14021_v23 = vpop.f32.mrb[120].mxu0  ;;  %v12102_v52 = vld [vmem:[#allocation2 + $0xc0] ss:$8 sps:$4 sm:$0xff]   ;;  %v12110_v15 = vld [vmem:[#allocation2 + $0xe4] ss:$8 sps:$4 sm:$0xff]  }
0x1449   :  { %6915 = vmatprep.subr.bf16.mxu1 %v12056_v58  ;;  %v6281_v46 = vpop.f32.mrb[121].mxu0  ;;  %v12131_v58 = vld [vmem:[#allocation2 + $0x264] ss:$8 sps:$4 sm:$0xff]  }
0x144a   :  { %v6327_v32 = vpack.c.bf16 %v6281_v46, %v6281_v46  ;;  %v6283_v49 = vpop.f32.mrb[122].mxu0  ;;  %v12108_v46 = vld [vmem:[#allocation2 + $0xe0] ss:$8 sps:$4 sm:$0xff]  }
0x144b   :  { %v6284_v38 = vpop.f32.mrb[123].mxu0  ;;  %v12132_v49 = vld [vmem:[#allocation2 + $0x270] ss:$8 sps:$4 sm:$0xff]  }
0x144c   :  { %6916 = vmatpush1.bf16.msra.mxu1 %v12054_v3  ;;  %6945 = vmatprep.mubr.bf16.mxu1 %v6327_v32  ;;  %v12129_v3 = vld [vmem:[#allocation2 + $0x260] ss:$8 sps:$4 sm:$0xff]   ;;  %v12113_v32 = vld [vmem:[#allocation2 + $0xf4] ss:$8 sps:$4 sm:$0xff]   ;;  %v12111_v38 = vld [vmem:[#allocation2 + $0xf0] ss:$8 sps:$4 sm:$0xff]  }
0x144d   :  { %6917 = vmatprep.subr.bf16.mxu1 %v12062_v43  ;;  %v12134_v43 = vld [vmem:[#allocation2 + $0x274] ss:$8 sps:$4 sm:$0xff]  }
0x1450   :  { %6918 = vmatpush1.bf16.msra.mxu1 %v12060_v45  ;;  %v6320_v28 = vpop.f32.mrb[124].mxu0  ;;  %v6326_v45 = vpack.c.bf16 %v14021_v23, %v14021_v23  ;;  %v12135_v23 = vld [vmem:[#allocation2 + $0x280] ss:$8 sps:$4 sm:$0xff]  }
0x1451   :  { %6919 = vmatprep.subr.bf16.mxu1 %v12068_v50  ;;  %v11434_v18 = vpop.f32.mrb[125].mxu0  ;;  %v6328_v12 = vpack.c.bf16 %v6320_v28, %v6320_v28  ;;  %v12116_v50 = vld [vmem:[#allocation2 + $0x324] ss:$8 sps:$4 sm:$0xff]  }
0x1452   :  { %v6323_v35 = vpop.f32.mrb[126].mxu0  ;;  %v12137_v28 = vld [vmem:[#allocation2 + $0x284] ss:$8 sps:$4 sm:$0xff]   ;;  %v12140_v18 = vld [vmem:[#allocation2 + $0x294] ss:$8 sps:$4 sm:$0xff]  }
0x1453   :  { %v11435_v34 = vpop.f32.mrb[127].mxu0  ;;  %v12143_v35 = vld [vmem:[#allocation2 + $0x2a4] ss:$8 sps:$4 sm:$0xff]  }
0x1454   :  { %6920 = vmatpush1.bf16.msra.mxu1 %v12066_v16  ;;  %v12114_v16 = vld [vmem:[#allocation2 + $0x320] ss:$8 sps:$4 sm:$0xff]  }
0x1455   :  { %6921 = vmatprep.subr.bf16.mxu1 %v12074_v33  ;;  %v12138_v33 = vld [vmem:[#allocation2 + $0x290] ss:$8 sps:$4 sm:$0xff]   ;;  %v12141_v34 = vld [vmem:[#allocation2 + $0x2a0] ss:$8 sps:$4 sm:$0xff]  }
0x1458   :  { %6922 = vmatpush1.bf16.msra.mxu1 %v12072_v37  ;;  %v6401_v4 = vpop.f32.mrb[128].mxu0  ;;  %v12146_v37 = vld [vmem:[#allocation2 + $0x2b4] ss:$8 sps:$4 sm:$0xff]  }
0x1459   :  { %v6448_v40 = vpack.c.bf16 %v6401_v4, %v6401_v4  ;;  %v6403_v47 = vpop.f32.mrb[129].mxu0  ;;  %6923 = vmatprep.subr.bf16.mxu1 %v12080_v42  ;;  %v12144_v42 = vld [vmem:[#allocation2 + $0x2b0] ss:$8 sps:$4 sm:$0xff]   ;;  %v12149_v4 = vld [vmem:[#allocation2 + $0x2c4] ss:$8 sps:$4 sm:$0xff]  }
0x145a   :  { %v6449_v55 = vpack.c.bf16 %v6403_v47, %v6403_v47  ;;  %v6405_v8 = vpop.f32.mrb[130].mxu0  ;;  %v12150_v47 = vld [vmem:[#allocation2 + $0x2d0] ss:$8 sps:$4 sm:$0xff]  }
0x145b   :  { %v6406_v9 = vpop.f32.mrb[131].mxu0  ;;  %v12156_v8 = vld [vmem:[#allocation2 + $0x2f0] ss:$8 sps:$4 sm:$0xff]  }
0x145c   :  { %6924 = vmatpush1.bf16.msra.mxu1 %v12078_v53  ;;  %6690 = vmatprep.mubr.bf16.mxu0 %v6449_v55  ;;  %v12147_v53 = vld [vmem:[#allocation2 + $0x2c0] ss:$8 sps:$4 sm:$0xff]   ;;  %v12155_v55 = vld [vmem:[#allocation2 + $0x2e4] ss:$8 sps:$4 sm:$0xff]  }
0x145d   :  { %6691 = vmatmul.mubr.bf16.vlgmr.msra.gmra.mrb[132].mxu0 %v6448_v40  ;;  %6925 = vmatprep.subr.bf16.mxu1 %v12086_v5  ;;  %v12152_v40 = vld [vmem:[#allocation2 + $0x2d4] ss:$8 sps:$4 sm:$0xff]   ;;  %v12153_v5 = vld [vmem:[#allocation2 + $0x2e0] ss:$8 sps:$4 sm:$0xff]   ;;  %v12161_v9 = vld [vmem:[#allocation2 + $0x304] ss:$8 sps:$4 sm:$0xff]  }
0x145e   :  { %6955 = vmatpush1.bf16.msra.mxu0 %v12081_v6  ;;  %6986 = vmatprep.mubr.bf16.mxu0 %v14998_v24  ;;  %v12158_v6 = vld [vmem:[#allocation2 + $0x2f4] ss:$8 sps:$4 sm:$0xff]  }
0x145f   :  { %6999 = vmatprep.subr.bf16.mxu0 %v13978_v30 }
0x1460   :  { %6926 = vmatpush1.bf16.msra.mxu1 %v12084_v57  ;;  %v12159_v57 = vld [vmem:[#allocation2 + $0x300] ss:$8 sps:$4 sm:$0xff]  }
0x1461   :  { %6927 = vmatprep.subr.bf16.mxu1 %v12089_v29  ;;  %v12164_v29 = vld [vmem:[#allocation2 + $0x314] ss:$8 sps:$4 sm:$0xff]  }
0x1464   :  { %6928 = vmatpush1.bf16.msra.mxu1 %v12087_v11  ;;  %v12162_v11 = vld [vmem:[#allocation2 + $0x310] ss:$8 sps:$4 sm:$0xff]  }
0x1465   :  { %10667 = vmatmul.mubr.msk.bf16.vlgmr.msra.gmra.mrb[136].mxu0 %vm1745_vm6, %v6328_v12  ;;  %6929 = vmatprep.subr.bf16.mxu1 %v12092_v13  ;;  %v12167_v12 = vld [vmem:[#allocation2 + $0x434] ss:$8 sps:$4 sm:$0xff]  }
0x1466   :  { %7000 = vmatpush1.bf16.msra.mxu0 %v13976_v62  ;;  %7031 = vmatprep.mubr.bf16.mxu0 %v14998_v24 }
0x1467   :  { %7001 = vmatprep.subr.bf16.mxu0 %v13994_v27 }
0x1468   :  { %6930 = vmatpush1.bf16.msra.mxu1 %v12090_v61 }
0x1469   :  { %6931 = vmatprep.subr.bf16.mxu1 %v12095_v54 }
0x146a   :  { %7002 = vmatpush1.bf16.msra.mxu0 %v13997_v17 }
0x146b   :  { %7290 = vmatprep.subr.bf16.mxu0 %v12119_v63 }
0x146c   :  { %6932 = vmatpush1.bf16.msra.mxu1 %v12093_v2 }
0x146d   :  { %10669 = vmatmul.mubr.msk.bf16.vlgmr.msra.gmra.mrb[140].mxu0 %vm1317_vm4, %v10668_v41  ;;  %6933 = vmatprep.subr.bf16.mxu1 %v12098_v25 }
0x146e   :  { %7291 = vmatpush1.bf16.msra.mxu0 %v12117_v48 }
0x146f   :  { %7292 = vmatprep.subr.bf16.mxu0 %v12122_v0 }
0x1470   :  { %6934 = vmatpush1.bf16.msra.mxu1 %v12096_v44 }
0x1471   :  { %6935 = vmatprep.subr.bf16.mxu1 %v12101_v14 }
0x1472   :  { %7293 = vmatpush1.bf16.msra.mxu0 %v12120_v51 }
0x1473   :  { %7294 = vmatprep.subr.bf16.mxu0 %v12125_v26 }
0x1474   :  { %6936 = vmatpush1.bf16.msra.mxu1 %v12099_v20 }
0x1475   :  { %6937 = vmatprep.subr.bf16.mxu1 %v12104_v36 }
0x1476   :  { %7295 = vmatpush1.bf16.msra.mxu0 %v12123_v1 }
0x1477   :  { %7296 = vmatprep.subr.bf16.mxu0 %v12128_v31 }
0x1478   :  { %6938 = vmatpush1.bf16.msra.mxu1 %v12102_v52 }
0x1479   :  { %6939 = vmatprep.subr.bf16.mxu1 %v12107_v19  ;;  %v12165_v19 = vld [vmem:[#allocation2 + $0x430] ss:$8 sps:$4 sm:$0xff]  }
0x147a   :  { %7297 = vmatpush1.bf16.msra.mxu0 %v12126_v7 }
0x147b   :  { %7298 = vmatprep.subr.bf16.mxu0 %v12131_v58 }
0x147c   :  { %6940 = vmatpush1.bf16.msra.mxu1 %v12105_v21 }
0x147d   :  { %6941 = vmatprep.subr.bf16.mxu1 %v12110_v15 }
0x147e   :  { %7299 = vmatpush1.bf16.msra.mxu0 %v12129_v3 }
0x147f   :  { %7300 = vmatprep.subr.bf16.mxu0 %v12134_v43 }
0x1480   :  { %6942 = vmatpush1.bf16.msra.mxu1 %v12108_v46 }
0x1481   :  { %6943 = vmatprep.subr.bf16.mxu1 %v12113_v32 }
0x1482   :  { %7301 = vmatpush1.bf16.msra.mxu0 %v12132_v49 }
0x1483   :  { %7302 = vmatprep.subr.bf16.mxu0 %v12137_v28 }
0x1484   :  { %6944 = vmatpush1.bf16.msra.mxu1 %v12111_v38 }
0x1485   :  { %11444 = vmatprep.subr.bf16.mxu1 %v15041_v59 }
0x1486   :  { %7303 = vmatpush1.bf16.msra.mxu0 %v12135_v23 }
0x1487   :  { %6946 = vmatmul.mubr.bf16.vlgmr.msra.gmra.mrb[184].mxu1 %v6326_v45  ;;  %7304 = vmatprep.subr.bf16.mxu0 %v12140_v18  ;;  %v12170_v18 = vld [vmem:[#allocation2 + $0x334] ss:$8 sps:$4 sm:$0xff]  }
0x1488   :  { %11445 = vmatpush3.bf16.msra.mxu1 %v13981_v22  ;;  %11448 = vmatprep.mubr.msk.bf16.mxu1 %vm12401_vm5, %v15041_v59 }
0x1489   :  { %11446 = vmatprep.subr.bf16.mxu1 %v15041_v59 }
0x148a   :  { %7305 = vmatpush1.bf16.msra.mxu0 %v12138_v33  ;;  %v12168_v33 = vld [vmem:[#allocation2 + $0x330] ss:$8 sps:$4 sm:$0xff]  }
0x148b   :  { %7306 = vmatprep.subr.bf16.mxu0 %v12143_v35  ;;  %v12173_v35 = vld [vmem:[#allocation2 + $0x344] ss:$8 sps:$4 sm:$0xff]  }
0x148c   :  { %11447 = vmatpush3.bf16.msra.mxu1 %v13987_v39 }
0x148d   :  { %7331 = vmatprep.subr.bf16.mxu1 %v12116_v50 }
0x148e   :  { %7307 = vmatpush1.bf16.msra.mxu0 %v12141_v34  ;;  %v12171_v34 = vld [vmem:[#allocation2 + $0x340] ss:$8 sps:$4 sm:$0xff]  }
0x148f   :  { %11449 = vmatmul.mubr.msk.bf16.vlgmr.msra.gmra.mrb[188].mxu1 %vm1317_vm4, %v10668_v41  ;;  %7308 = vmatprep.subr.bf16.mxu0 %v12146_v37  ;;  %v12176_v37 = vld [vmem:[#allocation2 + $0x354] ss:$8 sps:$4 sm:$0xff]  }
0x1490   :  { %7332 = vmatpush1.bf16.msra.mxu1 %v12114_v16  ;;  %7363 = vmatprep.mubr.bf16.mxu1 %v14998_v24 }
0x1491   :  { %7378 = vmatprep.subr.bf16.mxu1 %v13978_v30 }
0x1492   :  { %7309 = vmatpush1.bf16.msra.mxu0 %v12144_v42  ;;  %v12174_v42 = vld [vmem:[#allocation2 + $0x350] ss:$8 sps:$4 sm:$0xff]  }
0x1493   :  { %7310 = vmatprep.subr.bf16.mxu0 %v12149_v4  ;;  %v12179_v4 = vld [vmem:[#allocation2 + $0x364] ss:$8 sps:$4 sm:$0xff]  }
0x1496   :  { %7311 = vmatpush1.bf16.msra.mxu0 %v12147_v53  ;;  %v12177_v53 = vld [vmem:[#allocation2 + $0x360] ss:$8 sps:$4 sm:$0xff]  }
0x1497   :  { %7312 = vmatprep.subr.bf16.mxu0 %v12152_v40  ;;  %v12182_v40 = vld [vmem:[#allocation2 + $0x374] ss:$8 sps:$4 sm:$0xff]  }
0x149a   :  { %7313 = vmatpush1.bf16.msra.mxu0 %v12150_v47  ;;  %v12180_v47 = vld [vmem:[#allocation2 + $0x370] ss:$8 sps:$4 sm:$0xff]  }
0x149b   :  { %7314 = vmatprep.subr.bf16.mxu0 %v12155_v55  ;;  %v12183_v55 = vld [vmem:[#allocation2 + $0x380] ss:$8 sps:$4 sm:$0xff]  }
0x149e   :  { %7315 = vmatpush1.bf16.msra.mxu0 %v12153_v5  ;;  %v12185_v5 = vld [vmem:[#allocation2 + $0x384] ss:$8 sps:$4 sm:$0xff]  }
0x149f   :  { %7316 = vmatprep.subr.bf16.mxu0 %v12158_v6  ;;  %v12188_v6 = vld [vmem:[#allocation2 + $0x394] ss:$8 sps:$4 sm:$0xff]  }
0x14a2   :  { %7317 = vmatpush1.bf16.msra.mxu0 %v12156_v8  ;;  %v12186_v8 = vld [vmem:[#allocation2 + $0x390] ss:$8 sps:$4 sm:$0xff]  }
0x14a3   :  { %7318 = vmatprep.subr.bf16.mxu0 %v12161_v9  ;;  %v12191_v9 = vld [vmem:[#allocation2 + $0x3a4] ss:$8 sps:$4 sm:$0xff]  }
0x14a6   :  { %7319 = vmatpush1.bf16.msra.mxu0 %v12159_v57  ;;  %v12189_v57 = vld [vmem:[#allocation2 + $0x3a0] ss:$8 sps:$4 sm:$0xff]  }
0x14a7   :  { %7320 = vmatprep.subr.bf16.mxu0 %v12164_v29  ;;  %v12194_v29 = vld [vmem:[#allocation2 + $0x3b4] ss:$8 sps:$4 sm:$0xff]  }
0x14aa   :  { %7321 = vmatpush1.bf16.msra.mxu0 %v12162_v11  ;;  %v12192_v11 = vld [vmem:[#allocation2 + $0x3b0] ss:$8 sps:$4 sm:$0xff]  }
0x14ab   :  { %7710 = vmatprep.subr.bf16.mxu0 %v12167_v12  ;;  %v12197_v12 = vld [vmem:[#allocation2 + $0x3c4] ss:$8 sps:$4 sm:$0xff]  }
0x151a   :  { %v6733_v13 = vpop.f32.mrb[180].mxu1 }
0x151b   :  { %v6735_v61 = vpop.f32.mrb[181].mxu1 }
0x151c   :  { %v6737_v54 = vpop.f32.mrb[182].mxu1 }
0x151d   :  { %v6738_v63 = vpop.f32.mrb[183].mxu1  ;;  %v12198_v54 = vld [vmem:[#allocation2 + $0x3d0] ss:$8 sps:$4 sm:$0xff]  }
0x151e   :  { %v12203_v63 = vld [vmem:[#allocation2 + $0x3e4] ss:$8 sps:$4 sm:$0xff]  }
0x1530   :  { %v6692_v2 = vpop.f32.mrb[132].mxu0 }
0x1531   :  { %v6734_v25 = vadd.f32 %v6733_v13, %v6692_v2  ;;  %v6694_v41 = vpop.f32.mrb[133].mxu0  ;;  %v12195_v13 = vld [vmem:[#allocation2 + $0x3c0] ss:$8 sps:$4 sm:$0xff]  }
0x1532   :  { %v6736_v48 = vadd.f32 %v6735_v61, %v6694_v41  ;;  %v6696_v0 = vpop.f32.mrb[134].mxu0  ;;  %v12200_v61 = vld [vmem:[#allocation2 + $0x3d4] ss:$8 sps:$4 sm:$0xff]   ;;  %v12201_v2 = vld [vmem:[#allocation2 + $0x3e0] ss:$8 sps:$4 sm:$0xff]  }
0x1533   :  { %v6697_v44 = vpop.f32.mrb[135].mxu0  ;;  %v12204_v41 = vld [vmem:[#allocation2 + $0x3f0] ss:$8 sps:$4 sm:$0xff]   ;;  %v12207_v0 = vld [vmem:[#allocation2 + $0x400] ss:$8 sps:$4 sm:$0xff]  }
0x1534   :  { %v12210_v44 = vld [vmem:[#allocation2 + $0x410] ss:$8 sps:$4 sm:$0xff]  }
0x1538   :  { %v6988_v14 = vpop.f32.mrb[136].mxu0 }
0x1539   :  { %v6990_v51 = vpop.f32.mrb[137].mxu0 }
0x153a   :  { %v6992_v26 = vpop.f32.mrb[138].mxu0 }
0x153b   :  { %v6993_v20 = vpop.f32.mrb[139].mxu0  ;;  %v12213_v26 = vld [vmem:[#allocation2 + $0x420] ss:$8 sps:$4 sm:$0xff]  }
0x1540   :  { %v7033_v36 = vpop.f32.mrb[140].mxu0 }
0x1541   :  { %v7080_v1 = vpack.c.bf16 %v7033_v36, %v7033_v36  ;;  %v7035_v31 = vpop.f32.mrb[141].mxu0 }
0x1542   :  { %v7081_v52 = vpack.c.bf16 %v7035_v31, %v7035_v31  ;;  %v7037_v7 = vpop.f32.mrb[142].mxu0 }
0x1543   :  { %v7038_v58 = vpop.f32.mrb[143].mxu0 }
0x1544   :  { %7322 = vmatprep.mubr.bf16.mxu0 %v7081_v52 }
0x1545   :  { %7323 = vmatmul.mubr.bf16.vlgmr.msra.gmra.mrb[144].mxu0 %v7080_v1 }
0x1546   :  { %7711 = vmatpush1.bf16.msra.mxu0 %v12165_v19  ;;  %7742 = vmatprep.mubr.bf16.mxu0 %v14998_v24 }
0x1547   :  { %7757 = vmatprep.subr.bf16.mxu0 %v13978_v30  ;;  %v10706_v30 = vld [vmem:[%s14895_s4 + $0xc] sm:$0xf] }
0x155a   :  { %v6947_v21 = vpop.f32.mrb[184].mxu1 }
0x155b   :  { %v6948_v15 = vadd.f32 %v6947_v21, %v6734_v25  ;;  %v6949_v3 = vpop.f32.mrb[185].mxu1  ;;  %v12206_v25 = vld [vmem:[#allocation2 + $0x3f4] ss:$8 sps:$4 sm:$0xff]  }
0x155c   :  { %v6950_v43 = vadd.f32 %v6949_v3, %v6736_v48  ;;  %v6951_v46 = vpop.f32.mrb[186].mxu1  ;;  %v12209_v48 = vld [vmem:[#allocation2 + $0x404] ss:$8 sps:$4 sm:$0xff]  }
0x155d   :  { %v14047_v32 = vadd.f32 %v6988_v14, %v6948_v15  ;;  %v6952_v49 = vpop.f32.mrb[187].mxu1  ;;  %v12212_v14 = vld [vmem:[#allocation2 + $0x414] ss:$8 sps:$4 sm:$0xff]  }
0x155e   :  { %v14049_v38 = vadd.f32 %v6990_v51, %v6950_v43  ;;  %v12215_v51 = vld [vmem:[#allocation2 + $0x424] ss:$8 sps:$4 sm:$0xff]  }
0x1562   :  { %v7074_v45 = vpop.f32.mrb[188].mxu1 }
0x1563   :  { %v7082_v50 = vpack.c.bf16 %v7074_v45, %v7074_v45  ;;  %v11450_v16 = vpop.f32.mrb[189].mxu1 }
0x1564   :  { %v7077_v23 = vpop.f32.mrb[190].mxu1 }
0x1565   :  { %10705 = vmatmul.mubr.msk.bf16.vlgmr.msra.gmra.mrb[192].mxu1 %vm1745_vm6, %v7082_v50  ;;  %v11451_v28 = vpop.f32.mrb[191].mxu1 }
0x1566   :  { %7379 = vmatpush1.bf16.msra.mxu1 %v13976_v62  ;;  %7410 = vmatprep.mubr.bf16.mxu1 %v14998_v24 }
0x1567   :  { %7380 = vmatprep.subr.bf16.mxu1 %v13994_v27 }
0x156a   :  { %7381 = vmatpush1.bf16.msra.mxu1 %v13997_v17 }
0x156b   :  { %11452 = vmatprep.subr.bf16.mxu1 %v15041_v59 }
0x156d   :  { %10707 = vmatmul.mubr.msk.bf16.vlgmr.msra.gmra.mrb[196].mxu1 %vm1317_vm4, %v10706_v30 }
0x156e   :  { %11453 = vmatpush3.bf16.msra.mxu1 %v13981_v22  ;;  %11456 = vmatprep.mubr.msk.bf16.mxu1 %vm12401_vm5, %v15041_v59 }
0x156f   :  { %11454 = vmatprep.subr.bf16.mxu1 %v15041_v59 }
0x1572   :  { %11455 = vmatpush3.bf16.msra.mxu1 %v13987_v39 }
0x1573   :  { %7669 = vmatprep.subr.bf16.mxu1 %v12170_v18 }
0x1575   :  { %11457 = vmatmul.mubr.msk.bf16.vlgmr.msra.gmra.mrb[200].mxu1 %vm1317_vm4, %v10706_v30 }
0x1576   :  { %7670 = vmatpush1.bf16.msra.mxu1 %v12168_v33 }
0x1577   :  { %7671 = vmatprep.subr.bf16.mxu1 %v12173_v35  ;;  %v12219_v35 = vld [vmem:[#allocation2 + $0x450] ss:$8 sps:$4 sm:$0xff]  }
0x157a   :  { %7672 = vmatpush1.bf16.msra.mxu1 %v12171_v34  ;;  %v12224_v34 = vld [vmem:[#allocation2 + $0x464] ss:$8 sps:$4 sm:$0xff]  }
0x157b   :  { %7673 = vmatprep.subr.bf16.mxu1 %v12176_v37  ;;  %v12222_v37 = vld [vmem:[#allocation2 + $0x460] ss:$8 sps:$4 sm:$0xff]  }
0x157e   :  { %7674 = vmatpush1.bf16.msra.mxu1 %v12174_v42  ;;  %v12225_v42 = vld [vmem:[#allocation2 + $0x470] ss:$8 sps:$4 sm:$0xff]  }
0x157f   :  { %7675 = vmatprep.subr.bf16.mxu1 %v12179_v4  ;;  %v12230_v4 = vld [vmem:[#allocation2 + $0x484] ss:$8 sps:$4 sm:$0xff]  }
0x1582   :  { %7676 = vmatpush1.bf16.msra.mxu1 %v12177_v53  ;;  %v12228_v53 = vld [vmem:[#allocation2 + $0x480] ss:$8 sps:$4 sm:$0xff]  }
0x1583   :  { %7677 = vmatprep.subr.bf16.mxu1 %v12182_v40  ;;  %v12231_v40 = vld [vmem:[#allocation2 + $0x490] ss:$8 sps:$4 sm:$0xff]  }
0x1586   :  { %7678 = vmatpush1.bf16.msra.mxu1 %v12180_v47  ;;  %v12236_v47 = vld [vmem:[#allocation2 + $0x4a4] ss:$8 sps:$4 sm:$0xff]  }
0x1587   :  { %7679 = vmatprep.subr.bf16.mxu1 %v12185_v5  ;;  %v12234_v5 = vld [vmem:[#allocation2 + $0x4a0] ss:$8 sps:$4 sm:$0xff]  }
0x158a   :  { %7680 = vmatpush1.bf16.msra.mxu1 %v12183_v55  ;;  %v12239_v55 = vld [vmem:[#allocation2 + $0x4b4] ss:$8 sps:$4 sm:$0xff]  }
0x158b   :  { %7681 = vmatprep.subr.bf16.mxu1 %v12188_v6  ;;  %v12237_v6 = vld [vmem:[#allocation2 + $0x4b0] ss:$8 sps:$4 sm:$0xff]  }
0x158e   :  { %7682 = vmatpush1.bf16.msra.mxu1 %v12186_v8  ;;  %v12242_v8 = vld [vmem:[#allocation2 + $0x4c4] ss:$8 sps:$4 sm:$0xff]  }
0x158f   :  { %7683 = vmatprep.subr.bf16.mxu1 %v12191_v9  ;;  %v12240_v9 = vld [vmem:[#allocation2 + $0x4c0] ss:$8 sps:$4 sm:$0xff]  }
0x1592   :  { %7684 = vmatpush1.bf16.msra.mxu1 %v12189_v57  ;;  %v12245_v57 = vld [vmem:[#allocation2 + $0x4d4] ss:$8 sps:$4 sm:$0xff]  }
0x1593   :  { %7685 = vmatprep.subr.bf16.mxu1 %v12194_v29  ;;  %v12243_v29 = vld [vmem:[#allocation2 + $0x4d0] ss:$8 sps:$4 sm:$0xff]  }
0x1596   :  { %7686 = vmatpush1.bf16.msra.mxu1 %v12192_v11  ;;  %v12248_v11 = vld [vmem:[#allocation2 + $0x4e4] ss:$8 sps:$4 sm:$0xff]  }
0x1597   :  { %7687 = vmatprep.subr.bf16.mxu1 %v12197_v12  ;;  %v12246_v12 = vld [vmem:[#allocation2 + $0x4e0] ss:$8 sps:$4 sm:$0xff]  }
0x159a   :  { %7688 = vmatpush1.bf16.msra.mxu1 %v12195_v13  ;;  %v12251_v13 = vld [vmem:[#allocation2 + $0x4f4] ss:$8 sps:$4 sm:$0xff]  }
0x159b   :  { %7689 = vmatprep.subr.bf16.mxu1 %v12200_v61  ;;  %v12249_v61 = vld [vmem:[#allocation2 + $0x4f0] ss:$8 sps:$4 sm:$0xff]  }
0x159e   :  { %7690 = vmatpush1.bf16.msra.mxu1 %v12198_v54  ;;  %v12254_v54 = vld [vmem:[#allocation2 + $0x504] ss:$8 sps:$4 sm:$0xff]  }
0x159f   :  { %7691 = vmatprep.subr.bf16.mxu1 %v12203_v63  ;;  %v12252_v63 = vld [vmem:[#allocation2 + $0x500] ss:$8 sps:$4 sm:$0xff]  }
0x15a2   :  { %7692 = vmatpush1.bf16.msra.mxu1 %v12201_v2  ;;  %v12257_v2 = vld [vmem:[#allocation2 + $0x514] ss:$8 sps:$4 sm:$0xff]  }
0x15a3   :  { %7693 = vmatprep.subr.bf16.mxu1 %v12206_v25  ;;  %v12255_v25 = vld [vmem:[#allocation2 + $0x510] ss:$8 sps:$4 sm:$0xff]  }
0x15a6   :  { %7694 = vmatpush1.bf16.msra.mxu1 %v12204_v41  ;;  %v12258_v41 = vld [vmem:[#allocation2 + $0x520] ss:$8 sps:$4 sm:$0xff]  }
0x15a7   :  { %7695 = vmatprep.subr.bf16.mxu1 %v12209_v48  ;;  %v12260_v48 = vld [vmem:[#allocation2 + $0x524] ss:$8 sps:$4 sm:$0xff]  }
0x15aa   :  { %7696 = vmatpush1.bf16.msra.mxu1 %v12207_v0  ;;  %v12263_v0 = vld [vmem:[#allocation2 + $0x534] ss:$8 sps:$4 sm:$0xff]  }
0x15ab   :  { %7697 = vmatprep.subr.bf16.mxu1 %v12212_v14  ;;  %v12264_v14 = vld [vmem:[#allocation2 + $0x540] ss:$8 sps:$4 sm:$0xff]  }
0x15ae   :  { %7698 = vmatpush1.bf16.msra.mxu1 %v12210_v44  ;;  %v12261_v44 = vld [vmem:[#allocation2 + $0x530] ss:$8 sps:$4 sm:$0xff]  }
0x15af   :  { %7699 = vmatprep.subr.bf16.mxu1 %v12215_v51  ;;  %v12266_v51 = vld [vmem:[#allocation2 + $0x544] ss:$8 sps:$4 sm:$0xff]  }
0x15b2   :  { %7700 = vmatpush1.bf16.msra.mxu1 %v12213_v26 }
0x15b3   :  { %8089 = vmatprep.subr.bf16.mxu1 %v12266_v51  ;;  %v15046_v51 = vld [vmem:[#allocation12_spill] sm:$0xff] }
0x1618   :  { %v7324_v20 = vpop.f32.mrb[144].mxu0 }
0x1619   :  { %v7326_v36 = vpop.f32.mrb[145].mxu0 }
0x161a   :  { %v7328_v1 = vpop.f32.mrb[146].mxu0 }
0x161b   :  { %v7329_v31 = vpop.f32.mrb[147].mxu0 }
0x1638   :  { %v7365_v52 = vpop.f32.mrb[192].mxu1 }
0x1639   :  { %v7366_v19 = vadd.f32 %v7365_v52, %v7324_v20  ;;  %v7367_v7 = vpop.f32.mrb[193].mxu1 }
0x163a   :  { %v7368_v58 = vadd.f32 %v7367_v7, %v7326_v36  ;;  %v7369_v21 = vpop.f32.mrb[194].mxu1 }
0x163b   :  { %v14068_v15 = vadd.f32 %v7366_v19, %v14047_v32  ;;  %v7370_v3 = vpop.f32.mrb[195].mxu1 }
0x163c   :  { %v14071_v43 = vadd.f32 %v7368_v58, %v14049_v38  ;;  %v10744_v38 = vld [vmem:[%s14895_s4 + $0x10] sm:$0xf] }
0x1640   :  { %v7412_v46 = vpop.f32.mrb[196].mxu1 }
0x1641   :  { %v7414_v49 = vpop.f32.mrb[197].mxu1  ;;  %v7459_v16 = vpack.c.bf16 %v7412_v46, %v7412_v46 }
0x1642   :  { %v7460_v45 = vpack.c.bf16 %v7414_v49, %v7414_v49  ;;  %v7416_v50 = vpop.f32.mrb[198].mxu1 }
0x1643   :  { %v7417_v23 = vpop.f32.mrb[199].mxu1 }
0x1644   :  { %7701 = vmatprep.mubr.bf16.mxu1 %v7460_v45  ;;  %v14100_v23 = vld [vmem:[%s14899_s8] sm:$0xff]  }
0x1645   :  { %7702 = vmatmul.mubr.bf16.vlgmr.msra.gmra.mrb[204].mxu1 %v7459_v16 }
0x1646   :  { %8121 = vmatprep.mubr.bf16.mxu1 %v14998_v24  ;;  %8090 = vmatpush1.bf16.msra.mxu1 %v12264_v14 }
0x1648   :  { %v7453_v28 = vpop.f32.mrb[200].mxu1 }
0x1649   :  { %v7461_v30 = vpack.c.bf16 %v7453_v28, %v7453_v28  ;;  %v11458_v18 = vpop.f32.mrb[201].mxu1 }
0x164a   :  { %v7456_v33 = vpop.f32.mrb[202].mxu1 }
0x164b   :  { %10743 = vmatmul.mubr.msk.bf16.vlgmr.msra.gmra.mrb[148].mxu0 %vm1745_vm6, %v7461_v30  ;;  %v11459_v32 = vpop.f32.mrb[203].mxu1 }
0x164c   :  { %7758 = vmatpush1.bf16.msra.mxu0 %v13976_v62  ;;  %7789 = vmatprep.mubr.bf16.mxu0 %v14998_v24  ;;  %v12218_v62 = vld [vmem:[#allocation2 + $0x444] ss:$8 sps:$4 sm:$0xff]  }
0x164d   :  { %7759 = vmatprep.subr.bf16.mxu0 %v13994_v27  ;;  %v12216_v27 = vld [vmem:[#allocation2 + $0x440] ss:$8 sps:$4 sm:$0xff]  }
0x1650   :  { %7760 = vmatpush1.bf16.msra.mxu0 %v13997_v17  ;;  %v12221_v17 = vld [vmem:[#allocation2 + $0x454] ss:$8 sps:$4 sm:$0xff]  }
0x1651   :  { %11460 = vmatprep.subr.bf16.mxu0 %v15041_v59 }
0x1653   :  { %10745 = vmatmul.mubr.msk.bf16.vlgmr.msra.gmra.mrb[152].mxu0 %vm1317_vm4, %v10744_v38 }
0x1654   :  { %11461 = vmatpush3.bf16.msra.mxu0 %v13981_v22  ;;  %11464 = vmatprep.mubr.msk.bf16.mxu0 %vm12401_vm5, %v15041_v59  ;;  %v12227_v22 = vld [vmem:[#allocation2 + $0x474] ss:$8 sps:$4 sm:$0xff]  }
0x1655   :  { %11462 = vmatprep.subr.bf16.mxu0 %v15041_v59 }
0x1658   :  { %11463 = vmatpush3.bf16.msra.mxu0 %v13987_v39  ;;  %v12233_v39 = vld [vmem:[#allocation2 + $0x494] ss:$8 sps:$4 sm:$0xff]  }
0x1659   :  { %8048 = vmatprep.subr.bf16.mxu0 %v12218_v62 }
0x165b   :  { %11465 = vmatmul.mubr.msk.bf16.vlgmr.msra.gmra.mrb[156].mxu0 %vm1317_vm4, %v10744_v38  ;;  %v14113_v38 = vld [vmem:[%s14899_s8 + $0x10] sm:$0xff]  }
0x165c   :  { %8049 = vmatpush1.bf16.msra.mxu0 %v12216_v27  ;;  %v14122_v27 = vld [vmem:[%s14899_s8 + $0x18] sm:$0xff]  }
0x165d   :  { %8050 = vmatprep.subr.bf16.mxu0 %v12221_v17  ;;  %v14129_v17 = vld [vmem:[%s14899_s8 + $0x20] sm:$0xff]  }
0x1660   :  { %8051 = vmatpush1.bf16.msra.mxu0 %v12219_v35  ;;  %v14136_v35 = vld [vmem:[%s14899_s8 + $0x28] sm:$0xff]  }
0x1661   :  { %8052 = vmatprep.subr.bf16.mxu0 %v12224_v34  ;;  %v14143_v34 = vld [vmem:[%s14899_s8 + $0x30] sm:$0xff]  }
0x1664   :  { %8053 = vmatpush1.bf16.msra.mxu0 %v12222_v37  ;;  %v14150_v37 = vld [vmem:[%s14899_s8 + $0x38] sm:$0xff]  }
0x1665   :  { %8054 = vmatprep.subr.bf16.mxu0 %v12227_v22  ;;  %v14157_v22 = vld [vmem:[%s14899_s8 + $0x40] sm:$0xff]  }
0x1668   :  { %8055 = vmatpush1.bf16.msra.mxu0 %v12225_v42  ;;  %v14165_v42 = vld [vmem:[%s14899_s8 + $0x48] sm:$0xff]  }
0x1669   :  { %8056 = vmatprep.subr.bf16.mxu0 %v12230_v4  ;;  %v14172_v4 = vld [vmem:[%s14899_s8 + $0x50] sm:$0xff]  }
0x166c   :  { %8057 = vmatpush1.bf16.msra.mxu0 %v12228_v53  ;;  %v14179_v53 = vld [vmem:[%s14899_s8 + $0x58] sm:$0xff]  }
0x166d   :  { %8058 = vmatprep.subr.bf16.mxu0 %v12233_v39  ;;  %v14186_v39 = vld [vmem:[%s14899_s8 + $0x60] sm:$0xff]  }
0x1670   :  { %8059 = vmatpush1.bf16.msra.mxu0 %v12231_v40  ;;  %v14193_v40 = vld [vmem:[%s14899_s8 + $0x68] sm:$0xff]  }
0x1671   :  { %8060 = vmatprep.subr.bf16.mxu0 %v12236_v47 }
0x1674   :  { %8061 = vmatpush1.bf16.msra.mxu0 %v12234_v5 }
0x1675   :  { %8062 = vmatprep.subr.bf16.mxu0 %v12239_v55 }
0x1678   :  { %8063 = vmatpush1.bf16.msra.mxu0 %v12237_v6 }
0x1679   :  { %8064 = vmatprep.subr.bf16.mxu0 %v12242_v8  ;;  %v8132_v8 = vld [vmem:[%s14897_s6] sm:$0x3] }
0x167c   :  { %8065 = vmatpush1.bf16.msra.mxu0 %v12240_v9 }
0x167d   :  { %8066 = vmatprep.subr.bf16.mxu0 %v12245_v57 }
0x1680   :  { %8067 = vmatpush1.bf16.msra.mxu0 %v12243_v29  ;;  %v8137_v29 = vrot.slane %v8132_v8, %v15042_v60 }
0x1681   :  { %8068 = vmatprep.subr.bf16.mxu0 %v12248_v11 }
0x1684   :  { %8069 = vmatpush1.bf16.msra.mxu0 %v12246_v12 }
0x1685   :  { %8070 = vmatprep.subr.bf16.mxu0 %v12251_v13  ;;  %v8141_v13 = vrot.slane %v8132_v8, %v15043_v56  ;;  %v14215_v56 = vld [vmem:[%s14898_s7] sm:$0x1] }
0x1688   :  { %8071 = vmatpush1.bf16.msra.mxu0 %v12249_v61 }
0x1689   :  { %8072 = vmatprep.subr.bf16.mxu0 %v12254_v54 }
0x168c   :  { %8073 = vmatpush1.bf16.msra.mxu0 %v12252_v63 }
0x168d   :  { %8074 = vmatprep.subr.bf16.mxu0 %v12257_v2 }
0x1690   :  { %8075 = vmatpush1.bf16.msra.mxu0 %v12255_v25 }
0x1691   :  { %8076 = vmatprep.subr.bf16.mxu0 %v12260_v48 }
0x1694   :  { %8077 = vmatpush1.bf16.msra.mxu0 %v12258_v41 }
0x1695   :  { %8078 = vmatprep.subr.bf16.mxu0 %v12263_v0 }
0x1698   :  { %8079 = vmatpush1.bf16.msra.mxu0 %v12261_v44 }
0x1699   :  { %8521 = vmatprep.subr.bf16.mxu0 %v14998_v24 }
0x1718   :  { %v7703_v26 = vpop.f32.mrb[204].mxu1 }
0x1719   :  { %v7705_v20 = vpop.f32.mrb[205].mxu1 }
0x171a   :  { %v7707_v36 = vpop.f32.mrb[206].mxu1 }
0x171b   :  { %v7708_v1 = vpop.f32.mrb[207].mxu1  ;;  %v14229_v36 = vld [vmem:[%s14899_s8 + $0x70] sm:$0xff]  }
0x171c   :  { %v14236_v1 = vld [vmem:[%s14899_s8 + $0x78] sm:$0xff]  }
0x171e   :  { %v7744_v31 = vpop.f32.mrb[148].mxu0 }
0x171f   :  { %v7745_v52 = vadd.f32 %v7744_v31, %v7703_v26  ;;  %v7746_v19 = vpop.f32.mrb[149].mxu0  ;;  %v14243_v31 = vld [vmem:[%s14899_s8 + $0x80] sm:$0xff]  }
0x1720   :  { %v7747_v7 = vadd.f32 %v7746_v19, %v7705_v20  ;;  %v7748_v58 = vpop.f32.mrb[150].mxu0  ;;  %v10783_v20 = vld [vmem:[%s14898_s7 + $0x1] sm:$0x1]  ;;  %v14257_v19 = vld [vmem:[%s14899_s8 + $0x90] sm:$0xff]  }
0x1721   :  { %v14092_v21 = vadd.f32 %v7745_v52, %v14068_v15  ;;  %v7749_v3 = vpop.f32.mrb[151].mxu0  ;;  %v14106_v15 = vld [vmem:[%s14899_s8 + $0x8] sm:$0xff]   ;;  %v14271_v58 = vld [vmem:[%s14899_s8 + $0xa0] sm:$0xff]  }
0x1722   :  { %v14095_v46 = vadd.f32 %v7747_v7, %v14071_v43  ;;  %v14250_v52 = vld [vmem:[%s14899_s8 + $0x88] sm:$0xff]   ;;  %v14264_v7 = vld [vmem:[%s14899_s8 + $0x98] sm:$0xff]   ;;  %v14285_v3 = vld [vmem:[%s14899_s8 + $0xb0] sm:$0xff]  }
0x1726   :  { %v7791_v49 = vpop.f32.mrb[152].mxu0 }
0x1727   :  { %v7793_v45 = vpop.f32.mrb[153].mxu0  ;;  %v7838_v28 = vpack.c.bf16 %v7791_v49, %v7791_v49  ;;  %v14299_v49 = vld [vmem:[%s14899_s8 + $0xc0] sm:$0xff]  }
0x1728   :  { %v7839_v50 = vpack.c.bf16 %v7793_v45, %v7793_v45  ;;  %v7795_v16 = vpop.f32.mrb[154].mxu0  ;;  %v14306_v45 = vld [vmem:[%s14899_s8 + $0xc8] sm:$0xff]  }
0x1729   :  { %v7796_v30 = vpop.f32.mrb[155].mxu0  ;;  %v14320_v16 = vld [vmem:[%s14899_s8 + $0xd8] sm:$0xff]  }
0x172a   :  { %8080 = vmatprep.mubr.bf16.mxu0 %v7839_v50  ;;  %v14313_v50 = vld [vmem:[%s14899_s8 + $0xd0] sm:$0xff]  }
0x172b   :  { %8081 = vmatmul.mubr.bf16.vlgmr.msra.gmra.mrb[160].mxu0 %v7838_v28 }
0x172c   :  { %8522 = vmatpush1.bf16.msra.mxu0 %v14100_v23 }
0x172d   :  { %8523 = vmatprep.subr.bf16.mxu0 %v14998_v24 }
0x172e   :  { %v7832_v43 = vpop.f32.mrb[156].mxu0 }
0x172f   :  { %v7840_v18 = vpack.c.bf16 %v7832_v43, %v7832_v43  ;;  %v11466_v33 = vpop.f32.mrb[157].mxu0 }
0x1730   :  { %v7835_v32 = vpop.f32.mrb[158].mxu0  ;;  %8524 = vmatpush1.bf16.msra.mxu0 %v14106_v15 }
0x1731   :  { %10781 = vmatmul.mubr.msk.bf16.vlgmr.msra.gmra.mrb[208].mxu1 %vm1745_vm6, %v7840_v18  ;;  %v11467_v62 = vpop.f32.mrb[159].mxu0  ;;  %8525 = vmatprep.subr.bf16.mxu0 %v14998_v24 }
0x1732   :  { %8193 = vmatprep.mubr.bf16.mxu1 %v14998_v24 }
0x1734   :  { %8526 = vmatpush1.bf16.msra.mxu0 %v14113_v38 }
0x1735   :  { %8527 = vmatprep.subr.bf16.mxu0 %v14998_v24 }
0x1738   :  { %8528 = vmatpush1.bf16.msra.mxu0 %v14122_v27 }
0x1739   :  { %8529 = vmatprep.subr.bf16.mxu0 %v14998_v24 }
0x173c   :  { %8530 = vmatpush1.bf16.msra.mxu0 %v14129_v17 }
0x173d   :  { %8531 = vmatprep.subr.bf16.mxu0 %v14998_v24 }
0x1740   :  { %8532 = vmatpush1.bf16.msra.mxu0 %v14136_v35 }
0x1741   :  { %8533 = vmatprep.subr.bf16.mxu0 %v14998_v24 }
0x1744   :  { %8534 = vmatpush1.bf16.msra.mxu0 %v14143_v34 }
0x1745   :  { %8535 = vmatprep.subr.bf16.mxu0 %v14998_v24 }
0x1748   :  { %8536 = vmatpush1.bf16.msra.mxu0 %v14150_v37 }
0x1749   :  { %8537 = vmatprep.subr.bf16.mxu0 %v14998_v24 }
0x174c   :  { %8538 = vmatpush1.bf16.msra.mxu0 %v14157_v22 }
0x174d   :  { %8539 = vmatprep.subr.bf16.mxu0 %v14998_v24 }
0x1750   :  { %8540 = vmatpush1.bf16.msra.mxu0 %v14165_v42 }
0x1751   :  { %8541 = vmatprep.subr.bf16.mxu0 %v14998_v24 }
0x1754   :  { %8542 = vmatpush1.bf16.msra.mxu0 %v14172_v4 }
0x1755   :  { %8543 = vmatprep.subr.bf16.mxu0 %v14998_v24 }
0x1758   :  { %8544 = vmatpush1.bf16.msra.mxu0 %v14179_v53 }
0x1759   :  { %8545 = vmatprep.subr.bf16.mxu0 %v14998_v24 }
0x175c   :  { %8546 = vmatpush1.bf16.msra.mxu0 %v14186_v39 }
0x175d   :  { %8547 = vmatprep.subr.bf16.mxu0 %v14998_v24 }
0x1760   :  { %8548 = vmatpush1.bf16.msra.mxu0 %v14193_v40 }
0x17fe   :  { %v8082_v47 = vpop.f32.mrb[160].mxu0 }
0x17ff   :  { %v8084_v5 = vpop.f32.mrb[161].mxu0 }
0x1800   :  { %v8086_v55 = vpop.f32.mrb[162].mxu0 }
0x1801   :  { %v8087_v6 = vpop.f32.mrb[163].mxu0  ;;  %v10888_v55 = vld [vmem:[%s14898_s7 + $0x3] sm:$0x1] }
0x1804   :  { %v8123_v9 = vpop.f32.mrb[208].mxu1 }
0x1805   :  { %v8124_v57 = vadd.f32 %v8123_v9, %v8082_v47  ;;  %v8125_v11 = vpop.f32.mrb[209].mxu1 }
0x1806   :  { %v8126_v12 = vadd.f32 %v8125_v11, %v8084_v5  ;;  %v8127_v61 = vpop.f32.mrb[210].mxu1  ;;  %v10843_v11 = vld [vmem:[%s14898_s7 + $0x2] sm:$0x1] }
0x1807   :  { %v8130_v54 = vadd.f32 %v8124_v57, %v14092_v21  ;;  %v8128_v63 = vpop.f32.mrb[211].mxu1  ;;  %v14278_v21 = vld [vmem:[%s14899_s8 + $0xa8] sm:$0xff]   ;;  %v14335_v57 = vld [vmem:[%s14899_s8 + $0x150] sm:$0xff]  }
0x1808   :  { %v8131_v2 = vadd.f32 %v8126_v12, %v14095_v46  ;;  %v14292_v46 = vld [vmem:[%s14899_s8 + $0xb8] sm:$0xff]   ;;  %v14355_v12 = vld [vmem:[%s14899_s8 + $0xe0] sm:$0xff]   ;;  %v14369_v61 = vld [vmem:[%s14899_s8 + $0xe8] sm:$0xff]  }
0x1809   :  { %v8144_v25 = vadd.f32 %v8137_v29, %v8130_v54  ;;  %v14346_v29 = vld [vmem:[%s14899_s8 + $0x158] sm:$0xff]   ;;  %v14376_v54 = vld [vmem:[%s14899_s8 + $0x168] sm:$0xff]   ;;  %v14383_v63 = vld [vmem:[%s14899_s8 + $0xf0] sm:$0xff]  }
0x180a   :  { %v8145_v41 = vadd.f32 %v8141_v13, %v8131_v2  ;;  %v14361_v13 = vld [vmem:[%s14899_s8 + $0x160] sm:$0xff]   ;;  %15047 = vst [vmem:[#allocation13_spill] sm:$0xff] %v14376_v54  ;;  %v14390_v2 = vld [vmem:[%s14899_s8 + $0x170] sm:$0xff]  }
0x180b   :  { %v8146_v48 = vmax.f32 %v8144_v25, 0.0  ;;  %15048 = vst [vmem:[#allocation21_spill] sm:$0xff] %v14390_v2  ;;  %v14397_v25 = vld [vmem:[%s14899_s8 + $0xf8] sm:$0xff]  }
0x180c   :  { %v8147_v0 = vmax.f32 %v8145_v41, 0.0  ;;  %v14404_v41 = vld [vmem:[%s14899_s8 + $0x178] sm:$0xff]  }
0x180d   :  { %v8148_v44 = vpack.c.bf16 %v8146_v48, %v8146_v48  ;;  %15049 = vst [vmem:[#allocation14_spill] sm:$0xff] %v14404_v41  ;;  %v14411_v48 = vld [vmem:[%s14899_s8 + $0x100] sm:$0xff]  }
0x180e   :  { %v8149_v14 = vpack.c.bf16 %v8147_v0, %v8147_v0  ;;  %v14418_v0 = vld [vmem:[%s14899_s8 + $0x180] sm:$0xff]  }
0x180f   :  { %v14207_v60 = vand.u32 %v8148_v44, %v15046_v51  ;;  %15050 = vst [vmem:[#allocation22_spill] sm:$0xff] %v14418_v0  ;;  %v14425_v44 = vld [vmem:[%s14899_s8 + $0x108] sm:$0xff]  }
0x1810   :  { %v14204_v26 = vand.u32 %v8149_v14, %v15046_v51  ;;  %v14432_v14 = vld [vmem:[%s14899_s8 + $0x188] sm:$0xff]   ;;  %v14439_v51 = vld [vmem:[%s14899_s8 + $0x110] sm:$0xff]  }
0x1811   :  { %15051 = vst [vmem:[#allocation15_spill] sm:$0xff] %v14432_v14 }
0x1812   :  { %8161 = vmatprep.subr.bf16.mxu1 %v14204_v26  ;;  %8768 = vmatprep.subr.bf16.mxu0 %v14204_v26 }
0x1813   :  { %8162 = vmatpush1.bf16.msra.mxu1 %v14207_v60 }
0x1814   :  { %8236 = vmatprep.subr.bf16.mxu1 %v14204_v26 }
0x1816   :  { %10782 = vmatmul.mubr.msk.bf16.vlgmr.msra.gmra.mrb[212].mxu1 %vm3249_vm8, %v14215_v56 }
0x1817   :  { %8237 = vmatpush1.bf16.msra.mxu1 %v14207_v60  ;;  %8268 = vmatprep.mubr.bf16.mxu1 %v14998_v24 }
0x1818   :  { %8394 = vmatprep.subr.bf16.mxu1 %v14998_v24 }
0x181e   :  { %10784 = vmatmul.mubr.msk.bf16.vlgmr.msra.gmra.mrb[216].mxu1 %vm3249_vm8, %v10783_v20  ;;  %v14446_v20 = vld [vmem:[%s14899_s8 + $0x190] sm:$0xff]  }
0x181f   :  { %8395 = vmatpush1.bf16.msra.mxu1 %v14229_v36  ;;  %15052 = vst [vmem:[#allocation23_spill] sm:$0xff] %v14446_v20 }
0x1820   :  { %8396 = vmatprep.subr.bf16.mxu1 %v14998_v24 }
0x1823   :  { %8397 = vmatpush1.bf16.msra.mxu1 %v14236_v1 }
0x1824   :  { %8398 = vmatprep.subr.bf16.mxu1 %v14998_v24 }
0x1827   :  { %8399 = vmatpush1.bf16.msra.mxu1 %v14243_v31 }
0x1828   :  { %8400 = vmatprep.subr.bf16.mxu1 %v14998_v24 }
0x182b   :  { %8401 = vmatpush1.bf16.msra.mxu1 %v14250_v52 }
0x182c   :  { %8402 = vmatprep.subr.bf16.mxu1 %v14998_v24 }
0x182f   :  { %8403 = vmatpush1.bf16.msra.mxu1 %v14257_v19 }
0x1830   :  { %8404 = vmatprep.subr.bf16.mxu1 %v14998_v24 }
0x1833   :  { %8405 = vmatpush1.bf16.msra.mxu1 %v14264_v7 }
0x1834   :  { %8406 = vmatprep.subr.bf16.mxu1 %v14998_v24 }
0x1837   :  { %8407 = vmatpush1.bf16.msra.mxu1 %v14271_v58 }
0x1838   :  { %8408 = vmatprep.subr.bf16.mxu1 %v14998_v24 }
0x183b   :  { %8409 = vmatpush1.bf16.msra.mxu1 %v14278_v21 }
0x183c   :  { %8410 = vmatprep.subr.bf16.mxu1 %v14998_v24 }
0x183f   :  { %8411 = vmatpush1.bf16.msra.mxu1 %v14285_v3 }
0x1840   :  { %8412 = vmatprep.subr.bf16.mxu1 %v14998_v24 }
0x1843   :  { %8413 = vmatpush1.bf16.msra.mxu1 %v14292_v46 }
0x1844   :  { %8414 = vmatprep.subr.bf16.mxu1 %v14998_v24 }
0x1847   :  { %8415 = vmatpush1.bf16.msra.mxu1 %v14299_v49 }
0x1848   :  { %8416 = vmatprep.subr.bf16.mxu1 %v14998_v24 }
0x184b   :  { %8417 = vmatpush1.bf16.msra.mxu1 %v14306_v45 }
0x184c   :  { %8418 = vmatprep.subr.bf16.mxu1 %v14998_v24 }
0x184f   :  { %8419 = vmatpush1.bf16.msra.mxu1 %v14313_v50 }
0x1850   :  { %8420 = vmatprep.subr.bf16.mxu1 %v14998_v24 }
0x1853   :  { %8421 = vmatpush1.bf16.msra.mxu1 %v14320_v16 }
0x1854   :  { %8565 = vmatprep.subr.bf16.mxu1 %v14204_v26 }
0x18e9   :  { %v8195_v28 = vpop.f32.mrb[212].mxu1 }
0x18ea   :  { %v8197_v30 = vpop.f32.mrb[213].mxu1  ;;  %v8202_v33 = vpack.c.bf16 %v8195_v28, %v8195_v28  ;;  %v14453_v28 = vld [vmem:[%s14899_s8 + $0x118] sm:$0xff]  }
0x18eb   :  { %v8203_v43 = vpack.c.bf16 %v8197_v30, %v8197_v30  ;;  %v8199_v18 = vpop.f32.mrb[214].mxu1  ;;  %v14460_v30 = vld [vmem:[%s14899_s8 + $0x198] sm:$0xff]  }
0x18ec   :  { %v8200_v32 = vpop.f32.mrb[215].mxu1  ;;  %15053 = vst [vmem:[#allocation16_spill] sm:$0xff] %v14460_v30  ;;  %v14474_v18 = vld [vmem:[%s14899_s8 + $0x1a0] sm:$0xff]  }
0x18ed   :  { %10842 = vmatprep.mubr.msk.bf16.mxu0 %vm3494_vm9, %v8203_v43  ;;  %v14467_v43 = vld [vmem:[%s14899_s8 + $0x120] sm:$0xff]   ;;  %15054 = vst [vmem:[#allocation24_spill] sm:$0xff] %v14474_v18  ;;  %v14488_v32 = vld [vmem:[%s14899_s8 + $0x1a8] sm:$0xff]  }
0x18ee   :  { %8554 = vmatmul.mubr.bf16.vlgmr.msra.gmra.mrb[164].mxu0 %v8202_v33  ;;  %v14481_v33 = vld [vmem:[%s14899_s8 + $0x128] sm:$0xff]   ;;  %15055 = vst [vmem:[#allocation17_spill] sm:$0xff] %v14488_v32 }
0x18ef   :  { %8769 = vmatpush1.bf16.msra.mxu0 %v14207_v60  ;;  %8800 = vmatprep.mubr.bf16.mxu0 %v14998_v24 }
0x18f0   :  { %8926 = vmatprep.subr.bf16.mxu0 %v14998_v24 }
0x18f1   :  { %v8270_v62 = vpop.f32.mrb[216].mxu1 }
0x18f2   :  { %v8272_v47 = vpop.f32.mrb[217].mxu1  ;;  %v8277_v8 = vpack.c.bf16 %v8270_v62, %v8270_v62  ;;  %v14495_v62 = vld [vmem:[%s14899_s8 + $0x130] sm:$0xff]  }
0x18f3   :  { %v8278_v5 = vpack.c.bf16 %v8272_v47, %v8272_v47  ;;  %v8274_v6 = vpop.f32.mrb[218].mxu1  ;;  %15056 = vst [vmem:[#allocation18_spill] sm:$0xff] %v14495_v62  ;;  %v14504_v47 = vld [vmem:[%s14899_s8 + $0x138] sm:$0xff]  }
0x18f4   :  { %v8275_v9 = vpop.f32.mrb[219].mxu1  ;;  %15057 = vst [vmem:[#allocation19_spill] sm:$0xff] %v14504_v47  ;;  %v14526_v6 = vld [vmem:[%s14899_s8 + $0x1b0] sm:$0xff]  }
0x18f5   :  { %10827 = vmatprep.mubr.msk.bf16.mxu1 %vm3494_vm9, %v8278_v5  ;;  %v14511_v5 = vld [vmem:[%s14899_s8 + $0x140] sm:$0xff]   ;;  %15060 = vst [vmem:[#allocation26_spill] sm:$0xff] %v14526_v6 }
0x18f6   :  { %8427 = vmatmul.mubr.bf16.vlgmr.msra.gmra.mrb[220].mxu1 %v8277_v8  ;;  %10889 = vmatmul.mubr.msk.bf16.vlgmr.msra.gmra.mrb[168].mxu0 %vm3249_vm8, %v10888_v55  ;;  %15058 = vst [vmem:[#allocation20_spill] sm:$0xff] %v14511_v5  ;;  %v14518_v55 = vld [vmem:[%s14899_s8 + $0x148] sm:$0xff]   ;;  %v14533_v8 = vld [vmem:[%s14899_s8 + $0x1b8] sm:$0xff]  }
0x18f7   :  { %8566 = vmatpush1.bf16.msra.mxu1 %v14207_v60  ;;  %8597 = vmatprep.mubr.bf16.mxu1 %v14998_v24  ;;  %15059 = vst [vmem:[#allocation25_spill] sm:$0xff] %v14518_v55  ;;  %15061 = vst [vmem:[#allocation27_spill] sm:$0xff] %v14533_v8 }
0x18f8   :  { %8723 = vmatprep.subr.bf16.mxu1 %v14998_v24  ;;  %8927 = vmatpush1.bf16.msra.mxu0 %v14335_v57 }
0x18f9   :  { %8928 = vmatprep.subr.bf16.mxu0 %v14998_v24 }
0x18fc   :  { %8929 = vmatpush1.bf16.msra.mxu0 %v14346_v29 }
0x18fd   :  { %8930 = vmatprep.subr.bf16.mxu0 %v14998_v24 }
0x18fe   :  { %10844 = vmatmul.mubr.msk.bf16.vlgmr.msra.gmra.mrb[224].mxu1 %vm3249_vm8, %v10843_v11 }
0x18ff   :  { %8724 = vmatpush1.bf16.msra.mxu1 %v14355_v12 }
0x1900   :  { %8725 = vmatprep.subr.bf16.mxu1 %v14998_v24  ;;  %8931 = vmatpush1.bf16.msra.mxu0 %v14361_v13 }
0x1901   :  { %8932 = vmatprep.subr.bf16.mxu0 %v14998_v24 }
0x1903   :  { %8726 = vmatpush1.bf16.msra.mxu1 %v14369_v61 }
0x1904   :  { %8727 = vmatprep.subr.bf16.mxu1 %v14998_v24  ;;  %8933 = vmatpush1.bf16.msra.mxu0 %v14376_v54 }
0x1905   :  { %8934 = vmatprep.subr.bf16.mxu0 %v14998_v24 }
0x1907   :  { %8728 = vmatpush1.bf16.msra.mxu1 %v14383_v63 }
0x1908   :  { %8729 = vmatprep.subr.bf16.mxu1 %v14998_v24  ;;  %8935 = vmatpush1.bf16.msra.mxu0 %v14390_v2 }
0x1909   :  { %8936 = vmatprep.subr.bf16.mxu0 %v14998_v24 }
0x190b   :  { %8730 = vmatpush1.bf16.msra.mxu1 %v14397_v25 }
0x190c   :  { %8731 = vmatprep.subr.bf16.mxu1 %v14998_v24  ;;  %8937 = vmatpush1.bf16.msra.mxu0 %v14404_v41  ;;  %v12323_v41 = vld [vmem:[%s14901_s10] sm:$0xff]  }
0x190d   :  { %8938 = vmatprep.subr.bf16.mxu0 %v14998_v24 }
0x190f   :  { %8732 = vmatpush1.bf16.msra.mxu1 %v14411_v48 }
0x1910   :  { %8733 = vmatprep.subr.bf16.mxu1 %v14998_v24  ;;  %8939 = vmatpush1.bf16.msra.mxu0 %v14418_v0 }
0x1911   :  { %8940 = vmatprep.subr.bf16.mxu0 %v14998_v24 }
0x1913   :  { %8734 = vmatpush1.bf16.msra.mxu1 %v14425_v44 }
0x1914   :  { %8735 = vmatprep.subr.bf16.mxu1 %v14998_v24  ;;  %8941 = vmatpush1.bf16.msra.mxu0 %v14432_v14 }
0x1915   :  { %8942 = vmatprep.subr.bf16.mxu0 %v14998_v24 }
0x1917   :  { %8736 = vmatpush1.bf16.msra.mxu1 %v14439_v51 }
0x1918   :  { %8737 = vmatprep.subr.bf16.mxu1 %v14998_v24  ;;  %8943 = vmatpush1.bf16.msra.mxu0 %v14446_v20 }
0x1919   :  { %8944 = vmatprep.subr.bf16.mxu0 %v14998_v24 }
0x191b   :  { %8738 = vmatpush1.bf16.msra.mxu1 %v14453_v28 }
0x191c   :  { %8739 = vmatprep.subr.bf16.mxu1 %v14998_v24  ;;  %8945 = vmatpush1.bf16.msra.mxu0 %v14460_v30 }
0x191d   :  { %8946 = vmatprep.subr.bf16.mxu0 %v14998_v24 }
0x191f   :  { %8740 = vmatpush1.bf16.msra.mxu1 %v14467_v43 }
0x1920   :  { %8741 = vmatprep.subr.bf16.mxu1 %v14998_v24  ;;  %8947 = vmatpush1.bf16.msra.mxu0 %v14474_v18 }
0x1921   :  { %8948 = vmatprep.subr.bf16.mxu0 %v14998_v24 }
0x1923   :  { %8742 = vmatpush1.bf16.msra.mxu1 %v14481_v33 }
0x1924   :  { %8743 = vmatprep.subr.bf16.mxu1 %v14998_v24  ;;  %8949 = vmatpush1.bf16.msra.mxu0 %v14488_v32 }
0x1925   :  { %8950 = vmatprep.subr.bf16.mxu0 %v14998_v24 }
0x1927   :  { %8744 = vmatpush1.bf16.msra.mxu1 %v14495_v62 }
0x1928   :  { %8745 = vmatprep.subr.bf16.mxu1 %v14998_v24  ;;  %8951 = vmatpush1.bf16.msra.mxu0 %v14526_v6 }
0x1929   :  { %8952 = vmatprep.subr.bf16.mxu0 %v14998_v24 }
0x192b   :  { %8746 = vmatpush1.bf16.msra.mxu1 %v14504_v47 }
0x192c   :  { %8747 = vmatprep.subr.bf16.mxu1 %v14998_v24  ;;  %8953 = vmatpush1.bf16.msra.mxu0 %v14533_v8 }
0x192d   :  { %11468 = vmatprep.subr.bf16.mxu0 %v15041_v59 }
0x192f   :  { %8748 = vmatpush1.bf16.msra.mxu1 %v14511_v5 }
0x1930   :  { %8749 = vmatprep.subr.bf16.mxu1 %v14998_v24 }
0x1933   :  { %8750 = vmatpush1.bf16.msra.mxu1 %v14518_v55 }
0x1934   :  { %8971 = vmatprep.subr.bf16.mxu1 %v14204_v26 }
0x19c1   :  { %v8555_v9 = vpop.f32.mrb[164].mxu0 }
0x19c2   :  { %v8557_v11 = vpop.f32.mrb[165].mxu0 }
0x19c3   :  { %v8558_v32 = vpop.f32.mrb[166].mxu0  ;;  %v14596_v11 = vld [vmem:[%s14899_s8 + $0x1e0] sm:$0xff]  }
0x19c4   :  { %v8559_v18 = vpop.f32.mrb[167].mxu0  ;;  %15066 = vst [vmem:[#allocation31_spill] sm:$0xff] %v14596_v11 }
0x19c9   :  { %v8428_v30 = vpop.f32.mrb[220].mxu1  ;;  %v8802_v20 = vpop.f32.mrb[168].mxu0 }
0x19ca   :  { %v14537_v14 = vadd.f32 %v8555_v9, %v8428_v30  ;;  %v8809_v6 = vpack.c.bf16 %v8802_v20, %v8802_v20  ;;  %v8804_v55 = vpop.f32.mrb[169].mxu0  ;;  %v8430_v0 = vpop.f32.mrb[221].mxu1  ;;  %v12324_v30 = vld [vmem:[%s14901_s10 + $0x8] sm:$0xff]   ;;  %v14589_v9 = vld [vmem:[%s14899_s8 + $0x1d8] sm:$0xff]  }
0x19cb   :  { %v8810_v5 = vpack.c.bf16 %v8804_v55, %v8804_v55  ;;  %v8431_v47 = vpop.f32.mrb[222].mxu1  ;;  %v8806_v8 = vpop.f32.mrb[170].mxu0  ;;  %v14567_v55 = vld [vmem:[%s14899_s8 + $0x1c0] sm:$0xff]   ;;  %15065 = vst [vmem:[#allocation30_spill] sm:$0xff] %v14589_v9 }
0x19cc   :  { %v8432_v2 = vpop.f32.mrb[223].mxu1  ;;  %v8807_v62 = vpop.f32.mrb[171].mxu0  ;;  %v12326_v47 = vld [vmem:[%s14901_s10 + $0x18] sm:$0xff]   ;;  %15062 = vst [vmem:[#allocation8_spill] sm:$0xff] %v14567_v55  ;;  %v14582_v8 = vld [vmem:[%s14899_s8 + $0x1d0] sm:$0xff]  }
0x19cd   :  { %10932 = vmatprep.mubr.msk.bf16.mxu0 %vm3494_vm9, %v8810_v5  ;;  %v12325_v2 = vld [vmem:[%s14901_s10 + $0x10] sm:$0xff]   ;;  %v10933_v5 = vld [vmem:[%s14898_s7 + $0x4] sm:$0x1]  ;;  %15064 = vst [vmem:[#allocation29_spill] sm:$0xff] %v14582_v8 }
0x19ce   :  { %8959 = vmatmul.mubr.bf16.vlgmr.msra.gmra.mrb[172].mxu0 %v8809_v6  ;;  %v14575_v6 = vld [vmem:[%s14899_s8 + $0x1c8] sm:$0xff]  }
0x19cf   :  { %11469 = vmatpush3.bf16.msra.mxu0 %v12323_v41  ;;  %11476 = vmatprep.mubr.msk.bf16.mxu0 %vm12401_vm5, %v15041_v59  ;;  %15063 = vst [vmem:[#allocation28_spill] sm:$0xff] %v14575_v6 }
0x19d0   :  { %11470 = vmatprep.subr.bf16.mxu0 %v15041_v59 }
0x19d1   :  { %v8599_v0 = vpop.f32.mrb[224].mxu1 }
0x19d2   :  { %v8601_v20 = vpop.f32.mrb[225].mxu1  ;;  %v8606_v62 = vpack.c.bf16 %v8599_v0, %v8599_v0  ;;  %v14610_v0 = vld [vmem:[%s14899_s8 + $0x1f0] sm:$0xff]  }
0x19d3   :  { %v8607_v18 = vpack.c.bf16 %v8601_v20, %v8601_v20  ;;  %11471 = vmatpush3.bf16.msra.mxu0 %v12324_v30  ;;  %v8603_v32 = vpop.f32.mrb[226].mxu1  ;;  %v14603_v30 = vld [vmem:[%s14899_s8 + $0x1e8] sm:$0xff]   ;;  %15068 = vst [vmem:[#allocation33_spill] sm:$0xff] %v14610_v0  ;;  %v14617_v20 = vld [vmem:[%s14899_s8 + $0x1f8] sm:$0xff]  }
0x19d4   :  { %11472 = vmatprep.subr.bf16.mxu0 %v15041_v59  ;;  %v8604_v41 = vpop.f32.mrb[227].mxu1  ;;  %15067 = vst [vmem:[#allocation32_spill] sm:$0xff] %v14603_v30  ;;  %15069 = vst [vmem:[#allocation34_spill] sm:$0xff] %v14617_v20  ;;  %v14638_v32 = vld [vmem:[%s14899_s8 + $0x210] sm:$0xff]  }
0x19d5   :  { %10887 = vmatprep.mubr.msk.bf16.mxu1 %vm3494_vm9, %v8607_v18  ;;  %v14624_v18 = vld [vmem:[%s14899_s8 + $0x200] sm:$0xff]   ;;  %15072 = vst [vmem:[#allocation37_spill] sm:$0xff] %v14638_v32 }
0x19d6   :  { %8756 = vmatmul.mubr.bf16.vlgmr.msra.gmra.mrb[228].mxu1 %v8606_v62  ;;  %15070 = vst [vmem:[#allocation35_spill] sm:$0xff] %v14624_v18  ;;  %v14646_v62 = vld [vmem:[%s14899_s8 + $0x218] sm:$0xff]   ;;  %v14653_v41 = vld [vmem:[%s14899_s8 + $0x220] sm:$0xff]  }
0x19d7   :  { %8972 = vmatpush1.bf16.msra.mxu1 %v14207_v60  ;;  %11473 = vmatpush3.bf16.msra.mxu0 %v12325_v2  ;;  %v14631_v2 = vld [vmem:[%s14899_s8 + $0x208] sm:$0xff]   ;;  %15073 = vst [vmem:[#allocation38_spill] sm:$0xff] %v14646_v62  ;;  %15074 = vst [vmem:[#allocation39_spill] sm:$0xff] %v14653_v41 }
0x19d8   :  { %11474 = vmatprep.subr.bf16.mxu0 %v15041_v59  ;;  %9003 = vmatprep.mubr.bf16.mxu1 %v14998_v24  ;;  %15071 = vst [vmem:[#allocation36_spill] sm:$0xff] %v14631_v2 }
0x19d9   :  { %9129 = vmatprep.subr.bf16.mxu1 %v14998_v24 }
0x19db   :  { %11475 = vmatpush3.bf16.msra.mxu0 %v12326_v47  ;;  %v14660_v47 = vld [vmem:[%s14899_s8 + $0x228] sm:$0xff]  }
0x19dc   :  { %9271 = vmatprep.subr.bf16.mxu0 %v14204_v26 }
0x19de   :  { %10934 = vmatmul.mubr.msk.bf16.vlgmr.msra.gmra.mrb[232].mxu1 %vm3249_vm8, %v10933_v5 }
0x19df   :  { %9130 = vmatpush1.bf16.msra.mxu1 %v14567_v55 }
0x19e0   :  { %9131 = vmatprep.subr.bf16.mxu1 %v14998_v24 }
0x19e3   :  { %9132 = vmatpush1.bf16.msra.mxu1 %v14575_v6 }
0x19e4   :  { %9133 = vmatprep.subr.bf16.mxu1 %v14998_v24 }
0x19e7   :  { %9134 = vmatpush1.bf16.msra.mxu1 %v14582_v8 }
0x19e8   :  { %9135 = vmatprep.subr.bf16.mxu1 %v14998_v24 }
0x19eb   :  { %9136 = vmatpush1.bf16.msra.mxu1 %v14589_v9 }
0x19ec   :  { %9137 = vmatprep.subr.bf16.mxu1 %v14998_v24 }
0x19ef   :  { %9138 = vmatpush1.bf16.msra.mxu1 %v14596_v11 }
0x19f0   :  { %9139 = vmatprep.subr.bf16.mxu1 %v14998_v24 }
0x19f3   :  { %9140 = vmatpush1.bf16.msra.mxu1 %v14603_v30 }
0x19f4   :  { %9141 = vmatprep.subr.bf16.mxu1 %v14998_v24 }
0x19f7   :  { %9142 = vmatpush1.bf16.msra.mxu1 %v14610_v0 }
0x19f8   :  { %9143 = vmatprep.subr.bf16.mxu1 %v14998_v24 }
0x19fb   :  { %9144 = vmatpush1.bf16.msra.mxu1 %v14617_v20 }
0x19fc   :  { %9145 = vmatprep.subr.bf16.mxu1 %v14998_v24 }
0x19ff   :  { %9146 = vmatpush1.bf16.msra.mxu1 %v14624_v18 }
0x1a00   :  { %9147 = vmatprep.subr.bf16.mxu1 %v14998_v24 }
0x1a03   :  { %9148 = vmatpush1.bf16.msra.mxu1 %v14631_v2 }
0x1a04   :  { %9149 = vmatprep.subr.bf16.mxu1 %v14998_v24 }
0x1a07   :  { %9150 = vmatpush1.bf16.msra.mxu1 %v14638_v32 }
0x1a08   :  { %9151 = vmatprep.subr.bf16.mxu1 %v14998_v24 }
0x1a0b   :  { %9152 = vmatpush1.bf16.msra.mxu1 %v14646_v62 }
0x1a0c   :  { %9153 = vmatprep.subr.bf16.mxu1 %v14998_v24 }
0x1a0f   :  { %9154 = vmatpush1.bf16.msra.mxu1 %v14653_v41 }
0x1a10   :  { %9155 = vmatprep.subr.bf16.mxu1 %v14998_v24 }
0x1a13   :  { %9156 = vmatpush1.bf16.msra.mxu1 %v14660_v47 }
0x1a14   :  { %9382 = vmatprep.subr.bf16.mxu1 %v14998_v24 }
0x1aa1   :  { %v8960_v5 = vpop.f32.mrb[172].mxu0 }
0x1aa2   :  { %v8962_v59 = vpop.f32.mrb[173].mxu0 }
0x1aa3   :  { %v8963_v62 = vpop.f32.mrb[174].mxu0 }
0x1aa4   :  { %v8964_v32 = vpop.f32.mrb[175].mxu0 }
0x1aa9   :  { %v8757_v2 = vpop.f32.mrb[228].mxu1 }
0x1aaa   :  { %v8763_v18 = vadd.f32 %v8757_v2, %v14537_v14  ;;  %v8759_v20 = vpop.f32.mrb[229].mxu1  ;;  %v15082_v14 = vld [vmem:[#allocation25_spill] sm:$0xff] }
0x1aab   :  { %v8760_v41 = vpop.f32.mrb[230].mxu1 }
0x1aac   :  { %v8966_v0 = vadd.f32 %v8960_v5, %v8763_v18  ;;  %v8761_v30 = vpop.f32.mrb[231].mxu1 }
0x1ab1   :  { %v9005_v11 = vpop.f32.mrb[232].mxu1 }
0x1ab2   :  { %v9007_v9 = vpop.f32.mrb[233].mxu1  ;;  %v9012_v55 = vpack.c.bf16 %v9005_v11, %v9005_v11 }
0x1ab3   :  { %v9013_v8 = vpack.c.bf16 %v9007_v9, %v9007_v9  ;;  %v9009_v6 = vpop.f32.mrb[234].mxu1 }
0x1ab4   :  { %v9010_v54 = vpop.f32.mrb[235].mxu1  ;;  %v15088_v6 = vld [vmem:[#allocation26_spill] sm:$0xff] }
0x1ab5   :  { %10977 = vmatprep.mubr.msk.bf16.mxu1 %vm3494_vm9, %v9013_v8 }
0x1ab6   :  { %9162 = vmatmul.mubr.bf16.vlgmr.msra.gmra.mrb[236].mxu1 %v9012_v55  ;;  %v15087_v55 = vld [vmem:[#allocation17_spill] sm:$0xff] }
0x1ab7   :  { %9383 = vmatpush1.bf16.msra.mxu1 %v14229_v36  ;;  %v14697_v36 = vld [vmem:[%s14900_s9] sm:$0x1] }
0x1ab8   :  { %9384 = vmatprep.subr.bf16.mxu1 %v14998_v24 }
0x1abb   :  { %9385 = vmatpush1.bf16.msra.mxu1 %v14236_v1 }
0x1abc   :  { %9386 = vmatprep.subr.bf16.mxu1 %v14998_v24 }
0x1abf   :  { %9387 = vmatpush1.bf16.msra.mxu1 %v14243_v31 }
0x1ac0   :  { %9388 = vmatprep.subr.bf16.mxu1 %v14998_v24 }
0x1ac3   :  { %9389 = vmatpush1.bf16.msra.mxu1 %v14250_v52 }
0x1ac4   :  { %9390 = vmatprep.subr.bf16.mxu1 %v14998_v24 }
0x1ac7   :  { %9391 = vmatpush1.bf16.msra.mxu1 %v14257_v19 }
0x1ac8   :  { %9392 = vmatprep.subr.bf16.mxu1 %v14998_v24 }
0x1acb   :  { %9393 = vmatpush1.bf16.msra.mxu1 %v14264_v7 }
0x1acc   :  { %9394 = vmatprep.subr.bf16.mxu1 %v14998_v24 }
0x1acf   :  { %9395 = vmatpush1.bf16.msra.mxu1 %v14271_v58  ;;  %v9257_v58 = vrot.slane %v14215_v56, %v13507_v10 }
0x1ad0   :  { %9396 = vmatprep.subr.bf16.mxu1 %v14998_v24 }
0x1ad3   :  { %9397 = vmatpush1.bf16.msra.mxu1 %v14278_v21 }
0x1ad4   :  { %9398 = vmatprep.subr.bf16.mxu1 %v14998_v24 }
0x1ad7   :  { %9399 = vmatpush1.bf16.msra.mxu1 %v14285_v3 }
0x1ad8   :  { %9400 = vmatprep.subr.bf16.mxu1 %v14998_v24 }
0x1adb   :  { %9401 = vmatpush1.bf16.msra.mxu1 %v14292_v46  ;;  %v9264_v46 = vrot.slane %v9257_v58, %v13507_v10 }
0x1adc   :  { %9402 = vmatprep.subr.bf16.mxu1 %v14998_v24 }
0x1adf   :  { %9403 = vmatpush1.bf16.msra.mxu1 %v14299_v49  ;;  %v9266_v49 = vshrl.u32 %v9264_v46, 16 }
0x1ae0   :  { %9404 = vmatprep.subr.bf16.mxu1 %v14998_v24 }
0x1ae3   :  { %9405 = vmatpush1.bf16.msra.mxu1 %v14306_v45  ;;  %v10985_v45 = vld.sshfl [vmem:[%s14898_s7 + $0x1] sm:$0x1 pattern:$0x75316420] }
0x1ae4   :  { %9406 = vmatprep.subr.bf16.mxu1 %v14998_v24  ;;  %v9329_v56 = vrot.slane %v10985_v45, %v13507_v10 }
0x1ae7   :  { %9407 = vmatpush1.bf16.msra.mxu1 %v14313_v50  ;;  %v9331_v50 = vshrl.u32 %v9329_v56, 16  ;;  %v15090_v56 = vld [vmem:[#allocation8_spill] sm:$0xff] }
0x1ae8   :  { %9408 = vmatprep.subr.bf16.mxu1 %v14998_v24 }
0x1aeb   :  { %9409 = vmatpush1.bf16.msra.mxu1 %v14320_v16 }
0x1aec   :  { %9487 = vmatprep.subr.bf16.mxu1 %v14204_v26 }
0x1b89   :  { %v9163_v59 = vpop.f32.mrb[236].mxu1 }
0x1b8a   :  { %v9169_v1 = vadd.f32 %v9163_v59, %v8966_v0  ;;  %v9165_v31 = vpop.f32.mrb[237].mxu1 }
0x1b8b   :  { %v9166_v52 = vpop.f32.mrb[238].mxu1 }
0x1b8c   :  { %v9171_v19 = vadd.f32 %v14697_v36, %v9169_v1  ;;  %v9167_v7 = vpop.f32.mrb[239].mxu1  ;;  %v10998_v1 = vld.sshfl [vmem:[%s14898_s7 + $0x4] sm:$0x1 pattern:$0x75316420] }
0x1b8e   :  { %v9172_v21 = vmax.f32 %v9171_v19, 0.0  ;;  %v9698_v19 = vrot.slane %v10998_v1, %v13507_v10 }
0x1b90   :  { %v9173_v3 = vpack.c.bf16 %v9172_v21, %v9172_v21 }
0x1b92   :  { %11477 = vmatmul.mubr.msk.bf16.vlgmr.msra.gmra.mrb[176].mxu0 %vm4316_vm10, %v9173_v3  ;;  %v9700_v3 = vshrl.u32 %v9698_v19, 16 }
0x1b93   :  { %9272 = vmatpush1.bf16.msra.mxu0 %v14207_v60  ;;  %9303 = vmatprep.mubr.bf16.mxu0 %v14998_v24 }
0x1b94   :  { %9336 = vmatprep.subr.bf16.mxu0 %v14204_v26 }
0x1b9a   :  { %10983 = vmatmul.mubr.msk.bf16.vlgmr.msra.gmra.mrb[180].mxu0 %vm3249_vm8, %v9266_v49 }
0x1b9b   :  { %9337 = vmatpush1.bf16.msra.mxu0 %v14207_v60  ;;  %9368 = vmatprep.mubr.bf16.mxu0 %v14998_v24 }
0x1b9c   :  { %9425 = vmatprep.subr.bf16.mxu0 %v14998_v24 }
0x1ba2   :  { %10986 = vmatmul.mubr.msk.bf16.vlgmr.msra.gmra.mrb[184].mxu0 %vm3249_vm8, %v9331_v50  ;;  %v15093_v50 = vld [vmem:[#allocation30_spill] sm:$0xff] }
0x1ba3   :  { %9426 = vmatpush1.bf16.msra.mxu0 %v14100_v23 }
0x1ba4   :  { %9427 = vmatprep.subr.bf16.mxu0 %v14998_v24 }
0x1ba7   :  { %9428 = vmatpush1.bf16.msra.mxu0 %v14106_v15 }
0x1ba8   :  { %9429 = vmatprep.subr.bf16.mxu0 %v14998_v24 }
0x1bab   :  { %9430 = vmatpush1.bf16.msra.mxu0 %v14113_v38 }
0x1bac   :  { %9431 = vmatprep.subr.bf16.mxu0 %v14998_v24 }
0x1baf   :  { %9432 = vmatpush1.bf16.msra.mxu0 %v14122_v27 }
0x1bb0   :  { %9433 = vmatprep.subr.bf16.mxu0 %v14998_v24 }
0x1bb3   :  { %9434 = vmatpush1.bf16.msra.mxu0 %v14129_v17 }
0x1bb4   :  { %9435 = vmatprep.subr.bf16.mxu0 %v14998_v24 }
0x1bb7   :  { %9436 = vmatpush1.bf16.msra.mxu0 %v14136_v35 }
0x1bb8   :  { %9437 = vmatprep.subr.bf16.mxu0 %v14998_v24 }
0x1bbb   :  { %9438 = vmatpush1.bf16.msra.mxu0 %v14143_v34 }
0x1bbc   :  { %9439 = vmatprep.subr.bf16.mxu0 %v14998_v24 }
0x1bbf   :  { %9440 = vmatpush1.bf16.msra.mxu0 %v14150_v37 }
0x1bc0   :  { %9441 = vmatprep.subr.bf16.mxu0 %v14998_v24 }
0x1bc3   :  { %9442 = vmatpush1.bf16.msra.mxu0 %v14157_v22 }
0x1bc4   :  { %9443 = vmatprep.subr.bf16.mxu0 %v14998_v24 }
0x1bc7   :  { %9444 = vmatpush1.bf16.msra.mxu0 %v14165_v42 }
0x1bc8   :  { %9445 = vmatprep.subr.bf16.mxu0 %v14998_v24 }
0x1bcb   :  { %9446 = vmatpush1.bf16.msra.mxu0 %v14172_v4  ;;  %v10990_v4 = vld.sshfl [vmem:[%s14898_s7 + $0x2] sm:$0x1 pattern:$0x75316420] }
0x1bcc   :  { %9447 = vmatprep.subr.bf16.mxu0 %v14998_v24 }
0x1bcf   :  { %9448 = vmatpush1.bf16.msra.mxu0 %v14179_v53 }
0x1bd0   :  { %9449 = vmatprep.subr.bf16.mxu0 %v14998_v24 }
0x1bd3   :  { %9450 = vmatpush1.bf16.msra.mxu0 %v14186_v39 }
0x1bd4   :  { %9451 = vmatprep.subr.bf16.mxu0 %v14998_v24 }
0x1bd7   :  { %9452 = vmatpush1.bf16.msra.mxu0 %v14193_v40  ;;  %v9480_v40 = vrot.slane %v10990_v4, %v13507_v10 }
0x1bd8   :  { %9533 = vmatprep.subr.bf16.mxu0 %v14998_v24 }
0x1bd9   :  { %v9482_v16 = vshrl.u32 %v9480_v40, 16 }
0x1c6d   :  { %v9305_v23 = vpop.f32.mrb[180].mxu0 }
0x1c6e   :  { %v9307_v15 = vpop.f32.mrb[181].mxu0  ;;  %v9312_v17 = vpack.c.bf16 %v9305_v23, %v9305_v23  ;;  %v15094_v23 = vld [vmem:[#allocation31_spill] sm:$0xff] }
0x1c6f   :  { %v9313_v38 = vpack.c.bf16 %v9307_v15, %v9307_v15  ;;  %v9309_v27 = vpop.f32.mrb[182].mxu0  ;;  %v15095_v15 = vld [vmem:[#allocation32_spill] sm:$0xff] }
0x1c70   :  { %v9310_v35 = vpop.f32.mrb[183].mxu0  ;;  %v15097_v27 = vld [vmem:[#allocation34_spill] sm:$0xff] }
0x1c71   :  { %10988 = vmatprep.mubr.msk.bf16.mxu0 %vm3494_vm9, %v9313_v38  ;;  %v15096_v38 = vld [vmem:[#allocation33_spill] sm:$0xff]  ;;  %v15099_v35 = vld [vmem:[#allocation36_spill] sm:$0xff] }
0x1c72   :  { %9458 = vmatmul.mubr.bf16.vlgmr.msra.gmra.mrb[188].mxu0 %v9312_v17  ;;  %v15098_v17 = vld [vmem:[#allocation35_spill] sm:$0xff] }
0x1c73   :  { %9534 = vmatpush1.bf16.msra.mxu0 %v14355_v12  ;;  %v10994_v12 = vld.sshfl [vmem:[%s14898_s7 + $0x3] sm:$0x1 pattern:$0x75316420] }
0x1c74   :  { %9535 = vmatprep.subr.bf16.mxu0 %v14998_v24 }
0x1c75   :  { %v9370_v34 = vpop.f32.mrb[184].mxu0 }
0x1c76   :  { %v9372_v37 = vpop.f32.mrb[185].mxu0  ;;  %v9377_v53 = vpack.c.bf16 %v9370_v34, %v9370_v34  ;;  %v15100_v34 = vld [vmem:[#allocation37_spill] sm:$0xff] }
0x1c77   :  { %v9378_v22 = vpack.c.bf16 %v9372_v37, %v9372_v37  ;;  %9536 = vmatpush1.bf16.msra.mxu0 %v14369_v61  ;;  %v9374_v42 = vpop.f32.mrb[186].mxu0  ;;  %v9589_v61 = vrot.slane %v10994_v12, %v13507_v10  ;;  %v15091_v10 = vld [vmem:[#allocation28_spill] sm:$0xff]  ;;  %v15101_v37 = vld [vmem:[#allocation38_spill] sm:$0xff] }
0x1c78   :  { %9537 = vmatprep.subr.bf16.mxu0 %v14998_v24  ;;  %v9375_v39 = vpop.f32.mrb[187].mxu0  ;;  %v15103_v42 = vmov 0.0  }
0x1c79   :  { %10987 = vmatprep.mubr.msk.bf16.mxu1 %vm3494_vm9, %v9378_v22  ;;  %v9591_v54 = vshrl.u32 %v9589_v61, 16  ;;  %v15102_v22 = vld [vmem:[#allocation39_spill] sm:$0xff] }
0x1c7a   :  { %9415 = vmatmul.mubr.bf16.vlgmr.msra.gmra.mrb[240].mxu1 %v9377_v53 }
0x1c7b   :  { %9488 = vmatpush1.bf16.msra.mxu1 %v14207_v60  ;;  %9538 = vmatpush1.bf16.msra.mxu0 %v14383_v63  ;;  %v15077_v63 = vld [vmem:[#allocation21_spill] sm:$0xff] }
0x1c7c   :  { %9596 = vmatprep.subr.bf16.mxu1 %v14204_v26  ;;  %9539 = vmatprep.subr.bf16.mxu0 %v14998_v24 }
0x1c7d   :  { %9519 = vmatprep.mubr.bf16.mxu1 %v14998_v24 }
0x1c7f   :  { %9540 = vmatpush1.bf16.msra.mxu0 %v14397_v25  ;;  %v15079_v25 = vld [vmem:[#allocation14_spill] sm:$0xff] }
0x1c80   :  { %9541 = vmatprep.subr.bf16.mxu0 %v14998_v24 }
0x1c82   :  { %10991 = vmatmul.mubr.msk.bf16.vlgmr.msra.gmra.mrb[244].mxu1 %vm3249_vm8, %v9482_v16 }
0x1c83   :  { %9542 = vmatpush1.bf16.msra.mxu0 %v14411_v48  ;;  %9597 = vmatpush1.bf16.msra.mxu1 %v14207_v60  ;;  %v15080_v48 = vld [vmem:[#allocation20_spill] sm:$0xff] }
0x1c84   :  { %9543 = vmatprep.subr.bf16.mxu0 %v14998_v24  ;;  %9628 = vmatprep.mubr.bf16.mxu1 %v14998_v24 }
0x1c85   :  { %9642 = vmatprep.subr.bf16.mxu1 %v14998_v24 }
0x1c87   :  { %9544 = vmatpush1.bf16.msra.mxu0 %v14425_v44  ;;  %v15081_v44 = vld [vmem:[#allocation22_spill] sm:$0xff] }
0x1c88   :  { %9545 = vmatprep.subr.bf16.mxu0 %v14998_v24 }
0x1c8a   :  { %10995 = vmatmul.mubr.msk.bf16.vlgmr.msra.gmra.mrb[248].mxu1 %vm3249_vm8, %v9591_v54 }
0x1c8b   :  { %9546 = vmatpush1.bf16.msra.mxu0 %v14439_v51  ;;  %9643 = vmatpush1.bf16.msra.mxu1 %v14335_v57  ;;  %v15075_v57 = vld [vmem:[#allocation13_spill] sm:$0xff]  ;;  %v15083_v51 = vld [vmem:[#allocation15_spill] sm:$0xff] }
0x1c8c   :  { %9547 = vmatprep.subr.bf16.mxu0 %v14998_v24  ;;  %9644 = vmatprep.subr.bf16.mxu1 %v14998_v24 }
0x1c8f   :  { %9548 = vmatpush1.bf16.msra.mxu0 %v14453_v28  ;;  %9645 = vmatpush1.bf16.msra.mxu1 %v14346_v29  ;;  %v15076_v29 = vld [vmem:[#allocation18_spill] sm:$0xff]  ;;  %v15084_v28 = vld [vmem:[#allocation23_spill] sm:$0xff] }
0x1c90   :  { %9549 = vmatprep.subr.bf16.mxu0 %v14998_v24  ;;  %9646 = vmatprep.subr.bf16.mxu1 %v14998_v24 }
0x1c93   :  { %9550 = vmatpush1.bf16.msra.mxu0 %v14467_v43  ;;  %9647 = vmatpush1.bf16.msra.mxu1 %v14361_v13  ;;  %v15078_v13 = vld [vmem:[#allocation19_spill] sm:$0xff]  ;;  %v15085_v43 = vld [vmem:[#allocation16_spill] sm:$0xff] }
0x1c94   :  { %9551 = vmatprep.subr.bf16.mxu0 %v14998_v24  ;;  %9648 = vmatprep.subr.bf16.mxu1 %v14998_v24 }
0x1c97   :  { %9552 = vmatpush1.bf16.msra.mxu0 %v14481_v33  ;;  %9649 = vmatpush1.bf16.msra.mxu1 %v15075_v57  ;;  %v15086_v33 = vld [vmem:[#allocation24_spill] sm:$0xff] }
0x1c98   :  { %9553 = vmatprep.subr.bf16.mxu0 %v14998_v24  ;;  %9650 = vmatprep.subr.bf16.mxu1 %v14998_v24 }
0x1c9b   :  { %9554 = vmatpush1.bf16.msra.mxu0 %v15076_v29  ;;  %9651 = vmatpush1.bf16.msra.mxu1 %v15077_v63 }
0x1c9c   :  { %9555 = vmatprep.subr.bf16.mxu0 %v14998_v24  ;;  %9652 = vmatprep.subr.bf16.mxu1 %v14998_v24 }
0x1c9f   :  { %9556 = vmatpush1.bf16.msra.mxu0 %v15078_v13  ;;  %9653 = vmatpush1.bf16.msra.mxu1 %v15079_v25 }
0x1ca0   :  { %9557 = vmatprep.subr.bf16.mxu0 %v14998_v24  ;;  %9654 = vmatprep.subr.bf16.mxu1 %v14998_v24 }
0x1ca3   :  { %9558 = vmatpush1.bf16.msra.mxu0 %v15080_v48  ;;  %9655 = vmatpush1.bf16.msra.mxu1 %v15081_v44 }
0x1ca4   :  { %9559 = vmatprep.subr.bf16.mxu0 %v14998_v24  ;;  %9656 = vmatprep.subr.bf16.mxu1 %v14998_v24 }
0x1ca7   :  { %9560 = vmatpush1.bf16.msra.mxu0 %v15082_v14  ;;  %9657 = vmatpush1.bf16.msra.mxu1 %v15083_v51  ;;  %v12342_v14 = vld [vmem:[%s14901_s10 + $0x28] sm:$0xff]   ;;  %v12343_v51 = vld [vmem:[%s14901_s10 + $0x30] sm:$0xff]  }
0x1ca8   :  { %9705 = vmatprep.subr.bf16.mxu0 %v14204_v26  ;;  %9658 = vmatprep.subr.bf16.mxu1 %v14998_v24  ;;  %v15089_v26 = vld [vmem:[#allocation27_spill] sm:$0xff] }
0x1cab   :  { %9659 = vmatpush1.bf16.msra.mxu1 %v15084_v28  ;;  %v12344_v28 = vld [vmem:[%s14901_s10 + $0x38] sm:$0xff]  }
0x1cac   :  { %9660 = vmatprep.subr.bf16.mxu1 %v14998_v24 }
0x1caf   :  { %9661 = vmatpush1.bf16.msra.mxu1 %v15085_v43 }
0x1cb0   :  { %9662 = vmatprep.subr.bf16.mxu1 %v14998_v24 }
0x1cb3   :  { %9663 = vmatpush1.bf16.msra.mxu1 %v15086_v33 }
0x1cb4   :  { %9664 = vmatprep.subr.bf16.mxu1 %v14998_v24 }
0x1cb7   :  { %9665 = vmatpush1.bf16.msra.mxu1 %v15087_v55 }
0x1cb8   :  { %9666 = vmatprep.subr.bf16.mxu1 %v14998_v24 }
0x1cbb   :  { %9667 = vmatpush1.bf16.msra.mxu1 %v15088_v6 }
0x1cbc   :  { %9668 = vmatprep.subr.bf16.mxu1 %v14998_v24 }
0x1cbf   :  { %9669 = vmatpush1.bf16.msra.mxu1 %v15089_v26 }
0x1d45   :  { %v9459_v8 = vpop.f32.mrb[188].mxu0 }
0x1d46   :  { %v9461_v9 = vpop.f32.mrb[189].mxu0 }
0x1d47   :  { %v9462_v11 = vpop.f32.mrb[190].mxu0 }
0x1d48   :  { %v9463_v30 = vpop.f32.mrb[191].mxu0 }
0x1d49   :  { %v8150_v30 = vld [vmem:[%s14902_s11] sm:$0x1] }
0x1d4d   :  { %v9416_v0 = vpop.f32.mrb[240].mxu1 }
0x1d4e   :  { %v9460_v20 = vadd.f32 %v9459_v8, %v9416_v0  ;;  %v9418_v18 = vpop.f32.mrb[241].mxu1 }
0x1d4f   :  { %v9419_v2 = vpop.f32.mrb[242].mxu1 }
0x1d50   :  { %v9420_v32 = vpop.f32.mrb[243].mxu1 }
0x1d55   :  { %v9521_v62 = vpop.f32.mrb[244].mxu1 }
0x1d56   :  { %v9523_v41 = vpop.f32.mrb[245].mxu1  ;;  %v9528_v31 = vpack.c.bf16 %v9521_v62, %v9521_v62 }
0x1d57   :  { %v9529_v5 = vpack.c.bf16 %v9523_v41, %v9523_v41  ;;  %v9525_v59 = vpop.f32.mrb[246].mxu1 }
0x1d58   :  { %v9526_v52 = vpop.f32.mrb[247].mxu1 }
0x1d59   :  { %10992 = vmatprep.mubr.msk.bf16.mxu0 %vm3494_vm9, %v9529_v5 }
0x1d5a   :  { %9566 = vmatmul.mubr.bf16.vlgmr.msra.gmra.mrb[192].mxu0 %v9528_v31 }
0x1d5b   :  { %9706 = vmatpush1.bf16.msra.mxu0 %v14207_v60  ;;  %9737 = vmatprep.mubr.bf16.mxu0 %v14998_v24  ;;  %v15092_v60 = vld [vmem:[#allocation29_spill] sm:$0xff] }
0x1d5c   :  { %9751 = vmatprep.subr.bf16.mxu0 %v14998_v24 }
0x1d5d   :  { %v9630_v7 = vpop.f32.mrb[248].mxu1 }
0x1d5e   :  { %v9637_v58 = vpack.c.bf16 %v9630_v7, %v9630_v7  ;;  %v9632_v21 = vpop.f32.mrb[249].mxu1 }
0x1d5f   :  { %v9638_v46 = vpack.c.bf16 %v9632_v21, %v9632_v21  ;;  %v9634_v49 = vpop.f32.mrb[250].mxu1 }
0x1d60   :  { %v9635_v45 = vpop.f32.mrb[251].mxu1 }
0x1d61   :  { %10996 = vmatprep.mubr.msk.bf16.mxu1 %vm3494_vm9, %v9638_v46 }
0x1d62   :  { %9675 = vmatmul.mubr.bf16.vlgmr.msra.gmra.mrb[252].mxu1 %v9637_v58  ;;  %10999 = vmatmul.mubr.msk.bf16.vlgmr.msra.gmra.mrb[196].mxu0 %vm3249_vm8, %v9700_v3 }
0x1d63   :  { %9752 = vmatpush1.bf16.msra.mxu0 %v15090_v56 }
0x1d64   :  { %9753 = vmatprep.subr.bf16.mxu0 %v14998_v24 }
0x1d67   :  { %9754 = vmatpush1.bf16.msra.mxu0 %v15091_v10 }
0x1d68   :  { %9755 = vmatprep.subr.bf16.mxu0 %v14998_v24 }
0x1d6b   :  { %9756 = vmatpush1.bf16.msra.mxu0 %v15092_v60 }
0x1d6c   :  { %9757 = vmatprep.subr.bf16.mxu0 %v14998_v24 }
0x1d6f   :  { %9758 = vmatpush1.bf16.msra.mxu0 %v15093_v50 }
0x1d70   :  { %9759 = vmatprep.subr.bf16.mxu0 %v14998_v24 }
0x1d73   :  { %9760 = vmatpush1.bf16.msra.mxu0 %v15094_v23 }
0x1d74   :  { %9761 = vmatprep.subr.bf16.mxu0 %v14998_v24 }
0x1d77   :  { %9762 = vmatpush1.bf16.msra.mxu0 %v15095_v15 }
0x1d78   :  { %9763 = vmatprep.subr.bf16.mxu0 %v14998_v24 }
0x1d7b   :  { %9764 = vmatpush1.bf16.msra.mxu0 %v15096_v38 }
0x1d7c   :  { %9765 = vmatprep.subr.bf16.mxu0 %v14998_v24 }
0x1d7f   :  { %9766 = vmatpush1.bf16.msra.mxu0 %v15097_v27 }
0x1d80   :  { %9767 = vmatprep.subr.bf16.mxu0 %v14998_v24 }
0x1d83   :  { %9768 = vmatpush1.bf16.msra.mxu0 %v15098_v17 }
0x1d84   :  { %9769 = vmatprep.subr.bf16.mxu0 %v14998_v24 }
0x1d87   :  { %9770 = vmatpush1.bf16.msra.mxu0 %v15099_v35 }
0x1d88   :  { %9771 = vmatprep.subr.bf16.mxu0 %v14998_v24 }
0x1d8b   :  { %9772 = vmatpush1.bf16.msra.mxu0 %v15100_v34 }
0x1d8c   :  { %9773 = vmatprep.subr.bf16.mxu0 %v14998_v24 }
0x1d8f   :  { %9774 = vmatpush1.bf16.msra.mxu0 %v15101_v37 }
0x1d90   :  { %9775 = vmatprep.subr.bf16.mxu0 %v14998_v24 }
0x1d93   :  { %9776 = vmatpush1.bf16.msra.mxu0 %v15102_v22 }
0x1d94   :  { %9777 = vmatprep.subr.bf16.mxu0 %v14998_v24  ;;  %v12341_v24 = vld [vmem:[%s14901_s10 + $0x20] sm:$0xff]   ;;  %s12369_s10 = scalar_lea.vmem %s9879_s30, 32 }
0x1d95   :  { %p12370_p8 = scmp.ne.s32.totalorder %s9879_s30, %s12369_s10  ;;  %p12375_p10 = scmp.lt.s32.totalorder %s12369_s10, %s12369_s10 }
0x1d97   :  { %9778 = vmatpush1.bf16.msra.mxu0 %v14660_v47  ;;  %p12376_p11 = por %p12375_p10, %p12374_p9 }
0x1d98   :  { %11480 = vmatprep.subr.bf16.mxu0 %v15103_v42 }
0x1d99   :  { %p12377_p12 = pnand %p12376_p11, %p12370_p8 }
0x1e2d   :  { %v9567_v4 = vpop.f32.mrb[192].mxu0 }
0x1e2e   :  { %v9573_v53 = vadd.f32 %v9567_v4, %v9460_v20  ;;  %v9569_v39 = vpop.f32.mrb[193].mxu0 }
0x1e2f   :  { %v9570_v40 = vpop.f32.mrb[194].mxu0 }
0x1e30   :  { %v9571_v16 = vpop.f32.mrb[195].mxu0 }
0x1e35   :  { %v9676_v12 = vpop.f32.mrb[252].mxu1  ;;  %v9739_v61 = vpop.f32.mrb[196].mxu0 }
0x1e36   :  { %v9682_v54 = vadd.f32 %v9676_v12, %v9573_v53  ;;  %v9741_v57 = vpop.f32.mrb[197].mxu0  ;;  %v9678_v29 = vpop.f32.mrb[253].mxu1  ;;  %v9746_v47 = vpack.c.bf16 %v9739_v61, %v9739_v61 }
0x1e37   :  { %v9747_v63 = vpack.c.bf16 %v9741_v57, %v9741_v57  ;;  %v9743_v13 = vpop.f32.mrb[198].mxu0  ;;  %v9679_v25 = vpop.f32.mrb[254].mxu1 }
0x1e38   :  { %v9744_v48 = vpop.f32.mrb[199].mxu0  ;;  %v9680_v44 = vpop.f32.mrb[255].mxu1 }
0x1e39   :  { %11000 = vmatprep.mubr.msk.bf16.mxu0 %vm3494_vm9, %v9747_v63 }
0x1e3a   :  { %9784 = vmatmul.mubr.bf16.vlgmr.msra.gmra.mrb[200].mxu0 %v9746_v47 }
0x1e3b   :  { %11481 = vmatpush3.bf16.msra.mxu0 %v12341_v24  ;;  %11488 = vmatprep.mubr.msk.bf16.mxu0 %vm12401_vm5, %v15103_v42 }
0x1e3c   :  { %11482 = vmatprep.subr.bf16.mxu0 %v15103_v42 }
0x1e3f   :  { %11483 = vmatpush3.bf16.msra.mxu0 %v12342_v14 }
0x1e40   :  { %11484 = vmatprep.subr.bf16.mxu0 %v15103_v42 }
0x1e43   :  { %11485 = vmatpush3.bf16.msra.mxu0 %v12343_v51 }
0x1e44   :  { %11486 = vmatprep.subr.bf16.mxu0 %v15103_v42 }
0x1e47   :  { %11487 = vmatpush3.bf16.msra.mxu0 %v12344_v28 }
0x1f0d   :  { %v9785_v43 = vpop.f32.mrb[200].mxu0 }
0x1f0e   :  { %v9791_v33 = vadd.f32 %v9785_v43, %v9682_v54  ;;  %v9787_v55 = vpop.f32.mrb[201].mxu0 }
0x1f0f   :  { %v9788_v6 = vpop.f32.mrb[202].mxu0 }
0x1f10   :  { %v9792_v26 = vadd.f32 %v9791_v33, %v14697_v36  ;;  %v9789_v8 = vpop.f32.mrb[203].mxu0 }
0x1f12   :  { %v9793_v9 = vmax.f32 %v9792_v26, 0.0 }
0x1f14   :  { %v9794_v11 = vpack.c.bf16 %v9793_v9, %v9793_v9 }
0x1f16   :  { %11489 = vmatmul.mubr.msk.bf16.vlgmr.msra.gmra.mrb[176].mxu0 %vm4316_vm10, %v9794_v11 }
0x1fe9   :  { %v9864_v0 = vpop.f32.mrb[176].mxu0 }
0x1fea   :  { %v11497_v20 = vadd.f32 %v9864_v0, %v8150_v30  ;;  %v11490_v18 = vpop.f32.mrb[177].mxu0 }
0x1feb   :  { %v9867_v2 = vpop.f32.mrb[178].mxu0 }
0x1fec   :  { %v11491_v32 = vpop.f32.mrb[179].mxu0  ;;  %9871 = vst.msk [vmem:[#allocation5 + $0x1] sm:$0x1] %vm4983_vm11, %v11497_v20 }
0x1fed   :  { %12380 = shalt.err (!%p12377_p12)
}
0x1fee   :  { %s12381_s11 = scalar_lea.hbm %s14903_s12, 32 }
0x1fef   :  { %p12382_p13 = scmp.ne.s32.totalorder %s14903_s12, %s12381_s11  ;;  %p12385_p0 = scmp.lt.u32.totalorder %s12381_s11, %s14903_s12 }
0x1ff1   :  { %p12387_p1 = pnand %p12385_p0, %p12382_p13 }
0x1ff3   :  { %12390 = shalt.err (!%p12387_p1)
}
0x1ff4   :  { %9881 = dma.vmem_to_hbm [thread:$0]  %s9879_s30, 32, %s14903_s12, [#allocation4]  }
0x1ff5   :  { %12393 = dma.done.wait [#allocation4], 32  }
0x1ff6   :  { %12394 = vsyncadd [#allocation4], 4294967264 }
0x1ff7   :  { %9885 = vsyncpa [#allocation3], 1 }
0x1ff8   :  { %9886 = vsyncpa [#allocation4], 1 }

</bundles_post_ra>
